<compile_context>
chip_gen: v6e
topology: v6e:2x2x1
jax: 0.10.0
libtpu: 0.0.40
codegen_flags: <defaults>
</compile_context>

<pallas_src>
import functools
import math

import jax
import jax.numpy as jnp
from jax.experimental import pallas as pl
from jax.experimental.pallas import tpu as pltpu

BN_EPS = 1e-5
LANE = 128


def _round_up(v, m):
    return ((v + m - 1) // m) * m


def _norm2(v):
    return v if isinstance(v, (tuple, list)) else (v, v)


def _pad_channels(x):
    c = x.shape[-1]
    cp = _round_up(c, LANE)
    if cp == c:
        return x
    return jnp.pad(x, ((0, 0), (0, 0), (0, 0), (0, cp - c)))


# --------------------------------------------------------------------------
# Fused conv + BN(bias) + residual + activation Pallas kernel.
#
# Inputs (per grid step (n, j)):
#   x_ref : (P*Rp, Cin)  bf16   flattened phase-major padded input (one image)
#   w_ref : (T,  Cin, tn) bf16  per-tap weights (BN scale already folded in)
#   b_ref : (1,  tn)     f32    folded BN bias
#   r_ref : (Mout, tn)   bf16   optional residual (already in flat-row layout)
#   o_ref : (Mout, tn)   bf16
# --------------------------------------------------------------------------
def _conv_kernel(*refs, tap_offsets, m_out, act, has_res):
    if has_res:
        x_ref, w_ref, b_ref, r_ref, o_ref = refs
    else:
        x_ref, w_ref, b_ref, o_ref = refs
        r_ref = None
    tn = o_ref.shape[-1]
    acc = jnp.zeros((m_out, tn), jnp.float32)
    # Static unrolled tap loop: each tap is one contiguous row-window matmul.
    for t, off in enumerate(tap_offsets):
        acc = acc + jnp.dot(x_ref[off:off + m_out, :], w_ref[t],
                            preferred_element_type=jnp.float32)
    y = acc + b_ref[...]                       # (Mout, tn) + (1, tn)
    if r_ref is not None:
        y = y + r_ref[...].astype(jnp.float32)
    if act == "relu":
        y = jnp.maximum(y, 0.0)
    elif act == "tanh":
        y = jnp.tanh(y)
    o_ref[...] = y.astype(o_ref.dtype)


def conv_bn_act(x, w, bn, stride, pad, act="relu", residual=None):
    """Fused Conv2d + BatchNorm(eval) + (residual) + activation.

    x: (N, H, W, Cp_in) NHWC, channels already padded to a multiple of 128.
    w: (kh, kw, cin_true, cout_true) float32.
    residual (optional): (N, OH, OW, Cout_p) same padded channel count as out.
    Returns (N, OH, OW, Cout_p) bfloat16, Cout_p = round_up(cout, 128).
    """
    N, H, W, Cp_in = x.shape
    kh, kw, cin, cout = w.shape
    sh, sw = _norm2(stride)
    ph, pw = _norm2(pad)

    # ---- fold BN (inference) into weights; pad channels lane-dense --------
    if bn is None:
        scale = jnp.ones((cout,), jnp.float32)
        bias = jnp.zeros((cout,), jnp.float32)
    else:
        scale = bn["gamma"] / jnp.sqrt(bn["var"] + BN_EPS)
        bias = bn["beta"] - bn["mean"] * scale
    Cout_p = _round_up(cout, LANE)
    wf = w.astype(jnp.float32) * scale[None, None, None, :]
    wf = jnp.pad(wf, ((0, 0), (0, 0), (0, Cp_in - cin), (0, Cout_p - cout)))
    wt = wf.reshape(kh * kw, Cp_in, Cout_p).astype(jnp.bfloat16)
    bias_p = jnp.pad(bias, (0, Cout_p - cout)).reshape(1, Cout_p)
    bias_p = bias_p.astype(jnp.float32)

    # ---- geometry: phase decomposition + flattened overlapping windows ----
    OH = (H + 2 * ph - kh) // sh + 1
    OW = (W + 2 * pw - kw) // sw + 1
    Ph = (kh - 1) // sh                       # extra rows needed per phase
    Pw = (kw - 1) // sw                       # extra cols -> garbage columns
    We = OW + Pw                              # computed ("wide") output width
    Mrows = OH * We
    Mout = _round_up(Mrows, 8)
    Rp = _round_up(Ph * We + Pw + Mout, 8)    # rows reserved per phase slab
    phases = sorted(set((i % sh, j % sw) for i in range(kh) for j in range(kw)))
    slot = {p: s for s, p in enumerate(phases)}
    P = len(phases)
    tap_offsets = tuple(
        slot[(i % sh, j % sw)] * Rp + (i // sh) * We + (j // sw)
        for i in range(kh) for j in range(kw))

    Hp_need = max(H + 2 * ph, sh * (OH + Ph))
    Wp_need = max(W + 2 * pw, sw * (OW + Pw))
    xpad = jnp.pad(x, ((0, 0), (ph, Hp_need - H - ph),
                       (pw, Wp_need - W - pw), (0, 0)))
    parts = []
    for (pi, pj) in phases:
        ph_arr = xpad[:, pi:pi + sh * (OH + Ph):sh,
                      pj:pj + sw * (OW + Pw):sw, :]          # (N, OH+Ph, We, C)
        flat = ph_arr.reshape(N, (OH + Ph) * We, Cp_in)
        parts.append(jnp.pad(flat, ((0, 0), (0, Rp - (OH + Ph) * We), (0, 0))))
    xflat = jnp.concatenate(parts, axis=1).astype(jnp.bfloat16)  # (N, P*Rp, C)

    # ---- pallas call -------------------------------------------------------
    tn = 256 if (Cout_p % 256 == 0) else 128   # MXU-width tiles on v6e/v7x
    n_ct = Cout_p // tn
    T = kh * kw
    PRp = P * Rp

    in_specs = [
        pl.BlockSpec((None, PRp, Cp_in), lambda n, j: (n, 0, 0)),
        pl.BlockSpec((T, Cp_in, tn), lambda n, j: (0, 0, j)),
        pl.BlockSpec((1, tn), lambda n, j: (0, j)),
    ]
    args = [xflat, wt, bias_p]
    has_res = residual is not None
    if has_res:
        r = jnp.pad(residual, ((0, 0), (0, 0), (0, We - OW), (0, 0)))
        r = r.reshape(N, Mrows, Cout_p)
        r = jnp.pad(r, ((0, 0), (0, Mout - Mrows), (0, 0))).astype(jnp.bfloat16)
        args.append(r)
        in_specs.append(pl.BlockSpec((None, Mout, tn), lambda n, j: (n, 0, j)))

    kernel = functools.partial(_conv_kernel, tap_offsets=tap_offsets,
                               m_out=Mout, act=act, has_res=has_res)
    y = pl.pallas_call(
        kernel,
        out_shape=jax.ShapeDtypeStruct((N, Mout, Cout_p), jnp.bfloat16),
        grid=(N, n_ct),
        in_specs=in_specs,
        out_specs=pl.BlockSpec((None, Mout, tn), lambda n, j: (n, 0, j)),
        compiler_params=pltpu.CompilerParams(
            dimension_semantics=("parallel", "parallel"),
            vmem_limit_bytes=32 * 1024 * 1024),
    )(*args)

    # drop garbage columns / pad rows (cheap plain-JAX slice+reshape)
    y = y[:, :Mrows, :].reshape(N, OH, We, Cout_p)[:, :, :OW, :]
    return y


# --------------------------------------------------------------------------
# Parameter init (deterministic, mirrors the PyTorch __init__ init scheme)
# --------------------------------------------------------------------------
def init_conv(key, kh, kw, cin, cout):
    n = kh * kw * cout
    std = math.sqrt(2.0 / n)
    return jax.random.normal(key, (kh, kw, cin, cout), jnp.float32) * std


def init_bn(cout):
    return {
        "gamma": jnp.ones((cout,), jnp.float32),
        "beta": jnp.zeros((cout,), jnp.float32),
        "mean": jnp.zeros((cout,), jnp.float32),
        "var": jnp.ones((cout,), jnp.float32),
    }


def init_basic_block(key, cin, cout, stride):
    k1, k2, k3 = jax.random.split(key, 3)
    sh, sw = _norm2(stride)
    p = {
        "conv1": init_conv(k1, 3, 3, cin, cout),
        "bn1": init_bn(cout),
        "conv2": init_conv(k2, 3, 3, cout, cout),
        "bn2": init_bn(cout),
    }
    if sh != 1 or sw != 1 or cin != cout:
        p["down_conv"] = init_conv(k3, 1, 1, cin, cout)
        p["down_bn"] = init_bn(cout)
    return p


def init_reslayer(key, cin, cout, blocks, stride):
    keys = jax.random.split(key, blocks)
    ps = [init_basic_block(keys[0], cin, cout, stride)]
    for i in range(1, blocks):
        ps.append(init_basic_block(keys[i], cout, cout, 1))
    return ps


def init_lens(key, c):
    return {"conv": init_conv(key, 3, 3, c, 2)}


def init_dan_resnetv2(key, layers, inpch, oupch, expf, compress_layer=True):
    ks = jax.random.split(key, 10)
    c32, c64, c128, c256, c512 = (int(32 * expf), int(64 * expf),
                                  int(128 * expf), int(256 * expf),
                                  int(512 * expf))
    params = {
        "conv1": init_conv(ks[0], 3, 3, inpch, c32),
        "bn1": init_bn(c32),
        "layer1": init_reslayer(ks[1], c32, c64, layers[0], 1),
        "lens": init_lens(ks[2], c64),
        "layer2": init_reslayer(ks[3], c64, c128, layers[1], 1),
        "layer3": init_reslayer(ks[4], c128, c256, layers[2], 1),
        "layer4": init_reslayer(ks[5], c256, c512, layers[3], 1),
    }
    if compress_layer:
        params["layer5"] = init_reslayer(ks[6], c512, c512, layers[4], 1)
        params["conv6"] = init_conv(ks[7], 3, 1, c512, oupch)
        params["bn6"] = init_bn(oupch)
    else:
        params["layer5"] = init_reslayer(ks[6], c512, oupch, layers[4], 1)
    return params


# --------------------------------------------------------------------------
# Module forward (NHWC / bf16 / lane-padded channels internally)
# --------------------------------------------------------------------------
def basic_block_fwd(x, p, stride):
    out = conv_bn_act(x, p["conv1"], p["bn1"], stride, 1, act="relu")
    if "down_conv" in p:
        identity = conv_bn_act(x, p["down_conv"], p["down_bn"], stride, 0,
                               act="none")
    else:
        identity = x
    # second conv: BN + residual add + ReLU fused in the Pallas kernel
    return conv_bn_act(out, p["conv2"], p["bn2"], 1, 1, act="relu",
                       residual=identity)


def reslayer_fwd(x, ps, stride):
    x = basic_block_fwd(x, ps[0], stride)
    for p in ps[1:]:
        x = basic_block_fwd(x, p, 1)
    return x, []


def grid_sample_bilinear(x, grid):
    """x: (N,H,W,C), grid: (N,H,W,2) in [-1,1] (x,y).  Border padding."""
    # TODO(synk): replace the XLA gather with a one-hot-matmul / DMA-gather
    # Pallas kernel for large H*W; at these spatial sizes it is negligible.
    N, H, W, C = x.shape
    gx = (grid[..., 0] + 1.0) * 0.5 * (W - 1)
    gy = (grid[..., 1] + 1.0) * 0.5 * (H - 1)
    x0 = jnp.floor(gx).astype(jnp.int32)
    y0 = jnp.floor(gy).astype(jnp.int32)
    x1, y1 = x0 + 1, y0 + 1
    wx = (gx - x0)[..., None]
    wy = (gy - y0)[..., None]
    x0c, x1c = jnp.clip(x0, 0, W - 1), jnp.clip(x1, 0, W - 1)
    y0c, y1c = jnp.clip(y0, 0, H - 1), jnp.clip(y1, 0, H - 1)
    bidx = jnp.arange(N)[:, None, None]

    def gather(yy, xx):
        return x[bidx, yy, xx, :].astype(jnp.float32)

    v00, v01 = gather(y0c, x0c), gather(y0c, x1c)
    v10, v11 = gather(y1c, x0c), gather(y1c, x1c)
    top = v00 * (1 - wx) + v01 * wx
    bot = v10 * (1 - wx) + v11 * wx
    return top * (1 - wy) + bot * wy


def lens_fwd(x, p, hardness):
    # offset field: 3x3 conv -> tanh (fused in kernel) -> scaled by 1/hardness
    off_full = conv_bn_act(x, p["conv"], None, 1, 1, act="tanh")
    off = off_full[..., :2].astype(jnp.float32) / hardness
    N, H, W, _ = off.shape
    ys = jnp.linspace(-1.0, 1.0, H)
    xs = jnp.linspace(-1.0, 1.0, W)
    gy, gx = jnp.meshgrid(ys, xs, indexing="ij")
    base = jnp.stack([gx, gy], axis=-1)[None]            # (1,H,W,2)
    grid = base + off
    y = grid_sample_bilinear(x, grid).astype(jnp.bfloat16)
    return y, grid


def dan_resnetv2_forward(params, x_nchw, strides, hardness,
                         compress_layer=True):
    x = jnp.transpose(x_nchw, (0, 2, 3, 1)).astype(jnp.bfloat16)   # NCHW->NHWC
    x = _pad_channels(x)
    out_features = []
    grids = []
    tmp_shape = x.shape[1:3]

    def emit(feat, c_true):
        f = feat[..., :c_true].astype(jnp.float32)
        out_features.append(jnp.transpose(f, (0, 3, 1, 2)))        # NHWC->NCHW

    # pre_layers
    x = conv_bn_act(x, params["conv1"], params["bn1"], strides[0], 1, "relu")
    x, _ = reslayer_fwd(x, params["layer1"], strides[1])
    x, lens = lens_fwd(x, params["lens"], hardness)
    c_true = params["layer1"][-1]["conv2"].shape[-1]
    if x.shape[1:3] != tmp_shape:
        tmp_shape = x.shape[1:3]
        emit(x, c_true)
    grids.append(lens)

    x, grid = reslayer_fwd(x, params["layer2"], strides[2])
    c_true = params["layer2"][-1]["conv2"].shape[-1]
    if x.shape[1:3] != tmp_shape:
        tmp_shape = x.shape[1:3]
        emit(x, c_true)
    x, grid = reslayer_fwd(x, params["layer3"], strides[3])
    c_true = params["layer3"][-1]["conv2"].shape[-1]
    grids += grid
    if x.shape[1:3] != tmp_shape:
        tmp_shape = x.shape[1:3]
        emit(x, c_true)
    x, grid = reslayer_fwd(x, params["layer4"], strides[4])
    c_true = params["layer4"][-1]["conv2"].shape[-1]
    grids += grid
    if x.shape[1:3] != tmp_shape:
        tmp_shape = x.shape[1:3]
        emit(x, c_true)
    x, grid = reslayer_fwd(x, params["layer5"], strides[5])
    c_true = params["layer5"][-1]["conv2"].shape[-1]
    grids += grid
    if not compress_layer:
        emit(x, c_true)
    else:
        if x.shape[1:3] != tmp_shape:
            tmp_shape = x.shape[1:3]
            emit(x, c_true)
        # layer6: Conv2d(k=(3,1), pad=(0,0), stride=(1,1)) + BN + ReLU
        x = conv_bn_act(x, params["conv6"], params["bn6"], (1, 1), (0, 0),
                        "relu")
        emit(x, params["conv6"].shape[-1])

    return out_features, grids


# --------------------------------------------------------------------------
if __name__ == "__main__":
    key = jax.random.PRNGKey(0)
    kp, kx = jax.random.split(key)

    # small synthetic config (consistent with the module's constructor)
    layers = [1, 1, 1, 1, 1]
    strides = [1, (2, 2), (2, 2), (1, 1), (1, 1), (1, 1)]
    inpch, oupch, expf, hardness = 1, 64, 0.25, 2.0

    params = init_dan_resnetv2(kp, layers, inpch, oupch, expf,
                               compress_layer=True)
    x = jax.random.normal(kx, (2, inpch, 16, 16), jnp.float32)

    fwd = jax.jit(functools.partial(dan_resnetv2_forward, strides=strides,
                                    hardness=hardness, compress_layer=True))
    out_features, grids = fwd(params, x)
    jax.block_until_ready((out_features, grids))

    assert len(out_features) == 3 and len(grids) == 1
    assert out_features[-1].shape == (2, oupch, 2, 4)
    assert all(bool(jnp.all(jnp.isfinite(f))) for f in out_features)
    print("KERNEL_OK")
</pallas_src>

<mosaic_0001>
module attributes {stable_mosaic.version = 11 : i64} {
  func.func @_conv_kernel(%arg0: i32, %arg1: i32, %arg2: memref<1x328x128xbf16, #tpu.memory_space<vmem>>, %arg3: memref<9x128x128xbf16, #tpu.memory_space<vmem>>, %arg4: memref<1x128xf32, #tpu.memory_space<vmem>>, %arg5: memref<1x288x128xbf16, #tpu.memory_space<vmem>>) attributes {dimension_semantics = [#tpu.dimension_semantics<parallel>, #tpu.dimension_semantics<parallel>], iteration_bounds = array<i64: 2, 1>, scalar_prefetch = 0 : i64, scratch_operands = 0 : i64, tpu.core_type = #tpu.core_type<tc>, window_params = [{transform_indices = @transform_0, window_bounds = array<i64: 1, 328, 128>}, {transform_indices = @transform_1, window_bounds = array<i64: 9, 128, 128>}, {transform_indices = @transform_2, window_bounds = array<i64: 1, 128>}, {transform_indices = @transform_3, window_bounds = array<i64: 1, 288, 128>}]} {
    %cst = arith.constant 0.000000e+00 : f32
    %0 = vector.broadcast %cst : f32 to vector<288x128xf32>
    %c0 = arith.constant 0 : index
    %c0_0 = arith.constant 0 : index
    %c0_1 = arith.constant 0 : index
    %1 = vector.load %arg2[%c0, %c0_0, %c0_1] : memref<1x328x128xbf16, #tpu.memory_space<vmem>>, vector<1x288x128xbf16>
    %2 = vector.shape_cast %1 : vector<1x288x128xbf16> to vector<288x128xbf16>
    %c0_2 = arith.constant 0 : index
    %c0_3 = arith.constant 0 : index
    %c0_4 = arith.constant 0 : index
    %3 = vector.load %arg3[%c0_2, %c0_3, %c0_4] : memref<9x128x128xbf16, #tpu.memory_space<vmem>>, vector<1x128x128xbf16>
    %4 = vector.shape_cast %3 : vector<1x128x128xbf16> to vector<128x128xbf16>
    %cst_5 = arith.constant dense<0.000000e+00> : vector<288x128xf32>
    %5 = tpu.matmul %2, %4, %cst_5 {dimension_numbers = #tpu.dot_dimension_numbers<[1], [0], [0], [1], [0, 0, 1, 1], [], []>} : vector<288x128xbf16>, vector<128x128xbf16>, vector<288x128xf32> -> vector<288x128xf32>
    %6 = arith.addf %0, %5 : vector<288x128xf32>
    %c0_6 = arith.constant 0 : index
    %c1 = arith.constant 1 : index
    %c0_7 = arith.constant 0 : index
    %7 = vector.load %arg2[%c0_6, %c1, %c0_7] : memref<1x328x128xbf16, #tpu.memory_space<vmem>>, vector<1x288x128xbf16>
    %8 = vector.shape_cast %7 : vector<1x288x128xbf16> to vector<288x128xbf16>
    %c1_8 = arith.constant 1 : index
    %c0_9 = arith.constant 0 : index
    %c0_10 = arith.constant 0 : index
    %9 = vector.load %arg3[%c1_8, %c0_9, %c0_10] : memref<9x128x128xbf16, #tpu.memory_space<vmem>>, vector<1x128x128xbf16>
    %10 = vector.shape_cast %9 : vector<1x128x128xbf16> to vector<128x128xbf16>
    %cst_11 = arith.constant dense<0.000000e+00> : vector<288x128xf32>
    %11 = tpu.matmul %8, %10, %cst_11 {dimension_numbers = #tpu.dot_dimension_numbers<[1], [0], [0], [1], [0, 0, 1, 1], [], []>} : vector<288x128xbf16>, vector<128x128xbf16>, vector<288x128xf32> -> vector<288x128xf32>
    %12 = arith.addf %6, %11 : vector<288x128xf32>
    %c0_12 = arith.constant 0 : index
    %c2 = arith.constant 2 : index
    %c0_13 = arith.constant 0 : index
    %13 = vector.load %arg2[%c0_12, %c2, %c0_13] : memref<1x328x128xbf16, #tpu.memory_space<vmem>>, vector<1x288x128xbf16>
    %14 = vector.shape_cast %13 : vector<1x288x128xbf16> to vector<288x128xbf16>
    %c2_14 = arith.constant 2 : index
    %c0_15 = arith.constant 0 : index
    %c0_16 = arith.constant 0 : index
    %15 = vector.load %arg3[%c2_14, %c0_15, %c0_16] : memref<9x128x128xbf16, #tpu.memory_space<vmem>>, vector<1x128x128xbf16>
    %16 = vector.shape_cast %15 : vector<1x128x128xbf16> to vector<128x128xbf16>
    %cst_17 = arith.constant dense<0.000000e+00> : vector<288x128xf32>
    %17 = tpu.matmul %14, %16, %cst_17 {dimension_numbers = #tpu.dot_dimension_numbers<[1], [0], [0], [1], [0, 0, 1, 1], [], []>} : vector<288x128xbf16>, vector<128x128xbf16>, vector<288x128xf32> -> vector<288x128xf32>
    %18 = arith.addf %12, %17 : vector<288x128xf32>
    %c0_18 = arith.constant 0 : index
    %c18 = arith.constant 18 : index
    %c0_19 = arith.constant 0 : index
    %19 = vector.load %arg2[%c0_18, %c18, %c0_19] : memref<1x328x128xbf16, #tpu.memory_space<vmem>>, vector<1x288x128xbf16>
    %20 = vector.shape_cast %19 : vector<1x288x128xbf16> to vector<288x128xbf16>
    %c3 = arith.constant 3 : index
    %c0_20 = arith.constant 0 : index
    %c0_21 = arith.constant 0 : index
    %21 = vector.load %arg3[%c3, %c0_20, %c0_21] : memref<9x128x128xbf16, #tpu.memory_space<vmem>>, vector<1x128x128xbf16>
    %22 = vector.shape_cast %21 : vector<1x128x128xbf16> to vector<128x128xbf16>
    %cst_22 = arith.constant dense<0.000000e+00> : vector<288x128xf32>
    %23 = tpu.matmul %20, %22, %cst_22 {dimension_numbers = #tpu.dot_dimension_numbers<[1], [0], [0], [1], [0, 0, 1, 1], [], []>} : vector<288x128xbf16>, vector<128x128xbf16>, vector<288x128xf32> -> vector<288x128xf32>
    %24 = arith.addf %18, %23 : vector<288x128xf32>
    %c0_23 = arith.constant 0 : index
    %c19 = arith.constant 19 : index
    %c0_24 = arith.constant 0 : index
    %25 = vector.load %arg2[%c0_23, %c19, %c0_24] : memref<1x328x128xbf16, #tpu.memory_space<vmem>>, vector<1x288x128xbf16>
    %26 = vector.shape_cast %25 : vector<1x288x128xbf16> to vector<288x128xbf16>
    %c4 = arith.constant 4 : index
    %c0_25 = arith.constant 0 : index
    %c0_26 = arith.constant 0 : index
    %27 = vector.load %arg3[%c4, %c0_25, %c0_26] : memref<9x128x128xbf16, #tpu.memory_space<vmem>>, vector<1x128x128xbf16>
    %28 = vector.shape_cast %27 : vector<1x128x128xbf16> to vector<128x128xbf16>
    %cst_27 = arith.constant dense<0.000000e+00> : vector<288x128xf32>
    %29 = tpu.matmul %26, %28, %cst_27 {dimension_numbers = #tpu.dot_dimension_numbers<[1], [0], [0], [1], [0, 0, 1, 1], [], []>} : vector<288x128xbf16>, vector<128x128xbf16>, vector<288x128xf32> -> vector<288x128xf32>
    %30 = arith.addf %24, %29 : vector<288x128xf32>
    %c0_28 = arith.constant 0 : index
    %c20 = arith.constant 20 : index
    %c0_29 = arith.constant 0 : index
    %31 = vector.load %arg2[%c0_28, %c20, %c0_29] : memref<1x328x128xbf16, #tpu.memory_space<vmem>>, vector<1x288x128xbf16>
    %32 = vector.shape_cast %31 : vector<1x288x128xbf16> to vector<288x128xbf16>
    %c5 = arith.constant 5 : index
    %c0_30 = arith.constant 0 : index
    %c0_31 = arith.constant 0 : index
    %33 = vector.load %arg3[%c5, %c0_30, %c0_31] : memref<9x128x128xbf16, #tpu.memory_space<vmem>>, vector<1x128x128xbf16>
    %34 = vector.shape_cast %33 : vector<1x128x128xbf16> to vector<128x128xbf16>
    %cst_32 = arith.constant dense<0.000000e+00> : vector<288x128xf32>
    %35 = tpu.matmul %32, %34, %cst_32 {dimension_numbers = #tpu.dot_dimension_numbers<[1], [0], [0], [1], [0, 0, 1, 1], [], []>} : vector<288x128xbf16>, vector<128x128xbf16>, vector<288x128xf32> -> vector<288x128xf32>
    %36 = arith.addf %30, %35 : vector<288x128xf32>
    %c0_33 = arith.constant 0 : index
    %c36 = arith.constant 36 : index
    %c0_34 = arith.constant 0 : index
    %37 = vector.load %arg2[%c0_33, %c36, %c0_34] : memref<1x328x128xbf16, #tpu.memory_space<vmem>>, vector<1x288x128xbf16>
    %38 = vector.shape_cast %37 : vector<1x288x128xbf16> to vector<288x128xbf16>
    %c6 = arith.constant 6 : index
    %c0_35 = arith.constant 0 : index
    %c0_36 = arith.constant 0 : index
    %39 = vector.load %arg3[%c6, %c0_35, %c0_36] : memref<9x128x128xbf16, #tpu.memory_space<vmem>>, vector<1x128x128xbf16>
    %40 = vector.shape_cast %39 : vector<1x128x128xbf16> to vector<128x128xbf16>
    %cst_37 = arith.constant dense<0.000000e+00> : vector<288x128xf32>
    %41 = tpu.matmul %38, %40, %cst_37 {dimension_numbers = #tpu.dot_dimension_numbers<[1], [0], [0], [1], [0, 0, 1, 1], [], []>} : vector<288x128xbf16>, vector<128x128xbf16>, vector<288x128xf32> -> vector<288x128xf32>
    %42 = arith.addf %36, %41 : vector<288x128xf32>
    %c0_38 = arith.constant 0 : index
    %c37 = arith.constant 37 : index
    %c0_39 = arith.constant 0 : index
    %43 = vector.load %arg2[%c0_38, %c37, %c0_39] : memref<1x328x128xbf16, #tpu.memory_space<vmem>>, vector<1x288x128xbf16>
    %44 = vector.shape_cast %43 : vector<1x288x128xbf16> to vector<288x128xbf16>
    %c7 = arith.constant 7 : index
    %c0_40 = arith.constant 0 : index
    %c0_41 = arith.constant 0 : index
    %45 = vector.load %arg3[%c7, %c0_40, %c0_41] : memref<9x128x128xbf16, #tpu.memory_space<vmem>>, vector<1x128x128xbf16>
    %46 = vector.shape_cast %45 : vector<1x128x128xbf16> to vector<128x128xbf16>
    %cst_42 = arith.constant dense<0.000000e+00> : vector<288x128xf32>
    %47 = tpu.matmul %44, %46, %cst_42 {dimension_numbers = #tpu.dot_dimension_numbers<[1], [0], [0], [1], [0, 0, 1, 1], [], []>} : vector<288x128xbf16>, vector<128x128xbf16>, vector<288x128xf32> -> vector<288x128xf32>
    %48 = arith.addf %42, %47 : vector<288x128xf32>
    %c0_43 = arith.constant 0 : index
    %c38 = arith.constant 38 : index
    %c0_44 = arith.constant 0 : index
    %49 = vector.load %arg2[%c0_43, %c38, %c0_44] : memref<1x328x128xbf16, #tpu.memory_space<vmem>>, vector<1x288x128xbf16>
    %50 = vector.shape_cast %49 : vector<1x288x128xbf16> to vector<288x128xbf16>
    %c8 = arith.constant 8 : index
    %c0_45 = arith.constant 0 : index
    %c0_46 = arith.constant 0 : index
    %51 = vector.load %arg3[%c8, %c0_45, %c0_46] : memref<9x128x128xbf16, #tpu.memory_space<vmem>>, vector<1x128x128xbf16>
    %52 = vector.shape_cast %51 : vector<1x128x128xbf16> to vector<128x128xbf16>
    %cst_47 = arith.constant dense<0.000000e+00> : vector<288x128xf32>
    %53 = tpu.matmul %50, %52, %cst_47 {dimension_numbers = #tpu.dot_dimension_numbers<[1], [0], [0], [1], [0, 0, 1, 1], [], []>} : vector<288x128xbf16>, vector<128x128xbf16>, vector<288x128xf32> -> vector<288x128xf32>
    %54 = arith.addf %48, %53 : vector<288x128xf32>
    %c0_48 = arith.constant 0 : index
    %c0_49 = arith.constant 0 : index
    %55 = vector.load %arg4[%c0_48, %c0_49] : memref<1x128xf32, #tpu.memory_space<vmem>>, vector<1x128xf32>
    %56 = vector.broadcast %55 : vector<1x128xf32> to vector<288x128xf32>
    %57 = arith.addf %54, %56 : vector<288x128xf32>
    %cst_50 = arith.constant 0.000000e+00 : f32
    %58 = vector.broadcast %cst_50 : f32 to vector<288x128xf32>
    %59 = arith.maximumf %57, %58 : vector<288x128xf32>
    %60 = arith.truncf %59 : vector<288x128xf32> to vector<288x128xbf16>
    %c0_51 = arith.constant 0 : index
    %c0_52 = arith.constant 0 : index
    %c0_53 = arith.constant 0 : index
    %61 = vector.load %arg5[%c0_51, %c0_52, %c0_53] : memref<1x288x128xbf16, #tpu.memory_space<vmem>>, vector<1x288x128xbf16>
    %62 = vector.shape_cast %61 : vector<1x288x128xbf16> to vector<288x128xbf16>
    %63 = vector.shape_cast %60 : vector<288x128xbf16> to vector<1x288x128xbf16>
    tpu.vector_store %arg5[%c0_51, %c0_52, %c0_53], %63 {strides = array<i32>} : memref<1x288x128xbf16, #tpu.memory_space<vmem>>, vector<1x288x128xbf16>,
    return
  }
  func.func @transform_0(%arg0: i32, %arg1: i32) -> (i32, i32, i32) {
    %c0_i32 = arith.constant 0 : i32
    %c0_i32_0 = arith.constant 0 : i32
    %c0_i32_1 = arith.constant 0 : i32
    return %arg0, %c0_i32, %c0_i32_0 : i32, i32, i32
  }
  func.func @transform_1(%arg0: i32, %arg1: i32) -> (i32, i32, i32) {
    %c0_i32 = arith.constant 0 : i32
    %c0_i32_0 = arith.constant 0 : i32
    %c0_i32_1 = arith.constant 0 : i32
    return %c0_i32, %c0_i32_0, %arg1 : i32, i32, i32
  }
  func.func @transform_2(%arg0: i32, %arg1: i32) -> (i32, i32) {
    %c0_i32 = arith.constant 0 : i32
    %c0_i32_0 = arith.constant 0 : i32
    return %c0_i32, %arg1 : i32, i32
  }
  func.func @transform_3(%arg0: i32, %arg1: i32) -> (i32, i32, i32) {
    %c0_i32 = arith.constant 0 : i32
    %c0_i32_0 = arith.constant 0 : i32
    return %arg0, %c0_i32, %arg1 : i32, i32, i32
  }
}

module attributes {stable_mosaic.version = 11 : i64} {
  func.func @_conv_kernel(%arg0: i32, %arg1: i32, %arg2: memref<1x352x128xbf16, #tpu.memory_space<vmem>>, %arg3: memref<9x128x128xbf16, #tpu.memory_space<vmem>>, %arg4: memref<1x128xf32, #tpu.memory_space<vmem>>, %arg5: memref<1x72x128xbf16, #tpu.memory_space<vmem>>) attributes {dimension_semantics = [#tpu.dimension_semantics<parallel>, #tpu.dimension_semantics<parallel>], iteration_bounds = array<i64: 2, 1>, scalar_prefetch = 0 : i64, scratch_operands = 0 : i64, tpu.core_type = #tpu.core_type<tc>, window_params = [{transform_indices = @transform_0, window_bounds = array<i64: 1, 352, 128>}, {transform_indices = @transform_1, window_bounds = array<i64: 9, 128, 128>}, {transform_indices = @transform_2, window_bounds = array<i64: 1, 128>}, {transform_indices = @transform_3, window_bounds = array<i64: 1, 72, 128>}]} {
    %cst = arith.constant 0.000000e+00 : f32
    %0 = vector.broadcast %cst : f32 to vector<72x128xf32>
    %c0 = arith.constant 0 : index
    %c0_0 = arith.constant 0 : index
    %c0_1 = arith.constant 0 : index
    %1 = vector.load %arg2[%c0, %c0_0, %c0_1] : memref<1x352x128xbf16, #tpu.memory_space<vmem>>, vector<1x72x128xbf16>
    %2 = vector.shape_cast %1 : vector<1x72x128xbf16> to vector<72x128xbf16>
    %c0_2 = arith.constant 0 : index
    %c0_3 = arith.constant 0 : index
    %c0_4 = arith.constant 0 : index
    %3 = vector.load %arg3[%c0_2, %c0_3, %c0_4] : memref<9x128x128xbf16, #tpu.memory_space<vmem>>, vector<1x128x128xbf16>
    %4 = vector.shape_cast %3 : vector<1x128x128xbf16> to vector<128x128xbf16>
    %cst_5 = arith.constant dense<0.000000e+00> : vector<72x128xf32>
    %5 = tpu.matmul %2, %4, %cst_5 {dimension_numbers = #tpu.dot_dimension_numbers<[1], [0], [0], [1], [0, 0, 1, 1], [], []>} : vector<72x128xbf16>, vector<128x128xbf16>, vector<72x128xf32> -> vector<72x128xf32>
    %6 = arith.addf %0, %5 : vector<72x128xf32>
    %c0_6 = arith.constant 0 : index
    %c88 = arith.constant 88 : index
    %c0_7 = arith.constant 0 : index
    %7 = vector.load %arg2[%c0_6, %c88, %c0_7] : memref<1x352x128xbf16, #tpu.memory_space<vmem>>, vector<1x72x128xbf16>
    %8 = vector.shape_cast %7 : vector<1x72x128xbf16> to vector<72x128xbf16>
    %c1 = arith.constant 1 : index
    %c0_8 = arith.constant 0 : index
    %c0_9 = arith.constant 0 : index
    %9 = vector.load %arg3[%c1, %c0_8, %c0_9] : memref<9x128x128xbf16, #tpu.memory_space<vmem>>, vector<1x128x128xbf16>
    %10 = vector.shape_cast %9 : vector<1x128x128xbf16> to vector<128x128xbf16>
    %cst_10 = arith.constant dense<0.000000e+00> : vector<72x128xf32>
    %11 = tpu.matmul %8, %10, %cst_10 {dimension_numbers = #tpu.dot_dimension_numbers<[1], [0], [0], [1], [0, 0, 1, 1], [], []>} : vector<72x128xbf16>, vector<128x128xbf16>, vector<72x128xf32> -> vector<72x128xf32>
    %12 = arith.addf %6, %11 : vector<72x128xf32>
    %c0_11 = arith.constant 0 : index
    %c1_12 = arith.constant 1 : index
    %c0_13 = arith.constant 0 : index
    %13 = vector.load %arg2[%c0_11, %c1_12, %c0_13] : memref<1x352x128xbf16, #tpu.memory_space<vmem>>, vector<1x72x128xbf16>
    %14 = vector.shape_cast %13 : vector<1x72x128xbf16> to vector<72x128xbf16>
    %c2 = arith.constant 2 : index
    %c0_14 = arith.constant 0 : index
    %c0_15 = arith.constant 0 : index
    %15 = vector.load %arg3[%c2, %c0_14, %c0_15] : memref<9x128x128xbf16, #tpu.memory_space<vmem>>, vector<1x128x128xbf16>
    %16 = vector.shape_cast %15 : vector<1x128x128xbf16> to vector<128x128xbf16>
    %cst_16 = arith.constant dense<0.000000e+00> : vector<72x128xf32>
    %17 = tpu.matmul %14, %16, %cst_16 {dimension_numbers = #tpu.dot_dimension_numbers<[1], [0], [0], [1], [0, 0, 1, 1], [], []>} : vector<72x128xbf16>, vector<128x128xbf16>, vector<72x128xf32> -> vector<72x128xf32>
    %18 = arith.addf %12, %17 : vector<72x128xf32>
    %c0_17 = arith.constant 0 : index
    %c176 = arith.constant 176 : index
    %c0_18 = arith.constant 0 : index
    %19 = vector.load %arg2[%c0_17, %c176, %c0_18] : memref<1x352x128xbf16, #tpu.memory_space<vmem>>, vector<1x72x128xbf16>
    %20 = vector.shape_cast %19 : vector<1x72x128xbf16> to vector<72x128xbf16>
    %c3 = arith.constant 3 : index
    %c0_19 = arith.constant 0 : index
    %c0_20 = arith.constant 0 : index
    %21 = vector.load %arg3[%c3, %c0_19, %c0_20] : memref<9x128x128xbf16, #tpu.memory_space<vmem>>, vector<1x128x128xbf16>
    %22 = vector.shape_cast %21 : vector<1x128x128xbf16> to vector<128x128xbf16>
    %cst_21 = arith.constant dense<0.000000e+00> : vector<72x128xf32>
    %23 = tpu.matmul %20, %22, %cst_21 {dimension_numbers = #tpu.dot_dimension_numbers<[1], [0], [0], [1], [0, 0, 1, 1], [], []>} : vector<72x128xbf16>, vector<128x128xbf16>, vector<72x128xf32> -> vector<72x128xf32>
    %24 = arith.addf %18, %23 : vector<72x128xf32>
    %c0_22 = arith.constant 0 : index
    %c264 = arith.constant 264 : index
    %c0_23 = arith.constant 0 : index
    %25 = vector.load %arg2[%c0_22, %c264, %c0_23] : memref<1x352x128xbf16, #tpu.memory_space<vmem>>, vector<1x72x128xbf16>
    %26 = vector.shape_cast %25 : vector<1x72x128xbf16> to vector<72x128xbf16>
    %c4 = arith.constant 4 : index
    %c0_24 = arith.constant 0 : index
    %c0_25 = arith.constant 0 : index
    %27 = vector.load %arg3[%c4, %c0_24, %c0_25] : memref<9x128x128xbf16, #tpu.memory_space<vmem>>, vector<1x128x128xbf16>
    %28 = vector.shape_cast %27 : vector<1x128x128xbf16> to vector<128x128xbf16>
    %cst_26 = arith.constant dense<0.000000e+00> : vector<72x128xf32>
    %29 = tpu.matmul %26, %28, %cst_26 {dimension_numbers = #tpu.dot_dimension_numbers<[1], [0], [0], [1], [0, 0, 1, 1], [], []>} : vector<72x128xbf16>, vector<128x128xbf16>, vector<72x128xf32> -> vector<72x128xf32>
    %30 = arith.addf %24, %29 : vector<72x128xf32>
    %c0_27 = arith.constant 0 : index
    %c177 = arith.constant 177 : index
    %c0_28 = arith.constant 0 : index
    %31 = vector.load %arg2[%c0_27, %c177, %c0_28] : memref<1x352x128xbf16, #tpu.memory_space<vmem>>, vector<1x72x128xbf16>
    %32 = vector.shape_cast %31 : vector<1x72x128xbf16> to vector<72x128xbf16>
    %c5 = arith.constant 5 : index
    %c0_29 = arith.constant 0 : index
    %c0_30 = arith.constant 0 : index
    %33 = vector.load %arg3[%c5, %c0_29, %c0_30] : memref<9x128x128xbf16, #tpu.memory_space<vmem>>, vector<1x128x128xbf16>
    %34 = vector.shape_cast %33 : vector<1x128x128xbf16> to vector<128x128xbf16>
    %cst_31 = arith.constant dense<0.000000e+00> : vector<72x128xf32>
    %35 = tpu.matmul %32, %34, %cst_31 {dimension_numbers = #tpu.dot_dimension_numbers<[1], [0], [0], [1], [0, 0, 1, 1], [], []>} : vector<72x128xbf16>, vector<128x128xbf16>, vector<72x128xf32> -> vector<72x128xf32>
    %36 = arith.addf %30, %35 : vector<72x128xf32>
    %c0_32 = arith.constant 0 : index
    %c9 = arith.constant 9 : index
    %c0_33 = arith.constant 0 : index
    %37 = vector.load %arg2[%c0_32, %c9, %c0_33] : memref<1x352x128xbf16, #tpu.memory_space<vmem>>, vector<1x72x128xbf16>
    %38 = vector.shape_cast %37 : vector<1x72x128xbf16> to vector<72x128xbf16>
    %c6 = arith.constant 6 : index
    %c0_34 = arith.constant 0 : index
    %c0_35 = arith.constant 0 : index
    %39 = vector.load %arg3[%c6, %c0_34, %c0_35] : memref<9x128x128xbf16, #tpu.memory_space<vmem>>, vector<1x128x128xbf16>
    %40 = vector.shape_cast %39 : vector<1x128x128xbf16> to vector<128x128xbf16>
    %cst_36 = arith.constant dense<0.000000e+00> : vector<72x128xf32>
    %41 = tpu.matmul %38, %40, %cst_36 {dimension_numbers = #tpu.dot_dimension_numbers<[1], [0], [0], [1], [0, 0, 1, 1], [], []>} : vector<72x128xbf16>, vector<128x128xbf16>, vector<72x128xf32> -> vector<72x128xf32>
    %42 = arith.addf %36, %41 : vector<72x128xf32>
    %c0_37 = arith.constant 0 : index
    %c97 = arith.constant 97 : index
    %c0_38 = arith.constant 0 : index
    %43 = vector.load %arg2[%c0_37, %c97, %c0_38] : memref<1x352x128xbf16, #tpu.memory_space<vmem>>, vector<1x72x128xbf16>
    %44 = vector.shape_cast %43 : vector<1x72x128xbf16> to vector<72x128xbf16>
    %c7 = arith.constant 7 : index
    %c0_39 = arith.constant 0 : index
    %c0_40 = arith.constant 0 : index
    %45 = vector.load %arg3[%c7, %c0_39, %c0_40] : memref<9x128x128xbf16, #tpu.memory_space<vmem>>, vector<1x128x128xbf16>
    %46 = vector.shape_cast %45 : vector<1x128x128xbf16> to vector<128x128xbf16>
    %cst_41 = arith.constant dense<0.000000e+00> : vector<72x128xf32>
    %47 = tpu.matmul %44, %46, %cst_41 {dimension_numbers = #tpu.dot_dimension_numbers<[1], [0], [0], [1], [0, 0, 1, 1], [], []>} : vector<72x128xbf16>, vector<128x128xbf16>, vector<72x128xf32> -> vector<72x128xf32>
    %48 = arith.addf %42, %47 : vector<72x128xf32>
    %c0_42 = arith.constant 0 : index
    %c10 = arith.constant 10 : index
    %c0_43 = arith.constant 0 : index
    %49 = vector.load %arg2[%c0_42, %c10, %c0_43] : memref<1x352x128xbf16, #tpu.memory_space<vmem>>, vector<1x72x128xbf16>
    %50 = vector.shape_cast %49 : vector<1x72x128xbf16> to vector<72x128xbf16>
    %c8 = arith.constant 8 : index
    %c0_44 = arith.constant 0 : index
    %c0_45 = arith.constant 0 : index
    %51 = vector.load %arg3[%c8, %c0_44, %c0_45] : memref<9x128x128xbf16, #tpu.memory_space<vmem>>, vector<1x128x128xbf16>
    %52 = vector.shape_cast %51 : vector<1x128x128xbf16> to vector<128x128xbf16>
    %cst_46 = arith.constant dense<0.000000e+00> : vector<72x128xf32>
    %53 = tpu.matmul %50, %52, %cst_46 {dimension_numbers = #tpu.dot_dimension_numbers<[1], [0], [0], [1], [0, 0, 1, 1], [], []>} : vector<72x128xbf16>, vector<128x128xbf16>, vector<72x128xf32> -> vector<72x128xf32>
    %54 = arith.addf %48, %53 : vector<72x128xf32>
    %c0_47 = arith.constant 0 : index
    %c0_48 = arith.constant 0 : index
    %55 = vector.load %arg4[%c0_47, %c0_48] : memref<1x128xf32, #tpu.memory_space<vmem>>, vector<1x128xf32>
    %56 = vector.broadcast %55 : vector<1x128xf32> to vector<72x128xf32>
    %57 = arith.addf %54, %56 : vector<72x128xf32>
    %cst_49 = arith.constant 0.000000e+00 : f32
    %58 = vector.broadcast %cst_49 : f32 to vector<72x128xf32>
    %59 = arith.maximumf %57, %58 : vector<72x128xf32>
    %60 = arith.truncf %59 : vector<72x128xf32> to vector<72x128xbf16>
    %c0_50 = arith.constant 0 : index
    %c0_51 = arith.constant 0 : index
    %c0_52 = arith.constant 0 : index
    %61 = vector.load %arg5[%c0_50, %c0_51, %c0_52] : memref<1x72x128xbf16, #tpu.memory_space<vmem>>, vector<1x72x128xbf16>
    %62 = vector.shape_cast %61 : vector<1x72x128xbf16> to vector<72x128xbf16>
    %63 = vector.shape_cast %60 : vector<72x128xbf16> to vector<1x72x128xbf16>
    tpu.vector_store %arg5[%c0_50, %c0_51, %c0_52], %63 {strides = array<i32>} : memref<1x72x128xbf16, #tpu.memory_space<vmem>>, vector<1x72x128xbf16>,
    return
  }
  func.func @transform_0(%arg0: i32, %arg1: i32) -> (i32, i32, i32) {
    %c0_i32 = arith.constant 0 : i32
    %c0_i32_0 = arith.constant 0 : i32
    %c0_i32_1 = arith.constant 0 : i32
    return %arg0, %c0_i32, %c0_i32_0 : i32, i32, i32
  }
  func.func @transform_1(%arg0: i32, %arg1: i32) -> (i32, i32, i32) {
    %c0_i32 = arith.constant 0 : i32
    %c0_i32_0 = arith.constant 0 : i32
    %c0_i32_1 = arith.constant 0 : i32
    return %c0_i32, %c0_i32_0, %arg1 : i32, i32, i32
  }
  func.func @transform_2(%arg0: i32, %arg1: i32) -> (i32, i32) {
    %c0_i32 = arith.constant 0 : i32
    %c0_i32_0 = arith.constant 0 : i32
    return %c0_i32, %arg1 : i32, i32
  }
  func.func @transform_3(%arg0: i32, %arg1: i32) -> (i32, i32, i32) {
    %c0_i32 = arith.constant 0 : i32
    %c0_i32_0 = arith.constant 0 : i32
    return %arg0, %c0_i32, %arg1 : i32, i32, i32
  }
}

module attributes {stable_mosaic.version = 11 : i64} {
  func.func @_conv_kernel(%arg0: i32, %arg1: i32, %arg2: memref<1x64x128xbf16, #tpu.memory_space<vmem>>, %arg3: memref<1x128x128xbf16, #tpu.memory_space<vmem>>, %arg4: memref<1x128xf32, #tpu.memory_space<vmem>>, %arg5: memref<1x64x128xbf16, #tpu.memory_space<vmem>>) attributes {dimension_semantics = [#tpu.dimension_semantics<parallel>, #tpu.dimension_semantics<parallel>], iteration_bounds = array<i64: 2, 1>, scalar_prefetch = 0 : i64, scratch_operands = 0 : i64, tpu.core_type = #tpu.core_type<tc>, window_params = [{transform_indices = @transform_0, window_bounds = array<i64: 1, 64, 128>}, {transform_indices = @transform_1, window_bounds = array<i64: 1, 128, 128>}, {transform_indices = @transform_2, window_bounds = array<i64: 1, 128>}, {transform_indices = @transform_3, window_bounds = array<i64: 1, 64, 128>}]} {
    %cst = arith.constant 0.000000e+00 : f32
    %0 = vector.broadcast %cst : f32 to vector<64x128xf32>
    %c0 = arith.constant 0 : index
    %c0_0 = arith.constant 0 : index
    %c0_1 = arith.constant 0 : index
    %1 = vector.load %arg2[%c0, %c0_0, %c0_1] : memref<1x64x128xbf16, #tpu.memory_space<vmem>>, vector<1x64x128xbf16>
    %2 = vector.shape_cast %1 : vector<1x64x128xbf16> to vector<64x128xbf16>
    %c0_2 = arith.constant 0 : index
    %c0_3 = arith.constant 0 : index
    %c0_4 = arith.constant 0 : index
    %3 = vector.load %arg3[%c0_2, %c0_3, %c0_4] : memref<1x128x128xbf16, #tpu.memory_space<vmem>>, vector<1x128x128xbf16>
    %4 = vector.shape_cast %3 : vector<1x128x128xbf16> to vector<128x128xbf16>
    %cst_5 = arith.constant dense<0.000000e+00> : vector<64x128xf32>
    %5 = tpu.matmul %2, %4, %cst_5 {dimension_numbers = #tpu.dot_dimension_numbers<[1], [0], [0], [1], [0, 0, 1, 1], [], []>} : vector<64x128xbf16>, vector<128x128xbf16>, vector<64x128xf32> -> vector<64x128xf32>
    %6 = arith.addf %0, %5 : vector<64x128xf32>
    %c0_6 = arith.constant 0 : index
    %c0_7 = arith.constant 0 : index
    %7 = vector.load %arg4[%c0_6, %c0_7] : memref<1x128xf32, #tpu.memory_space<vmem>>, vector<1x128xf32>
    %8 = vector.broadcast %7 : vector<1x128xf32> to vector<64x128xf32>
    %9 = arith.addf %6, %8 : vector<64x128xf32>
    %10 = arith.truncf %9 : vector<64x128xf32> to vector<64x128xbf16>
    %c0_8 = arith.constant 0 : index
    %c0_9 = arith.constant 0 : index
    %c0_10 = arith.constant 0 : index
    %11 = vector.load %arg5[%c0_8, %c0_9, %c0_10] : memref<1x64x128xbf16, #tpu.memory_space<vmem>>, vector<1x64x128xbf16>
    %12 = vector.shape_cast %11 : vector<1x64x128xbf16> to vector<64x128xbf16>
    %13 = vector.shape_cast %10 : vector<64x128xbf16> to vector<1x64x128xbf16>
    tpu.vector_store %arg5[%c0_8, %c0_9, %c0_10], %13 {strides = array<i32>} : memref<1x64x128xbf16, #tpu.memory_space<vmem>>, vector<1x64x128xbf16>,
    return
  }
  func.func @transform_0(%arg0: i32, %arg1: i32) -> (i32, i32, i32) {
    %c0_i32 = arith.constant 0 : i32
    %c0_i32_0 = arith.constant 0 : i32
    %c0_i32_1 = arith.constant 0 : i32
    return %arg0, %c0_i32, %c0_i32_0 : i32, i32, i32
  }
  func.func @transform_1(%arg0: i32, %arg1: i32) -> (i32, i32, i32) {
    %c0_i32 = arith.constant 0 : i32
    %c0_i32_0 = arith.constant 0 : i32
    %c0_i32_1 = arith.constant 0 : i32
    return %c0_i32, %c0_i32_0, %arg1 : i32, i32, i32
  }
  func.func @transform_2(%arg0: i32, %arg1: i32) -> (i32, i32) {
    %c0_i32 = arith.constant 0 : i32
    %c0_i32_0 = arith.constant 0 : i32
    return %c0_i32, %arg1 : i32, i32
  }
  func.func @transform_3(%arg0: i32, %arg1: i32) -> (i32, i32, i32) {
    %c0_i32 = arith.constant 0 : i32
    %c0_i32_0 = arith.constant 0 : i32
    return %arg0, %c0_i32, %arg1 : i32, i32, i32
  }
}

module attributes {stable_mosaic.version = 11 : i64} {
  func.func @_conv_kernel(%arg0: i32, %arg1: i32, %arg2: memref<1x104x128xbf16, #tpu.memory_space<vmem>>, %arg3: memref<9x128x128xbf16, #tpu.memory_space<vmem>>, %arg4: memref<1x128xf32, #tpu.memory_space<vmem>>, %arg5: memref<1x80x128xbf16, #tpu.memory_space<vmem>>, %arg6: memref<1x80x128xbf16, #tpu.memory_space<vmem>>) attributes {dimension_semantics = [#tpu.dimension_semantics<parallel>, #tpu.dimension_semantics<parallel>], iteration_bounds = array<i64: 2, 1>, scalar_prefetch = 0 : i64, scratch_operands = 0 : i64, tpu.core_type = #tpu.core_type<tc>, window_params = [{transform_indices = @transform_0, window_bounds = array<i64: 1, 104, 128>}, {transform_indices = @transform_1, window_bounds = array<i64: 9, 128, 128>}, {transform_indices = @transform_2, window_bounds = array<i64: 1, 128>}, {transform_indices = @transform_3, window_bounds = array<i64: 1, 80, 128>}, {transform_indices = @transform_4, window_bounds = array<i64: 1, 80, 128>}]} {
    %cst = arith.constant 0.000000e+00 : f32
    %0 = vector.broadcast %cst : f32 to vector<80x128xf32>
    %c0 = arith.constant 0 : index
    %c0_0 = arith.constant 0 : index
    %c0_1 = arith.constant 0 : index
    %1 = vector.load %arg2[%c0, %c0_0, %c0_1] : memref<1x104x128xbf16, #tpu.memory_space<vmem>>, vector<1x80x128xbf16>
    %2 = vector.shape_cast %1 : vector<1x80x128xbf16> to vector<80x128xbf16>
    %c0_2 = arith.constant 0 : index
    %c0_3 = arith.constant 0 : index
    %c0_4 = arith.constant 0 : index
    %3 = vector.load %arg3[%c0_2, %c0_3, %c0_4] : memref<9x128x128xbf16, #tpu.memory_space<vmem>>, vector<1x128x128xbf16>
    %4 = vector.shape_cast %3 : vector<1x128x128xbf16> to vector<128x128xbf16>
    %cst_5 = arith.constant dense<0.000000e+00> : vector<80x128xf32>
    %5 = tpu.matmul %2, %4, %cst_5 {dimension_numbers = #tpu.dot_dimension_numbers<[1], [0], [0], [1], [0, 0, 1, 1], [], []>} : vector<80x128xbf16>, vector<128x128xbf16>, vector<80x128xf32> -> vector<80x128xf32>
    %6 = arith.addf %0, %5 : vector<80x128xf32>
    %c0_6 = arith.constant 0 : index
    %c1 = arith.constant 1 : index
    %c0_7 = arith.constant 0 : index
    %7 = vector.load %arg2[%c0_6, %c1, %c0_7] : memref<1x104x128xbf16, #tpu.memory_space<vmem>>, vector<1x80x128xbf16>
    %8 = vector.shape_cast %7 : vector<1x80x128xbf16> to vector<80x128xbf16>
    %c1_8 = arith.constant 1 : index
    %c0_9 = arith.constant 0 : index
    %c0_10 = arith.constant 0 : index
    %9 = vector.load %arg3[%c1_8, %c0_9, %c0_10] : memref<9x128x128xbf16, #tpu.memory_space<vmem>>, vector<1x128x128xbf16>
    %10 = vector.shape_cast %9 : vector<1x128x128xbf16> to vector<128x128xbf16>
    %cst_11 = arith.constant dense<0.000000e+00> : vector<80x128xf32>
    %11 = tpu.matmul %8, %10, %cst_11 {dimension_numbers = #tpu.dot_dimension_numbers<[1], [0], [0], [1], [0, 0, 1, 1], [], []>} : vector<80x128xbf16>, vector<128x128xbf16>, vector<80x128xf32> -> vector<80x128xf32>
    %12 = arith.addf %6, %11 : vector<80x128xf32>
    %c0_12 = arith.constant 0 : index
    %c2 = arith.constant 2 : index
    %c0_13 = arith.constant 0 : index
    %13 = vector.load %arg2[%c0_12, %c2, %c0_13] : memref<1x104x128xbf16, #tpu.memory_space<vmem>>, vector<1x80x128xbf16>
    %14 = vector.shape_cast %13 : vector<1x80x128xbf16> to vector<80x128xbf16>
    %c2_14 = arith.constant 2 : index
    %c0_15 = arith.constant 0 : index
    %c0_16 = arith.constant 0 : index
    %15 = vector.load %arg3[%c2_14, %c0_15, %c0_16] : memref<9x128x128xbf16, #tpu.memory_space<vmem>>, vector<1x128x128xbf16>
    %16 = vector.shape_cast %15 : vector<1x128x128xbf16> to vector<128x128xbf16>
    %cst_17 = arith.constant dense<0.000000e+00> : vector<80x128xf32>
    %17 = tpu.matmul %14, %16, %cst_17 {dimension_numbers = #tpu.dot_dimension_numbers<[1], [0], [0], [1], [0, 0, 1, 1], [], []>} : vector<80x128xbf16>, vector<128x128xbf16>, vector<80x128xf32> -> vector<80x128xf32>
    %18 = arith.addf %12, %17 : vector<80x128xf32>
    %c0_18 = arith.constant 0 : index
    %c10 = arith.constant 10 : index
    %c0_19 = arith.constant 0 : index
    %19 = vector.load %arg2[%c0_18, %c10, %c0_19] : memref<1x104x128xbf16, #tpu.memory_space<vmem>>, vector<1x80x128xbf16>
    %20 = vector.shape_cast %19 : vector<1x80x128xbf16> to vector<80x128xbf16>
    %c3 = arith.constant 3 : index
    %c0_20 = arith.constant 0 : index
    %c0_21 = arith.constant 0 : index
    %21 = vector.load %arg3[%c3, %c0_20, %c0_21] : memref<9x128x128xbf16, #tpu.memory_space<vmem>>, vector<1x128x128xbf16>
    %22 = vector.shape_cast %21 : vector<1x128x128xbf16> to vector<128x128xbf16>
    %cst_22 = arith.constant dense<0.000000e+00> : vector<80x128xf32>
    %23 = tpu.matmul %20, %22, %cst_22 {dimension_numbers = #tpu.dot_dimension_numbers<[1], [0], [0], [1], [0, 0, 1, 1], [], []>} : vector<80x128xbf16>, vector<128x128xbf16>, vector<80x128xf32> -> vector<80x128xf32>
    %24 = arith.addf %18, %23 : vector<80x128xf32>
    %c0_23 = arith.constant 0 : index
    %c11 = arith.constant 11 : index
    %c0_24 = arith.constant 0 : index
    %25 = vector.load %arg2[%c0_23, %c11, %c0_24] : memref<1x104x128xbf16, #tpu.memory_space<vmem>>, vector<1x80x128xbf16>
    %26 = vector.shape_cast %25 : vector<1x80x128xbf16> to vector<80x128xbf16>
    %c4 = arith.constant 4 : index
    %c0_25 = arith.constant 0 : index
    %c0_26 = arith.constant 0 : index
    %27 = vector.load %arg3[%c4, %c0_25, %c0_26] : memref<9x128x128xbf16, #tpu.memory_space<vmem>>, vector<1x128x128xbf16>
    %28 = vector.shape_cast %27 : vector<1x128x128xbf16> to vector<128x128xbf16>
    %cst_27 = arith.constant dense<0.000000e+00> : vector<80x128xf32>
    %29 = tpu.matmul %26, %28, %cst_27 {dimension_numbers = #tpu.dot_dimension_numbers<[1], [0], [0], [1], [0, 0, 1, 1], [], []>} : vector<80x128xbf16>, vector<128x128xbf16>, vector<80x128xf32> -> vector<80x128xf32>
    %30 = arith.addf %24, %29 : vector<80x128xf32>
    %c0_28 = arith.constant 0 : index
    %c12 = arith.constant 12 : index
    %c0_29 = arith.constant 0 : index
    %31 = vector.load %arg2[%c0_28, %c12, %c0_29] : memref<1x104x128xbf16, #tpu.memory_space<vmem>>, vector<1x80x128xbf16>
    %32 = vector.shape_cast %31 : vector<1x80x128xbf16> to vector<80x128xbf16>
    %c5 = arith.constant 5 : index
    %c0_30 = arith.constant 0 : index
    %c0_31 = arith.constant 0 : index
    %33 = vector.load %arg3[%c5, %c0_30, %c0_31] : memref<9x128x128xbf16, #tpu.memory_space<vmem>>, vector<1x128x128xbf16>
    %34 = vector.shape_cast %33 : vector<1x128x128xbf16> to vector<128x128xbf16>
    %cst_32 = arith.constant dense<0.000000e+00> : vector<80x128xf32>
    %35 = tpu.matmul %32, %34, %cst_32 {dimension_numbers = #tpu.dot_dimension_numbers<[1], [0], [0], [1], [0, 0, 1, 1], [], []>} : vector<80x128xbf16>, vector<128x128xbf16>, vector<80x128xf32> -> vector<80x128xf32>
    %36 = arith.addf %30, %35 : vector<80x128xf32>
    %c0_33 = arith.constant 0 : index
    %c20 = arith.constant 20 : index
    %c0_34 = arith.constant 0 : index
    %37 = vector.load %arg2[%c0_33, %c20, %c0_34] : memref<1x104x128xbf16, #tpu.memory_space<vmem>>, vector<1x80x128xbf16>
    %38 = vector.shape_cast %37 : vector<1x80x128xbf16> to vector<80x128xbf16>
    %c6 = arith.constant 6 : index
    %c0_35 = arith.constant 0 : index
    %c0_36 = arith.constant 0 : index
    %39 = vector.load %arg3[%c6, %c0_35, %c0_36] : memref<9x128x128xbf16, #tpu.memory_space<vmem>>, vector<1x128x128xbf16>
    %40 = vector.shape_cast %39 : vector<1x128x128xbf16> to vector<128x128xbf16>
    %cst_37 = arith.constant dense<0.000000e+00> : vector<80x128xf32>
    %41 = tpu.matmul %38, %40, %cst_37 {dimension_numbers = #tpu.dot_dimension_numbers<[1], [0], [0], [1], [0, 0, 1, 1], [], []>} : vector<80x128xbf16>, vector<128x128xbf16>, vector<80x128xf32> -> vector<80x128xf32>
    %42 = arith.addf %36, %41 : vector<80x128xf32>
    %c0_38 = arith.constant 0 : index
    %c21 = arith.constant 21 : index
    %c0_39 = arith.constant 0 : index
    %43 = vector.load %arg2[%c0_38, %c21, %c0_39] : memref<1x104x128xbf16, #tpu.memory_space<vmem>>, vector<1x80x128xbf16>
    %44 = vector.shape_cast %43 : vector<1x80x128xbf16> to vector<80x128xbf16>
    %c7 = arith.constant 7 : index
    %c0_40 = arith.constant 0 : index
    %c0_41 = arith.constant 0 : index
    %45 = vector.load %arg3[%c7, %c0_40, %c0_41] : memref<9x128x128xbf16, #tpu.memory_space<vmem>>, vector<1x128x128xbf16>
    %46 = vector.shape_cast %45 : vector<1x128x128xbf16> to vector<128x128xbf16>
    %cst_42 = arith.constant dense<0.000000e+00> : vector<80x128xf32>
    %47 = tpu.matmul %44, %46, %cst_42 {dimension_numbers = #tpu.dot_dimension_numbers<[1], [0], [0], [1], [0, 0, 1, 1], [], []>} : vector<80x128xbf16>, vector<128x128xbf16>, vector<80x128xf32> -> vector<80x128xf32>
    %48 = arith.addf %42, %47 : vector<80x128xf32>
    %c0_43 = arith.constant 0 : index
    %c22 = arith.constant 22 : index
    %c0_44 = arith.constant 0 : index
    %49 = vector.load %arg2[%c0_43, %c22, %c0_44] : memref<1x104x128xbf16, #tpu.memory_space<vmem>>, vector<1x80x128xbf16>
    %50 = vector.shape_cast %49 : vector<1x80x128xbf16> to vector<80x128xbf16>
    %c8 = arith.constant 8 : index
    %c0_45 = arith.constant 0 : index
    %c0_46 = arith.constant 0 : index
    %51 = vector.load %arg3[%c8, %c0_45, %c0_46] : memref<9x128x128xbf16, #tpu.memory_space<vmem>>, vector<1x128x128xbf16>
    %52 = vector.shape_cast %51 : vector<1x128x128xbf16> to vector<128x128xbf16>
    %cst_47 = arith.constant dense<0.000000e+00> : vector<80x128xf32>
    %53 = tpu.matmul %50, %52, %cst_47 {dimension_numbers = #tpu.dot_dimension_numbers<[1], [0], [0], [1], [0, 0, 1, 1], [], []>} : vector<80x128xbf16>, vector<128x128xbf16>, vector<80x128xf32> -> vector<80x128xf32>
    %54 = arith.addf %48, %53 : vector<80x128xf32>
    %c0_48 = arith.constant 0 : index
    %c0_49 = arith.constant 0 : index
    %55 = vector.load %arg4[%c0_48, %c0_49] : memref<1x128xf32, #tpu.memory_space<vmem>>, vector<1x128xf32>
    %56 = vector.broadcast %55 : vector<1x128xf32> to vector<80x128xf32>
    %57 = arith.addf %54, %56 : vector<80x128xf32>
    %c0_50 = arith.constant 0 : index
    %c0_51 = arith.constant 0 : index
    %c0_52 = arith.constant 0 : index
    %58 = vector.load %arg5[%c0_50, %c0_51, %c0_52] : memref<1x80x128xbf16, #tpu.memory_space<vmem>>, vector<1x80x128xbf16>
    %59 = vector.shape_cast %58 : vector<1x80x128xbf16> to vector<80x128xbf16>
    %60 = arith.extf %59 : vector<80x128xbf16> to vector<80x128xf32>
    %61 = arith.addf %57, %60 : vector<80x128xf32>
    %cst_53 = arith.constant 0.000000e+00 : f32
    %62 = vector.broadcast %cst_53 : f32 to vector<80x128xf32>
    %63 = arith.maximumf %61, %62 : vector<80x128xf32>
    %64 = arith.truncf %63 : vector<80x128xf32> to vector<80x128xbf16>
    %c0_54 = arith.constant 0 : index
    %c0_55 = arith.constant 0 : index
    %c0_56 = arith.constant 0 : index
    %65 = vector.load %arg6[%c0_54, %c0_55, %c0_56] : memref<1x80x128xbf16, #tpu.memory_space<vmem>>, vector<1x80x128xbf16>
    %66 = vector.shape_cast %65 : vector<1x80x128xbf16> to vector<80x128xbf16>
    %67 = vector.shape_cast %64 : vector<80x128xbf16> to vector<1x80x128xbf16>
    tpu.vector_store %arg6[%c0_54, %c0_55, %c0_56], %67 {strides = array<i32>} : memref<1x80x128xbf16, #tpu.memory_space<vmem>>, vector<1x80x128xbf16>,
    return
  }
  func.func @transform_0(%arg0: i32, %arg1: i32) -> (i32, i32, i32) {
    %c0_i32 = arith.constant 0 : i32
    %c0_i32_0 = arith.constant 0 : i32
    %c0_i32_1 = arith.constant 0 : i32
    return %arg0, %c0_i32, %c0_i32_0 : i32, i32, i32
  }
  func.func @transform_1(%arg0: i32, %arg1: i32) -> (i32, i32, i32) {
    %c0_i32 = arith.constant 0 : i32
    %c0_i32_0 = arith.constant 0 : i32
    %c0_i32_1 = arith.constant 0 : i32
    return %c0_i32, %c0_i32_0, %arg1 : i32, i32, i32
  }
  func.func @transform_2(%arg0: i32, %arg1: i32) -> (i32, i32) {
    %c0_i32 = arith.constant 0 : i32
    %c0_i32_0 = arith.constant 0 : i32
    return %c0_i32, %arg1 : i32, i32
  }
  func.func @transform_3(%arg0: i32, %arg1: i32) -> (i32, i32, i32) {
    %c0_i32 = arith.constant 0 : i32
    %c0_i32_0 = arith.constant 0 : i32
    return %arg0, %c0_i32, %arg1 : i32, i32, i32
  }
  func.func @transform_4(%arg0: i32, %arg1: i32) -> (i32, i32, i32) {
    %c0_i32 = arith.constant 0 : i32
    %c0_i32_0 = arith.constant 0 : i32
    return %arg0, %c0_i32, %arg1 : i32, i32, i32
  }
}

module attributes {stable_mosaic.version = 11 : i64} {
  func.func @_conv_kernel(%arg0: i32, %arg1: i32, %arg2: memref<1x104x128xbf16, #tpu.memory_space<vmem>>, %arg3: memref<9x128x128xbf16, #tpu.memory_space<vmem>>, %arg4: memref<1x128xf32, #tpu.memory_space<vmem>>, %arg5: memref<1x80x128xbf16, #tpu.memory_space<vmem>>) attributes {dimension_semantics = [#tpu.dimension_semantics<parallel>, #tpu.dimension_semantics<parallel>], iteration_bounds = array<i64: 2, 1>, scalar_prefetch = 0 : i64, scratch_operands = 0 : i64, tpu.core_type = #tpu.core_type<tc>, window_params = [{transform_indices = @transform_0, window_bounds = array<i64: 1, 104, 128>}, {transform_indices = @transform_1, window_bounds = array<i64: 9, 128, 128>}, {transform_indices = @transform_2, window_bounds = array<i64: 1, 128>}, {transform_indices = @transform_3, window_bounds = array<i64: 1, 80, 128>}]} {
    %cst = arith.constant 0.000000e+00 : f32
    %0 = vector.broadcast %cst : f32 to vector<80x128xf32>
    %c0 = arith.constant 0 : index
    %c0_0 = arith.constant 0 : index
    %c0_1 = arith.constant 0 : index
    %1 = vector.load %arg2[%c0, %c0_0, %c0_1] : memref<1x104x128xbf16, #tpu.memory_space<vmem>>, vector<1x80x128xbf16>
    %2 = vector.shape_cast %1 : vector<1x80x128xbf16> to vector<80x128xbf16>
    %c0_2 = arith.constant 0 : index
    %c0_3 = arith.constant 0 : index
    %c0_4 = arith.constant 0 : index
    %3 = vector.load %arg3[%c0_2, %c0_3, %c0_4] : memref<9x128x128xbf16, #tpu.memory_space<vmem>>, vector<1x128x128xbf16>
    %4 = vector.shape_cast %3 : vector<1x128x128xbf16> to vector<128x128xbf16>
    %cst_5 = arith.constant dense<0.000000e+00> : vector<80x128xf32>
    %5 = tpu.matmul %2, %4, %cst_5 {dimension_numbers = #tpu.dot_dimension_numbers<[1], [0], [0], [1], [0, 0, 1, 1], [], []>} : vector<80x128xbf16>, vector<128x128xbf16>, vector<80x128xf32> -> vector<80x128xf32>
    %6 = arith.addf %0, %5 : vector<80x128xf32>
    %c0_6 = arith.constant 0 : index
    %c1 = arith.constant 1 : index
    %c0_7 = arith.constant 0 : index
    %7 = vector.load %arg2[%c0_6, %c1, %c0_7] : memref<1x104x128xbf16, #tpu.memory_space<vmem>>, vector<1x80x128xbf16>
    %8 = vector.shape_cast %7 : vector<1x80x128xbf16> to vector<80x128xbf16>
    %c1_8 = arith.constant 1 : index
    %c0_9 = arith.constant 0 : index
    %c0_10 = arith.constant 0 : index
    %9 = vector.load %arg3[%c1_8, %c0_9, %c0_10] : memref<9x128x128xbf16, #tpu.memory_space<vmem>>, vector<1x128x128xbf16>
    %10 = vector.shape_cast %9 : vector<1x128x128xbf16> to vector<128x128xbf16>
    %cst_11 = arith.constant dense<0.000000e+00> : vector<80x128xf32>
    %11 = tpu.matmul %8, %10, %cst_11 {dimension_numbers = #tpu.dot_dimension_numbers<[1], [0], [0], [1], [0, 0, 1, 1], [], []>} : vector<80x128xbf16>, vector<128x128xbf16>, vector<80x128xf32> -> vector<80x128xf32>
    %12 = arith.addf %6, %11 : vector<80x128xf32>
    %c0_12 = arith.constant 0 : index
    %c2 = arith.constant 2 : index
    %c0_13 = arith.constant 0 : index
    %13 = vector.load %arg2[%c0_12, %c2, %c0_13] : memref<1x104x128xbf16, #tpu.memory_space<vmem>>, vector<1x80x128xbf16>
    %14 = vector.shape_cast %13 : vector<1x80x128xbf16> to vector<80x128xbf16>
    %c2_14 = arith.constant 2 : index
    %c0_15 = arith.constant 0 : index
    %c0_16 = arith.constant 0 : index
    %15 = vector.load %arg3[%c2_14, %c0_15, %c0_16] : memref<9x128x128xbf16, #tpu.memory_space<vmem>>, vector<1x128x128xbf16>
    %16 = vector.shape_cast %15 : vector<1x128x128xbf16> to vector<128x128xbf16>
    %cst_17 = arith.constant dense<0.000000e+00> : vector<80x128xf32>
    %17 = tpu.matmul %14, %16, %cst_17 {dimension_numbers = #tpu.dot_dimension_numbers<[1], [0], [0], [1], [0, 0, 1, 1], [], []>} : vector<80x128xbf16>, vector<128x128xbf16>, vector<80x128xf32> -> vector<80x128xf32>
    %18 = arith.addf %12, %17 : vector<80x128xf32>
    %c0_18 = arith.constant 0 : index
    %c10 = arith.constant 10 : index
    %c0_19 = arith.constant 0 : index
    %19 = vector.load %arg2[%c0_18, %c10, %c0_19] : memref<1x104x128xbf16, #tpu.memory_space<vmem>>, vector<1x80x128xbf16>
    %20 = vector.shape_cast %19 : vector<1x80x128xbf16> to vector<80x128xbf16>
    %c3 = arith.constant 3 : index
    %c0_20 = arith.constant 0 : index
    %c0_21 = arith.constant 0 : index
    %21 = vector.load %arg3[%c3, %c0_20, %c0_21] : memref<9x128x128xbf16, #tpu.memory_space<vmem>>, vector<1x128x128xbf16>
    %22 = vector.shape_cast %21 : vector<1x128x128xbf16> to vector<128x128xbf16>
    %cst_22 = arith.constant dense<0.000000e+00> : vector<80x128xf32>
    %23 = tpu.matmul %20, %22, %cst_22 {dimension_numbers = #tpu.dot_dimension_numbers<[1], [0], [0], [1], [0, 0, 1, 1], [], []>} : vector<80x128xbf16>, vector<128x128xbf16>, vector<80x128xf32> -> vector<80x128xf32>
    %24 = arith.addf %18, %23 : vector<80x128xf32>
    %c0_23 = arith.constant 0 : index
    %c11 = arith.constant 11 : index
    %c0_24 = arith.constant 0 : index
    %25 = vector.load %arg2[%c0_23, %c11, %c0_24] : memref<1x104x128xbf16, #tpu.memory_space<vmem>>, vector<1x80x128xbf16>
    %26 = vector.shape_cast %25 : vector<1x80x128xbf16> to vector<80x128xbf16>
    %c4 = arith.constant 4 : index
    %c0_25 = arith.constant 0 : index
    %c0_26 = arith.constant 0 : index
    %27 = vector.load %arg3[%c4, %c0_25, %c0_26] : memref<9x128x128xbf16, #tpu.memory_space<vmem>>, vector<1x128x128xbf16>
    %28 = vector.shape_cast %27 : vector<1x128x128xbf16> to vector<128x128xbf16>
    %cst_27 = arith.constant dense<0.000000e+00> : vector<80x128xf32>
    %29 = tpu.matmul %26, %28, %cst_27 {dimension_numbers = #tpu.dot_dimension_numbers<[1], [0], [0], [1], [0, 0, 1, 1], [], []>} : vector<80x128xbf16>, vector<128x128xbf16>, vector<80x128xf32> -> vector<80x128xf32>
    %30 = arith.addf %24, %29 : vector<80x128xf32>
    %c0_28 = arith.constant 0 : index
    %c12 = arith.constant 12 : index
    %c0_29 = arith.constant 0 : index
    %31 = vector.load %arg2[%c0_28, %c12, %c0_29] : memref<1x104x128xbf16, #tpu.memory_space<vmem>>, vector<1x80x128xbf16>
    %32 = vector.shape_cast %31 : vector<1x80x128xbf16> to vector<80x128xbf16>
    %c5 = arith.constant 5 : index
    %c0_30 = arith.constant 0 : index
    %c0_31 = arith.constant 0 : index
    %33 = vector.load %arg3[%c5, %c0_30, %c0_31] : memref<9x128x128xbf16, #tpu.memory_space<vmem>>, vector<1x128x128xbf16>
    %34 = vector.shape_cast %33 : vector<1x128x128xbf16> to vector<128x128xbf16>
    %cst_32 = arith.constant dense<0.000000e+00> : vector<80x128xf32>
    %35 = tpu.matmul %32, %34, %cst_32 {dimension_numbers = #tpu.dot_dimension_numbers<[1], [0], [0], [1], [0, 0, 1, 1], [], []>} : vector<80x128xbf16>, vector<128x128xbf16>, vector<80x128xf32> -> vector<80x128xf32>
    %36 = arith.addf %30, %35 : vector<80x128xf32>
    %c0_33 = arith.constant 0 : index
    %c20 = arith.constant 20 : index
    %c0_34 = arith.constant 0 : index
    %37 = vector.load %arg2[%c0_33, %c20, %c0_34] : memref<1x104x128xbf16, #tpu.memory_space<vmem>>, vector<1x80x128xbf16>
    %38 = vector.shape_cast %37 : vector<1x80x128xbf16> to vector<80x128xbf16>
    %c6 = arith.constant 6 : index
    %c0_35 = arith.constant 0 : index
    %c0_36 = arith.constant 0 : index
    %39 = vector.load %arg3[%c6, %c0_35, %c0_36] : memref<9x128x128xbf16, #tpu.memory_space<vmem>>, vector<1x128x128xbf16>
    %40 = vector.shape_cast %39 : vector<1x128x128xbf16> to vector<128x128xbf16>
    %cst_37 = arith.constant dense<0.000000e+00> : vector<80x128xf32>
    %41 = tpu.matmul %38, %40, %cst_37 {dimension_numbers = #tpu.dot_dimension_numbers<[1], [0], [0], [1], [0, 0, 1, 1], [], []>} : vector<80x128xbf16>, vector<128x128xbf16>, vector<80x128xf32> -> vector<80x128xf32>
    %42 = arith.addf %36, %41 : vector<80x128xf32>
    %c0_38 = arith.constant 0 : index
    %c21 = arith.constant 21 : index
    %c0_39 = arith.constant 0 : index
    %43 = vector.load %arg2[%c0_38, %c21, %c0_39] : memref<1x104x128xbf16, #tpu.memory_space<vmem>>, vector<1x80x128xbf16>
    %44 = vector.shape_cast %43 : vector<1x80x128xbf16> to vector<80x128xbf16>
    %c7 = arith.constant 7 : index
    %c0_40 = arith.constant 0 : index
    %c0_41 = arith.constant 0 : index
    %45 = vector.load %arg3[%c7, %c0_40, %c0_41] : memref<9x128x128xbf16, #tpu.memory_space<vmem>>, vector<1x128x128xbf16>
    %46 = vector.shape_cast %45 : vector<1x128x128xbf16> to vector<128x128xbf16>
    %cst_42 = arith.constant dense<0.000000e+00> : vector<80x128xf32>
    %47 = tpu.matmul %44, %46, %cst_42 {dimension_numbers = #tpu.dot_dimension_numbers<[1], [0], [0], [1], [0, 0, 1, 1], [], []>} : vector<80x128xbf16>, vector<128x128xbf16>, vector<80x128xf32> -> vector<80x128xf32>
    %48 = arith.addf %42, %47 : vector<80x128xf32>
    %c0_43 = arith.constant 0 : index
    %c22 = arith.constant 22 : index
    %c0_44 = arith.constant 0 : index
    %49 = vector.load %arg2[%c0_43, %c22, %c0_44] : memref<1x104x128xbf16, #tpu.memory_space<vmem>>, vector<1x80x128xbf16>
    %50 = vector.shape_cast %49 : vector<1x80x128xbf16> to vector<80x128xbf16>
    %c8 = arith.constant 8 : index
    %c0_45 = arith.constant 0 : index
    %c0_46 = arith.constant 0 : index
    %51 = vector.load %arg3[%c8, %c0_45, %c0_46] : memref<9x128x128xbf16, #tpu.memory_space<vmem>>, vector<1x128x128xbf16>
    %52 = vector.shape_cast %51 : vector<1x128x128xbf16> to vector<128x128xbf16>
    %cst_47 = arith.constant dense<0.000000e+00> : vector<80x128xf32>
    %53 = tpu.matmul %50, %52, %cst_47 {dimension_numbers = #tpu.dot_dimension_numbers<[1], [0], [0], [1], [0, 0, 1, 1], [], []>} : vector<80x128xbf16>, vector<128x128xbf16>, vector<80x128xf32> -> vector<80x128xf32>
    %54 = arith.addf %48, %53 : vector<80x128xf32>
    %c0_48 = arith.constant 0 : index
    %c0_49 = arith.constant 0 : index
    %55 = vector.load %arg4[%c0_48, %c0_49] : memref<1x128xf32, #tpu.memory_space<vmem>>, vector<1x128xf32>
    %56 = vector.broadcast %55 : vector<1x128xf32> to vector<80x128xf32>
    %57 = arith.addf %54, %56 : vector<80x128xf32>
    %58 = math.tanh %57 : vector<80x128xf32>
    %59 = arith.truncf %58 : vector<80x128xf32> to vector<80x128xbf16>
    %c0_50 = arith.constant 0 : index
    %c0_51 = arith.constant 0 : index
    %c0_52 = arith.constant 0 : index
    %60 = vector.load %arg5[%c0_50, %c0_51, %c0_52] : memref<1x80x128xbf16, #tpu.memory_space<vmem>>, vector<1x80x128xbf16>
    %61 = vector.shape_cast %60 : vector<1x80x128xbf16> to vector<80x128xbf16>
    %62 = vector.shape_cast %59 : vector<80x128xbf16> to vector<1x80x128xbf16>
    tpu.vector_store %arg5[%c0_50, %c0_51, %c0_52], %62 {strides = array<i32>} : memref<1x80x128xbf16, #tpu.memory_space<vmem>>, vector<1x80x128xbf16>,
    return
  }
  func.func @transform_0(%arg0: i32, %arg1: i32) -> (i32, i32, i32) {
    %c0_i32 = arith.constant 0 : i32
    %c0_i32_0 = arith.constant 0 : i32
    %c0_i32_1 = arith.constant 0 : i32
    return %arg0, %c0_i32, %c0_i32_0 : i32, i32, i32
  }
  func.func @transform_1(%arg0: i32, %arg1: i32) -> (i32, i32, i32) {
    %c0_i32 = arith.constant 0 : i32
    %c0_i32_0 = arith.constant 0 : i32
    %c0_i32_1 = arith.constant 0 : i32
    return %c0_i32, %c0_i32_0, %arg1 : i32, i32, i32
  }
  func.func @transform_2(%arg0: i32, %arg1: i32) -> (i32, i32) {
    %c0_i32 = arith.constant 0 : i32
    %c0_i32_0 = arith.constant 0 : i32
    return %c0_i32, %arg1 : i32, i32
  }
  func.func @transform_3(%arg0: i32, %arg1: i32) -> (i32, i32, i32) {
    %c0_i32 = arith.constant 0 : i32
    %c0_i32_0 = arith.constant 0 : i32
    return %arg0, %c0_i32, %arg1 : i32, i32, i32
  }
}

module attributes {stable_mosaic.version = 11 : i64} {
  func.func @_conv_kernel(%arg0: i32, %arg1: i32, %arg2: memref<1x128x128xbf16, #tpu.memory_space<vmem>>, %arg3: memref<9x128x128xbf16, #tpu.memory_space<vmem>>, %arg4: memref<1x128xf32, #tpu.memory_space<vmem>>, %arg5: memref<1x24x128xbf16, #tpu.memory_space<vmem>>) attributes {dimension_semantics = [#tpu.dimension_semantics<parallel>, #tpu.dimension_semantics<parallel>], iteration_bounds = array<i64: 2, 1>, scalar_prefetch = 0 : i64, scratch_operands = 0 : i64, tpu.core_type = #tpu.core_type<tc>, window_params = [{transform_indices = @transform_0, window_bounds = array<i64: 1, 128, 128>}, {transform_indices = @transform_1, window_bounds = array<i64: 9, 128, 128>}, {transform_indices = @transform_2, window_bounds = array<i64: 1, 128>}, {transform_indices = @transform_3, window_bounds = array<i64: 1, 24, 128>}]} {
    %cst = arith.constant 0.000000e+00 : f32
    %0 = vector.broadcast %cst : f32 to vector<24x128xf32>
    %c0 = arith.constant 0 : index
    %c0_0 = arith.constant 0 : index
    %c0_1 = arith.constant 0 : index
    %1 = vector.load %arg2[%c0, %c0_0, %c0_1] : memref<1x128x128xbf16, #tpu.memory_space<vmem>>, vector<1x24x128xbf16>
    %2 = vector.shape_cast %1 : vector<1x24x128xbf16> to vector<24x128xbf16>
    %c0_2 = arith.constant 0 : index
    %c0_3 = arith.constant 0 : index
    %c0_4 = arith.constant 0 : index
    %3 = vector.load %arg3[%c0_2, %c0_3, %c0_4] : memref<9x128x128xbf16, #tpu.memory_space<vmem>>, vector<1x128x128xbf16>
    %4 = vector.shape_cast %3 : vector<1x128x128xbf16> to vector<128x128xbf16>
    %cst_5 = arith.constant dense<0.000000e+00> : vector<24x128xf32>
    %5 = tpu.matmul %2, %4, %cst_5 {dimension_numbers = #tpu.dot_dimension_numbers<[1], [0], [0], [1], [0, 0, 1, 1], [], []>} : vector<24x128xbf16>, vector<128x128xbf16>, vector<24x128xf32> -> vector<24x128xf32>
    %6 = arith.addf %0, %5 : vector<24x128xf32>
    %c0_6 = arith.constant 0 : index
    %c32 = arith.constant 32 : index
    %c0_7 = arith.constant 0 : index
    %7 = vector.load %arg2[%c0_6, %c32, %c0_7] : memref<1x128x128xbf16, #tpu.memory_space<vmem>>, vector<1x24x128xbf16>
    %8 = vector.shape_cast %7 : vector<1x24x128xbf16> to vector<24x128xbf16>
    %c1 = arith.constant 1 : index
    %c0_8 = arith.constant 0 : index
    %c0_9 = arith.constant 0 : index
    %9 = vector.load %arg3[%c1, %c0_8, %c0_9] : memref<9x128x128xbf16, #tpu.memory_space<vmem>>, vector<1x128x128xbf16>
    %10 = vector.shape_cast %9 : vector<1x128x128xbf16> to vector<128x128xbf16>
    %cst_10 = arith.constant dense<0.000000e+00> : vector<24x128xf32>
    %11 = tpu.matmul %8, %10, %cst_10 {dimension_numbers = #tpu.dot_dimension_numbers<[1], [0], [0], [1], [0, 0, 1, 1], [], []>} : vector<24x128xbf16>, vector<128x128xbf16>, vector<24x128xf32> -> vector<24x128xf32>
    %12 = arith.addf %6, %11 : vector<24x128xf32>
    %c0_11 = arith.constant 0 : index
    %c1_12 = arith.constant 1 : index
    %c0_13 = arith.constant 0 : index
    %13 = vector.load %arg2[%c0_11, %c1_12, %c0_13] : memref<1x128x128xbf16, #tpu.memory_space<vmem>>, vector<1x24x128xbf16>
    %14 = vector.shape_cast %13 : vector<1x24x128xbf16> to vector<24x128xbf16>
    %c2 = arith.constant 2 : index
    %c0_14 = arith.constant 0 : index
    %c0_15 = arith.constant 0 : index
    %15 = vector.load %arg3[%c2, %c0_14, %c0_15] : memref<9x128x128xbf16, #tpu.memory_space<vmem>>, vector<1x128x128xbf16>
    %16 = vector.shape_cast %15 : vector<1x128x128xbf16> to vector<128x128xbf16>
    %cst_16 = arith.constant dense<0.000000e+00> : vector<24x128xf32>
    %17 = tpu.matmul %14, %16, %cst_16 {dimension_numbers = #tpu.dot_dimension_numbers<[1], [0], [0], [1], [0, 0, 1, 1], [], []>} : vector<24x128xbf16>, vector<128x128xbf16>, vector<24x128xf32> -> vector<24x128xf32>
    %18 = arith.addf %12, %17 : vector<24x128xf32>
    %c0_17 = arith.constant 0 : index
    %c64 = arith.constant 64 : index
    %c0_18 = arith.constant 0 : index
    %19 = vector.load %arg2[%c0_17, %c64, %c0_18] : memref<1x128x128xbf16, #tpu.memory_space<vmem>>, vector<1x24x128xbf16>
    %20 = vector.shape_cast %19 : vector<1x24x128xbf16> to vector<24x128xbf16>
    %c3 = arith.constant 3 : index
    %c0_19 = arith.constant 0 : index
    %c0_20 = arith.constant 0 : index
    %21 = vector.load %arg3[%c3, %c0_19, %c0_20] : memref<9x128x128xbf16, #tpu.memory_space<vmem>>, vector<1x128x128xbf16>
    %22 = vector.shape_cast %21 : vector<1x128x128xbf16> to vector<128x128xbf16>
    %cst_21 = arith.constant dense<0.000000e+00> : vector<24x128xf32>
    %23 = tpu.matmul %20, %22, %cst_21 {dimension_numbers = #tpu.dot_dimension_numbers<[1], [0], [0], [1], [0, 0, 1, 1], [], []>} : vector<24x128xbf16>, vector<128x128xbf16>, vector<24x128xf32> -> vector<24x128xf32>
    %24 = arith.addf %18, %23 : vector<24x128xf32>
    %c0_22 = arith.constant 0 : index
    %c96 = arith.constant 96 : index
    %c0_23 = arith.constant 0 : index
    %25 = vector.load %arg2[%c0_22, %c96, %c0_23] : memref<1x128x128xbf16, #tpu.memory_space<vmem>>, vector<1x24x128xbf16>
    %26 = vector.shape_cast %25 : vector<1x24x128xbf16> to vector<24x128xbf16>
    %c4 = arith.constant 4 : index
    %c0_24 = arith.constant 0 : index
    %c0_25 = arith.constant 0 : index
    %27 = vector.load %arg3[%c4, %c0_24, %c0_25] : memref<9x128x128xbf16, #tpu.memory_space<vmem>>, vector<1x128x128xbf16>
    %28 = vector.shape_cast %27 : vector<1x128x128xbf16> to vector<128x128xbf16>
    %cst_26 = arith.constant dense<0.000000e+00> : vector<24x128xf32>
    %29 = tpu.matmul %26, %28, %cst_26 {dimension_numbers = #tpu.dot_dimension_numbers<[1], [0], [0], [1], [0, 0, 1, 1], [], []>} : vector<24x128xbf16>, vector<128x128xbf16>, vector<24x128xf32> -> vector<24x128xf32>
    %30 = arith.addf %24, %29 : vector<24x128xf32>
    %c0_27 = arith.constant 0 : index
    %c65 = arith.constant 65 : index
    %c0_28 = arith.constant 0 : index
    %31 = vector.load %arg2[%c0_27, %c65, %c0_28] : memref<1x128x128xbf16, #tpu.memory_space<vmem>>, vector<1x24x128xbf16>
    %32 = vector.shape_cast %31 : vector<1x24x128xbf16> to vector<24x128xbf16>
    %c5 = arith.constant 5 : index
    %c0_29 = arith.constant 0 : index
    %c0_30 = arith.constant 0 : index
    %33 = vector.load %arg3[%c5, %c0_29, %c0_30] : memref<9x128x128xbf16, #tpu.memory_space<vmem>>, vector<1x128x128xbf16>
    %34 = vector.shape_cast %33 : vector<1x128x128xbf16> to vector<128x128xbf16>
    %cst_31 = arith.constant dense<0.000000e+00> : vector<24x128xf32>
    %35 = tpu.matmul %32, %34, %cst_31 {dimension_numbers = #tpu.dot_dimension_numbers<[1], [0], [0], [1], [0, 0, 1, 1], [], []>} : vector<24x128xbf16>, vector<128x128xbf16>, vector<24x128xf32> -> vector<24x128xf32>
    %36 = arith.addf %30, %35 : vector<24x128xf32>
    %c0_32 = arith.constant 0 : index
    %c5_33 = arith.constant 5 : index
    %c0_34 = arith.constant 0 : index
    %37 = vector.load %arg2[%c0_32, %c5_33, %c0_34] : memref<1x128x128xbf16, #tpu.memory_space<vmem>>, vector<1x24x128xbf16>
    %38 = vector.shape_cast %37 : vector<1x24x128xbf16> to vector<24x128xbf16>
    %c6 = arith.constant 6 : index
    %c0_35 = arith.constant 0 : index
    %c0_36 = arith.constant 0 : index
    %39 = vector.load %arg3[%c6, %c0_35, %c0_36] : memref<9x128x128xbf16, #tpu.memory_space<vmem>>, vector<1x128x128xbf16>
    %40 = vector.shape_cast %39 : vector<1x128x128xbf16> to vector<128x128xbf16>
    %cst_37 = arith.constant dense<0.000000e+00> : vector<24x128xf32>
    %41 = tpu.matmul %38, %40, %cst_37 {dimension_numbers = #tpu.dot_dimension_numbers<[1], [0], [0], [1], [0, 0, 1, 1], [], []>} : vector<24x128xbf16>, vector<128x128xbf16>, vector<24x128xf32> -> vector<24x128xf32>
    %42 = arith.addf %36, %41 : vector<24x128xf32>
    %c0_38 = arith.constant 0 : index
    %c37 = arith.constant 37 : index
    %c0_39 = arith.constant 0 : index
    %43 = vector.load %arg2[%c0_38, %c37, %c0_39] : memref<1x128x128xbf16, #tpu.memory_space<vmem>>, vector<1x24x128xbf16>
    %44 = vector.shape_cast %43 : vector<1x24x128xbf16> to vector<24x128xbf16>
    %c7 = arith.constant 7 : index
    %c0_40 = arith.constant 0 : index
    %c0_41 = arith.constant 0 : index
    %45 = vector.load %arg3[%c7, %c0_40, %c0_41] : memref<9x128x128xbf16, #tpu.memory_space<vmem>>, vector<1x128x128xbf16>
    %46 = vector.shape_cast %45 : vector<1x128x128xbf16> to vector<128x128xbf16>
    %cst_42 = arith.constant dense<0.000000e+00> : vector<24x128xf32>
    %47 = tpu.matmul %44, %46, %cst_42 {dimension_numbers = #tpu.dot_dimension_numbers<[1], [0], [0], [1], [0, 0, 1, 1], [], []>} : vector<24x128xbf16>, vector<128x128xbf16>, vector<24x128xf32> -> vector<24x128xf32>
    %48 = arith.addf %42, %47 : vector<24x128xf32>
    %c0_43 = arith.constant 0 : index
    %c6_44 = arith.constant 6 : index
    %c0_45 = arith.constant 0 : index
    %49 = vector.load %arg2[%c0_43, %c6_44, %c0_45] : memref<1x128x128xbf16, #tpu.memory_space<vmem>>, vector<1x24x128xbf16>
    %50 = vector.shape_cast %49 : vector<1x24x128xbf16> to vector<24x128xbf16>
    %c8 = arith.constant 8 : index
    %c0_46 = arith.constant 0 : index
    %c0_47 = arith.constant 0 : index
    %51 = vector.load %arg3[%c8, %c0_46, %c0_47] : memref<9x128x128xbf16, #tpu.memory_space<vmem>>, vector<1x128x128xbf16>
    %52 = vector.shape_cast %51 : vector<1x128x128xbf16> to vector<128x128xbf16>
    %cst_48 = arith.constant dense<0.000000e+00> : vector<24x128xf32>
    %53 = tpu.matmul %50, %52, %cst_48 {dimension_numbers = #tpu.dot_dimension_numbers<[1], [0], [0], [1], [0, 0, 1, 1], [], []>} : vector<24x128xbf16>, vector<128x128xbf16>, vector<24x128xf32> -> vector<24x128xf32>
    %54 = arith.addf %48, %53 : vector<24x128xf32>
    %c0_49 = arith.constant 0 : index
    %c0_50 = arith.constant 0 : index
    %55 = vector.load %arg4[%c0_49, %c0_50] : memref<1x128xf32, #tpu.memory_space<vmem>>, vector<1x128xf32>
    %56 = vector.broadcast %55 : vector<1x128xf32> to vector<24x128xf32>
    %57 = arith.addf %54, %56 : vector<24x128xf32>
    %cst_51 = arith.constant 0.000000e+00 : f32
    %58 = vector.broadcast %cst_51 : f32 to vector<24x128xf32>
    %59 = arith.maximumf %57, %58 : vector<24x128xf32>
    %60 = arith.truncf %59 : vector<24x128xf32> to vector<24x128xbf16>
    %c0_52 = arith.constant 0 : index
    %c0_53 = arith.constant 0 : index
    %c0_54 = arith.constant 0 : index
    %61 = vector.load %arg5[%c0_52, %c0_53, %c0_54] : memref<1x24x128xbf16, #tpu.memory_space<vmem>>, vector<1x24x128xbf16>
    %62 = vector.shape_cast %61 : vector<1x24x128xbf16> to vector<24x128xbf16>
    %63 = vector.shape_cast %60 : vector<24x128xbf16> to vector<1x24x128xbf16>
    tpu.vector_store %arg5[%c0_52, %c0_53, %c0_54], %63 {strides = array<i32>} : memref<1x24x128xbf16, #tpu.memory_space<vmem>>, vector<1x24x128xbf16>,
    return
  }
  func.func @transform_0(%arg0: i32, %arg1: i32) -> (i32, i32, i32) {
    %c0_i32 = arith.constant 0 : i32
    %c0_i32_0 = arith.constant 0 : i32
    %c0_i32_1 = arith.constant 0 : i32
    return %arg0, %c0_i32, %c0_i32_0 : i32, i32, i32
  }
  func.func @transform_1(%arg0: i32, %arg1: i32) -> (i32, i32, i32) {
    %c0_i32 = arith.constant 0 : i32
    %c0_i32_0 = arith.constant 0 : i32
    %c0_i32_1 = arith.constant 0 : i32
    return %c0_i32, %c0_i32_0, %arg1 : i32, i32, i32
  }
  func.func @transform_2(%arg0: i32, %arg1: i32) -> (i32, i32) {
    %c0_i32 = arith.constant 0 : i32
    %c0_i32_0 = arith.constant 0 : i32
    return %c0_i32, %arg1 : i32, i32
  }
  func.func @transform_3(%arg0: i32, %arg1: i32) -> (i32, i32, i32) {
    %c0_i32 = arith.constant 0 : i32
    %c0_i32_0 = arith.constant 0 : i32
    return %arg0, %c0_i32, %arg1 : i32, i32, i32
  }
}

module attributes {stable_mosaic.version = 11 : i64} {
  func.func @_conv_kernel(%arg0: i32, %arg1: i32, %arg2: memref<1x16x128xbf16, #tpu.memory_space<vmem>>, %arg3: memref<1x128x128xbf16, #tpu.memory_space<vmem>>, %arg4: memref<1x128xf32, #tpu.memory_space<vmem>>, %arg5: memref<1x16x128xbf16, #tpu.memory_space<vmem>>) attributes {dimension_semantics = [#tpu.dimension_semantics<parallel>, #tpu.dimension_semantics<parallel>], iteration_bounds = array<i64: 2, 1>, scalar_prefetch = 0 : i64, scratch_operands = 0 : i64, tpu.core_type = #tpu.core_type<tc>, window_params = [{transform_indices = @transform_0, window_bounds = array<i64: 1, 16, 128>}, {transform_indices = @transform_1, window_bounds = array<i64: 1, 128, 128>}, {transform_indices = @transform_2, window_bounds = array<i64: 1, 128>}, {transform_indices = @transform_3, window_bounds = array<i64: 1, 16, 128>}]} {
    %cst = arith.constant 0.000000e+00 : f32
    %0 = vector.broadcast %cst : f32 to vector<16x128xf32>
    %c0 = arith.constant 0 : index
    %c0_0 = arith.constant 0 : index
    %c0_1 = arith.constant 0 : index
    %1 = vector.load %arg2[%c0, %c0_0, %c0_1] : memref<1x16x128xbf16, #tpu.memory_space<vmem>>, vector<1x16x128xbf16>
    %2 = vector.shape_cast %1 : vector<1x16x128xbf16> to vector<16x128xbf16>
    %c0_2 = arith.constant 0 : index
    %c0_3 = arith.constant 0 : index
    %c0_4 = arith.constant 0 : index
    %3 = vector.load %arg3[%c0_2, %c0_3, %c0_4] : memref<1x128x128xbf16, #tpu.memory_space<vmem>>, vector<1x128x128xbf16>
    %4 = vector.shape_cast %3 : vector<1x128x128xbf16> to vector<128x128xbf16>
    %cst_5 = arith.constant dense<0.000000e+00> : vector<16x128xf32>
    %5 = tpu.matmul %2, %4, %cst_5 {dimension_numbers = #tpu.dot_dimension_numbers<[1], [0], [0], [1], [0, 0, 1, 1], [], []>} : vector<16x128xbf16>, vector<128x128xbf16>, vector<16x128xf32> -> vector<16x128xf32>
    %6 = arith.addf %0, %5 : vector<16x128xf32>
    %c0_6 = arith.constant 0 : index
    %c0_7 = arith.constant 0 : index
    %7 = vector.load %arg4[%c0_6, %c0_7] : memref<1x128xf32, #tpu.memory_space<vmem>>, vector<1x128xf32>
    %8 = vector.broadcast %7 : vector<1x128xf32> to vector<16x128xf32>
    %9 = arith.addf %6, %8 : vector<16x128xf32>
    %10 = arith.truncf %9 : vector<16x128xf32> to vector<16x128xbf16>
    %c0_8 = arith.constant 0 : index
    %c0_9 = arith.constant 0 : index
    %c0_10 = arith.constant 0 : index
    %11 = vector.load %arg5[%c0_8, %c0_9, %c0_10] : memref<1x16x128xbf16, #tpu.memory_space<vmem>>, vector<1x16x128xbf16>
    %12 = vector.shape_cast %11 : vector<1x16x128xbf16> to vector<16x128xbf16>
    %13 = vector.shape_cast %10 : vector<16x128xbf16> to vector<1x16x128xbf16>
    tpu.vector_store %arg5[%c0_8, %c0_9, %c0_10], %13 {strides = array<i32>} : memref<1x16x128xbf16, #tpu.memory_space<vmem>>, vector<1x16x128xbf16>,
    return
  }
  func.func @transform_0(%arg0: i32, %arg1: i32) -> (i32, i32, i32) {
    %c0_i32 = arith.constant 0 : i32
    %c0_i32_0 = arith.constant 0 : i32
    %c0_i32_1 = arith.constant 0 : i32
    return %arg0, %c0_i32, %c0_i32_0 : i32, i32, i32
  }
  func.func @transform_1(%arg0: i32, %arg1: i32) -> (i32, i32, i32) {
    %c0_i32 = arith.constant 0 : i32
    %c0_i32_0 = arith.constant 0 : i32
    %c0_i32_1 = arith.constant 0 : i32
    return %c0_i32, %c0_i32_0, %arg1 : i32, i32, i32
  }
  func.func @transform_2(%arg0: i32, %arg1: i32) -> (i32, i32) {
    %c0_i32 = arith.constant 0 : i32
    %c0_i32_0 = arith.constant 0 : i32
    return %c0_i32, %arg1 : i32, i32
  }
  func.func @transform_3(%arg0: i32, %arg1: i32) -> (i32, i32, i32) {
    %c0_i32 = arith.constant 0 : i32
    %c0_i32_0 = arith.constant 0 : i32
    return %arg0, %c0_i32, %arg1 : i32, i32, i32
  }
}

module attributes {stable_mosaic.version = 11 : i64} {
  func.func @_conv_kernel(%arg0: i32, %arg1: i32, %arg2: memref<1x40x128xbf16, #tpu.memory_space<vmem>>, %arg3: memref<9x128x128xbf16, #tpu.memory_space<vmem>>, %arg4: memref<1x128xf32, #tpu.memory_space<vmem>>, %arg5: memref<1x24x128xbf16, #tpu.memory_space<vmem>>, %arg6: memref<1x24x128xbf16, #tpu.memory_space<vmem>>) attributes {dimension_semantics = [#tpu.dimension_semantics<parallel>, #tpu.dimension_semantics<parallel>], iteration_bounds = array<i64: 2, 1>, scalar_prefetch = 0 : i64, scratch_operands = 0 : i64, tpu.core_type = #tpu.core_type<tc>, window_params = [{transform_indices = @transform_0, window_bounds = array<i64: 1, 40, 128>}, {transform_indices = @transform_1, window_bounds = array<i64: 9, 128, 128>}, {transform_indices = @transform_2, window_bounds = array<i64: 1, 128>}, {transform_indices = @transform_3, window_bounds = array<i64: 1, 24, 128>}, {transform_indices = @transform_4, window_bounds = array<i64: 1, 24, 128>}]} {
    %cst = arith.constant 0.000000e+00 : f32
    %0 = vector.broadcast %cst : f32 to vector<24x128xf32>
    %c0 = arith.constant 0 : index
    %c0_0 = arith.constant 0 : index
    %c0_1 = arith.constant 0 : index
    %1 = vector.load %arg2[%c0, %c0_0, %c0_1] : memref<1x40x128xbf16, #tpu.memory_space<vmem>>, vector<1x24x128xbf16>
    %2 = vector.shape_cast %1 : vector<1x24x128xbf16> to vector<24x128xbf16>
    %c0_2 = arith.constant 0 : index
    %c0_3 = arith.constant 0 : index
    %c0_4 = arith.constant 0 : index
    %3 = vector.load %arg3[%c0_2, %c0_3, %c0_4] : memref<9x128x128xbf16, #tpu.memory_space<vmem>>, vector<1x128x128xbf16>
    %4 = vector.shape_cast %3 : vector<1x128x128xbf16> to vector<128x128xbf16>
    %cst_5 = arith.constant dense<0.000000e+00> : vector<24x128xf32>
    %5 = tpu.matmul %2, %4, %cst_5 {dimension_numbers = #tpu.dot_dimension_numbers<[1], [0], [0], [1], [0, 0, 1, 1], [], []>} : vector<24x128xbf16>, vector<128x128xbf16>, vector<24x128xf32> -> vector<24x128xf32>
    %6 = arith.addf %0, %5 : vector<24x128xf32>
    %c0_6 = arith.constant 0 : index
    %c1 = arith.constant 1 : index
    %c0_7 = arith.constant 0 : index
    %7 = vector.load %arg2[%c0_6, %c1, %c0_7] : memref<1x40x128xbf16, #tpu.memory_space<vmem>>, vector<1x24x128xbf16>
    %8 = vector.shape_cast %7 : vector<1x24x128xbf16> to vector<24x128xbf16>
    %c1_8 = arith.constant 1 : index
    %c0_9 = arith.constant 0 : index
    %c0_10 = arith.constant 0 : index
    %9 = vector.load %arg3[%c1_8, %c0_9, %c0_10] : memref<9x128x128xbf16, #tpu.memory_space<vmem>>, vector<1x128x128xbf16>
    %10 = vector.shape_cast %9 : vector<1x128x128xbf16> to vector<128x128xbf16>
    %cst_11 = arith.constant dense<0.000000e+00> : vector<24x128xf32>
    %11 = tpu.matmul %8, %10, %cst_11 {dimension_numbers = #tpu.dot_dimension_numbers<[1], [0], [0], [1], [0, 0, 1, 1], [], []>} : vector<24x128xbf16>, vector<128x128xbf16>, vector<24x128xf32> -> vector<24x128xf32>
    %12 = arith.addf %6, %11 : vector<24x128xf32>
    %c0_12 = arith.constant 0 : index
    %c2 = arith.constant 2 : index
    %c0_13 = arith.constant 0 : index
    %13 = vector.load %arg2[%c0_12, %c2, %c0_13] : memref<1x40x128xbf16, #tpu.memory_space<vmem>>, vector<1x24x128xbf16>
    %14 = vector.shape_cast %13 : vector<1x24x128xbf16> to vector<24x128xbf16>
    %c2_14 = arith.constant 2 : index
    %c0_15 = arith.constant 0 : index
    %c0_16 = arith.constant 0 : index
    %15 = vector.load %arg3[%c2_14, %c0_15, %c0_16] : memref<9x128x128xbf16, #tpu.memory_space<vmem>>, vector<1x128x128xbf16>
    %16 = vector.shape_cast %15 : vector<1x128x128xbf16> to vector<128x128xbf16>
    %cst_17 = arith.constant dense<0.000000e+00> : vector<24x128xf32>
    %17 = tpu.matmul %14, %16, %cst_17 {dimension_numbers = #tpu.dot_dimension_numbers<[1], [0], [0], [1], [0, 0, 1, 1], [], []>} : vector<24x128xbf16>, vector<128x128xbf16>, vector<24x128xf32> -> vector<24x128xf32>
    %18 = arith.addf %12, %17 : vector<24x128xf32>
    %c0_18 = arith.constant 0 : index
    %c6 = arith.constant 6 : index
    %c0_19 = arith.constant 0 : index
    %19 = vector.load %arg2[%c0_18, %c6, %c0_19] : memref<1x40x128xbf16, #tpu.memory_space<vmem>>, vector<1x24x128xbf16>
    %20 = vector.shape_cast %19 : vector<1x24x128xbf16> to vector<24x128xbf16>
    %c3 = arith.constant 3 : index
    %c0_20 = arith.constant 0 : index
    %c0_21 = arith.constant 0 : index
    %21 = vector.load %arg3[%c3, %c0_20, %c0_21] : memref<9x128x128xbf16, #tpu.memory_space<vmem>>, vector<1x128x128xbf16>
    %22 = vector.shape_cast %21 : vector<1x128x128xbf16> to vector<128x128xbf16>
    %cst_22 = arith.constant dense<0.000000e+00> : vector<24x128xf32>
    %23 = tpu.matmul %20, %22, %cst_22 {dimension_numbers = #tpu.dot_dimension_numbers<[1], [0], [0], [1], [0, 0, 1, 1], [], []>} : vector<24x128xbf16>, vector<128x128xbf16>, vector<24x128xf32> -> vector<24x128xf32>
    %24 = arith.addf %18, %23 : vector<24x128xf32>
    %c0_23 = arith.constant 0 : index
    %c7 = arith.constant 7 : index
    %c0_24 = arith.constant 0 : index
    %25 = vector.load %arg2[%c0_23, %c7, %c0_24] : memref<1x40x128xbf16, #tpu.memory_space<vmem>>, vector<1x24x128xbf16>
    %26 = vector.shape_cast %25 : vector<1x24x128xbf16> to vector<24x128xbf16>
    %c4 = arith.constant 4 : index
    %c0_25 = arith.constant 0 : index
    %c0_26 = arith.constant 0 : index
    %27 = vector.load %arg3[%c4, %c0_25, %c0_26] : memref<9x128x128xbf16, #tpu.memory_space<vmem>>, vector<1x128x128xbf16>
    %28 = vector.shape_cast %27 : vector<1x128x128xbf16> to vector<128x128xbf16>
    %cst_27 = arith.constant dense<0.000000e+00> : vector<24x128xf32>
    %29 = tpu.matmul %26, %28, %cst_27 {dimension_numbers = #tpu.dot_dimension_numbers<[1], [0], [0], [1], [0, 0, 1, 1], [], []>} : vector<24x128xbf16>, vector<128x128xbf16>, vector<24x128xf32> -> vector<24x128xf32>
    %30 = arith.addf %24, %29 : vector<24x128xf32>
    %c0_28 = arith.constant 0 : index
    %c8 = arith.constant 8 : index
    %c0_29 = arith.constant 0 : index
    %31 = vector.load %arg2[%c0_28, %c8, %c0_29] : memref<1x40x128xbf16, #tpu.memory_space<vmem>>, vector<1x24x128xbf16>
    %32 = vector.shape_cast %31 : vector<1x24x128xbf16> to vector<24x128xbf16>
    %c5 = arith.constant 5 : index
    %c0_30 = arith.constant 0 : index
    %c0_31 = arith.constant 0 : index
    %33 = vector.load %arg3[%c5, %c0_30, %c0_31] : memref<9x128x128xbf16, #tpu.memory_space<vmem>>, vector<1x128x128xbf16>
    %34 = vector.shape_cast %33 : vector<1x128x128xbf16> to vector<128x128xbf16>
    %cst_32 = arith.constant dense<0.000000e+00> : vector<24x128xf32>
    %35 = tpu.matmul %32, %34, %cst_32 {dimension_numbers = #tpu.dot_dimension_numbers<[1], [0], [0], [1], [0, 0, 1, 1], [], []>} : vector<24x128xbf16>, vector<128x128xbf16>, vector<24x128xf32> -> vector<24x128xf32>
    %36 = arith.addf %30, %35 : vector<24x128xf32>
    %c0_33 = arith.constant 0 : index
    %c12 = arith.constant 12 : index
    %c0_34 = arith.constant 0 : index
    %37 = vector.load %arg2[%c0_33, %c12, %c0_34] : memref<1x40x128xbf16, #tpu.memory_space<vmem>>, vector<1x24x128xbf16>
    %38 = vector.shape_cast %37 : vector<1x24x128xbf16> to vector<24x128xbf16>
    %c6_35 = arith.constant 6 : index
    %c0_36 = arith.constant 0 : index
    %c0_37 = arith.constant 0 : index
    %39 = vector.load %arg3[%c6_35, %c0_36, %c0_37] : memref<9x128x128xbf16, #tpu.memory_space<vmem>>, vector<1x128x128xbf16>
    %40 = vector.shape_cast %39 : vector<1x128x128xbf16> to vector<128x128xbf16>
    %cst_38 = arith.constant dense<0.000000e+00> : vector<24x128xf32>
    %41 = tpu.matmul %38, %40, %cst_38 {dimension_numbers = #tpu.dot_dimension_numbers<[1], [0], [0], [1], [0, 0, 1, 1], [], []>} : vector<24x128xbf16>, vector<128x128xbf16>, vector<24x128xf32> -> vector<24x128xf32>
    %42 = arith.addf %36, %41 : vector<24x128xf32>
    %c0_39 = arith.constant 0 : index
    %c13 = arith.constant 13 : index
    %c0_40 = arith.constant 0 : index
    %43 = vector.load %arg2[%c0_39, %c13, %c0_40] : memref<1x40x128xbf16, #tpu.memory_space<vmem>>, vector<1x24x128xbf16>
    %44 = vector.shape_cast %43 : vector<1x24x128xbf16> to vector<24x128xbf16>
    %c7_41 = arith.constant 7 : index
    %c0_42 = arith.constant 0 : index
    %c0_43 = arith.constant 0 : index
    %45 = vector.load %arg3[%c7_41, %c0_42, %c0_43] : memref<9x128x128xbf16, #tpu.memory_space<vmem>>, vector<1x128x128xbf16>
    %46 = vector.shape_cast %45 : vector<1x128x128xbf16> to vector<128x128xbf16>
    %cst_44 = arith.constant dense<0.000000e+00> : vector<24x128xf32>
    %47 = tpu.matmul %44, %46, %cst_44 {dimension_numbers = #tpu.dot_dimension_numbers<[1], [0], [0], [1], [0, 0, 1, 1], [], []>} : vector<24x128xbf16>, vector<128x128xbf16>, vector<24x128xf32> -> vector<24x128xf32>
    %48 = arith.addf %42, %47 : vector<24x128xf32>
    %c0_45 = arith.constant 0 : index
    %c14 = arith.constant 14 : index
    %c0_46 = arith.constant 0 : index
    %49 = vector.load %arg2[%c0_45, %c14, %c0_46] : memref<1x40x128xbf16, #tpu.memory_space<vmem>>, vector<1x24x128xbf16>
    %50 = vector.shape_cast %49 : vector<1x24x128xbf16> to vector<24x128xbf16>
    %c8_47 = arith.constant 8 : index
    %c0_48 = arith.constant 0 : index
    %c0_49 = arith.constant 0 : index
    %51 = vector.load %arg3[%c8_47, %c0_48, %c0_49] : memref<9x128x128xbf16, #tpu.memory_space<vmem>>, vector<1x128x128xbf16>
    %52 = vector.shape_cast %51 : vector<1x128x128xbf16> to vector<128x128xbf16>
    %cst_50 = arith.constant dense<0.000000e+00> : vector<24x128xf32>
    %53 = tpu.matmul %50, %52, %cst_50 {dimension_numbers = #tpu.dot_dimension_numbers<[1], [0], [0], [1], [0, 0, 1, 1], [], []>} : vector<24x128xbf16>, vector<128x128xbf16>, vector<24x128xf32> -> vector<24x128xf32>
    %54 = arith.addf %48, %53 : vector<24x128xf32>
    %c0_51 = arith.constant 0 : index
    %c0_52 = arith.constant 0 : index
    %55 = vector.load %arg4[%c0_51, %c0_52] : memref<1x128xf32, #tpu.memory_space<vmem>>, vector<1x128xf32>
    %56 = vector.broadcast %55 : vector<1x128xf32> to vector<24x128xf32>
    %57 = arith.addf %54, %56 : vector<24x128xf32>
    %c0_53 = arith.constant 0 : index
    %c0_54 = arith.constant 0 : index
    %c0_55 = arith.constant 0 : index
    %58 = vector.load %arg5[%c0_53, %c0_54, %c0_55] : memref<1x24x128xbf16, #tpu.memory_space<vmem>>, vector<1x24x128xbf16>
    %59 = vector.shape_cast %58 : vector<1x24x128xbf16> to vector<24x128xbf16>
    %60 = arith.extf %59 : vector<24x128xbf16> to vector<24x128xf32>
    %61 = arith.addf %57, %60 : vector<24x128xf32>
    %cst_56 = arith.constant 0.000000e+00 : f32
    %62 = vector.broadcast %cst_56 : f32 to vector<24x128xf32>
    %63 = arith.maximumf %61, %62 : vector<24x128xf32>
    %64 = arith.truncf %63 : vector<24x128xf32> to vector<24x128xbf16>
    %c0_57 = arith.constant 0 : index
    %c0_58 = arith.constant 0 : index
    %c0_59 = arith.constant 0 : index
    %65 = vector.load %arg6[%c0_57, %c0_58, %c0_59] : memref<1x24x128xbf16, #tpu.memory_space<vmem>>, vector<1x24x128xbf16>
    %66 = vector.shape_cast %65 : vector<1x24x128xbf16> to vector<24x128xbf16>
    %67 = vector.shape_cast %64 : vector<24x128xbf16> to vector<1x24x128xbf16>
    tpu.vector_store %arg6[%c0_57, %c0_58, %c0_59], %67 {strides = array<i32>} : memref<1x24x128xbf16, #tpu.memory_space<vmem>>, vector<1x24x128xbf16>,
    return
  }
  func.func @transform_0(%arg0: i32, %arg1: i32) -> (i32, i32, i32) {
    %c0_i32 = arith.constant 0 : i32
    %c0_i32_0 = arith.constant 0 : i32
    %c0_i32_1 = arith.constant 0 : i32
    return %arg0, %c0_i32, %c0_i32_0 : i32, i32, i32
  }
  func.func @transform_1(%arg0: i32, %arg1: i32) -> (i32, i32, i32) {
    %c0_i32 = arith.constant 0 : i32
    %c0_i32_0 = arith.constant 0 : i32
    %c0_i32_1 = arith.constant 0 : i32
    return %c0_i32, %c0_i32_0, %arg1 : i32, i32, i32
  }
  func.func @transform_2(%arg0: i32, %arg1: i32) -> (i32, i32) {
    %c0_i32 = arith.constant 0 : i32
    %c0_i32_0 = arith.constant 0 : i32
    return %c0_i32, %arg1 : i32, i32
  }
  func.func @transform_3(%arg0: i32, %arg1: i32) -> (i32, i32, i32) {
    %c0_i32 = arith.constant 0 : i32
    %c0_i32_0 = arith.constant 0 : i32
    return %arg0, %c0_i32, %arg1 : i32, i32, i32
  }
  func.func @transform_4(%arg0: i32, %arg1: i32) -> (i32, i32, i32) {
    %c0_i32 = arith.constant 0 : i32
    %c0_i32_0 = arith.constant 0 : i32
    return %arg0, %c0_i32, %arg1 : i32, i32, i32
  }
}

module attributes {stable_mosaic.version = 11 : i64} {
  func.func @_conv_kernel(%arg0: i32, %arg1: i32, %arg2: memref<1x40x128xbf16, #tpu.memory_space<vmem>>, %arg3: memref<9x128x128xbf16, #tpu.memory_space<vmem>>, %arg4: memref<1x128xf32, #tpu.memory_space<vmem>>, %arg5: memref<1x24x128xbf16, #tpu.memory_space<vmem>>) attributes {dimension_semantics = [#tpu.dimension_semantics<parallel>, #tpu.dimension_semantics<parallel>], iteration_bounds = array<i64: 2, 1>, scalar_prefetch = 0 : i64, scratch_operands = 0 : i64, tpu.core_type = #tpu.core_type<tc>, window_params = [{transform_indices = @transform_0, window_bounds = array<i64: 1, 40, 128>}, {transform_indices = @transform_1, window_bounds = array<i64: 9, 128, 128>}, {transform_indices = @transform_2, window_bounds = array<i64: 1, 128>}, {transform_indices = @transform_3, window_bounds = array<i64: 1, 24, 128>}]} {
    %cst = arith.constant 0.000000e+00 : f32
    %0 = vector.broadcast %cst : f32 to vector<24x128xf32>
    %c0 = arith.constant 0 : index
    %c0_0 = arith.constant 0 : index
    %c0_1 = arith.constant 0 : index
    %1 = vector.load %arg2[%c0, %c0_0, %c0_1] : memref<1x40x128xbf16, #tpu.memory_space<vmem>>, vector<1x24x128xbf16>
    %2 = vector.shape_cast %1 : vector<1x24x128xbf16> to vector<24x128xbf16>
    %c0_2 = arith.constant 0 : index
    %c0_3 = arith.constant 0 : index
    %c0_4 = arith.constant 0 : index
    %3 = vector.load %arg3[%c0_2, %c0_3, %c0_4] : memref<9x128x128xbf16, #tpu.memory_space<vmem>>, vector<1x128x128xbf16>
    %4 = vector.shape_cast %3 : vector<1x128x128xbf16> to vector<128x128xbf16>
    %cst_5 = arith.constant dense<0.000000e+00> : vector<24x128xf32>
    %5 = tpu.matmul %2, %4, %cst_5 {dimension_numbers = #tpu.dot_dimension_numbers<[1], [0], [0], [1], [0, 0, 1, 1], [], []>} : vector<24x128xbf16>, vector<128x128xbf16>, vector<24x128xf32> -> vector<24x128xf32>
    %6 = arith.addf %0, %5 : vector<24x128xf32>
    %c0_6 = arith.constant 0 : index
    %c1 = arith.constant 1 : index
    %c0_7 = arith.constant 0 : index
    %7 = vector.load %arg2[%c0_6, %c1, %c0_7] : memref<1x40x128xbf16, #tpu.memory_space<vmem>>, vector<1x24x128xbf16>
    %8 = vector.shape_cast %7 : vector<1x24x128xbf16> to vector<24x128xbf16>
    %c1_8 = arith.constant 1 : index
    %c0_9 = arith.constant 0 : index
    %c0_10 = arith.constant 0 : index
    %9 = vector.load %arg3[%c1_8, %c0_9, %c0_10] : memref<9x128x128xbf16, #tpu.memory_space<vmem>>, vector<1x128x128xbf16>
    %10 = vector.shape_cast %9 : vector<1x128x128xbf16> to vector<128x128xbf16>
    %cst_11 = arith.constant dense<0.000000e+00> : vector<24x128xf32>
    %11 = tpu.matmul %8, %10, %cst_11 {dimension_numbers = #tpu.dot_dimension_numbers<[1], [0], [0], [1], [0, 0, 1, 1], [], []>} : vector<24x128xbf16>, vector<128x128xbf16>, vector<24x128xf32> -> vector<24x128xf32>
    %12 = arith.addf %6, %11 : vector<24x128xf32>
    %c0_12 = arith.constant 0 : index
    %c2 = arith.constant 2 : index
    %c0_13 = arith.constant 0 : index
    %13 = vector.load %arg2[%c0_12, %c2, %c0_13] : memref<1x40x128xbf16, #tpu.memory_space<vmem>>, vector<1x24x128xbf16>
    %14 = vector.shape_cast %13 : vector<1x24x128xbf16> to vector<24x128xbf16>
    %c2_14 = arith.constant 2 : index
    %c0_15 = arith.constant 0 : index
    %c0_16 = arith.constant 0 : index
    %15 = vector.load %arg3[%c2_14, %c0_15, %c0_16] : memref<9x128x128xbf16, #tpu.memory_space<vmem>>, vector<1x128x128xbf16>
    %16 = vector.shape_cast %15 : vector<1x128x128xbf16> to vector<128x128xbf16>
    %cst_17 = arith.constant dense<0.000000e+00> : vector<24x128xf32>
    %17 = tpu.matmul %14, %16, %cst_17 {dimension_numbers = #tpu.dot_dimension_numbers<[1], [0], [0], [1], [0, 0, 1, 1], [], []>} : vector<24x128xbf16>, vector<128x128xbf16>, vector<24x128xf32> -> vector<24x128xf32>
    %18 = arith.addf %12, %17 : vector<24x128xf32>
    %c0_18 = arith.constant 0 : index
    %c6 = arith.constant 6 : index
    %c0_19 = arith.constant 0 : index
    %19 = vector.load %arg2[%c0_18, %c6, %c0_19] : memref<1x40x128xbf16, #tpu.memory_space<vmem>>, vector<1x24x128xbf16>
    %20 = vector.shape_cast %19 : vector<1x24x128xbf16> to vector<24x128xbf16>
    %c3 = arith.constant 3 : index
    %c0_20 = arith.constant 0 : index
    %c0_21 = arith.constant 0 : index
    %21 = vector.load %arg3[%c3, %c0_20, %c0_21] : memref<9x128x128xbf16, #tpu.memory_space<vmem>>, vector<1x128x128xbf16>
    %22 = vector.shape_cast %21 : vector<1x128x128xbf16> to vector<128x128xbf16>
    %cst_22 = arith.constant dense<0.000000e+00> : vector<24x128xf32>
    %23 = tpu.matmul %20, %22, %cst_22 {dimension_numbers = #tpu.dot_dimension_numbers<[1], [0], [0], [1], [0, 0, 1, 1], [], []>} : vector<24x128xbf16>, vector<128x128xbf16>, vector<24x128xf32> -> vector<24x128xf32>
    %24 = arith.addf %18, %23 : vector<24x128xf32>
    %c0_23 = arith.constant 0 : index
    %c7 = arith.constant 7 : index
    %c0_24 = arith.constant 0 : index
    %25 = vector.load %arg2[%c0_23, %c7, %c0_24] : memref<1x40x128xbf16, #tpu.memory_space<vmem>>, vector<1x24x128xbf16>
    %26 = vector.shape_cast %25 : vector<1x24x128xbf16> to vector<24x128xbf16>
    %c4 = arith.constant 4 : index
    %c0_25 = arith.constant 0 : index
    %c0_26 = arith.constant 0 : index
    %27 = vector.load %arg3[%c4, %c0_25, %c0_26] : memref<9x128x128xbf16, #tpu.memory_space<vmem>>, vector<1x128x128xbf16>
    %28 = vector.shape_cast %27 : vector<1x128x128xbf16> to vector<128x128xbf16>
    %cst_27 = arith.constant dense<0.000000e+00> : vector<24x128xf32>
    %29 = tpu.matmul %26, %28, %cst_27 {dimension_numbers = #tpu.dot_dimension_numbers<[1], [0], [0], [1], [0, 0, 1, 1], [], []>} : vector<24x128xbf16>, vector<128x128xbf16>, vector<24x128xf32> -> vector<24x128xf32>
    %30 = arith.addf %24, %29 : vector<24x128xf32>
    %c0_28 = arith.constant 0 : index
    %c8 = arith.constant 8 : index
    %c0_29 = arith.constant 0 : index
    %31 = vector.load %arg2[%c0_28, %c8, %c0_29] : memref<1x40x128xbf16, #tpu.memory_space<vmem>>, vector<1x24x128xbf16>
    %32 = vector.shape_cast %31 : vector<1x24x128xbf16> to vector<24x128xbf16>
    %c5 = arith.constant 5 : index
    %c0_30 = arith.constant 0 : index
    %c0_31 = arith.constant 0 : index
    %33 = vector.load %arg3[%c5, %c0_30, %c0_31] : memref<9x128x128xbf16, #tpu.memory_space<vmem>>, vector<1x128x128xbf16>
    %34 = vector.shape_cast %33 : vector<1x128x128xbf16> to vector<128x128xbf16>
    %cst_32 = arith.constant dense<0.000000e+00> : vector<24x128xf32>
    %35 = tpu.matmul %32, %34, %cst_32 {dimension_numbers = #tpu.dot_dimension_numbers<[1], [0], [0], [1], [0, 0, 1, 1], [], []>} : vector<24x128xbf16>, vector<128x128xbf16>, vector<24x128xf32> -> vector<24x128xf32>
    %36 = arith.addf %30, %35 : vector<24x128xf32>
    %c0_33 = arith.constant 0 : index
    %c12 = arith.constant 12 : index
    %c0_34 = arith.constant 0 : index
    %37 = vector.load %arg2[%c0_33, %c12, %c0_34] : memref<1x40x128xbf16, #tpu.memory_space<vmem>>, vector<1x24x128xbf16>
    %38 = vector.shape_cast %37 : vector<1x24x128xbf16> to vector<24x128xbf16>
    %c6_35 = arith.constant 6 : index
    %c0_36 = arith.constant 0 : index
    %c0_37 = arith.constant 0 : index
    %39 = vector.load %arg3[%c6_35, %c0_36, %c0_37] : memref<9x128x128xbf16, #tpu.memory_space<vmem>>, vector<1x128x128xbf16>
    %40 = vector.shape_cast %39 : vector<1x128x128xbf16> to vector<128x128xbf16>
    %cst_38 = arith.constant dense<0.000000e+00> : vector<24x128xf32>
    %41 = tpu.matmul %38, %40, %cst_38 {dimension_numbers = #tpu.dot_dimension_numbers<[1], [0], [0], [1], [0, 0, 1, 1], [], []>} : vector<24x128xbf16>, vector<128x128xbf16>, vector<24x128xf32> -> vector<24x128xf32>
    %42 = arith.addf %36, %41 : vector<24x128xf32>
    %c0_39 = arith.constant 0 : index
    %c13 = arith.constant 13 : index
    %c0_40 = arith.constant 0 : index
    %43 = vector.load %arg2[%c0_39, %c13, %c0_40] : memref<1x40x128xbf16, #tpu.memory_space<vmem>>, vector<1x24x128xbf16>
    %44 = vector.shape_cast %43 : vector<1x24x128xbf16> to vector<24x128xbf16>
    %c7_41 = arith.constant 7 : index
    %c0_42 = arith.constant 0 : index
    %c0_43 = arith.constant 0 : index
    %45 = vector.load %arg3[%c7_41, %c0_42, %c0_43] : memref<9x128x128xbf16, #tpu.memory_space<vmem>>, vector<1x128x128xbf16>
    %46 = vector.shape_cast %45 : vector<1x128x128xbf16> to vector<128x128xbf16>
    %cst_44 = arith.constant dense<0.000000e+00> : vector<24x128xf32>
    %47 = tpu.matmul %44, %46, %cst_44 {dimension_numbers = #tpu.dot_dimension_numbers<[1], [0], [0], [1], [0, 0, 1, 1], [], []>} : vector<24x128xbf16>, vector<128x128xbf16>, vector<24x128xf32> -> vector<24x128xf32>
    %48 = arith.addf %42, %47 : vector<24x128xf32>
    %c0_45 = arith.constant 0 : index
    %c14 = arith.constant 14 : index
    %c0_46 = arith.constant 0 : index
    %49 = vector.load %arg2[%c0_45, %c14, %c0_46] : memref<1x40x128xbf16, #tpu.memory_space<vmem>>, vector<1x24x128xbf16>
    %50 = vector.shape_cast %49 : vector<1x24x128xbf16> to vector<24x128xbf16>
    %c8_47 = arith.constant 8 : index
    %c0_48 = arith.constant 0 : index
    %c0_49 = arith.constant 0 : index
    %51 = vector.load %arg3[%c8_47, %c0_48, %c0_49] : memref<9x128x128xbf16, #tpu.memory_space<vmem>>, vector<1x128x128xbf16>
    %52 = vector.shape_cast %51 : vector<1x128x128xbf16> to vector<128x128xbf16>
    %cst_50 = arith.constant dense<0.000000e+00> : vector<24x128xf32>
    %53 = tpu.matmul %50, %52, %cst_50 {dimension_numbers = #tpu.dot_dimension_numbers<[1], [0], [0], [1], [0, 0, 1, 1], [], []>} : vector<24x128xbf16>, vector<128x128xbf16>, vector<24x128xf32> -> vector<24x128xf32>
    %54 = arith.addf %48, %53 : vector<24x128xf32>
    %c0_51 = arith.constant 0 : index
    %c0_52 = arith.constant 0 : index
    %55 = vector.load %arg4[%c0_51, %c0_52] : memref<1x128xf32, #tpu.memory_space<vmem>>, vector<1x128xf32>
    %56 = vector.broadcast %55 : vector<1x128xf32> to vector<24x128xf32>
    %57 = arith.addf %54, %56 : vector<24x128xf32>
    %cst_53 = arith.constant 0.000000e+00 : f32
    %58 = vector.broadcast %cst_53 : f32 to vector<24x128xf32>
    %59 = arith.maximumf %57, %58 : vector<24x128xf32>
    %60 = arith.truncf %59 : vector<24x128xf32> to vector<24x128xbf16>
    %c0_54 = arith.constant 0 : index
    %c0_55 = arith.constant 0 : index
    %c0_56 = arith.constant 0 : index
    %61 = vector.load %arg5[%c0_54, %c0_55, %c0_56] : memref<1x24x128xbf16, #tpu.memory_space<vmem>>, vector<1x24x128xbf16>
    %62 = vector.shape_cast %61 : vector<1x24x128xbf16> to vector<24x128xbf16>
    %63 = vector.shape_cast %60 : vector<24x128xbf16> to vector<1x24x128xbf16>
    tpu.vector_store %arg5[%c0_54, %c0_55, %c0_56], %63 {strides = array<i32>} : memref<1x24x128xbf16, #tpu.memory_space<vmem>>, vector<1x24x128xbf16>,
    return
  }
  func.func @transform_0(%arg0: i32, %arg1: i32) -> (i32, i32, i32) {
    %c0_i32 = arith.constant 0 : i32
    %c0_i32_0 = arith.constant 0 : i32
    %c0_i32_1 = arith.constant 0 : i32
    return %arg0, %c0_i32, %c0_i32_0 : i32, i32, i32
  }
  func.func @transform_1(%arg0: i32, %arg1: i32) -> (i32, i32, i32) {
    %c0_i32 = arith.constant 0 : i32
    %c0_i32_0 = arith.constant 0 : i32
    %c0_i32_1 = arith.constant 0 : i32
    return %c0_i32, %c0_i32_0, %arg1 : i32, i32, i32
  }
  func.func @transform_2(%arg0: i32, %arg1: i32) -> (i32, i32) {
    %c0_i32 = arith.constant 0 : i32
    %c0_i32_0 = arith.constant 0 : i32
    return %c0_i32, %arg1 : i32, i32
  }
  func.func @transform_3(%arg0: i32, %arg1: i32) -> (i32, i32, i32) {
    %c0_i32 = arith.constant 0 : i32
    %c0_i32_0 = arith.constant 0 : i32
    return %arg0, %c0_i32, %arg1 : i32, i32, i32
  }
}

module attributes {stable_mosaic.version = 11 : i64} {
  func.func @_conv_kernel(%arg0: i32, %arg1: i32, %arg2: memref<1x16x128xbf16, #tpu.memory_space<vmem>>, %arg3: memref<3x128x128xbf16, #tpu.memory_space<vmem>>, %arg4: memref<1x128xf32, #tpu.memory_space<vmem>>, %arg5: memref<1x8x128xbf16, #tpu.memory_space<vmem>>) attributes {dimension_semantics = [#tpu.dimension_semantics<parallel>, #tpu.dimension_semantics<parallel>], iteration_bounds = array<i64: 2, 1>, scalar_prefetch = 0 : i64, scratch_operands = 0 : i64, tpu.core_type = #tpu.core_type<tc>, window_params = [{transform_indices = @transform_0, window_bounds = array<i64: 1, 16, 128>}, {transform_indices = @transform_1, window_bounds = array<i64: 3, 128, 128>}, {transform_indices = @transform_2, window_bounds = array<i64: 1, 128>}, {transform_indices = @transform_3, window_bounds = array<i64: 1, 8, 128>}]} {
    %cst = arith.constant 0.000000e+00 : f32
    %0 = vector.broadcast %cst : f32 to vector<8x128xf32>
    %c0 = arith.constant 0 : index
    %c0_0 = arith.constant 0 : index
    %c0_1 = arith.constant 0 : index
    %1 = vector.load %arg2[%c0, %c0_0, %c0_1] : memref<1x16x128xbf16, #tpu.memory_space<vmem>>, vector<1x8x128xbf16>
    %2 = vector.shape_cast %1 : vector<1x8x128xbf16> to vector<8x128xbf16>
    %c0_2 = arith.constant 0 : index
    %c0_3 = arith.constant 0 : index
    %c0_4 = arith.constant 0 : index
    %3 = vector.load %arg3[%c0_2, %c0_3, %c0_4] : memref<3x128x128xbf16, #tpu.memory_space<vmem>>, vector<1x128x128xbf16>
    %4 = vector.shape_cast %3 : vector<1x128x128xbf16> to vector<128x128xbf16>
    %cst_5 = arith.constant dense<0.000000e+00> : vector<8x128xf32>
    %5 = tpu.matmul %2, %4, %cst_5 {dimension_numbers = #tpu.dot_dimension_numbers<[1], [0], [0], [1], [0, 0, 1, 1], [], []>} : vector<8x128xbf16>, vector<128x128xbf16>, vector<8x128xf32> -> vector<8x128xf32>
    %6 = arith.addf %0, %5 : vector<8x128xf32>
    %c0_6 = arith.constant 0 : index
    %c4 = arith.constant 4 : index
    %c0_7 = arith.constant 0 : index
    %7 = vector.load %arg2[%c0_6, %c4, %c0_7] : memref<1x16x128xbf16, #tpu.memory_space<vmem>>, vector<1x8x128xbf16>
    %8 = vector.shape_cast %7 : vector<1x8x128xbf16> to vector<8x128xbf16>
    %c1 = arith.constant 1 : index
    %c0_8 = arith.constant 0 : index
    %c0_9 = arith.constant 0 : index
    %9 = vector.load %arg3[%c1, %c0_8, %c0_9] : memref<3x128x128xbf16, #tpu.memory_space<vmem>>, vector<1x128x128xbf16>
    %10 = vector.shape_cast %9 : vector<1x128x128xbf16> to vector<128x128xbf16>
    %cst_10 = arith.constant dense<0.000000e+00> : vector<8x128xf32>
    %11 = tpu.matmul %8, %10, %cst_10 {dimension_numbers = #tpu.dot_dimension_numbers<[1], [0], [0], [1], [0, 0, 1, 1], [], []>} : vector<8x128xbf16>, vector<128x128xbf16>, vector<8x128xf32> -> vector<8x128xf32>
    %12 = arith.addf %6, %11 : vector<8x128xf32>
    %c0_11 = arith.constant 0 : index
    %c8 = arith.constant 8 : index
    %c0_12 = arith.constant 0 : index
    %13 = vector.load %arg2[%c0_11, %c8, %c0_12] : memref<1x16x128xbf16, #tpu.memory_space<vmem>>, vector<1x8x128xbf16>
    %14 = vector.shape_cast %13 : vector<1x8x128xbf16> to vector<8x128xbf16>
    %c2 = arith.constant 2 : index
    %c0_13 = arith.constant 0 : index
    %c0_14 = arith.constant 0 : index
    %15 = vector.load %arg3[%c2, %c0_13, %c0_14] : memref<3x128x128xbf16, #tpu.memory_space<vmem>>, vector<1x128x128xbf16>
    %16 = vector.shape_cast %15 : vector<1x128x128xbf16> to vector<128x128xbf16>
    %cst_15 = arith.constant dense<0.000000e+00> : vector<8x128xf32>
    %17 = tpu.matmul %14, %16, %cst_15 {dimension_numbers = #tpu.dot_dimension_numbers<[1], [0], [0], [1], [0, 0, 1, 1], [], []>} : vector<8x128xbf16>, vector<128x128xbf16>, vector<8x128xf32> -> vector<8x128xf32>
    %18 = arith.addf %12, %17 : vector<8x128xf32>
    %c0_16 = arith.constant 0 : index
    %c0_17 = arith.constant 0 : index
    %19 = vector.load %arg4[%c0_16, %c0_17] : memref<1x128xf32, #tpu.memory_space<vmem>>, vector<1x128xf32>
    %20 = vector.broadcast %19 : vector<1x128xf32> to vector<8x128xf32>
    %21 = arith.addf %18, %20 : vector<8x128xf32>
    %cst_18 = arith.constant 0.000000e+00 : f32
    %22 = vector.broadcast %cst_18 : f32 to vector<8x128xf32>
    %23 = arith.maximumf %21, %22 : vector<8x128xf32>
    %24 = arith.truncf %23 : vector<8x128xf32> to vector<8x128xbf16>
    %c0_19 = arith.constant 0 : index
    %c0_20 = arith.constant 0 : index
    %c0_21 = arith.constant 0 : index
    %25 = vector.load %arg5[%c0_19, %c0_20, %c0_21] : memref<1x8x128xbf16, #tpu.memory_space<vmem>>, vector<1x8x128xbf16>
    %26 = vector.shape_cast %25 : vector<1x8x128xbf16> to vector<8x128xbf16>
    %27 = vector.shape_cast %24 : vector<8x128xbf16> to vector<1x8x128xbf16>
    tpu.vector_store %arg5[%c0_19, %c0_20, %c0_21], %27 {strides = array<i32>} : memref<1x8x128xbf16, #tpu.memory_space<vmem>>, vector<1x8x128xbf16>,
    return
  }
  func.func @transform_0(%arg0: i32, %arg1: i32) -> (i32, i32, i32) {
    %c0_i32 = arith.constant 0 : i32
    %c0_i32_0 = arith.constant 0 : i32
    %c0_i32_1 = arith.constant 0 : i32
    return %arg0, %c0_i32, %c0_i32_0 : i32, i32, i32
  }
  func.func @transform_1(%arg0: i32, %arg1: i32) -> (i32, i32, i32) {
    %c0_i32 = arith.constant 0 : i32
    %c0_i32_0 = arith.constant 0 : i32
    %c0_i32_1 = arith.constant 0 : i32
    return %c0_i32, %c0_i32_0, %arg1 : i32, i32, i32
  }
  func.func @transform_2(%arg0: i32, %arg1: i32) -> (i32, i32) {
    %c0_i32 = arith.constant 0 : i32
    %c0_i32_0 = arith.constant 0 : i32
    return %c0_i32, %arg1 : i32, i32
  }
  func.func @transform_3(%arg0: i32, %arg1: i32) -> (i32, i32, i32) {
    %c0_i32 = arith.constant 0 : i32
    %c0_i32_0 = arith.constant 0 : i32
    return %arg0, %c0_i32, %arg1 : i32, i32, i32
  }
}

</mosaic_0001>

<bundles_post_ra>
// kernel: dan_resnetv2_forward.17
= control target key start
LH: loop header
LB: loop body
LE: loop exit
PB: predicated region body
PF: predicated region fallthrough
CT: control target
= control target key end

     0   :  { %s5642_s12 = smov 0   ;;  %s5644_s13 = smov 0   ;;  %s7146_s0 = inlined_call_operand.vmem [shape: bf16[2,328,128], index: 0, kind: input, shape index: {}]   ;;  %s7147_s1 = inlined_call_operand.vmem [shape: bf16[9,128,128], index: 1, kind: input, shape index: {}]   ;;  %s7148_s2 = inlined_call_operand.vmem [shape: f32[1,128], index: 2, kind: input, shape index: {}]   ;;  %s7149_s3 = inlined_call_operand.vmem [shape: bf16[2,288,128], index: 3, kind: output, shape index: {}]  }
   0x1   :  { %s5646_s14 = smov 0  }
   0x2 LB: > { %s25_s15 = sadd.s32 1, %s5616_s13  ;;  %p4273_p0 = scmp.ge.s32.totalorder %s5620_s14, 1  ;;  %s5620_s14 = sphi %s5646_s14, %s13_s14   ;;  %s5616_s13 = sphi %s5644_s13, %s7232_s13   ;;  %s5612_s12 = sphi %s5642_s12, %s7231_s12  }
   0x3   : > { %p27_p1 = scmp.ge.s32.totalorder %s25_s15, 2  ;;  %p168_p2 = scmp.lt.s32.totalorder %s5620_s14, 3 }
   0x5   : > { %s7234_s15 = smov (%p27_p1, %s25_s15), 0  ;;  %p169_p3 = pnand %p4273_p0, %p168_p2 }
   0x7   : > { %172 = sbr.rel (%p169_p3) target bundleno = 575 (0x23f), region = 32 }
   0xc   : > { %v5464_v0 = vld [vmem:[%s7147_s1 + $0x78] sm:$0xff]   ;;  %p202_p4 = scmp.lt.s32.totalorder %s5612_s12, 1  ;;  %v5465_v1 = vld [vmem:[%s7147_s1 + $0x70] sm:$0xff]   ;;  %v5466_v2 = vld [vmem:[%s7147_s1 + $0x68] sm:$0xff]   ;;  %vm386_vm0 = vsmask.f32 7424 }
   0xd   : > { %5422 = vmatprep.subr.bf16.mxu1 %v5464_v0  ;;  %4954 = vmatprep.subr.bf16.mxu0 %v5464_v0  ;;  %v5467_v3 = vld [vmem:[%s7147_s1 + $0x60] sm:$0xff]   ;;  %v5468_v6 = vld [vmem:[%s7147_s1 + $0x58] sm:$0xff]   ;;  %v5469_v17 = vld [vmem:[%s7147_s1 + $0x50] sm:$0xff]   ;;  %vm1042_vm1 = vcmask 1046528   ;;  %vm2314_vm2 = vcmask 1045504   ;;  %vm3586_vm4 = vcmask 1044480  }
   0xe   : > { %s7236_s12 = smov (!%p202_p4, %s5612_s12), 1  ;;  %5430 = vmatpush3.bf16.msra.mxu1 %v5464_v0  ;;  %4955 = vmatpush3.bf16.msra.mxu0 %v5464_v0  ;;  %v5470_v26 = vld [vmem:[%s7147_s1 + $0x48] sm:$0xff]   ;;  %v5471_v32 = vld [vmem:[%s7147_s1 + $0x40] sm:$0xff]   ;;  %v5475_v41 = vld [vmem:[%s7147_s1 + $0x38] sm:$0xff]   ;;  %vm1843_vm3 = vsmask.f32 6400 }
   0xf   : > { %5423 = vmatprep.subr.bf16.mxu1 %v5465_v1  ;;  %4956 = vmatprep.subr.bf16.mxu0 %v5465_v1  ;;  %s5438_s22 = smul.u32 164, %s7236_s12  ;;  %v5480_v47 = vld [vmem:[%s7147_s1 + $0xb8] sm:$0xff]   ;;  %v5479_v52 = vld [vmem:[%s7147_s1 + $0x30] sm:$0xff]   ;;  %vm3115_vm5 = vsmask.f32 5376 }
  0x10   : > { %v5483_v62 = vld [vmem:[%s7147_s1 + $0xb0] sm:$0xff]   ;;  %s5439_s6 = smul.u32 144, %s7236_s12 }
  0x11   : > { %s5675_s25 = scalar_lea.vmem %s7146_s0, %s5438_s22 }
  0x12   : > { %5431 = vmatpush3.bf16.msra.mxu1 %v5465_v1  ;;  %4957 = vmatpush3.bf16.msra.mxu0 %v5465_v1  ;;  %v5681_v4 = vld [vmem:[%s5675_s25 + $0x40] sm:$0xff]   ;;  %v5684_v5 = vld [vmem:[%s5675_s25 + $0x48] sm:$0xff]   ;;  %v5713_v22 = vld [vmem:[%s5675_s25 + $0x50] sm:$0xff]   ;;  %s7055_s12 = scalar_lea.vmem %s7149_s3, %s5439_s6 }
  0x13   : > { %5424 = vmatprep.subr.bf16.mxu1 %v5466_v2  ;;  %4958 = vmatprep.subr.bf16.mxu0 %v5466_v2  ;;  %v451_v7 = vshll.u32 %v5681_v4, 16  ;;  %v455_v8 = vshrl.u32 %v5681_v4, 16  ;;  %v459_v9 = vshll.u32 %v5684_v5, 16  ;;  %v223_v10 = vld [vmem:[%s5675_s25] sm:$0xf]  ;;  %v5702_v15 = vld [vmem:[%s5675_s25 + $0x8] sm:$0xff]  }
  0x14   : > { %v5696_v13 = vld [vmem:[%s5675_s25 + $0x4] sm:$0xf]  ;;  %v395_v20 = vshll.u32 %v5702_v15, 16  ;;  %v5716_v25 = vld [vmem:[%s5675_s25 + $0x10] sm:$0xff]   ;;  %v467_v28 = vshll.u32 %v5713_v22, 16  ;;  %v5723_v29 = vld [vmem:[%s5675_s25 + $0x58] sm:$0xff]  }
  0x15   : > { %v5693_v11 = vrot.slane %v451_v7, 1  ;;  %v461_v12 = vrot.slane %v459_v9, 1  ;;  %v5699_v14 = vcombine.low %v223_v10, %v5696_v13  ;;  %v463_v30 = vshrl.u32 %v5684_v5, 16  ;;  %v5733_v35 = vld [vmem:[%s5675_s25 + $0x18] sm:$0xff]   ;;  %v5738_v39 = vld [vmem:[%s5675_s25 + $0x60] sm:$0xff]   ;;  %v5752_v50 = vld [vmem:[%s5675_s25 + $0x68] sm:$0xff]  }
  0x16   : > { %5432 = vmatpush3.bf16.msra.mxu1 %v5466_v2  ;;  %4959 = vmatpush3.bf16.msra.mxu0 %v5466_v2  ;;  %v397_v24 = vrot.slane %v395_v20, 1  ;;  %v399_v33 = vshrl.u32 %v5702_v15, 16  ;;  %v403_v34 = vshll.u32 %v5716_v25, 16  ;;  %v469_v36 = vrot.slane %v467_v28, 1  ;;  %v5746_v46 = vld [vmem:[%s5675_s25 + $0x20] sm:$0xff]   ;;  %v5764_v60 = vld [vmem:[%s5675_s25 + $0x28] sm:$0xff]  }
  0x17   : > { %5425 = vmatprep.subr.bf16.mxu1 %v5467_v3  ;;  %4960 = vmatprep.subr.bf16.mxu0 %v5467_v3  ;;  %v457_v16 = vor.u32 %v455_v8, %v5693_v11  ;;  %v388_v18 = vshrl.u32 %v5699_v14, 16  ;;  %v390_v19 = vshll.u32 %v5699_v14, 16  ;;  %v471_v37 = vshrl.u32 %v5713_v22, 16  ;;  %v5773_v1 = vld [vmem:[%s5675_s25 + $0x70] sm:$0xff]   ;;  %v5484_v2 = vld [vmem:[%s7147_s1 + $0x28] sm:$0xff]  }
  0x18   : > { %v475_v38 = vshll.u32 %v5723_v29, 16  ;;  %v465_v40 = vor.u32 %v463_v30, %v461_v12  ;;  %v407_v42 = vshrl.u32 %v5716_v25, 16  ;;  %v411_v43 = vshll.u32 %v5733_v35, 16 }
  0x19   : > { %v462_v21 = vsel %vm386_vm0, %v457_v16, %v461_v12  ;;  %v392_v23 = vrot.slane %v390_v19, 1  ;;  %v401_v44 = vor.u32 %v399_v33, %v397_v24  ;;  %v405_v45 = vrot.slane %v403_v34, 1  ;;  %v5487_v16 = vld [vmem:[%s7147_s1 + $0xa8] sm:$0xff]   ;;  %v5800_v33 = vld [vmem:[%s5675_s25 + $0x38] sm:$0xff]   ;;  %v5491_v34 = vld [vmem:[%s7147_s1 + $0xa0] sm:$0xff]  }
  0x1a   : > { %5433 = vmatpush3.bf16.msra.mxu1 %v5467_v3  ;;  %4961 = vmatpush3.bf16.msra.mxu0 %v5467_v3  ;;  %v473_v48 = vor.u32 %v471_v37, %v469_v36  ;;  %v477_v49 = vrot.slane %v475_v38, 1  ;;  %v470_v51 = vsel %vm386_vm0, %v465_v40, %v469_v36  ;;  %v479_v53 = vshrl.u32 %v5723_v29, 16  ;;  %v5809_v40 = vld [vmem:[%s5675_s25 + $0x80] sm:$0xff]  }
  0x1b   : > { %5426 = vmatprep.subr.bf16.mxu1 %v5468_v6  ;;  %4962 = vmatprep.subr.bf16.mxu0 %v5468_v6  ;;  %v393_v27 = vor.u32 %v392_v23, %v388_v18  ;;  %v409_v54 = vor.u32 %v407_v42, %v405_v45  ;;  %v413_v55 = vrot.slane %v411_v43, 1  ;;  %v406_v56 = vsel %vm386_vm0, %v401_v44, %v405_v45  ;;  %v5790_v23 = vld [vmem:[%s5675_s25 + $0x78] sm:$0xff]  }
  0x1c   : > { %4986 = vmatprep.mubr.bf16.mxu1 %v462_v21  ;;  %v483_v57 = vshll.u32 %v5738_v39, 16  ;;  %v415_v58 = vshrl.u32 %v5733_v35, 16  ;;  %v419_v59 = vshll.u32 %v5746_v46, 16  ;;  %v478_v61 = vsel %vm386_vm0, %v473_v48, %v477_v49 }
  0x1d   : > { %v398_v31 = vsel %vm386_vm0, %v393_v27, %v397_v24  ;;  %v487_v63 = vshrl.u32 %v5738_v39, 16  ;;  %v491_v0 = vshll.u32 %v5752_v50, 16  ;;  %v414_v3 = vsel %vm386_vm0, %v409_v54, %v413_v55  ;;  %v5489_v24 = vld [vmem:[%s7147_s1 + $0x20] sm:$0xff]  }
  0x1e   : > { %5434 = vmatpush3.bf16.msra.mxu1 %v5468_v6  ;;  %4963 = vmatpush3.bf16.msra.mxu0 %v5468_v6  ;;  %v423_v6 = vshrl.u32 %v5746_v46, 16  ;;  %v427_v7 = vshll.u32 %v5764_v60, 16  ;;  %v481_v8 = vor.u32 %v479_v53, %v477_v49  ;;  %v485_v9 = vrot.slane %v483_v57, 1  ;;  %v5498_v57 = vld [vmem:[%s7147_s1 + $0x10] sm:$0xff]  }
  0x1f   : > { %5427 = vmatprep.subr.bf16.mxu1 %v5469_v17  ;;  %4964 = vmatprep.subr.bf16.mxu0 %v5469_v17  ;;  %v417_v10 = vor.u32 %v415_v58, %v413_v55  ;;  %v421_v12 = vrot.slane %v419_v59, 1  ;;  %v493_v19 = vrot.slane %v491_v0, 1  ;;  %v495_v20 = vshrl.u32 %v5752_v50, 16  ;;  %v1021_v0 = vld [vmem:[%s5675_s25] sm:$0xe] }
  0x20   : > { %4970 = vmatprep.mubr.bf16.mxu0 %v398_v31  ;;  %v489_v18 = vor.u32 %v487_v63, %v485_v9  ;;  %v499_v21 = vshll.u32 %v5773_v1, 16  ;;  %v429_v27 = vrot.slane %v427_v7, 1  ;;  %v431_v28 = vshrl.u32 %v5764_v60, 16  ;;  %v5499_v7 = vld [vmem:[%s7147_s1 + $0x90] sm:$0xff]  }
  0x21   : > { %v486_v30 = vsel %vm386_vm0, %v481_v8, %v485_v9  ;;  %v422_v31 = vsel %vm386_vm0, %v417_v10, %v421_v12  ;;  %v503_v36 = vshrl.u32 %v5773_v1, 16  ;;  %v507_v38 = vshll.u32 %v5790_v23, 16  ;;  %v5504_v8 = vld [vmem:[%s5675_s25 + $0x90] ss:$0 sps:$4 sm:$0x11]  }
  0x22   : > { %5435 = vmatpush3.bf16.msra.mxu1 %v5469_v17  ;;  %4965 = vmatpush3.bf16.msra.mxu0 %v5469_v17  ;;  %v5785_v17 = vld [vmem:[%s5675_s25 + $0x30] sm:$0xff]   ;;  %v494_v37 = vsel %vm386_vm0, %v489_v18, %v493_v19  ;;  %v443_v42 = vshll.u32 %v5800_v33, 16  ;;  %v497_v44 = vor.u32 %v495_v20, %v493_v19  ;;  %v501_v45 = vrot.slane %v499_v21, 1  ;;  %v5501_v19 = vld [vmem:[%s7147_s1 + $0x88] sm:$0xff]  }
  0x23   : > { %5428 = vmatprep.subr.bf16.mxu1 %v5470_v26  ;;  %4966 = vmatprep.subr.bf16.mxu0 %v5470_v26  ;;  %v433_v48 = vor.u32 %v431_v28, %v429_v27  ;;  %v509_v54 = vrot.slane %v507_v38, 1  ;;  %v511_v55 = vshrl.u32 %v5790_v23, 16  ;;  %v5502_v20 = vld [vmem:[%s7147_s1 + $0x8] sm:$0xff]  }
  0x24   : > { %v505_v53 = vor.u32 %v503_v36, %v501_v45  ;;  %v445_v59 = vrot.slane %v443_v42, 1  ;;  %v5506_v36 = vld [vmem:[%s7147_s1] sm:$0xff]   ;;  %v5508_v42 = vld [vmem:[%s7147_s1 + $0xf8] sm:$0xff]  }
  0x26   : > { %5436 = vmatpush3.bf16.msra.mxu1 %v5470_v26  ;;  %4967 = vmatpush3.bf16.msra.mxu0 %v5470_v26  ;;  %v425_v26 = vor.u32 %v423_v6, %v421_v12  ;;  %v510_v6 = vsel %vm386_vm0, %v505_v53, %v509_v54  ;;  %v4343_v12 = vcombine.low %v1021_v0, %v5696_v13  ;;  %v5511_v53 = vld [vmem:[%s7147_s1 + $0x130] sm:$0xff]   ;;  %v1056_v0 = vrot.slane %v5800_v33, 1 }
  0x27   : > { %5429 = vmatprep.subr.bf16.mxu1 %v5471_v32  ;;  %4968 = vmatprep.subr.bf16.mxu0 %v5471_v32 }
  0x28   : > { %v430_v43 = vsel %vm386_vm0, %v425_v26, %v429_v27  ;;  %v1043_v13 = vrot.slane %v4343_v12, 1  ;;  %v1044_v26 = vrot.slane %v5702_v15, 1  ;;  %v5521_v12 = vld [vmem:[%s7147_s1 + $0x108] sm:$0xff]  }
  0x2a   : > { %5437 = vmatpush3.bf16.msra.mxu1 %v5471_v32  ;;  %4969 = vmatpush3.bf16.msra.mxu0 %v5471_v32  ;;  %v435_v32 = vshll.u32 %v5785_v17, 16 }
  0x2b   : > { %5006 = vmatprep.subr.bf16.mxu1 %v5475_v41  ;;  %5058 = vmatprep.subr.bf16.mxu0 %v5480_v47 }
  0x2c   : > { %v437_v49 = vrot.slane %v435_v32, 1 }
  0x2d   : > { %4987 = vmatmul.mubr.bf16.vlgmr.msra.gmra.mxu1 %v470_v51  ;;  %4971 = vmatmul.mubr.bf16.vlgmr.msra.gmra.mxu0 %v406_v56  ;;  %v5495_v51 = vld [vmem:[%s7147_s1 + $0x98] sm:$0xff]   ;;  %v515_v56 = vshll.u32 %v5809_v40, 16 }
  0x2e   : > { %5007 = vmatpush3.bf16.msra.mxu1 %v5475_v41  ;;  %5059 = vmatpush3.bf16.msra.mxu0 %v5480_v47  ;;  %v439_v41 = vshrl.u32 %v5785_v17, 16  ;;  %v5493_v47 = vld [vmem:[%s7147_s1 + $0x18] sm:$0xff]   ;;  %v438_v63 = vsel %vm386_vm0, %v433_v48, %v437_v49 }
  0x2f   : > { %5008 = vmatprep.subr.bf16.mxu1 %v5479_v52  ;;  %4990 = vmatprep.mubr.bf16.mxu1 %v478_v61  ;;  %v447_v61 = vshrl.u32 %v5800_v33, 16  ;;  %v517_v9 = vrot.slane %v515_v56, 1  ;;  %v5513_v56 = vld [vmem:[%s7147_s1 + $0x128] sm:$0xff]  }
  0x30   : > { %5060 = vmatprep.subr.bf16.mxu0 %v5483_v62  ;;  %4974 = vmatprep.mubr.bf16.mxu0 %v414_v3  ;;  %v441_v58 = vor.u32 %v439_v41, %v437_v49  ;;  %v1046_v41 = vrot.slane %v5716_v25, 1 }
  0x31   : > { %v449_v18 = vor.u32 %v447_v61, %v445_v59  ;;  %v5515_v61 = vld [vmem:[%s7147_s1 + $0x120] sm:$0xff]  }
  0x32   : > { %5009 = vmatpush3.bf16.msra.mxu1 %v5479_v52  ;;  %5061 = vmatpush3.bf16.msra.mxu0 %v5483_v62  ;;  %v5821_v52 = vld [vmem:[%s5675_s25 + $0x88] sm:$0xff]   ;;  %v502_v62 = vsel %vm386_vm0, %v497_v44, %v501_v45  ;;  %v446_v10 = vsel %vm386_vm0, %v441_v58, %v445_v59  ;;  %v1048_v45 = vrot.slane %v5733_v35, 1  ;;  %v1047_v49 = vsel %vm1042_vm1, %v1044_v26, %v1046_v41  ;;  %v5510_v59 = vld [vmem:[%s7147_s1 + $0xf0] sm:$0xff]  }
  0x33   : > { %5010 = vmatprep.subr.bf16.mxu1 %v5484_v2  ;;  %5062 = vmatprep.subr.bf16.mxu0 %v5487_v16  ;;  %v523_v3 = vshll.u32 %v5821_v52, 16  ;;  %v454_v28 = vsel %vm386_vm0, %v449_v18, %v5693_v11  ;;  %v1076_v44 = vrot.slane %v5821_v52, 1  ;;  %v1064_v18 = vrot.slane %v5723_v29, 1 }
  0x35   : > { %4991 = vmatmul.mubr.bf16.gmra.mxu1 %v486_v30  ;;  %4975 = vmatmul.mubr.bf16.gmra.mxu0 %v422_v31  ;;  %v527_v30 = vshrl.u32 %v5821_v52, 16  ;;  %v531_v31 = vshll.u32 %v5504_v8, 16 }
  0x36   : > { %5011 = vmatpush3.bf16.msra.mxu1 %v5484_v2  ;;  %5063 = vmatpush3.bf16.msra.mxu0 %v5487_v16  ;;  %v519_v2 = vshrl.u32 %v5809_v40, 16  ;;  %v513_v16 = vor.u32 %v511_v55, %v509_v54  ;;  %v1049_v54 = vsel %vm1042_vm1, %v1046_v41, %v1048_v45  ;;  %v1050_v55 = vrot.slane %v5746_v46, 1 }
  0x37   : > { %4994 = vmatprep.mubr.bf16.mxu1 %v494_v37  ;;  %5012 = vmatprep.subr.bf16.mxu1 %v5489_v24  ;;  %v1045_v37 = vsel %vm1042_vm1, %v1043_v13, %v1044_v26  ;;  %v533_v38 = vrot.slane %v531_v31, 1  ;;  %v1359_v13 = vld [vmem:[%s5675_s25 + $0x8] sm:$0xe]  ;;  %v1360_v26 = vld [vmem:[%s5675_s25 + $0xc] sm:$0xf]  ;;  %v1068_v31 = vrot.slane %v5752_v50, 1 }
  0x38   : > { %5064 = vmatprep.subr.bf16.mxu0 %v5491_v34  ;;  %4978 = vmatprep.mubr.bf16.mxu0 %v430_v43  ;;  %v521_v21 = vor.u32 %v519_v2, %v517_v9  ;;  %v518_v27 = vsel %vm386_vm0, %v513_v16, %v517_v9  ;;  %v5509_v43 = vld [vmem:[%s7147_s1 + $0x138] sm:$0xff]   ;;  %v1051_v58 = vsel %vm1042_vm1, %v1048_v45, %v1050_v55  ;;  %v1062_v16 = vrot.slane %v5713_v22, 1 }
  0x39   : > { %v5516_v9 = vld [vmem:[%s7147_s1 + $0xd8] sm:$0xff]   ;;  %v1072_v45 = vrot.slane %v5790_v23, 1 }
  0x3a   : > { %5013 = vmatpush3.bf16.msra.mxu1 %v5489_v24  ;;  %5065 = vmatpush3.bf16.msra.mxu0 %v5491_v34  ;;  %v525_v24 = vrot.slane %v523_v3, 1  ;;  %v5505_v34 = vld [vmem:[%s7147_s1 + $0x80] sm:$0xff]   ;;  %v5517_v3 = vld [vmem:[%s7147_s1 + $0x118] sm:$0xff]  }
  0x3b   : > { %5014 = vmatprep.subr.bf16.mxu1 %v5493_v47  ;;  %5066 = vmatprep.subr.bf16.mxu0 %v5495_v51 }
  0x3c   : > { %v526_v32 = vsel %vm386_vm0, %v521_v21, %v525_v24  ;;  %v529_v11 = vor.u32 %v527_v30, %v525_v24  ;;  %v5522_v21 = vld [vmem:[%s7147_s1 + $0xc0] sm:$0xff]   ;;  %v5945_v24 = vld [vmem:[%s7147_s1 + $0x1b8] sm:$0xff]  }
  0x3d   : > { %4995 = vmatmul.mubr.bf16.gmra.mxu1 %v502_v62  ;;  %4979 = vmatmul.mubr.bf16.gmra.mxu0 %v438_v63  ;;  %v1054_v62 = vrot.slane %v5785_v17, 1  ;;  %v5512_v63 = vld [vmem:[%s7147_s1 + $0xe8] sm:$0xff]   ;;  %v5956_v30 = vld [vmem:[%s5675_s25 + $0x18] sm:$0xff]  }
  0x3e   : > { %5015 = vmatpush3.bf16.msra.mxu1 %v5493_v47  ;;  %5067 = vmatpush3.bf16.msra.mxu0 %v5495_v51  ;;  %v1078_v47 = vrot.slane %v5504_v8, 1  ;;  %v534_v48 = vsel %vm386_vm0, %v529_v11, %v533_v38  ;;  %v1060_v8 = vrot.slane %v5684_v5, 1  ;;  %v1070_v38 = vrot.slane %v5773_v1, 1 }
  0x3f   : > { %4998 = vmatprep.mubr.bf16.mxu1 %v510_v6  ;;  %5016 = vmatprep.subr.bf16.mxu1 %v5498_v57  ;;  %v1057_v2 = vsel %vm1042_vm1, %v1054_v62, %v1056_v0  ;;  %v1058_v6 = vrot.slane %v5681_v4, 1 }
  0x40   : > { %5068 = vmatprep.subr.bf16.mxu0 %v5499_v7  ;;  %4982 = vmatprep.mubr.bf16.mxu0 %v446_v10  ;;  %v5874_v51 = vsel %vm1042_vm1, %v1076_v44, %v1078_v47  ;;  %v5518_v10 = vld [vmem:[%s7147_s1 + $0xd0] sm:$0xff]   ;;  %v1071_v47 = vsel %vm1042_vm1, %v1068_v31, %v1070_v38 }
  0x42   : > { %5017 = vmatpush3.bf16.msra.mxu1 %v5498_v57  ;;  %5069 = vmatpush3.bf16.msra.mxu0 %v5499_v7  ;;  %v1052_v57 = vrot.slane %v5764_v60, 1  ;;  %v5519_v7 = vld [vmem:[%s7147_s1 + $0x110] sm:$0xff]  }
  0x43   : > { %5070 = vmatprep.subr.bf16.mxu0 %v5501_v19  ;;  %5018 = vmatprep.subr.bf16.mxu1 %v5502_v20 }
  0x45   : > { %4999 = vmatmul.mubr.bf16.gmra.mxu1 %v518_v27  ;;  %4983 = vmatmul.mubr.bf16.gmra.mxu0 %v454_v28  ;;  %v5951_v27 = vld [vmem:[%s5675_s25 + $0x10] sm:$0xff]   ;;  %v1066_v28 = vrot.slane %v5738_v39, 1 }
  0x46   : > { %5071 = vmatpush3.bf16.msra.mxu0 %v5501_v19  ;;  %5002 = vmatprep.mubr.bf16.mxu1 %v526_v32  ;;  %v5520_v19 = vld [vmem:[%s7147_s1 + $0xc8] sm:$0xff]   ;;  %v2316_v32 = vrot.slane %v5951_v27, 2 }
  0x47   : > { %5019 = vmatpush3.bf16.msra.mxu1 %v5502_v20  ;;  %5072 = vmatprep.subr.bf16.mxu0 %v5505_v34  ;;  %v1065_v20 = vsel %vm1042_vm1, %v1062_v16, %v1064_v18 }
  0x48   : > { %5020 = vmatprep.subr.bf16.mxu1 %v5506_v36  ;;  %5074 = vmatprep.mubr.bf16.mxu0 %v1045_v37  ;;  %v1069_v37 = vsel %vm1042_vm1, %v1066_v28, %v1068_v31 }
  0x4a   : > { %5073 = vmatpush3.bf16.msra.mxu0 %v5505_v34  ;;  %v1067_v34 = vsel %vm1042_vm1, %v1064_v18, %v1066_v28 }
  0x4b   : > { %5021 = vmatpush3.bf16.msra.mxu1 %v5506_v36  ;;  %5162 = vmatprep.subr.bf16.mxu0 %v5509_v43  ;;  %v5968_v36 = vcombine.low %v1359_v13, %v1360_v26 }
  0x4c   : > { %5110 = vmatprep.subr.bf16.mxu1 %v5508_v42 }
  0x4d   : > { %5003 = vmatmul.mubr.bf16.gmra.mxu1 %v534_v48  ;;  %5075 = vmatmul.mubr.bf16.vlgmr.msra.gmra.mxu0 %v1047_v49  ;;  %v1845_v41 = vshrl.u32 %v5968_v36, 16  ;;  %v1856_v48 = vshll.u32 %v5951_v27, 16  ;;  %v1865_v49 = vshll.u32 %v5956_v30, 16 }
  0x4e   : > { %5022 = vmatprep.mubr.bf16.mxu1 %v5699_v14  ;;  %5163 = vmatpush3.bf16.msra.mxu0 %v5509_v43  ;;  %v1053_v14 = vsel %vm1042_vm1, %v1050_v55, %v1052_v57  ;;  %v1853_v43 = vshrl.u32 %v5951_v27, 16 }
  0x4f   : > { %5078 = vmatprep.mubr.bf16.mxu0 %v1049_v54  ;;  %5164 = vmatprep.subr.bf16.mxu0 %v5511_v53  ;;  %v1847_v54 = vrot.slane %v1845_v41, 1 }
  0x52   : > { %5165 = vmatpush3.bf16.msra.mxu0 %v5511_v53  ;;  %v1506_v53 = vrot.slane %v5968_v36, 1 }
  0x53   : > { %5166 = vmatprep.subr.bf16.mxu0 %v5513_v56 }
  0x55   : > { %5023 = vmatmul.mubr.bf16.vlgmr.msra.gmra.mxu1 %v5702_v15  ;;  %5079 = vmatmul.mubr.bf16.gmra.mxu0 %v1051_v58  ;;  %v1055_v15 = vsel %vm1042_vm1, %v1052_v57, %v1054_v62  ;;  %v1507_v57 = vrot.slane %v5951_v27, 1  ;;  %v1073_v58 = vsel %vm1042_vm1, %v1070_v38, %v1072_v45  ;;  %v6052_v38 = vld [vmem:[%s5675_s25 + $0x58] sm:$0xff]  }
  0x56   : > { %5111 = vmatpush3.bf16.msra.mxu1 %v5508_v42  ;;  %5026 = vmatprep.mubr.bf16.mxu1 %v5716_v25  ;;  %v5514_v25 = vld [vmem:[%s7147_s1 + $0xe0] sm:$0xff]   ;;  %v1848_v42 = vshll.u32 %v5968_v36, 16  ;;  %v5537_v36 = vld [vmem:[%s7147_s1 + $0x1a8] sm:$0xff]  }
  0x57   : > { %5112 = vmatprep.subr.bf16.mxu1 %v5510_v59  ;;  %5082 = vmatprep.mubr.bf16.mxu0 %v1053_v14  ;;  %v5991_v14 = vld [vmem:[%s5675_s25 + $0x20] sm:$0xff]  }
  0x58   : > { %5167 = vmatpush3.bf16.msra.mxu0 %v5513_v56  ;;  %v1850_v55 = vrot.slane %v1848_v42, 2  ;;  %v1855_v56 = vrot.slane %v1853_v43, 1 }
  0x59   : > { %5168 = vmatprep.subr.bf16.mxu0 %v5515_v61 }
  0x5a   : > { %5113 = vmatpush3.bf16.msra.mxu1 %v5510_v59  ;;  %v1858_v59 = vrot.slane %v1856_v48, 2  ;;  %v1851_v31 = vor.u32 %v1850_v55, %v1847_v54  ;;  %v6066_v54 = vld [vmem:[%s5675_s25 + $0x60] sm:$0xff]  }
  0x5b   : > { %5114 = vmatprep.subr.bf16.mxu1 %v5512_v63 }
  0x5c   : > { %5169 = vmatpush3.bf16.msra.mxu0 %v5515_v61  ;;  %v2293_v61 = vld [vmem:[%s5675_s25 + $0x8] sm:$0xc] }
  0x5d   : > { %5027 = vmatmul.mubr.bf16.gmra.mxu1 %v5733_v35  ;;  %5083 = vmatmul.mubr.bf16.gmra.mxu0 %v1055_v15  ;;  %v1059_v35 = vsel %vm1042_vm1, %v1056_v0, %v1058_v6  ;;  %v4436_v0 = vcombine.low %v2293_v61, %v1360_v26  ;;  %v1867_v15 = vrot.slane %v1865_v49, 2  ;;  %v6077_v61 = vld [vmem:[%s5675_s25 + $0x68] sm:$0xff]  }
  0x5e   : > { %5030 = vmatprep.mubr.bf16.mxu1 %v5746_v46  ;;  %5115 = vmatpush3.bf16.msra.mxu1 %v5512_v63  ;;  %v1061_v46 = vsel %vm1042_vm1, %v1058_v6, %v1060_v8  ;;  %v5996_v63 = vld [vmem:[%s5675_s25 + $0x28] sm:$0xff]   ;;  %v2320_v6 = vrot.slane %v5991_v14, 2 }
  0x5f   : > { %5086 = vmatprep.mubr.bf16.mxu0 %v1057_v2  ;;  %5116 = vmatprep.subr.bf16.mxu1 %v5514_v25  ;;  %v1871_v2 = vshrl.u32 %v5991_v14, 16  ;;  %v1880_v13 = vshrl.u32 %v5996_v63, 16 }
  0x60   : > { %5170 = vmatprep.subr.bf16.mxu0 %v5517_v3 }
  0x61   : > { %5171 = vmatpush3.bf16.msra.mxu0 %v5517_v3  ;;  %v6001_v3 = vld [vmem:[%s5675_s25 + $0x30] sm:$0xff]   ;;  %v1873_v18 = vrot.slane %v1871_v2, 1  ;;  %v1882_v43 = vrot.slane %v1880_v13, 1 }
  0x62   : > { %5117 = vmatpush3.bf16.msra.mxu1 %v5514_v25  ;;  %5172 = vmatprep.subr.bf16.mxu0 %v5519_v7  ;;  %v2315_v25 = vrot.slane %v4436_v0, 2  ;;  %v1892_v48 = vshll.u32 %v6001_v3, 16  ;;  %v2336_v0 = vrot.slane %v6066_v54, 2  ;;  %v6083_v2 = vld [vmem:[%s5675_s25 + $0x70] sm:$0xff]  }
  0x63   : > { %5118 = vmatprep.subr.bf16.mxu1 %v5516_v9 }
  0x65   : > { %5031 = vmatmul.mubr.bf16.gmra.mxu1 %v5764_v60  ;;  %5087 = vmatmul.mubr.bf16.gmra.mxu0 %v1059_v35  ;;  %v5523_v60 = vld [vmem:[%s7147_s1 + $0x100] sm:$0xff]   ;;  %v1874_v35 = vshll.u32 %v5991_v14, 16 }
  0x66   : > { %5034 = vmatprep.mubr.bf16.mxu1 %v5785_v17  ;;  %5090 = vmatprep.mubr.bf16.mxu0 %v1061_v46  ;;  %v1063_v17 = vsel %vm1042_vm1, %v1060_v8, %v1062_v16  ;;  %v6007_v8 = vld [vmem:[%s5675_s25 + $0x38] sm:$0xff]   ;;  %v6015_v46 = vld [vmem:[%s5675_s25 + $0x40] sm:$0xff]  }
  0x67   : > { %5119 = vmatpush3.bf16.msra.mxu1 %v5516_v9  ;;  %5173 = vmatpush3.bf16.msra.mxu0 %v5519_v7  ;;  %v1509_v7 = vrot.slane %v5956_v30, 1  ;;  %v6010_v9 = vsel %vm2314_vm2, %v2315_v25, %v2316_v32  ;;  %v1898_v55 = vshrl.u32 %v6007_v8, 16 }
  0x68   : > { %5120 = vmatprep.subr.bf16.mxu1 %v5518_v10  ;;  %5174 = vmatprep.subr.bf16.mxu0 %v5521_v12 }
  0x6b   : > { %5121 = vmatpush3.bf16.msra.mxu1 %v5518_v10  ;;  %5175 = vmatpush3.bf16.msra.mxu0 %v5521_v12 }
  0x6c   : > { %5122 = vmatprep.subr.bf16.mxu1 %v5520_v19  ;;  %5176 = vmatprep.subr.bf16.mxu0 %v5523_v60 }
  0x6d   : > { %5035 = vmatmul.mubr.bf16.gmra.mxu1 %v5800_v33  ;;  %5091 = vmatmul.mubr.bf16.gmra.mxu0 %v1063_v17  ;;  %v5963_v33 = vld [vmem:[%s7147_s1 + $0x178] sm:$0xff]   ;;  %v2326_v17 = vrot.slane %v6007_v8, 2 }
  0x6e   : > { %5038 = vmatprep.mubr.bf16.mxu1 %v5681_v4  ;;  %5094 = vmatprep.mubr.bf16.mxu0 %v1065_v20  ;;  %v2318_v4 = vrot.slane %v5956_v30, 2  ;;  %v6031_v20 = vld [vmem:[%s5675_s25 + $0x48] sm:$0xff]  }
  0x6f   : > { %5123 = vmatpush3.bf16.msra.mxu1 %v5520_v19  ;;  %5177 = vmatpush3.bf16.msra.mxu0 %v5523_v60  ;;  %v1511_v19 = vrot.slane %v5991_v14, 1  ;;  %v2324_v60 = vrot.slane %v6001_v3, 2 }
  0x70   : > { %5124 = vmatprep.subr.bf16.mxu1 %v5522_v21  ;;  %5266 = vmatprep.subr.bf16.mxu0 %v5945_v24  ;;  %v5972_v11 = vsel %vm2314_vm2, %v2316_v32, %v2318_v4  ;;  %v6018_v10 = vsel %vm2314_vm2, %v2318_v4, %v2320_v6  ;;  %v6043_v32 = vld [vmem:[%s5675_s25 + $0x50] sm:$0xff]  }
  0x71   : > { %v6040_v28 = vsel %vm2314_vm2, %v2324_v60, %v2326_v17  ;;  %v2332_v42 = vrot.slane %v6043_v32, 2 }
  0x73   : > { %5125 = vmatpush3.bf16.msra.mxu1 %v5522_v21  ;;  %v2328_v21 = vrot.slane %v6015_v46, 2 }
  0x74   : > { %5214 = vmatprep.subr.bf16.mxu1 %v5963_v33 }
  0x75   : > { %5039 = vmatmul.mubr.bf16.gmra.mxu1 %v5684_v5  ;;  %5095 = vmatmul.mubr.bf16.gmra.mxu0 %v1067_v34  ;;  %v1074_v5 = vrot.slane %v5809_v40, 1  ;;  %v6046_v4 = vsel %vm2314_vm2, %v2326_v17, %v2328_v21  ;;  %v1883_v34 = vshll.u32 %v5996_v63, 16 }
  0x76   : > { %5042 = vmatprep.mubr.bf16.mxu1 %v5713_v22  ;;  %5098 = vmatprep.mubr.bf16.mxu0 %v1069_v37  ;;  %v1862_v22 = vshrl.u32 %v5956_v30, 16  ;;  %v1513_v37 = vrot.slane %v5996_v63, 1 }
  0x77   : > { %v1077_v16 = vsel %vm1042_vm1, %v1074_v5, %v1076_v44  ;;  %v1876_v44 = vrot.slane %v1874_v35, 2  ;;  %v1885_v49 = vrot.slane %v1883_v34, 2  ;;  %v6094_v35 = vld [vmem:[%s5675_s25 + $0x78] sm:$0xff]   ;;  %v1916_v34 = vshrl.u32 %v6031_v20, 16 }
  0x78   : > { %v1864_v62 = vrot.slane %v1862_v22, 1  ;;  %v2334_v22 = vrot.slane %v6052_v38, 2 }
  0x79   : > { %v1877_v25 = vor.u32 %v1876_v44, %v1873_v18  ;;  %v2340_v18 = vrot.slane %v6083_v2, 2 }
  0x7d   : > { %5043 = vmatmul.mubr.bf16.gmra.mxu1 %v5723_v29  ;;  %5099 = vmatmul.mubr.bf16.gmra.mxu0 %v1071_v47  ;;  %v2322_v29 = vrot.slane %v5996_v63, 2 }
  0x7e   : > { %5046 = vmatprep.mubr.bf16.mxu1 %v5738_v39  ;;  %5102 = vmatprep.mubr.bf16.mxu0 %v1073_v58  ;;  %v1075_v39 = vsel %vm1042_vm1, %v1072_v45, %v1074_v5  ;;  %v1889_v45 = vshrl.u32 %v6001_v3, 16  ;;  %v6073_v58 = vsel %vm2314_vm2, %v2332_v42, %v2334_v22 }
  0x7f   : > { %v6021_v12 = vsel %vm2314_vm2, %v2320_v6, %v2322_v29  ;;  %v6037_v26 = vsel %vm2314_vm2, %v2322_v29, %v2324_v60  ;;  %v6086_v6 = vsel %vm2314_vm2, %v2334_v22, %v2336_v0  ;;  %v2338_v29 = vrot.slane %v6077_v61, 2  ;;  %v5531_v22 = vld [vmem:[%s7147_s1 + $0x170] sm:$0xff]  }
  0x80   : > { %v1508_v60 = vsel %vm1042_vm1, %v1506_v53, %v1507_v57  ;;  %v1886_v53 = vor.u32 %v1885_v49, %v1882_v43  ;;  %v1510_v49 = vsel %vm1042_vm1, %v1507_v57, %v1509_v7 }
  0x85   : > { %5047 = vmatmul.mubr.bf16.gmra.mxu1 %v5752_v50  ;;  %5103 = vmatmul.mubr.bf16.gmra.mxu0 %v1075_v39  ;;  %v1859_v50 = vor.u32 %v1858_v59, %v1855_v56  ;;  %v1901_v56 = vshll.u32 %v6007_v8, 16  ;;  %v1868_v59 = vor.u32 %v1867_v15, %v1864_v62  ;;  %v1891_v62 = vrot.slane %v1889_v45, 1 }
  0x86   : > { %5050 = vmatprep.mubr.bf16.mxu1 %v5773_v1  ;;  %5106 = vmatprep.mubr.bf16.mxu0 %v1077_v16  ;;  %v2330_v1 = vrot.slane %v6031_v20, 2  ;;  %v1894_v15 = vrot.slane %v1892_v48, 2  ;;  %v6097_v16 = vsel %vm2314_vm2, %v2336_v0, %v2338_v29  ;;  %v6124_v48 = vld [vmem:[%s5675_s25 + $0x88] sm:$0xff]   ;;  %v1512_v0 = vsel %vm1042_vm1, %v1509_v7, %v1511_v19 }
  0x87   : > { %v1860_v47 = vsel %vm1843_vm3, %v1851_v31, %v1859_v50  ;;  %v1869_v39 = vsel %vm1843_vm3, %v1859_v50, %v1868_v59  ;;  %v1878_v17 = vsel %vm1843_vm3, %v1868_v59, %v1877_v25  ;;  %v1903_v44 = vrot.slane %v1901_v56, 2 }
  0x88   : > { %v6055_v41 = vsel %vm2314_vm2, %v2328_v21, %v2330_v1  ;;  %v6062_v5 = vsel %vm2314_vm2, %v2330_v1, %v2332_v42  ;;  %v1900_v21 = vrot.slane %v1898_v55, 1  ;;  %v6107_v50 = vsel %vm2314_vm2, %v2338_v29, %v2340_v18  ;;  %v6117_v42 = vld [vmem:[%s5675_s25 + $0x80] sm:$0xff]  }
  0x89   : > { %v2342_v1 = vrot.slane %v6094_v35, 2  ;;  %v2344_v43 = vrot.slane %v6117_v42, 2  ;;  %v1887_v55 = vsel %vm1843_vm3, %v1877_v25, %v1886_v53  ;;  %v1928_v56 = vshll.u32 %v6043_v32, 16 }
  0x8a   : > { %v2346_v59 = vrot.slane %v6124_v48, 2  ;;  %v1904_v25 = vor.u32 %v1903_v44, %v1900_v21  ;;  %v7150_v29 = vrot.slane %v6015_v46, 1  ;;  %v6174_v21 = vld [vmem:[%s5675_s25 + $0x98] ss:$0 sps:$4 sm:$0x33]  }
  0x8b   : > { %v6120_v45 = vsel %vm2314_vm2, %v2340_v18, %v2342_v1  ;;  %v6147_v27 = vsel %vm2314_vm2, %v2342_v1, %v2344_v43  ;;  %v1937_v18 = vshll.u32 %v6052_v38, 16  ;;  %v2632_v1 = vld [vmem:[%s5675_s25 + $0x14] sm:$0xf] }
  0x8d   : > { %5051 = vmatmul.mubr.bf16.gmra.mxu1 %v5790_v23  ;;  %5107 = vmatmul.mubr.bf16.gmra.mxu0 %v5874_v51  ;;  %v1907_v23 = vshrl.u32 %v6015_v46, 16  ;;  %v1910_v51 = vshll.u32 %v6015_v46, 16 }
  0x8e   : > { %5054 = vmatprep.mubr.bf16.mxu1 %v5809_v40  ;;  %5178 = vmatprep.mubr.bf16.mxu0 %v1860_v47  ;;  %v5532_v40 = vld [vmem:[%s7147_s1 + $0x1b0] sm:$0xff]   ;;  %v1895_v47 = vor.u32 %v1894_v15, %v1891_v62  ;;  %v1930_v15 = vrot.slane %v1928_v56, 2 }
  0x8f   : > { %v1909_v13 = vrot.slane %v1907_v23, 1  ;;  %v1912_v31 = vrot.slane %v1910_v51, 2  ;;  %v1515_v23 = vrot.slane %v6001_v3, 1  ;;  %v1517_v51 = vrot.slane %v6007_v8, 1  ;;  %v5542_v8 = vld [vmem:[%s7147_s1 + $0x1a0] sm:$0xff]  }
  0x90   : > { %v1896_v57 = vsel %vm1843_vm3, %v1886_v53, %v1895_v47  ;;  %v1918_v3 = vrot.slane %v1916_v34, 1  ;;  %v1905_v44 = vsel %vm1843_vm3, %v1895_v47, %v1904_v25 }
  0x91   : > { %v6154_v30 = vor.u32 %v1912_v31, %v1909_v13  ;;  %v1516_v13 = vsel %vm1042_vm1, %v1513_v37, %v1515_v23  ;;  %v6181_v14 = vsel %vm1042_vm1, %v1515_v23, %v1517_v51  ;;  %v2631_v31 = vld [vmem:[%s5675_s25 + $0x10] sm:$0xc] }
  0x92   : > { %v6202_v56 = vcombine.low %v2631_v31, %v2632_v1 }
  0x93   : > { %v1914_v53 = vsel %vm1843_vm3, %v1904_v25, %v6154_v30  ;;  %v1955_v25 = vshll.u32 %v6077_v61, 16 }
  0x95   : > { %5055 = vmatmul.mubr.bf16.gmra.mxu1 %v5821_v52  ;;  %5179 = vmatmul.mubr.bf16.vlgmr.msra.gmra.mxu0 %v1869_v39  ;;  %v1919_v52 = vshll.u32 %v6031_v20, 16  ;;  %v1934_v39 = vshrl.u32 %v6052_v38, 16 }
  0x96   : > { %5126 = vmatprep.mubr.bf16.mxu1 %v1508_v60  ;;  %5267 = vmatpush3.bf16.msra.mxu0 %v5945_v24  ;;  %v1925_v24 = vshrl.u32 %v6043_v32, 16  ;;  %v1514_v60 = vsel %vm1042_vm1, %v1511_v19, %v1513_v37  ;;  %v6186_v19 = vsel %vm1042_vm1, %v1517_v51, %v7150_v29  ;;  %v1946_v51 = vshll.u32 %v6066_v54, 16 }
  0x97   : > { %5182 = vmatprep.mubr.bf16.mxu0 %v1878_v17  ;;  %5268 = vmatprep.subr.bf16.mxu0 %v5532_v40  ;;  %v1921_v7 = vrot.slane %v1919_v52, 2  ;;  %v6171_v17 = vld [vmem:[%s5675_s25 + $0x90] sm:$0xff]   ;;  %v1939_v52 = vrot.slane %v1937_v18, 2 }
  0x98   : > { %v1927_v62 = vrot.slane %v1925_v24, 1  ;;  %v2348_v37 = vrot.slane %v6171_v17, 2  ;;  %v2350_v24 = vrot.slane %v6174_v21, 2  ;;  %v5550_v18 = vld [vmem:[%s7147_s1 + $0x190] sm:$0xff]  }
  0x99   : > { %v1922_v34 = vor.u32 %v1921_v7, %v1918_v3  ;;  %v5546_v3 = vld [vmem:[%s7147_s1 + $0x198] sm:$0xff]   ;;  %v6217_v7 = vld [vmem:[%s5675_s25 + $0x20] sm:$0xff]  }
  0x9a   : > { %5269 = vmatpush3.bf16.msra.mxu0 %v5532_v40  ;;  %v6152_v40 = vsel %vm2314_vm2, %v2344_v43, %v2346_v59  ;;  %v6194_v47 = vor.u32 %v1930_v15, %v1927_v62  ;;  %v3565_v43 = vld [vmem:[%s5675_s25 + $0x10] sm:$0x8]  ;;  %v6220_v62 = vsel %vm2314_vm2, %v2348_v37, %v2350_v24  ;;  %v3117_v15 = vshrl.u32 %v6202_v56, 16 }
  0x9b   : > { %5270 = vmatprep.subr.bf16.mxu0 %v5537_v36  ;;  %v4529_v23 = vcombine.low %v3565_v43, %v2632_v1  ;;  %7160 = vst [vmem:[#allocation3_spill] sm:$0xff] %v6220_v62  ;;  %v3590_v31 = vrot.slane %v6217_v7, 3  ;;  %v3134_v24 = vshrl.u32 %v6217_v7, 16  ;;  %v1923_v63 = vsel %vm1843_vm3, %v6154_v30, %v1922_v34 }
  0x9c   : > { %v1957_v62 = vrot.slane %v1955_v25, 2 }
  0x9d   : > { %5127 = vmatmul.mubr.bf16.vlgmr.msra.gmra.mxu1 %v1510_v49  ;;  %5183 = vmatmul.mubr.bf16.gmra.mxu0 %v1887_v55  ;;  %v5539_v49 = vld [vmem:[%s7147_s1 + $0x160] sm:$0xff]   ;;  %v1943_v55 = vshrl.u32 %v6066_v54, 16 }
  0x9e   : > { %5215 = vmatpush3.bf16.msra.mxu1 %v5963_v33  ;;  %5130 = vmatprep.mubr.bf16.mxu1 %v1512_v0  ;;  %v5535_v33 = vld [vmem:[%s7147_s1 + $0x168] sm:$0xff]   ;;  %v6205_v0 = vld [vmem:[%s5675_s25 + $0x18] sm:$0xff]  }
  0x9f   : > { %5216 = vmatprep.subr.bf16.mxu1 %v5531_v22  ;;  %5186 = vmatprep.mubr.bf16.mxu0 %v1896_v57  ;;  %v1952_v57 = vshrl.u32 %v6077_v61, 16  ;;  %v3125_v1 = vshrl.u32 %v6205_v0, 16 }
  0xa0   : > { %5271 = vmatpush3.bf16.msra.mxu0 %v5537_v36  ;;  %v1936_v36 = vrot.slane %v1934_v39, 1  ;;  %v3120_v39 = vshll.u32 %v6202_v56, 16 }
  0xa1   : > { %5272 = vmatprep.subr.bf16.mxu0 %v5542_v8  ;;  %v1954_v30 = vrot.slane %v1952_v57, 1 }
  0xa2   : > { %5217 = vmatpush3.bf16.msra.mxu1 %v5531_v22  ;;  %v6208_v22 = vsel %vm2314_vm2, %v2346_v59, %v2348_v37  ;;  %v3587_v59 = vrot.slane %v4529_v23, 3  ;;  %v3122_v37 = vrot.slane %v3120_v39, 3  ;;  %v3127_v23 = vrot.slane %v3125_v1, 2 }
  0xa3   : > { %5218 = vmatprep.subr.bf16.mxu1 %v5535_v33  ;;  %7159 = vst [vmem:[#allocation2_spill] sm:$0xff] %v6208_v22  ;;  %v1940_v39 = vor.u32 %v1939_v52, %v1936_v36  ;;  %v1932_v1 = vsel %vm1843_vm3, %v1922_v34, %v6194_v47  ;;  %v6248_v22 = vld [vmem:[%s5675_s25 + $0x28] sm:$0xff]   ;;  %v5549_v36 = vld [vmem:[%s7147_s1 + $0x150] sm:$0xff]  }
  0xa4   : > { %5273 = vmatpush3.bf16.msra.mxu0 %v5542_v8  ;;  %v3588_v8 = vrot.slane %v6205_v0, 3  ;;  %v6258_v52 = vld [vmem:[%s5675_s25 + $0x30] sm:$0xff]   ;;  %v3143_v57 = vshrl.u32 %v6248_v22, 16  ;;  %v3146_v25 = vshll.u32 %v6248_v22, 16 }
  0xa5   : > { %5131 = vmatmul.mubr.bf16.gmra.mxu1 %v1514_v60  ;;  %5187 = vmatmul.mubr.bf16.gmra.mxu0 %v1905_v44  ;;  %v3128_v60 = vshll.u32 %v6205_v0, 16  ;;  %v5544_v44 = vld [vmem:[%s7147_s1 + $0x158] sm:$0xff]  }
  0xa6   : > { %5134 = vmatprep.mubr.bf16.mxu1 %v1516_v13  ;;  %5219 = vmatpush3.bf16.msra.mxu1 %v5535_v33  ;;  %v6235_v13 = vsel %vm3586_vm4, %v3587_v59, %v3588_v8  ;;  %v3119_v33 = vrot.slane %v3117_v15, 2  ;;  %v6239_v43 = vsel %vm3586_vm4, %v3588_v8, %v3590_v31  ;;  %v3136_v15 = vrot.slane %v3134_v24, 2 }
  0xa7   : > { %5190 = vmatprep.mubr.bf16.mxu0 %v1914_v53  ;;  %5220 = vmatprep.subr.bf16.mxu1 %v5539_v49  ;;  %7161 = vst [vmem:[#allocation4_spill] sm:$0xff] %v6235_v13  ;;  %7162 = vst [vmem:[#allocation5_spill] sm:$0xff] %v6239_v43  ;;  %v3130_v29 = vrot.slane %v3128_v60, 3  ;;  %v3137_v53 = vshll.u32 %v6217_v7, 16  ;;  %v1945_v60 = vrot.slane %v1943_v55, 1  ;;  %v1948_v13 = vrot.slane %v1946_v51, 2 }
  0xa8   : > { %5274 = vmatprep.subr.bf16.mxu0 %v5546_v3  ;;  %v3123_v59 = vor.u32 %v3122_v37, %v3119_v33  ;;  %v1964_v55 = vshll.u32 %v6083_v2, 16  ;;  %v3592_v51 = vrot.slane %v6248_v22, 3  ;;  %v3594_v37 = vrot.slane %v6258_v52, 3 }
  0xa9   : > { %5275 = vmatpush3.bf16.msra.mxu0 %v5546_v3  ;;  %v3131_v8 = vor.u32 %v3130_v29, %v3127_v23  ;;  %v3139_v43 = vrot.slane %v3137_v53, 3  ;;  %v1961_v3 = vshrl.u32 %v6083_v2, 16  ;;  %v5554_v29 = vld [vmem:[%s7147_s1 + $0x188] sm:$0xff]   ;;  %v3152_v24 = vshrl.u32 %v6258_v52, 16 }
  0xaa   : > { %5221 = vmatpush3.bf16.msra.mxu1 %v5539_v49  ;;  %5276 = vmatprep.subr.bf16.mxu0 %v5550_v18  ;;  %v3145_v23 = vrot.slane %v3143_v57, 2  ;;  %v3148_v53 = vrot.slane %v3146_v25, 3 }
  0xab   : > { %5222 = vmatprep.subr.bf16.mxu1 %v5544_v44  ;;  %v6261_v34 = vsel %vm3115_vm5, %v3123_v59, %v3131_v8  ;;  %v3140_v49 = vor.u32 %v3139_v43, %v3136_v15  ;;  %v6278_v43 = vsel %vm3586_vm4, %v3590_v31, %v3592_v51  ;;  %v5553_v59 = vld [vmem:[%s7147_s1 + $0x148] sm:$0xff]   ;;  %v7166_v15 = vrot.slane %v6031_v20, 1  ;;  %v6308_v20 = vld [vmem:[%s5675_s25 + $0x38] sm:$0xff]  }
  0xac   : > { %7164 = vst [vmem:[#allocation7_spill] sm:$0xff] %v6278_v43  ;;  %v3149_v43 = vor.u32 %v3148_v53, %v3145_v23  ;;  %v1958_v23 = vor.u32 %v1957_v62, %v1954_v30  ;;  %v1982_v62 = vshll.u32 %v6117_v42, 16  ;;  %v3596_v30 = vrot.slane %v6308_v20, 3 }
  0xad   : > { %5135 = vmatmul.mubr.bf16.gmra.mxu1 %v6181_v14  ;;  %5191 = vmatmul.mubr.bf16.gmra.mxu0 %v1923_v63  ;;  %v6270_v33 = vsel %vm3115_vm5, %v3131_v8, %v3140_v49  ;;  %v3155_v14 = vshll.u32 %v6258_v52, 16  ;;  %v6275_v63 = vor.u32 %v1948_v13, %v1945_v60  ;;  %v5559_v13 = vld [vmem:[%s7147_s1 + $0x180] sm:$0xff]   ;;  %v7167_v8 = vrot.slane %v6015_v46, 1 }
  0xae   : > { %5138 = vmatprep.mubr.bf16.mxu1 %v6186_v19  ;;  %5194 = vmatprep.mubr.bf16.mxu0 %v1932_v1  ;;  %7163 = vst [vmem:[#allocation6_spill] sm:$0xff] %v6270_v33  ;;  %v1970_v19 = vshrl.u32 %v6094_v35, 16  ;;  %v7168_v60 = vrot.slane %v6043_v32, 1  ;;  %v7169_v57 = vmov %v7166_v15  ;;  %v1525_v33 = vrot.slane %v6052_v38, 1 }
  0xaf   : > { %5223 = vmatpush3.bf16.msra.mxu1 %v5544_v44  ;;  %5277 = vmatpush3.bf16.msra.mxu0 %v5550_v18  ;;  %v6288_v44 = vsel %vm3586_vm4, %v3592_v51, %v3594_v37  ;;  %v3154_v18 = vrot.slane %v3152_v24, 2  ;;  %v3157_v31 = vrot.slane %v3155_v14, 3  ;;  %v1522_v1 = vsel %vm1042_vm1, %v7167_v8, %v7166_v15 }
  0xb0   : > { %5224 = vmatprep.subr.bf16.mxu1 %v5549_v36  ;;  %5278 = vmatprep.subr.bf16.mxu0 %v5554_v29  ;;  %7165 = vst [vmem:[#allocation8_spill] sm:$0xff] %v6288_v44  ;;  %v1524_v25 = vsel %vm1042_vm1, %v7169_v57, %v7168_v60  ;;  %v1941_v51 = vsel %vm1843_vm3, %v6194_v47, %v1940_v39  ;;  %v1963_v24 = vrot.slane %v1961_v3, 1  ;;  %v1966_v14 = vrot.slane %v1964_v55, 2 }
  0xb1   : > { %v3158_v44 = vor.u32 %v3157_v31, %v3154_v18  ;;  %v1950_v46 = vsel %vm1843_vm3, %v1940_v39, %v6275_v63  ;;  %v1973_v8 = vshll.u32 %v6094_v35, 16  ;;  %v6311_v38 = vsel %vm3115_vm5, %v3140_v49, %v3149_v43  ;;  %v5557_v39 = vld [vmem:[%s7147_s1 + $0x140] sm:$0xff]  }
  0xb2   : > { %7170 = vst [vmem:[#allocation9_spill] sm:$0xff] %v6311_v38  ;;  %v1972_v47 = vrot.slane %v1970_v19, 1  ;;  %v1979_v3 = vshrl.u32 %v6117_v42, 16  ;;  %v3161_v55 = vshrl.u32 %v6308_v20, 16  ;;  %v3164_v53 = vshll.u32 %v6308_v20, 16 }
  0xb3   : > { %5225 = vmatpush3.bf16.msra.mxu1 %v5549_v36  ;;  %5279 = vmatpush3.bf16.msra.mxu0 %v5554_v29  ;;  %v6320_v36 = vld [vmem:[%s7147_s1 + $0x238] sm:$0xff]   ;;  %v6323_v29 = vld [vmem:[%s5675_s25 + $0x40] sm:$0xff]   ;;  %v6326_v49 = vsel %vm3115_vm5, %v3149_v43, %v3158_v44  ;;  %v1967_v19 = vor.u32 %v1966_v14, %v1963_v24  ;;  %v1975_v60 = vrot.slane %v1973_v8, 2  ;;  %v1988_v15 = vshrl.u32 %v6124_v48, 16 }
  0xb4   : > { %5226 = vmatprep.subr.bf16.mxu1 %v5553_v59  ;;  %5280 = vmatprep.subr.bf16.mxu0 %v5559_v13  ;;  %7171 = vst [vmem:[#allocation10_spill] sm:$0xff] %v6326_v49  ;;  %v3598_v18 = vrot.slane %v6323_v29, 3  ;;  %v3170_v31 = vshrl.u32 %v6323_v29, 16  ;;  %v3173_v43 = vshll.u32 %v6323_v29, 16  ;;  %v3163_v57 = vrot.slane %v3161_v55, 2 }
  0xb5   : > { %5139 = vmatmul.mubr.bf16.gmra.mxu1 %v1522_v1  ;;  %5195 = vmatmul.mubr.bf16.gmra.mxu0 %v1941_v51  ;;  %v6336_v1 = vsel %vm3586_vm4, %v3594_v37, %v3596_v30  ;;  %v3166_v51 = vrot.slane %v3164_v53, 3  ;;  %v1981_v37 = vrot.slane %v1979_v3, 1  ;;  %v1984_v14 = vrot.slane %v1982_v62, 2  ;;  %v6360_v62 = vld [vmem:[%s5675_s25 + $0x48] sm:$0xff]  }
  0xb6   : > { %5142 = vmatprep.mubr.bf16.mxu1 %v1524_v25  ;;  %5198 = vmatprep.mubr.bf16.mxu0 %v1950_v46  ;;  %7172 = vst [vmem:[#allocation11_spill] sm:$0xff] %v6336_v1  ;;  %v6342_v25 = vld [vmem:[%s7147_s1 + $0x1f8] sm:$0xff]   ;;  %v6346_v24 = vsel %vm3586_vm4, %v3596_v30, %v3598_v18  ;;  %v7173_v8 = vrot.slane %v6043_v32, 1  ;;  %v1959_v53 = vsel %vm1843_vm3, %v6275_v63, %v1958_v23  ;;  %v1529_v49 = vrot.slane %v6077_v61, 1  ;;  %v6368_v61 = vld [vmem:[%s5675_s25 + $0x50] sm:$0xff]  }
  0xb7   : > { %5227 = vmatpush3.bf16.msra.mxu1 %v5553_v59  ;;  %5281 = vmatpush3.bf16.msra.mxu0 %v5559_v13  ;;  %v3172_v59 = vrot.slane %v3170_v31, 2  ;;  %v3175_v13 = vrot.slane %v3173_v43, 3  ;;  %v3167_v46 = vor.u32 %v3166_v51, %v3163_v57  ;;  %v7174_v38 = vrot.slane %v6066_v54, 1 }
  0xb8   : > { %5228 = vmatprep.subr.bf16.mxu1 %v5557_v39  ;;  %5370 = vmatprep.subr.bf16.mxu0 %v6320_v36  ;;  %v1526_v55 = vsel %vm1042_vm1, %v7173_v8, %v1525_v33  ;;  %v1968_v31 = vsel %vm1843_vm3, %v1958_v23, %v1967_v19  ;;  %v1976_v43 = vor.u32 %v1975_v60, %v1972_v47  ;;  %v1990_v57 = vrot.slane %v1988_v15, 1 }
  0xb9   : > { %v3176_v1 = vor.u32 %v3175_v13, %v3172_v59  ;;  %v1528_v30 = vsel %vm1042_vm1, %v1525_v33, %v7174_v38  ;;  %v6363_v32 = vsel %vm3115_vm5, %v3158_v44, %v3167_v46  ;;  %v1991_v63 = vshll.u32 %v6124_v48, 16 }
  0xba   : > { %7175 = vst [vmem:[#allocation12_spill] sm:$0xff] %v6363_v32  ;;  %v1985_v38 = vor.u32 %v1984_v14, %v1981_v37  ;;  %v3600_v23 = vrot.slane %v6360_v62, 3  ;;  %v3182_v44 = vshll.u32 %v6360_v62, 16  ;;  %v1997_v15 = vshrl.u32 %v6171_v17, 16 }
  0xbb   : > { %5229 = vmatpush3.bf16.msra.mxu1 %v5557_v39  ;;  %v6371_v33 = vsel %vm3115_vm5, %v3167_v46, %v3176_v1  ;;  %v3179_v39 = vshrl.u32 %v6360_v62, 16  ;;  %v3602_v47 = vrot.slane %v6368_v61, 3  ;;  %v3188_v60 = vshrl.u32 %v6368_v61, 16 }
  0xbc   : > { %5318 = vmatprep.subr.bf16.mxu1 %v6342_v25  ;;  %7176 = vst [vmem:[#allocation13_spill] sm:$0xff] %v6371_v33  ;;  %v3191_v51 = vshll.u32 %v6368_v61, 16  ;;  %v2000_v59 = vshll.u32 %v6171_v17, 16  ;;  %v6382_v13 = vsel %vm3586_vm4, %v3598_v18, %v3600_v23  ;;  %v3184_v14 = vrot.slane %v3182_v44, 3 }
  0xbd   : > { %5143 = vmatmul.mubr.bf16.gmra.mxu1 %v1526_v55  ;;  %5199 = vmatmul.mubr.bf16.gmra.mxu0 %v1959_v53  ;;  %v3181_v37 = vrot.slane %v3179_v39, 2  ;;  %v1993_v46 = vrot.slane %v1991_v63, 2  ;;  %v6385_v8 = vsel %vm3586_vm4, %v3600_v23, %v3602_v47  ;;  %v3190_v55 = vrot.slane %v3188_v60, 2 }
  0xbe   : > { %5146 = vmatprep.mubr.bf16.mxu1 %v1528_v30  ;;  %5202 = vmatprep.mubr.bf16.mxu0 %v1968_v31  ;;  %7177 = vst [vmem:[#allocation14_spill] sm:$0xff] %v6385_v8  ;;  %v3193_v53 = vrot.slane %v3191_v51, 3  ;;  %v7178_v31 = vrot.slane %v6066_v54, 1  ;;  %v1977_v33 = vsel %vm1843_vm3, %v1967_v19, %v1976_v43  ;;  %v7179_v32 = vrot.slane %v6083_v2, 1  ;;  %v6396_v8 = vld [vmem:[%s5675_s25 + $0x58] sm:$0xff]   ;;  %v6404_v19 = vld [vmem:[%s5675_s25 + $0x60] sm:$0xff]  }
  0xbf   : > { %v3185_v30 = vor.u32 %v3184_v14, %v3181_v37  ;;  %v1986_v63 = vsel %vm1843_vm3, %v1976_v43, %v1985_v38  ;;  %v1999_v44 = vrot.slane %v1997_v15, 1  ;;  %v2002_v23 = vrot.slane %v2000_v59, 2 }
  0xc0   : > { %v1530_v3 = vsel %vm1042_vm1, %v7178_v31, %v1529_v49  ;;  %v1532_v18 = vsel %vm1042_vm1, %v1529_v49, %v7179_v32  ;;  %v3194_v39 = vor.u32 %v3193_v53, %v3190_v55  ;;  %v1533_v54 = vrot.slane %v6094_v35, 1 }
  0xc1   : > { %v6399_v60 = vsel %vm3115_vm5, %v3176_v1, %v3185_v30  ;;  %v1994_v51 = vor.u32 %v1993_v46, %v1990_v57  ;;  %v1535_v37 = vrot.slane %v6117_v42, 1  ;;  %v2006_v49 = vshrl.u32 %v6174_v21, 16 }
  0xc2   : > { %v6407_v14 = vsel %vm3115_vm5, %v3185_v30, %v3194_v39  ;;  %v3604_v32 = vrot.slane %v6396_v8, 3  ;;  %v3197_v43 = vshrl.u32 %v6396_v8, 16  ;;  %v3200_v1 = vshll.u32 %v6396_v8, 16 }
  0xc3   : > { %7180 = vst [vmem:[#allocation15_spill] sm:$0xff] %v6407_v14  ;;  %v2009_v35 = vshll.u32 %v6174_v21, 16  ;;  %v3606_v42 = vrot.slane %v6404_v19, 3  ;;  %v3206_v57 = vshrl.u32 %v6404_v19, 16  ;;  %v3209_v15 = vshll.u32 %v6404_v19, 16 }
  0xc4   : > { %v3199_v59 = vrot.slane %v3197_v43, 2  ;;  %v3202_v46 = vrot.slane %v3200_v1, 3  ;;  %v7181_v21 = vrot.slane %v6083_v2, 1  ;;  %v2008_v14 = vrot.slane %v2006_v49, 1  ;;  %v6430_v1 = vld [vmem:[%s5675_s25 + $0x68] sm:$0xff]  }
  0xc5   : > { %5147 = vmatmul.mubr.bf16.gmra.mxu1 %v1530_v3  ;;  %5203 = vmatmul.mubr.bf16.gmra.mxu0 %v1977_v33  ;;  %v2003_v3 = vor.u32 %v2002_v23, %v1999_v44  ;;  %v6418_v33 = vsel %vm3586_vm4, %v3602_v47, %v3604_v32  ;;  %v6421_v55 = vsel %vm3586_vm4, %v3604_v32, %v3606_v42  ;;  %v3208_v53 = vrot.slane %v3206_v57, 2 }
  0xc6   : > { %5150 = vmatprep.mubr.bf16.mxu1 %v1532_v18  ;;  %5206 = vmatprep.mubr.bf16.mxu0 %v1986_v63  ;;  %v3211_v30 = vrot.slane %v3209_v15, 3  ;;  %v1534_v31 = vsel %vm1042_vm1, %v7181_v21, %v1533_v54  ;;  %v3203_v18 = vor.u32 %v3202_v46, %v3199_v59  ;;  %v1995_v63 = vsel %vm1843_vm3, %v1985_v38, %v1994_v51  ;;  %v6438_v15 = vld [vmem:[%s5675_s25 + $0x70] sm:$0xff]  }
  0xc7   : > { %v2011_v44 = vrot.slane %v2009_v35, 2  ;;  %v1536_v47 = vsel %vm1042_vm1, %v1533_v54, %v1535_v37  ;;  %v2004_v43 = vsel %vm1843_vm3, %v1994_v51, %v2003_v3  ;;  %v1537_v57 = vrot.slane %v6124_v48, 1 }
  0xc8   : > { %v3212_v23 = vor.u32 %v3211_v30, %v3208_v53  ;;  %v6433_v32 = vsel %vm3115_vm5, %v3194_v39, %v3203_v18  ;;  %v1539_v2 = vrot.slane %v6171_v17, 1  ;;  %v2779_v54 = vrot.slane %v6205_v0, 2 }
  0xc9   : > { %v3608_v51 = vrot.slane %v6430_v1, 3  ;;  %v3215_v49 = vshrl.u32 %v6430_v1, 16  ;;  %v3218_v39 = vshll.u32 %v6430_v1, 16  ;;  %v2012_v48 = vor.u32 %v2011_v44, %v2008_v14 }
  0xca   : > { %v6441_v38 = vsel %vm3115_vm5, %v3203_v18, %v3212_v23  ;;  %v7151_v17 = vrot.slane %v6438_v15, 3  ;;  %v3224_v35 = vshrl.u32 %v6438_v15, 16  ;;  %v3227_v59 = vshll.u32 %v6438_v15, 16 }
  0xcb   : > { %v2778_v46 = vrot.slane %v6202_v56, 2  ;;  %v6452_v0 = vsel %vm3586_vm4, %v3606_v42, %v3608_v51  ;;  %v3217_v53 = vrot.slane %v3215_v49, 2  ;;  %v3220_v30 = vrot.slane %v3218_v39, 3 }
  0xcc   : > { %v6457_v21 = vsel %vm3586_vm4, %v3608_v51, %v7151_v17  ;;  %v3229_v14 = vrot.slane %v3227_v59, 3  ;;  %v2013_v44 = vsel %vm1843_vm3, %v2003_v3, %v2012_v48  ;;  %v1540_v56 = vsel %vm1042_vm1, %v1537_v57, %v1539_v2  ;;  %v5568_v59 = vld [vmem:[%s7147_s1 + $0x1f0] sm:$0xff]  }
  0xcd   : > { %5151 = vmatmul.mubr.bf16.gmra.mxu1 %v1534_v31  ;;  %5207 = vmatmul.mubr.bf16.gmra.mxu0 %v1995_v63  ;;  %v3226_v31 = vrot.slane %v3224_v35, 2  ;;  %v3221_v18 = vor.u32 %v3220_v30, %v3217_v53  ;;  %v1538_v63 = vsel %vm1042_vm1, %v1535_v37, %v1537_v57  ;;  %v2780_v42 = vsel %vm2314_vm2, %v2778_v46, %v2779_v54 }
  0xce   : > { %5154 = vmatprep.mubr.bf16.mxu1 %v1536_v47  ;;  %5210 = vmatprep.mubr.bf16.mxu0 %v2004_v43  ;;  %v5558_v47 = vld [vmem:[%s5675_s25 + $0x98] ss:$0 sps:$4 sm:$0x11]   ;;  %v2781_v3 = vrot.slane %v6217_v7, 2  ;;  %v2783_v39 = vrot.slane %v6248_v22, 2  ;;  %v2785_v7 = vrot.slane %v6258_v52, 2 }
  0xcf   : > { %v6462_v43 = vor.u32 %v3229_v14, %v3226_v31  ;;  %v6467_v49 = vsel %vm3115_vm5, %v3212_v23, %v3221_v18  ;;  %v1541_v37 = vrot.slane %v5558_v47, 1  ;;  %v5569_v23 = vld [vmem:[%s7147_s1 + $0x230] sm:$0xff]   ;;  %v5574_v22 = vld [vmem:[%s7147_s1 + $0x228] sm:$0xff]   ;;  %v5579_v52 = vld [vmem:[%s7147_s1 + $0x220] sm:$0xff]   ;;  %v2791_v46 = vrot.slane %v6360_v62, 2 }
  0xd0   : > { %7183 = vst [vmem:[#allocation17_spill] sm:$0xff] %v6467_v49  ;;  %v2782_v48 = vsel %vm2314_vm2, %v2779_v54, %v2781_v3  ;;  %v2784_v35 = vsel %vm2314_vm2, %v2781_v3, %v2783_v39  ;;  %v2786_v54 = vsel %vm2314_vm2, %v2783_v39, %v2785_v7  ;;  %v2793_v30 = vrot.slane %v6368_v61, 2  ;;  %v5587_v31 = vld [vmem:[%s7147_s1 + $0x210] sm:$0xff]  }
  0xd1   : > { %7182 = vst [vmem:[#allocation16_spill] sm:$0xff] %v6462_v43  ;;  %v6471_v51 = vsel %vm3115_vm5, %v3221_v18, %v6462_v43  ;;  %v1542_v57 = vsel %vm1042_vm1, %v1539_v2, %v1541_v37  ;;  %v2787_v2 = vrot.slane %v6308_v20, 2  ;;  %v2789_v20 = vrot.slane %v6323_v29, 2  ;;  %v5591_v37 = vld [vmem:[%s7147_s1 + $0x208] sm:$0xff]  }
  0xd2   : > { %7184 = vst [vmem:[#allocation18_spill] sm:$0xff] %v6471_v51 }
  0xd3   : > { %v2792_v29 = vsel %vm2314_vm2, %v2789_v20, %v2791_v46 }
  0xd5   : > { %5155 = vmatmul.mubr.bf16.gmra.mxu1 %v1538_v63  ;;  %5211 = vmatmul.mubr.bf16.gmra.mxu0 %v2013_v44  ;;  %v5581_v63 = vld [vmem:[%s7147_s1 + $0x1d8] sm:$0xff]   ;;  %v2794_v44 = vsel %vm2314_vm2, %v2791_v46, %v2793_v30 }
  0xd6   : > { %5158 = vmatprep.mubr.bf16.mxu1 %v1540_v56  ;;  %5282 = vmatprep.mubr.bf16.mxu0 %v2780_v42  ;;  %v5586_v42 = vld [vmem:[%s7147_s1 + $0x1d0] sm:$0xff]  }
  0xdd   : > { %5159 = vmatmul.mubr.bf16.gmra.mxu1 %v1542_v57  ;;  %5283 = vmatmul.mubr.bf16.vlgmr.msra.gmra.mxu0 %v2782_v48  ;;  %v2797_v57 = vrot.slane %v6404_v19, 2 }
  0xde   : > { %5230 = vmatprep.mubr.bf16.mxu1 %v6010_v9  ;;  %5371 = vmatpush3.bf16.msra.mxu0 %v6320_v36  ;;  %v2788_v9 = vsel %vm2314_vm2, %v2785_v7, %v2787_v2  ;;  %v5572_v36 = vld [vmem:[%s7147_s1 + $0x1e8] sm:$0xff]  }
  0xdf   : > { %5286 = vmatprep.mubr.bf16.mxu0 %v2784_v35  ;;  %5372 = vmatprep.subr.bf16.mxu0 %v5569_v23  ;;  %v2799_v35 = vrot.slane %v6430_v1, 2 }
  0xe2   : > { %5373 = vmatpush3.bf16.msra.mxu0 %v5569_v23 }
  0xe3   : > { %5374 = vmatprep.subr.bf16.mxu0 %v5574_v22 }
  0xe5   : > { %5231 = vmatmul.mubr.bf16.vlgmr.msra.gmra.mxu1 %v5972_v11  ;;  %5287 = vmatmul.mubr.bf16.gmra.mxu0 %v2786_v54  ;;  %v2790_v11 = vsel %vm2314_vm2, %v2787_v2, %v2789_v20  ;;  %v2800_v54 = vsel %vm2314_vm2, %v2797_v57, %v2799_v35 }
  0xe6   : > { %5319 = vmatpush3.bf16.msra.mxu1 %v6342_v25  ;;  %5234 = vmatprep.mubr.bf16.mxu1 %v6018_v10  ;;  %v5576_v10 = vld [vmem:[%s7147_s1 + $0x1e0] sm:$0xff]   ;;  %v5583_v25 = vld [vmem:[%s7147_s1 + $0x218] sm:$0xff]  }
  0xe7   : > { %5320 = vmatprep.subr.bf16.mxu1 %v5568_v59  ;;  %5290 = vmatprep.mubr.bf16.mxu0 %v2788_v9  ;;  %v5594_v9 = vld [vmem:[%s7147_s1 + $0x1c0] sm:$0xff]  }
  0xe8   : > { %5375 = vmatpush3.bf16.msra.mxu0 %v5574_v22 }
  0xe9   : > { %5376 = vmatprep.subr.bf16.mxu0 %v5579_v52 }
  0xea   : > { %5321 = vmatpush3.bf16.msra.mxu1 %v5568_v59  ;;  %v6575_v59 = vld [vmem:[%s5675_s25 + $0x78] sm:$0xff]  }
  0xeb   : > { %5322 = vmatprep.subr.bf16.mxu1 %v5572_v36 }
  0xec   : > { %5377 = vmatpush3.bf16.msra.mxu0 %v5579_v52 }
  0xed   : > { %v6512_v53 = vpop.f32.mrf.mxu1  ;;  %5235 = vmatmul.mubr.bf16.gmra.mxu1 %v6021_v12  ;;  %v6515_v62 = vpop.f32.mrf.mxu0  ;;  %5291 = vmatmul.mubr.bf16.gmra.mxu0 %v2790_v11  ;;  %v2795_v12 = vrot.slane %v6396_v8, 2 }
  0xee   : > { %5238 = vmatprep.mubr.bf16.mxu1 %v6037_v26  ;;  %5323 = vmatpush3.bf16.msra.mxu1 %v5572_v36  ;;  %v2801_v36 = vrot.slane %v6438_v15, 2 }
  0xef   : > { %v6522_v14 = vpop.f32.mrf.mxu1  ;;  %v6524_v18 = vpop.f32.mrf.mxu0  ;;  %5294 = vmatprep.mubr.bf16.mxu0 %v2792_v29  ;;  %5324 = vmatprep.subr.bf16.mxu1 %v5576_v10  ;;  %v2796_v8 = vsel %vm2314_vm2, %v2793_v30, %v2795_v12  ;;  %v2798_v22 = vsel %vm2314_vm2, %v2795_v12, %v2797_v57 }
  0xf0   : > { %5378 = vmatprep.subr.bf16.mxu0 %v5583_v25 }
  0xf1   : > { %v6530_v26 = vpop.f32.mrf.mxu1  ;;  %v6532_v61 = vpop.f32.mrf.mxu0  ;;  %5379 = vmatpush3.bf16.msra.mxu0 %v5583_v25  ;;  %v2802_v25 = vsel %vm2314_vm2, %v2799_v35, %v2801_v36 }
  0xf2   : > { %5325 = vmatpush3.bf16.msra.mxu1 %v5576_v10  ;;  %5380 = vmatprep.subr.bf16.mxu0 %v5587_v31  ;;  %v2803_v10 = vrot.slane %v6575_v59, 2 }
  0xf3   : > { %v6535_v47 = vpop.f32.mrf.mxu1  ;;  %v6537_v56 = vpop.f32.mrf.mxu0  ;;  %5326 = vmatprep.subr.bf16.mxu1 %v5581_v63 }
  0xf4   : > { %v2804_v12 = vsel %vm2314_vm2, %v2801_v36, %v2803_v10  ;;  %v6634_v36 = vld [vmem:[%s5675_s25 + $0x98] sm:$0xff]  }
  0xf5   : > { %v6546_v3 = vpop.f32.mrf.mxu1  ;;  %5239 = vmatmul.mubr.bf16.gmra.mxu1 %v6040_v28  ;;  %v6549_v39 = vpop.f32.mrf.mxu0  ;;  %5295 = vmatmul.mubr.bf16.gmra.mxu0 %v2794_v44  ;;  %v5590_v28 = vld [vmem:[%s7147_s1 + $0x1c8] sm:$0xff]   ;;  %7191 = vst [vmem:[#allocation25_spill] sm:$0xff] %v6634_v36 }
  0xf6   : > { %5242 = vmatprep.mubr.bf16.mxu1 %v6046_v4  ;;  %5298 = vmatprep.mubr.bf16.mxu0 %v2796_v8  ;;  %v5595_v4 = vld [vmem:[%s7147_s1 + $0x200] sm:$0xff]  }
  0xf7   : > { %v6553_v48 = vpop.f32.mrf.mxu1  ;;  %v6555_v23 = vpop.f32.mrf.mxu0  ;;  %5327 = vmatpush3.bf16.msra.mxu1 %v5581_v63  ;;  %5381 = vmatpush3.bf16.msra.mxu0 %v5587_v31  ;;  %v6606_v63 = vld [vmem:[%s5675_s25 + $0x88] sm:$0xff]  }
  0xf8   : > { %5328 = vmatprep.subr.bf16.mxu1 %v5586_v42  ;;  %5382 = vmatprep.subr.bf16.mxu0 %v5591_v37  ;;  %7185 = vst [vmem:[#allocation19_spill] sm:$0xff] %v6606_v63  ;;  %v2807_v35 = vrot.slane %v6606_v63, 2 }
  0xf9   : > { %v6564_v19 = vpop.f32.mrf.mxu1  ;;  %v6566_v7 = vpop.f32.mrf.mxu0 }
  0xfb   : > { %v6569_v2 = vpop.f32.mrf.mxu1  ;;  %v6571_v1 = vpop.f32.mrf.mxu0  ;;  %5329 = vmatpush3.bf16.msra.mxu1 %v5586_v42  ;;  %5383 = vmatpush3.bf16.msra.mxu0 %v5591_v37 }
  0xfc   : > { %5330 = vmatprep.subr.bf16.mxu1 %v5590_v28  ;;  %5384 = vmatprep.subr.bf16.mxu0 %v5595_v4 }
  0xfd   : > { %v6580_v52 = vpop.f32.mrf.mxu1  ;;  %5243 = vmatmul.mubr.bf16.gmra.mxu1 %v6055_v41  ;;  %v6583_v20 = vpop.f32.mrf.mxu0  ;;  %5299 = vmatmul.mubr.bf16.gmra.mxu0 %v2798_v22  ;;  %v6626_v22 = vld [vmem:[%s5675_s25 + $0x90] sm:$0xff]  }
  0xfe   : > { %5246 = vmatprep.mubr.bf16.mxu1 %v6062_v5  ;;  %5302 = vmatprep.mubr.bf16.mxu0 %v2800_v54  ;;  %v6598_v5 = vld [vmem:[%s5675_s25 + $0x80] sm:$0xff]   ;;  %7189 = vst [vmem:[#allocation23_spill] sm:$0xff] %v6626_v22 }
  0xff   : > { %v6587_v46 = vpop.f32.mrf.mxu1  ;;  %v6589_v11 = vpop.f32.mrf.mxu0  ;;  %5331 = vmatpush3.bf16.msra.mxu1 %v5590_v28  ;;  %5385 = vmatpush3.bf16.msra.mxu0 %v5595_v4  ;;  %v2805_v42 = vrot.slane %v6598_v5, 2 }
 0x100   : > { %5332 = vmatprep.subr.bf16.mxu1 %v5594_v9 }
 0x101   : > { %v6592_v29 = vpop.f32.mrf.mxu1  ;;  %v6594_v41 = vpop.f32.mrf.mxu0 }
 0x103   : > { %v6600_v30 = vpop.f32.mrf.mxu1  ;;  %v6602_v31 = vpop.f32.mrf.mxu0  ;;  %5333 = vmatpush3.bf16.msra.mxu1 %v5594_v9  ;;  %v2808_v9 = vsel %vm2314_vm2, %v2805_v42, %v2807_v35 }
 0x105   : > { %v6608_v44 = vpop.f32.mrf.mxu1  ;;  %5247 = vmatmul.mubr.bf16.gmra.mxu1 %v6073_v58  ;;  %v6611_v8 = vpop.f32.mrf.mxu0  ;;  %5303 = vmatmul.mubr.bf16.gmra.mxu0 %v2802_v25  ;;  %v2806_v58 = vsel %vm2314_vm2, %v2803_v10, %v2805_v42  ;;  %v2809_v10 = vrot.slane %v6626_v22, 2 }
 0x106   : > { %7186 = vst [vmem:[#allocation20_spill] sm:$0xff] %v6608_v44  ;;  %5250 = vmatprep.mubr.bf16.mxu1 %v6086_v6  ;;  %5306 = vmatprep.mubr.bf16.mxu0 %v2804_v12 }
 0x107   : > { %v6615_v37 = vpop.f32.mrf.mxu1  ;;  %v6617_v57 = vpop.f32.mrf.mxu0 }
 0x108   : > { %7187 = vst [vmem:[#allocation21_spill] sm:$0xff] %v6615_v37 }
 0x109   : > { %v6620_v28 = vpop.f32.mrf.mxu1  ;;  %v6622_v4 = vpop.f32.mrf.mxu0 }
 0x10a   : > { %7188 = vst [vmem:[#allocation22_spill] sm:$0xff] %v6620_v28  ;;  %v2810_v28 = vsel %vm2314_vm2, %v2807_v35, %v2809_v10 }
 0x10b   : > { %v6628_v54 = vpop.f32.mrf.mxu1  ;;  %v6630_v6 = vpop.f32.mrf.mxu0 }
 0x10c   : > { %7190 = vst [vmem:[#allocation24_spill] sm:$0xff] %v6628_v54  ;;  %v2811_v54 = vrot.slane %v6634_v36, 2 }
 0x10d   : > { %v6636_v25 = vpop.f32.mrf.mxu1  ;;  %5251 = vmatmul.mubr.bf16.gmra.mxu1 %v6097_v16  ;;  %v5076_v12 = vpop.f32.mrf.mxu0  ;;  %5307 = vmatmul.mubr.bf16.gmra.mxu0 %v2806_v58 }
 0x10e   : > { %7192 = vst [vmem:[#allocation26_spill] sm:$0xff] %v6636_v25  ;;  %5254 = vmatprep.mubr.bf16.mxu1 %v6107_v50  ;;  %5310 = vmatprep.mubr.bf16.mxu0 %v2808_v9  ;;  %v5593_v25 = vld [vmem:[%s5675_s25 + $0xa0] ss:$0 sps:$4 sm:$0x33]   ;;  %v2812_v58 = vsel %vm2314_vm2, %v2809_v10, %v2811_v54 }
 0x10f   : > { %v6641_v17 = vpop.f32.mrf.mxu1  ;;  %v1180_v51 = vpop.f32.mrf.mxu0 }
 0x110   : > { %7193 = vst [vmem:[#allocation27_spill] sm:$0xff] %v6641_v17 }
 0x111   : > { %v6644_v43 = vpop.f32.mrf.mxu1  ;;  %v5077_v42 = vpop.f32.mrf.mxu0 }
 0x112   : > { %7194 = vst [vmem:[#allocation28_spill] sm:$0xff] %v6644_v43  ;;  %v2813_v43 = vrot.slane %v5593_v25, 2 }
 0x113   : > { %v6648_v37 = vpop.f32.mrf.mxu1  ;;  %v1183_v16 = vpop.f32.mrf.mxu0 }
 0x114   : > { %7195 = vst [vmem:[#allocation29_spill] sm:$0xff] %v6648_v37 }
 0x115   : > { %v5024_v50 = vpop.f32.mrf.mxu1  ;;  %5255 = vmatmul.mubr.bf16.gmra.mxu1 %v6120_v45  ;;  %v5080_v9 = vpop.f32.mrf.mxu0  ;;  %5311 = vmatmul.mubr.bf16.gmra.mxu0 %v2810_v28  ;;  %v2814_v45 = vsel %vm2314_vm2, %v2811_v54, %v2813_v43 }
 0x116   : > { %v887_v17 = vadd.f32 %v5024_v50, %v6515_v62  ;;  %5258 = vmatprep.mubr.bf16.mxu1 %v6147_v27  ;;  %5314 = vmatprep.mubr.bf16.mxu0 %v2812_v58 }
 0x117   : > { %v878_v36 = vpop.f32.mrf.mxu1  ;;  %v1196_v22 = vpop.f32.mrf.mxu0 }
 0x118   : > { %v879_v35 = vadd.f32 %v878_v36, %v6524_v18  ;;  %v6655_v63 = vadd.f32 %v5076_v12, %v887_v17  ;;  %v7196_v36 = vld [vmem:[#allocation2_spill] sm:$0xff] }
 0x119   : > { %v5025_v37 = vpop.f32.mrf.mxu1  ;;  %v5081_v49 = vpop.f32.mrf.mxu0 }
 0x11a   : > { %v890_v10 = vadd.f32 %v5025_v37, %v6532_v61  ;;  %v6659_v44 = vadd.f32 %v1180_v51, %v879_v35  ;;  %v7197_v61 = vld [vmem:[#allocation4_spill] sm:$0xff] }
 0x11b   : > { %v881_v28 = vpop.f32.mrf.mxu1  ;;  %v1199_v62 = vpop.f32.mrf.mxu0 }
 0x11c   : > { %v882_v27 = vadd.f32 %v881_v28, %v6537_v56  ;;  %v6662_v58 = vadd.f32 %v5077_v42, %v890_v10  ;;  %v7198_v28 = vld [vmem:[#allocation3_spill] sm:$0xff] }
 0x11d   : > { %v5028_v25 = vpop.f32.mrf.mxu1  ;;  %5259 = vmatmul.mubr.bf16.gmra.mxu1 %v6152_v40  ;;  %v5084_v18 = vpop.f32.mrf.mxu0  ;;  %5315 = vmatmul.mubr.bf16.gmra.mxu0 %v2814_v45 }
 0x11e   : > { %v903_v17 = vadd.f32 %v5028_v25, %v6549_v39  ;;  %5262 = vmatprep.mubr.bf16.mxu1 %v7196_v36  ;;  %5386 = vmatprep.mubr.bf16.mxu0 %v7197_v61  ;;  %v6668_v43 = vadd.f32 %v1183_v16, %v882_v27  ;;  %v7199_v25 = vld [vmem:[#allocation5_spill] sm:$0xff] }
 0x11f   : > { %v894_v51 = vpop.f32.mrf.mxu1  ;;  %v1212_v37 = vpop.f32.mrf.mxu0 }
 0x120   : > { %v895_v54 = vadd.f32 %v894_v51, %v6555_v23  ;;  %v6671_v56 = vadd.f32 %v5080_v9, %v903_v17  ;;  %v7200_v9 = vld [vmem:[#allocation7_spill] sm:$0xff] }
 0x121   : > { %v5029_v12 = vpop.f32.mrf.mxu1  ;;  %v5085_v42 = vpop.f32.mrf.mxu0 }
 0x122   : > { %v906_v40 = vadd.f32 %v5029_v12, %v6566_v7  ;;  %v6674_v50 = vadd.f32 %v1196_v22, %v895_v54 }
 0x123   : > { %v897_v35 = vpop.f32.mrf.mxu1  ;;  %v1215_v39 = vpop.f32.mrf.mxu0 }
 0x124   : > { %v898_v10 = vadd.f32 %v897_v35, %v6571_v1  ;;  %v6677_v45 = vadd.f32 %v5081_v49, %v906_v40  ;;  %v7201_v35 = vld [vmem:[#allocation6_spill] sm:$0xff] }
 0x125   : > { %v5032_v16 = vpop.f32.mrf.mxu1  ;;  %5263 = vmatmul.mubr.bf16.gmra.mxu1 %v7198_v28  ;;  %v5088_v27 = vpop.f32.mrf.mxu0  ;;  %5387 = vmatmul.mubr.bf16.vlgmr.msra.gmra.mxu0 %v7199_v25  ;;  %v7204_v28 = vld [vmem:[#allocation11_spill] sm:$0xff] }
 0x126   : > { %v919_v23 = vadd.f32 %v5032_v16, %v6583_v20  ;;  %5334 = vmatprep.mubr.bf16.mxu1 %v6261_v34  ;;  %5390 = vmatprep.mubr.bf16.mxu0 %v7200_v9  ;;  %v6684_v7 = vadd.f32 %v1199_v62, %v898_v10  ;;  %v7202_v16 = vld [vmem:[#allocation8_spill] sm:$0xff] }
 0x127   : > { %v910_v22 = vpop.f32.mrf.mxu1  ;;  %v1228_v17 = vpop.f32.mrf.mxu0 }
 0x128   : > { %v911_v1 = vadd.f32 %v910_v22, %v6589_v11  ;;  %v6687_v49 = vadd.f32 %v5084_v18, %v919_v23  ;;  %v7203_v18 = vld [vmem:[#allocation9_spill] sm:$0xff] }
 0x129   : > { %v5033_v36 = vpop.f32.mrf.mxu1  ;;  %v5089_v61 = vpop.f32.mrf.mxu0 }
 0x12a   : > { %v922_v51 = vadd.f32 %v5033_v36, %v6594_v41  ;;  %v6690_v54 = vadd.f32 %v1212_v37, %v911_v1 }
 0x12b   : > { %v913_v12 = vpop.f32.mrf.mxu1  ;;  %v1231_v20 = vpop.f32.mrf.mxu0 }
 0x12c   : > { %v914_v34 = vadd.f32 %v913_v12, %v6602_v31  ;;  %v6693_v40 = vadd.f32 %v5085_v42, %v922_v51 }
 0x12d   : > { %v5036_v62 = vpop.f32.mrf.mxu1  ;;  %5335 = vmatmul.mubr.bf16.vlgmr.msra.gmra.mxu1 %v7201_v35  ;;  %v5092_v10 = vpop.f32.mrf.mxu0  ;;  %5391 = vmatmul.mubr.bf16.gmra.mxu0 %v7202_v16 }
 0x12e   : > { %v935_v11 = vadd.f32 %v5036_v62, %v6611_v8  ;;  %5338 = vmatprep.mubr.bf16.mxu1 %v7203_v18  ;;  %5394 = vmatprep.mubr.bf16.mxu0 %v7204_v28  ;;  %v6700_v41 = vadd.f32 %v1215_v39, %v914_v34  ;;  %v7205_v34 = vld [vmem:[#allocation10_spill] sm:$0xff] }
 0x12f   : > { %v926_v37 = vpop.f32.mrf.mxu1  ;;  %v1244_v25 = vpop.f32.mrf.mxu0 }
 0x130   : > { %v927_v31 = vadd.f32 %v926_v37, %v6617_v57  ;;  %v6703_v42 = vadd.f32 %v5088_v27, %v935_v11  ;;  %v7206_v27 = vld [vmem:[#allocation12_spill] sm:$0xff] }
 0x131   : > { %v5037_v23 = vpop.f32.mrf.mxu1  ;;  %v5093_v9 = vpop.f32.mrf.mxu0 }
 0x132   : > { %v938_v22 = vadd.f32 %v5037_v23, %v6622_v4  ;;  %v6706_v1 = vadd.f32 %v1228_v17, %v927_v31 }
 0x133   : > { %v929_v36 = vpop.f32.mrf.mxu1  ;;  %v1247_v8 = vpop.f32.mrf.mxu0 }
 0x134   : > { %v930_v51 = vadd.f32 %v929_v36, %v6630_v6  ;;  %v6709_v12 = vadd.f32 %v5089_v61, %v938_v22  ;;  %v7208_v22 = vld [vmem:[#allocation14_spill] sm:$0xff] }
 0x135   : > { %v5040_v39 = vpop.f32.mrf.mxu1  ;;  %5339 = vmatmul.mubr.bf16.gmra.mxu1 %v7205_v34  ;;  %v5096_v62 = vpop.f32.mrf.mxu0  ;;  %5395 = vmatmul.mubr.bf16.gmra.mxu0 %v6346_v24 }
 0x136   : > { %v951_v57 = vadd.f32 %v5040_v39, %v6512_v53  ;;  %5342 = vmatprep.mubr.bf16.mxu1 %v7206_v27  ;;  %5398 = vmatprep.mubr.bf16.mxu0 %v6382_v13  ;;  %v6716_v4 = vadd.f32 %v1231_v20, %v930_v51  ;;  %v7207_v20 = vld [vmem:[#allocation13_spill] sm:$0xff] }
 0x137   : > { %v942_v17 = vpop.f32.mrf.mxu1  ;;  %v1260_v35 = vpop.f32.mrf.mxu0 }
 0x138   : > { %v943_v6 = vadd.f32 %v942_v17, %v6522_v14  ;;  %v6719_v61 = vadd.f32 %v5092_v10, %v951_v57 }
 0x139   : > { %v5041_v16 = vpop.f32.mrf.mxu1  ;;  %v5097_v11 = vpop.f32.mrf.mxu0 }
 0x13a   : > { %v954_v18 = vadd.f32 %v5041_v16, %v6530_v26  ;;  %v6722_v28 = vadd.f32 %v1244_v25, %v943_v6  ;;  %v3233_v6 = vshrl.u32 %v6575_v59, 16  ;;  %v3236_v16 = vshll.u32 %v6575_v59, 16 }
 0x13b   : > { %v945_v24 = vpop.f32.mrf.mxu1  ;;  %v1263_v53 = vpop.f32.mrf.mxu0 }
 0x13c   : > { %v946_v37 = vadd.f32 %v945_v24, %v6535_v47  ;;  %v6725_v31 = vadd.f32 %v5093_v9, %v954_v18 }
 0x13d   : > { %v5044_v13 = vpop.f32.mrf.mxu1  ;;  %5343 = vmatmul.mubr.bf16.gmra.mxu1 %v7207_v20  ;;  %v5100_v23 = vpop.f32.mrf.mxu0  ;;  %5399 = vmatmul.mubr.bf16.gmra.mxu0 %v7208_v22  ;;  %v3235_v20 = vrot.slane %v3233_v6, 2  ;;  %v3238_v22 = vrot.slane %v3236_v16, 3 }
 0x13e   : > { %v967_v14 = vadd.f32 %v5044_v13, %v6546_v3  ;;  %5346 = vmatprep.mubr.bf16.mxu1 %v6399_v60  ;;  %5402 = vmatprep.mubr.bf16.mxu0 %v6418_v33  ;;  %v6732_v26 = vadd.f32 %v1247_v8, %v946_v37  ;;  %v7209_v8 = vld [vmem:[#allocation15_spill] sm:$0xff]  ;;  %v7210_v37 = vrot.slane %v6438_v15, 3  ;;  %v3242_v15 = vshrl.u32 %v6598_v5, 16 }
 0x13f   : > { %v958_v10 = vpop.f32.mrf.mxu1  ;;  %v1276_v25 = vpop.f32.mrf.mxu0 }
 0x140   : > { %v959_v47 = vadd.f32 %v958_v10, %v6553_v48  ;;  %v6735_v9 = vadd.f32 %v5096_v62, %v967_v14  ;;  %v7211_v10 = vld [vmem:[#allocation20_spill] sm:$0xff] }
 0x141   : > { %v5045_v36 = vpop.f32.mrf.mxu1  ;;  %v5101_v51 = vpop.f32.mrf.mxu0 }
 0x142   : > { %v970_v39 = vadd.f32 %v5045_v36, %v6564_v19  ;;  %v6738_v34 = vadd.f32 %v1260_v35, %v959_v47  ;;  %v7212_v47 = vld [vmem:[#allocation17_spill] sm:$0xff]  ;;  %v3245_v36 = vshll.u32 %v6598_v5, 16 }
 0x143   : > { %v961_v57 = vpop.f32.mrf.mxu1  ;;  %v1279_v3 = vpop.f32.mrf.mxu0 }
 0x144   : > { %v962_v60 = vadd.f32 %v961_v57, %v6569_v2  ;;  %v6741_v27 = vadd.f32 %v5097_v11, %v970_v39  ;;  %v3612_v2 = vrot.slane %v6575_v59, 3  ;;  %v3239_v57 = vor.u32 %v3238_v22, %v3235_v20  ;;  %v7216_v20 = vld [vmem:[#allocation16_spill] sm:$0xff] }
 0x145   : > { %v5048_v33 = vpop.f32.mrf.mxu1  ;;  %5347 = vmatmul.mubr.bf16.gmra.mxu1 %v7209_v8  ;;  %v5104_v17 = vpop.f32.mrf.mxu0  ;;  %5403 = vmatmul.mubr.bf16.gmra.mxu0 %v6421_v55  ;;  %v7214_v8 = vld [vmem:[#allocation21_spill] sm:$0xff] }
 0x146   : > { %v983_v48 = vadd.f32 %v5048_v33, %v6580_v52  ;;  %5350 = vmatprep.mubr.bf16.mxu1 %v6433_v32  ;;  %5406 = vmatprep.mubr.bf16.mxu0 %v6452_v0  ;;  %v6748_v19 = vadd.f32 %v1263_v53, %v962_v60  ;;  %v3613_v13 = vsel %vm3586_vm4, %v7210_v37, %v3612_v2 }
 0x147   : > { %v974_v62 = vpop.f32.mrf.mxu1  ;;  %v1292_v35 = vpop.f32.mrf.mxu0  ;;  %v3240_v22 = vsel %vm3115_vm5, %v7216_v20, %v3239_v57 }
 0x148   : > { %v975_v11 = vadd.f32 %v974_v62, %v6587_v46  ;;  %v6754_v18 = vadd.f32 %v5100_v23, %v983_v48 }
 0x149   : > { %v5049_v55 = vpop.f32.mrf.mxu1  ;;  %v5105_v52 = vpop.f32.mrf.mxu0 }
 0x14a   : > { %v986_v32 = vadd.f32 %v5049_v55, %v6592_v29  ;;  %v6757_v24 = vadd.f32 %v1276_v25, %v975_v11  ;;  %v3614_v29 = vrot.slane %v6598_v5, 3  ;;  %v7215_v5 = vld [vmem:[#allocation22_spill] sm:$0xff]  ;;  %v3244_v55 = vrot.slane %v3242_v15, 2 }
 0x14b   : > { %v977_v0 = vpop.f32.mrf.mxu1  ;;  %v1295_v53 = vpop.f32.mrf.mxu0 }
 0x14c   : > { %v978_v59 = vadd.f32 %v977_v0, %v6600_v30  ;;  %v6763_v14 = vadd.f32 %v5101_v51, %v986_v32  ;;  %v3615_v11 = vsel %vm3586_vm4, %v3612_v2, %v3614_v29  ;;  %v3247_v32 = vrot.slane %v3245_v36, 3 }
 0x14d   : > { %v5052_v46 = vpop.f32.mrf.mxu1  ;;  %5351 = vmatmul.mubr.bf16.gmra.mxu1 %v6441_v38  ;;  %v5108_v23 = vpop.f32.mrf.mxu0  ;;  %5407 = vmatmul.mubr.bf16.gmra.mxu0 %v6457_v21  ;;  %v7213_v38 = vld [vmem:[#allocation19_spill] sm:$0xff] }
 0x14e   : > { %v999_v25 = vadd.f32 %v5052_v46, %v7211_v10  ;;  %5354 = vmatprep.mubr.bf16.mxu1 %v7212_v47  ;;  %5410 = vmatprep.mubr.bf16.mxu0 %v3613_v13  ;;  %v6772_v30 = vadd.f32 %v1279_v3, %v978_v59  ;;  %v3616_v60 = vrot.slane %v7213_v38, 3  ;;  %v3251_v21 = vshrl.u32 %v7213_v38, 16  ;;  %v7217_v10 = vld [vmem:[#allocation24_spill] sm:$0xff] }
 0x14f   : > { %v990_v51 = vpop.f32.mrf.mxu1  ;;  %v1308_v39 = vpop.f32.mrf.mxu0  ;;  %v3254_v33 = vshll.u32 %v7213_v38, 16 }
 0x150   : > { %v991_v48 = vadd.f32 %v990_v51, %v7214_v8  ;;  %v6778_v62 = vadd.f32 %v5104_v17, %v999_v25  ;;  %v3617_v59 = vsel %vm3586_vm4, %v3614_v29, %v3616_v60  ;;  %v3253_v46 = vrot.slane %v3251_v21, 2  ;;  %v7219_v51 = vld [vmem:[#allocation18_spill] sm:$0xff] }
 0x151   : > { %v5053_v6 = vpop.f32.mrf.mxu1  ;;  %v5109_v16 = vpop.f32.mrf.mxu0  ;;  %v3256_v17 = vrot.slane %v3254_v33, 3  ;;  %v7221_v8 = vld [vmem:[#allocation26_spill] sm:$0xff] }
 0x152   : > { %v1002_v3 = vadd.f32 %v5053_v6, %v7215_v5  ;;  %v6782_v0 = vadd.f32 %v1292_v35, %v991_v48  ;;  %v7220_v35 = vld [vmem:[#allocation23_spill] sm:$0xff]  ;;  %v3248_v6 = vor.u32 %v3247_v32, %v3244_v55 }
 0x153   : > { %v993_v37 = vpop.f32.mrf.mxu1  ;;  %v1311_v13 = vpop.f32.mrf.mxu0  ;;  %v3260_v36 = vshrl.u32 %v7220_v35, 16  ;;  %v3263_v38 = vshll.u32 %v7220_v35, 16  ;;  %v3618_v29 = vrot.slane %v7220_v35, 3  ;;  %v3257_v5 = vor.u32 %v3256_v17, %v3253_v46  ;;  %v5597_v35 = vld [vmem:[%s5675_s25 + $0xa0] ss:$0 sps:$4 sm:$0x77]  }
 0x154   : > { %v994_v25 = vadd.f32 %v993_v37, %v7217_v10  ;;  %v6788_v47 = vadd.f32 %v5105_v52, %v1002_v3  ;;  %v7223_v3 = vld [vmem:[#allocation25_spill] sm:$0xff]  ;;  %v7224_v10 = vld [vmem:[#allocation27_spill] sm:$0xff] }
 0x155   : > { %v5056_v2 = vpop.f32.mrf.mxu1  ;;  %5355 = vmatmul.mubr.bf16.gmra.mxu1 %v7219_v51  ;;  %v5180_v15 = vpop.f32.mrf.mxu0  ;;  %5411 = vmatmul.mubr.bf16.gmra.mxu0 %v3615_v11  ;;  %v3620_v37 = vrot.slane %v7223_v3, 3  ;;  %v3269_v11 = vshrl.u32 %v7223_v3, 16  ;;  %v3272_v20 = vshll.u32 %v7223_v3, 16  ;;  %v3619_v46 = vsel %vm3586_vm4, %v3616_v60, %v3618_v29 }
 0x156   : > { %7218 = vst [vmem:[#allocation2_spill] sm:$0xff] %v6788_v47  ;;  %v1015_v48 = vadd.f32 %v5056_v2, %v7221_v8  ;;  %5358 = vmatprep.mubr.bf16.mxu1 %v3240_v22  ;;  %5414 = vmatprep.mubr.bf16.mxu0 %v3617_v59  ;;  %v6795_v21 = vadd.f32 %v1295_v53, %v994_v25  ;;  %v3262_v22 = vrot.slane %v3260_v36, 2  ;;  %v3265_v59 = vrot.slane %v3263_v38, 3  ;;  %v7226_v53 = vld [vmem:[#allocation28_spill] sm:$0xff] }
 0x157   : > { %v1006_v52 = vpop.f32.mrf.mxu1  ;;  %v2114_v33 = vpop.f32.mrf.mxu0  ;;  %v3249_v8 = vsel %vm3115_vm5, %v3239_v57, %v3248_v6  ;;  %v3258_v3 = vsel %vm3115_vm5, %v3248_v6, %v3257_v5  ;;  %v3622_v60 = vrot.slane %v5597_v35, 3  ;;  %v3281_v6 = vshll.u32 %v5597_v35, 16 }
 0x158   : > { %7222 = vst [vmem:[#allocation4_spill] sm:$0xff] %v6795_v21  ;;  %v1007_v51 = vadd.f32 %v1006_v52, %v7224_v10  ;;  %v6801_v2 = vadd.f32 %v5108_v23, %v1015_v48  ;;  %v3621_v23 = vsel %vm3586_vm4, %v3618_v29, %v3620_v37  ;;  %v3271_v48 = vrot.slane %v3269_v11, 2  ;;  %v7227_v10 = vld [vmem:[#allocation29_spill] sm:$0xff] }
 0x159   : > { %v5057_v55 = vpop.f32.mrf.mxu1  ;;  %v5181_v32 = vpop.f32.mrf.mxu0  ;;  %v3274_v52 = vrot.slane %v3272_v20, 3  ;;  %v3266_v57 = vor.u32 %v3265_v59, %v3262_v22  ;;  %v3623_v59 = vsel %vm3586_vm4, %v3620_v37, %v3622_v60 }
 0x15a   : > { %7225 = vst [vmem:[#allocation3_spill] sm:$0xff] %v6801_v2  ;;  %v1018_v25 = vadd.f32 %v5057_v55, %v7226_v53  ;;  %v6807_v17 = vadd.f32 %v1308_v39, %v1007_v51  ;;  %v3278_v51 = vshrl.u32 %v5597_v35, 16 }
 0x15b   : > { %v1009_v21 = vpop.f32.mrf.mxu1  ;;  %v2117_v47 = vpop.f32.mrf.mxu0  ;;  %v3275_v20 = vor.u32 %v3274_v52, %v3271_v48 }
 0x15c   : > { %v1010_v36 = vadd.f32 %v1009_v21, %v7227_v10  ;;  %v6812_v38 = vadd.f32 %v5109_v16, %v1018_v25 }
 0x15d   : > { %v5128_v2 = vpop.f32.mrf.mxu1  ;;  %5359 = vmatmul.mubr.bf16.gmra.mxu1 %v3249_v8  ;;  %v5184_v55 = vpop.f32.mrf.mxu0  ;;  %5415 = vmatmul.mubr.bf16.gmra.mxu0 %v3619_v46  ;;  %v3267_v8 = vsel %vm3115_vm5, %v3257_v5, %v3266_v57  ;;  %v3283_v46 = vrot.slane %v3281_v6, 3 }
 0x15e   : > { %v1788_v39 = vadd.f32 %v5128_v2, %v6655_v63  ;;  %5362 = vmatprep.mubr.bf16.mxu1 %v3258_v3  ;;  %5418 = vmatprep.mubr.bf16.mxu0 %v3621_v23  ;;  %v6815_v53 = vadd.f32 %v1311_v13, %v1010_v36  ;;  %v3280_v2 = vrot.slane %v3278_v51, 2  ;;  %v3276_v23 = vsel %vm3115_vm5, %v3266_v57, %v3275_v20 }
 0x15f   : > { %v1643_v29 = vpop.f32.mrf.mxu1  ;;  %v2130_v11 = vpop.f32.mrf.mxu0 }
 0x160   : > { %v1786_v16 = vadd.f32 %v1643_v29, %v6659_v44  ;;  %v6818_v21 = vadd.f32 %v5180_v15, %v1788_v39 }
 0x161   : > { %v5129_v25 = vpop.f32.mrf.mxu1  ;;  %v5185_v22 = vpop.f32.mrf.mxu0 }
 0x162   : > { %v1789_v63 = vadd.f32 %v5129_v25, %v6662_v58  ;;  %v6823_v35 = vadd.f32 %v2114_v33, %v1786_v16  ;;  %v3284_v58 = vor.u32 %v3283_v46, %v3280_v2 }
 0x163   : > { %v1646_v13 = vpop.f32.mrf.mxu1  ;;  %v2133_v3 = vpop.f32.mrf.mxu0 }
 0x164   : > { %v1787_v44 = vadd.f32 %v1646_v13, %v6668_v43  ;;  %v6827_v15 = vadd.f32 %v5181_v32, %v1789_v63  ;;  %v3285_v39 = vsel %vm3115_vm5, %v3275_v20, %v3284_v58 }
 0x165   : > { %v5132_v48 = vpop.f32.mrf.mxu1  ;;  %5363 = vmatmul.mubr.bf16.gmra.mxu1 %v3267_v8  ;;  %v5188_v5 = vpop.f32.mrf.mxu0  ;;  %5419 = vmatmul.mubr.bf16.gmra.mxu0 %v3623_v59 }
 0x166   : > { %v1792_v37 = vadd.f32 %v5132_v48, %v6671_v56  ;;  %5366 = vmatprep.mubr.bf16.mxu1 %v3276_v23  ;;  %v6830_v52 = vadd.f32 %v2117_v47, %v1787_v44 }
 0x167   : > { %v1659_v33 = vpop.f32.mrf.mxu1  ;;  %v2146_v10 = vpop.f32.mrf.mxu0 }
 0x168   : > { %v1790_v36 = vadd.f32 %v1659_v33, %v6674_v50  ;;  %v6833_v60 = vadd.f32 %v5184_v55, %v1792_v37 }
 0x169   : > { %v5133_v57 = vpop.f32.mrf.mxu1  ;;  %v5189_v43 = vpop.f32.mrf.mxu0 }
 0x16a   : > { %v1793_v32 = vadd.f32 %v5133_v57, %v6677_v45  ;;  %v6837_v51 = vadd.f32 %v2130_v11, %v1790_v36 }
 0x16b   : > { %v1662_v6 = vpop.f32.mrf.mxu1  ;;  %v2149_v56 = vpop.f32.mrf.mxu0 }
 0x16c   : > { %v1791_v29 = vadd.f32 %v1662_v6, %v6684_v7  ;;  %v6840_v47 = vadd.f32 %v5185_v22, %v1793_v32 }
 0x16d   : > { %v5136_v16 = vpop.f32.mrf.mxu1  ;;  %5367 = vmatmul.mubr.bf16.gmra.mxu1 %v3285_v39  ;;  %v5192_v25 = vpop.f32.mrf.mxu0 }
 0x16e   : > { %v1796_v50 = vadd.f32 %v5136_v16, %v6687_v49  ;;  %v6843_v55 = vadd.f32 %v2133_v3, %v1791_v29 }
 0x16f   : > { %v1675_v8 = vpop.f32.mrf.mxu1  ;;  %v2162_v59 = vpop.f32.mrf.mxu0 }
 0x170   : > { %v1794_v45 = vadd.f32 %v1675_v8, %v6690_v54  ;;  %v6846_v20 = vadd.f32 %v5188_v5, %v1796_v50 }
 0x171   : > { %v5137_v11 = vpop.f32.mrf.mxu1  ;;  %v5193_v63 = vpop.f32.mrf.mxu0 }
 0x172   : > { %v1797_v2 = vadd.f32 %v5137_v11, %v6693_v40  ;;  %v6849_v7 = vadd.f32 %v2146_v10, %v1794_v45 }
 0x173   : > { %v1678_v22 = vpop.f32.mrf.mxu1  ;;  %v2165_v46 = vpop.f32.mrf.mxu0 }
 0x174   : > { %v1795_v13 = vadd.f32 %v1678_v22, %v6700_v41  ;;  %v6852_v23 = vadd.f32 %v5189_v43, %v1797_v2 }
 0x175   : > { %v5140_v49 = vpop.f32.mrf.mxu1  ;;  %v5196_v3 = vpop.f32.mrf.mxu0 }
 0x176   : > { %v1800_v44 = vadd.f32 %v5140_v49, %v6703_v42  ;;  %v6855_v48 = vadd.f32 %v2149_v56, %v1795_v13 }
 0x177   : > { %v1691_v54 = vpop.f32.mrf.mxu1  ;;  %v2178_v5 = vpop.f32.mrf.mxu0 }
 0x178   : > { %v1798_v37 = vadd.f32 %v1691_v54, %v6706_v1  ;;  %v6858_v58 = vadd.f32 %v5192_v25, %v1800_v44 }
 0x179   : > { %v5141_v40 = vpop.f32.mrf.mxu1  ;;  %v5197_v33 = vpop.f32.mrf.mxu0 }
 0x17a   : > { %v1801_v10 = vadd.f32 %v5141_v40, %v6709_v12  ;;  %v6861_v36 = vadd.f32 %v2162_v59, %v1798_v37 }
 0x17b   : > { %v1694_v41 = vpop.f32.mrf.mxu1  ;;  %v2181_v57 = vpop.f32.mrf.mxu0 }
 0x17c   : > { %v1799_v43 = vadd.f32 %v1694_v41, %v6716_v4  ;;  %v6864_v32 = vadd.f32 %v5193_v63, %v1801_v10 }
 0x17d   : > { %v5144_v42 = vpop.f32.mrf.mxu1  ;;  %v5200_v39 = vpop.f32.mrf.mxu0 }
 0x17e   : > { %v1804_v6 = vadd.f32 %v5144_v42, %v6719_v61  ;;  %v6867_v56 = vadd.f32 %v2165_v46, %v1799_v43 }
 0x17f   : > { %v1707_v1 = vpop.f32.mrf.mxu1  ;;  %v2194_v29 = vpop.f32.mrf.mxu0 }
 0x180   : > { %v1802_v16 = vadd.f32 %v1707_v1, %v6722_v28  ;;  %v6870_v25 = vadd.f32 %v5196_v3, %v1804_v6 }
 0x181   : > { %v5145_v12 = vpop.f32.mrf.mxu1  ;;  %v5201_v50 = vpop.f32.mrf.mxu0 }
 0x182   : > { %v1805_v8 = vadd.f32 %v5145_v12, %v6725_v31  ;;  %v6873_v59 = vadd.f32 %v2178_v5, %v1802_v16 }
 0x183   : > { %v1710_v4 = vpop.f32.mrf.mxu1  ;;  %v2197_v45 = vpop.f32.mrf.mxu0 }
 0x184   : > { %v1803_v11 = vadd.f32 %v1710_v4, %v6732_v26  ;;  %v6876_v63 = vadd.f32 %v5197_v33, %v1805_v8 }
 0x185   : > { %v5148_v61 = vpop.f32.mrf.mxu1  ;;  %v5204_v2 = vpop.f32.mrf.mxu0 }
 0x186   : > { %v1808_v22 = vadd.f32 %v5148_v61, %v6735_v9  ;;  %v6879_v46 = vadd.f32 %v2181_v57, %v1803_v11 }
 0x187   : > { %v1723_v28 = vpop.f32.mrf.mxu1  ;;  %v2210_v13 = vpop.f32.mrf.mxu0 }
 0x188   : > { %v1806_v49 = vadd.f32 %v1723_v28, %v6738_v34  ;;  %v6882_v3 = vadd.f32 %v5200_v39, %v1808_v22  ;;  %v7228_v28 = vld [vmem:[#allocation2_spill] sm:$0xff] }
 0x189   : > { %v5149_v31 = vpop.f32.mrf.mxu1  ;;  %v5205_v44 = vpop.f32.mrf.mxu0 }
 0x18a   : > { %v1809_v54 = vadd.f32 %v5149_v31, %v6741_v27  ;;  %v6885_v5 = vadd.f32 %v2194_v29, %v1806_v49 }
 0x18b   : > { %v1726_v26 = vpop.f32.mrf.mxu1  ;;  %v2213_v37 = vpop.f32.mrf.mxu0 }
 0x18c   : > { %v1807_v40 = vadd.f32 %v1726_v26, %v6748_v19  ;;  %v6888_v33 = vadd.f32 %v5201_v50, %v1809_v54 }
 0x18d   : > { %v5152_v9 = vpop.f32.mrf.mxu1  ;;  %v5208_v10 = vpop.f32.mrf.mxu0 }
 0x18e   : > { %v1812_v41 = vadd.f32 %v5152_v9, %v6754_v18  ;;  %v6891_v57 = vadd.f32 %v2197_v45, %v1807_v40  ;;  %v7230_v40 = vld [vmem:[#allocation3_spill] sm:$0xff] }
 0x18f   : > { %v1739_v34 = vpop.f32.mrf.mxu1  ;;  %v2226_v43 = vpop.f32.mrf.mxu0 }
 0x190   : > { %v1810_v42 = vadd.f32 %v1739_v34, %v6757_v24  ;;  %v6894_v39 = vadd.f32 %v5204_v2, %v1812_v41 }
 0x191   : > { %v5153_v27 = vpop.f32.mrf.mxu1  ;;  %v5209_v6 = vpop.f32.mrf.mxu0 }
 0x192   : > { %v1813_v1 = vadd.f32 %v5153_v27, %v6763_v14  ;;  %v6897_v29 = vadd.f32 %v2210_v13, %v1810_v42 }
 0x193   : > { %v1742_v19 = vpop.f32.mrf.mxu1  ;;  %v2229_v16 = vpop.f32.mrf.mxu0 }
 0x194   : > { %v1811_v12 = vadd.f32 %v1742_v19, %v6772_v30  ;;  %v6900_v50 = vadd.f32 %v5205_v44, %v1813_v1  ;;  %v7229_v44 = vld [vmem:[#allocation4_spill] sm:$0xff] }
 0x195   : > { %v5156_v18 = vpop.f32.mrf.mxu1  ;;  %v5212_v8 = vpop.f32.mrf.mxu0 }
 0x196   : > { %v1816_v4 = vadd.f32 %v5156_v18, %v6778_v62  ;;  %v6903_v45 = vadd.f32 %v2213_v37, %v1811_v12 }
 0x197   : > { %v1755_v24 = vpop.f32.mrf.mxu1  ;;  %v2242_v11 = vpop.f32.mrf.mxu0 }
 0x198   : > { %v1814_v61 = vadd.f32 %v1755_v24, %v6782_v0  ;;  %v6906_v2 = vadd.f32 %v5208_v10, %v1816_v4 }
 0x199   : > { %v5157_v14 = vpop.f32.mrf.mxu1  ;;  %v5213_v22 = vpop.f32.mrf.mxu0 }
 0x19a   : > { %v1817_v13 = vadd.f32 %v5157_v14, %v7228_v28  ;;  %v6909_v49 = vadd.f32 %v2226_v43, %v1814_v61 }
 0x19b   : > { %v1758_v30 = vpop.f32.mrf.mxu1  ;;  %v2245_v31 = vpop.f32.mrf.mxu0 }
 0x19c   : > { %v1815_v54 = vadd.f32 %v1758_v30, %v7229_v44  ;;  %v6912_v26 = vadd.f32 %v5209_v6, %v1817_v13 }
 0x19d   : > { %v5160_v62 = vpop.f32.mrf.mxu1  ;;  %v5284_v37 = vpop.f32.mrf.mxu0 }
 0x19e   : > { %v1820_v9 = vadd.f32 %v5160_v62, %v7230_v40  ;;  %v6915_v41 = vadd.f32 %v2229_v16, %v1815_v54 }
 0x19f   : > { %v1771_v0 = vpop.f32.mrf.mxu1  ;;  %v2915_v10 = vpop.f32.mrf.mxu0 }
 0x1a0   : > { %v1818_v34 = vadd.f32 %v1771_v0, %v6807_v17  ;;  %v6918_v42 = vadd.f32 %v5212_v8, %v1820_v9 }
 0x1a1   : > { %v5161_v43 = vpop.f32.mrf.mxu1  ;;  %v5285_v27 = vpop.f32.mrf.mxu0 }
 0x1a2   : > { %v1821_v1 = vadd.f32 %v5161_v43, %v6812_v38  ;;  %v6921_v19 = vadd.f32 %v2242_v11, %v1818_v34 }
 0x1a3   : > { %v1774_v6 = vpop.f32.mrf.mxu1  ;;  %v2918_v12 = vpop.f32.mrf.mxu0 }
 0x1a4   : > { %v1819_v18 = vadd.f32 %v1774_v6, %v6815_v53  ;;  %v6924_v4 = vadd.f32 %v5213_v22, %v1821_v1 }
 0x1a5   : > { %v5232_v16 = vpop.f32.mrf.mxu1  ;;  %v5288_v24 = vpop.f32.mrf.mxu0 }
 0x1a6   : > { %v2597_v61 = vadd.f32 %v5232_v16, %v6818_v21  ;;  %v6927_v14 = vadd.f32 %v2245_v31, %v1819_v18 }
 0x1a7   : > { %v2452_v17 = vpop.f32.mrf.mxu1  ;;  %v2931_v8 = vpop.f32.mrf.mxu0 }
 0x1a8   : > { %v2595_v28 = vadd.f32 %v2452_v17, %v6823_v35  ;;  %v6930_v13 = vadd.f32 %v5284_v37, %v2597_v61 }
 0x1a9   : > { %v5233_v38 = vpop.f32.mrf.mxu1  ;;  %v5289_v11 = vpop.f32.mrf.mxu0 }
 0x1aa   : > { %v2598_v30 = vadd.f32 %v5233_v38, %v6827_v15  ;;  %v6933_v44 = vadd.f32 %v2915_v10, %v2595_v28 }
 0x1ab   : > { %v2455_v53 = vpop.f32.mrf.mxu1  ;;  %v2934_v22 = vpop.f32.mrf.mxu0 }
 0x1ac   : > { %v2596_v54 = vadd.f32 %v2455_v53, %v6830_v52  ;;  %v6936_v62 = vadd.f32 %v5285_v27, %v2598_v30 }
 0x1ad   : > { %v5236_v21 = vpop.f32.mrf.mxu1  ;;  %v5292_v31 = vpop.f32.mrf.mxu0 }
 0x1ae   : > { %v2601_v40 = vadd.f32 %v5236_v21, %v6833_v60  ;;  %v6939_v9 = vadd.f32 %v2918_v12, %v2596_v54 }
 0x1af   : > { %v2468_v35 = vpop.f32.mrf.mxu1  ;;  %v2947_v37 = vpop.f32.mrf.mxu0 }
 0x1b0   : > { %v2599_v0 = vadd.f32 %v2468_v35, %v6837_v51  ;;  %v6942_v34 = vadd.f32 %v5288_v24, %v2601_v40 }
 0x1b1   : > { %v5237_v15 = vpop.f32.mrf.mxu1  ;;  %v5293_v10 = vpop.f32.mrf.mxu0 }
 0x1b2   : > { %v2602_v43 = vadd.f32 %v5237_v15, %v6840_v47  ;;  %v6945_v1 = vadd.f32 %v2931_v8, %v2599_v0 }
 0x1b3   : > { %v2471_v52 = vpop.f32.mrf.mxu1  ;;  %v2950_v27 = vpop.f32.mrf.mxu0 }
 0x1b4   : > { %v2600_v6 = vadd.f32 %v2471_v52, %v6843_v55  ;;  %v6948_v18 = vadd.f32 %v5289_v11, %v2602_v43 }
 0x1b5   : > { %v5240_v60 = vpop.f32.mrf.mxu1  ;;  %v5296_v12 = vpop.f32.mrf.mxu0 }
 0x1b6   : > { %v2605_v16 = vadd.f32 %v5240_v60, %v6846_v20  ;;  %v6951_v61 = vadd.f32 %v2934_v22, %v2600_v6 }
 0x1b7   : > { %v2484_v51 = vpop.f32.mrf.mxu1  ;;  %v2963_v24 = vpop.f32.mrf.mxu0 }
 0x1b8   : > { %v2603_v17 = vadd.f32 %v2484_v51, %v6849_v7  ;;  %v6954_v28 = vadd.f32 %v5292_v31, %v2605_v16 }
 0x1b9   : > { %v5241_v47 = vpop.f32.mrf.mxu1  ;;  %v5297_v8 = vpop.f32.mrf.mxu0 }
 0x1ba   : > { %v2606_v38 = vadd.f32 %v5241_v47, %v6852_v23  ;;  %v6957_v30 = vadd.f32 %v2947_v37, %v2603_v17 }
 0x1bb   : > { %v2487_v55 = vpop.f32.mrf.mxu1  ;;  %v2966_v11 = vpop.f32.mrf.mxu0 }
 0x1bc   : > { %v2604_v53 = vadd.f32 %v2487_v55, %v6855_v48  ;;  %v6960_v54 = vadd.f32 %v5293_v10, %v2606_v38 }
 0x1bd   : > { %v5244_v20 = vpop.f32.mrf.mxu1  ;;  %v5300_v22 = vpop.f32.mrf.mxu0 }
 0x1be   : > { %v2609_v21 = vadd.f32 %v5244_v20, %v6858_v58  ;;  %v6963_v40 = vadd.f32 %v2950_v27, %v2604_v53 }
 0x1bf   : > { %v2500_v7 = vpop.f32.mrf.mxu1  ;;  %v2979_v31 = vpop.f32.mrf.mxu0 }
 0x1c0   : > { %v2607_v35 = vadd.f32 %v2500_v7, %v6861_v36  ;;  %v6966_v0 = vadd.f32 %v5296_v12, %v2609_v21 }
 0x1c1   : > { %v5245_v23 = vpop.f32.mrf.mxu1  ;;  %v5301_v37 = vpop.f32.mrf.mxu0 }
 0x1c2   : > { %v2610_v15 = vadd.f32 %v5245_v23, %v6864_v32  ;;  %v6969_v43 = vadd.f32 %v2963_v24, %v2607_v35 }
 0x1c3   : > { %v2503_v48 = vpop.f32.mrf.mxu1  ;;  %v2982_v10 = vpop.f32.mrf.mxu0 }
 0x1c4   : > { %v2608_v52 = vadd.f32 %v2503_v48, %v6867_v56  ;;  %v6972_v6 = vadd.f32 %v5297_v8, %v2610_v15 }
 0x1c5   : > { %v5248_v58 = vpop.f32.mrf.mxu1  ;;  %v5304_v27 = vpop.f32.mrf.mxu0 }
 0x1c6   : > { %v2613_v60 = vadd.f32 %v5248_v58, %v6870_v25  ;;  %v6975_v16 = vadd.f32 %v2966_v11, %v2608_v52 }
 0x1c7   : > { %v2516_v36 = vpop.f32.mrf.mxu1  ;;  %v2995_v12 = vpop.f32.mrf.mxu0 }
 0x1c8   : > { %v2611_v51 = vadd.f32 %v2516_v36, %v6873_v59  ;;  %v6978_v17 = vadd.f32 %v5300_v22, %v2613_v60 }
 0x1c9   : > { %v5249_v32 = vpop.f32.mrf.mxu1  ;;  %v5305_v24 = vpop.f32.mrf.mxu0 }
 0x1ca   : > { %v2614_v47 = vadd.f32 %v5249_v32, %v6876_v63  ;;  %v6981_v38 = vadd.f32 %v2979_v31, %v2611_v51 }
 0x1cb   : > { %v2519_v56 = vpop.f32.mrf.mxu1  ;;  %v2998_v8 = vpop.f32.mrf.mxu0 }
 0x1cc   : > { %v2612_v55 = vadd.f32 %v2519_v56, %v6879_v46  ;;  %v6984_v53 = vadd.f32 %v5301_v37, %v2614_v47 }
 0x1cd   : > { %v5252_v25 = vpop.f32.mrf.mxu1  ;;  %v5308_v11 = vpop.f32.mrf.mxu0 }
 0x1ce   : > { %v2617_v20 = vadd.f32 %v5252_v25, %v6882_v3  ;;  %v6987_v21 = vadd.f32 %v2982_v10, %v2612_v55 }
 0x1cf   : > { %v2532_v59 = vpop.f32.mrf.mxu1  ;;  %v3011_v22 = vpop.f32.mrf.mxu0 }
 0x1d0   : > { %v2615_v7 = vadd.f32 %v2532_v59, %v6885_v5  ;;  %v6990_v35 = vadd.f32 %v5304_v27, %v2617_v20 }
 0x1d1   : > { %v5253_v63 = vpop.f32.mrf.mxu1  ;;  %v5309_v31 = vpop.f32.mrf.mxu0 }
 0x1d2   : > { %v2618_v23 = vadd.f32 %v5253_v63, %v6888_v33  ;;  %v6993_v15 = vadd.f32 %v2995_v12, %v2615_v7 }
 0x1d3   : > { %v2535_v46 = vpop.f32.mrf.mxu1  ;;  %v3014_v37 = vpop.f32.mrf.mxu0 }
 0x1d4   : > { %v2616_v48 = vadd.f32 %v2535_v46, %v6891_v57  ;;  %v6996_v52 = vadd.f32 %v5305_v24, %v2618_v23 }
 0x1d5   : > { %v5256_v3 = vpop.f32.mrf.mxu1  ;;  %v5312_v10 = vpop.f32.mrf.mxu0 }
 0x1d6   : > { %v2621_v58 = vadd.f32 %v5256_v3, %v6894_v39  ;;  %v6999_v60 = vadd.f32 %v2998_v8, %v2616_v48 }
 0x1d7   : > { %v2548_v5 = vpop.f32.mrf.mxu1  ;;  %v3027_v27 = vpop.f32.mrf.mxu0 }
 0x1d8   : > { %v2619_v36 = vadd.f32 %v2548_v5, %v6897_v29  ;;  %v7002_v51 = vadd.f32 %v5308_v11, %v2621_v58 }
 0x1d9   : > { %v5257_v33 = vpop.f32.mrf.mxu1  ;;  %v5313_v12 = vpop.f32.mrf.mxu0 }
 0x1da   : > { %v2622_v32 = vadd.f32 %v5257_v33, %v6900_v50  ;;  %v7005_v47 = vadd.f32 %v3011_v22, %v2619_v36 }
 0x1db   : > { %v2551_v57 = vpop.f32.mrf.mxu1  ;;  %v3030_v24 = vpop.f32.mrf.mxu0 }
 0x1dc   : > { %v2620_v56 = vadd.f32 %v2551_v57, %v6903_v45  ;;  %v7008_v55 = vadd.f32 %v5309_v31, %v2622_v32 }
 0x1dd   : > { %v5260_v39 = vpop.f32.mrf.mxu1  ;;  %v5316_v8 = vpop.f32.mrf.mxu0 }
 0x1de   : > { %v2625_v25 = vadd.f32 %v5260_v39, %v6906_v2  ;;  %v7011_v20 = vadd.f32 %v3014_v37, %v2620_v56 }
 0x1df   : > { %v2564_v29 = vpop.f32.mrf.mxu1  ;;  %v3043_v11 = vpop.f32.mrf.mxu0 }
 0x1e0   : > { %v2623_v59 = vadd.f32 %v2564_v29, %v6909_v49  ;;  %v7014_v7 = vadd.f32 %v5312_v10, %v2625_v25 }
 0x1e1   : > { %v5261_v50 = vpop.f32.mrf.mxu1  ;;  %v5317_v22 = vpop.f32.mrf.mxu0 }
 0x1e2   : > { %v2626_v63 = vadd.f32 %v5261_v50, %v6912_v26  ;;  %v7017_v23 = vadd.f32 %v3027_v27, %v2623_v59 }
 0x1e3   : > { %v2567_v45 = vpop.f32.mrf.mxu1  ;;  %v3046_v31 = vpop.f32.mrf.mxu0 }
 0x1e4   : > { %v2624_v46 = vadd.f32 %v2567_v45, %v6915_v41  ;;  %v7020_v48 = vadd.f32 %v5313_v12, %v2626_v63 }
 0x1e5   : > { %v5264_v2 = vpop.f32.mrf.mxu1  ;;  %v5388_v37 = vpop.f32.mrf.mxu0 }
 0x1e6   : > { %v2629_v3 = vadd.f32 %v5264_v2, %v6918_v42  ;;  %v7023_v58 = vadd.f32 %v3030_v24, %v2624_v46 }
 0x1e7   : > { %v2580_v49 = vpop.f32.mrf.mxu1  ;;  %v3724_v10 = vpop.f32.mrf.mxu0 }
 0x1e8   : > { %v2627_v5 = vadd.f32 %v2580_v49, %v6921_v19  ;;  %v7026_v36 = vadd.f32 %v5316_v8, %v2629_v3 }
 0x1e9   : > { %v5265_v26 = vpop.f32.mrf.mxu1  ;;  %v5389_v27 = vpop.f32.mrf.mxu0 }
 0x1ea   : > { %v2630_v33 = vadd.f32 %v5265_v26, %v6924_v4  ;;  %v7029_v32 = vadd.f32 %v3043_v11, %v2627_v5  ;;  %v7041_v11 = vld [vmem:[%s7148_s2] ss:$0 sm:$0xff] }
 0x1eb   : > { %v2583_v41 = vpop.f32.mrf.mxu1  ;;  %v3727_v12 = vpop.f32.mrf.mxu0 }
 0x1ec   : > { %v2628_v57 = vadd.f32 %v2583_v41, %v6927_v14  ;;  %v7032_v56 = vadd.f32 %v5317_v22, %v2630_v33 }
 0x1ed   : > { %v5336_v42 = vpop.f32.mrf.mxu1  ;;  %v5392_v24 = vpop.f32.mrf.mxu0 }
 0x1ee   : > { %v3531_v39 = vadd.f32 %v5336_v42, %v6930_v13  ;;  %v7035_v19 = vadd.f32 %v3046_v31, %v2628_v57 }
 0x1ef   : > { %v3386_v8 = vpop.f32.mrf.mxu1  ;;  %v3740_v25 = vpop.f32.mrf.mxu0 }
 0x1f0   : > { %v3869_v29 = vadd.f32 %v5388_v37, %v3531_v39  ;;  %v3529_v4 = vadd.f32 %v3386_v8, %v6933_v44 }
 0x1f1   : > { %v5337_v14 = vpop.f32.mrf.mxu1  ;;  %v5393_v59 = vpop.f32.mrf.mxu0 }
 0x1f2   : > { %v3867_v50 = vadd.f32 %v3724_v10, %v3529_v4  ;;  %v3532_v22 = vadd.f32 %v5337_v14, %v6936_v62  ;;  %v3912_v45 = vadd.f32 %v7041_v11, %v3869_v29 }
 0x1f3   : > { %v3389_v63 = vpop.f32.mrf.mxu1  ;;  %v3743_v13 = vpop.f32.mrf.mxu0 }
 0x1f4   : > { %v3870_v31 = vadd.f32 %v5389_v27, %v3532_v22  ;;  %v3530_v46 = vadd.f32 %v3389_v63, %v6939_v9  ;;  %v3910_v37 = vadd.f32 %v7041_v11, %v3867_v50  ;;  %v3948_v62 = vmax.f32 %v3912_v45, 0.0 }
 0x1f5   : > { %v5340_v2 = vpop.f32.mrf.mxu1  ;;  %v5396_v44 = vpop.f32.mrf.mxu0 }
 0x1f6   : > { %v3913_v3 = vadd.f32 %v7041_v11, %v3870_v31  ;;  %v3868_v49 = vadd.f32 %v3727_v12, %v3530_v46  ;;  %v3535_v5 = vadd.f32 %v5340_v2, %v6942_v34  ;;  %v3946_v42 = vmax.f32 %v3910_v37, 0.0 }
 0x1f7   : > { %v3402_v10 = vpop.f32.mrf.mxu1  ;;  %v3756_v26 = vpop.f32.mrf.mxu0 }
 0x1f8   : > { %v3949_v33 = vmax.f32 %v3913_v3, 0.0  ;;  %v3911_v41 = vadd.f32 %v7041_v11, %v3868_v49  ;;  %v3533_v27 = vadd.f32 %v3402_v10, %v6945_v1  ;;  %v3873_v9 = vadd.f32 %v5392_v24, %v3535_v5 }
 0x1f9   : > { %v5341_v57 = vpop.f32.mrf.mxu1  ;;  %v5397_v12 = vpop.f32.mrf.mxu0 }
 0x1fa   : > { %v4621_v34 = vpack.c.bf16 %v3949_v33, %v3948_v62  ;;  %v3947_v39 = vmax.f32 %v3911_v41, 0.0  ;;  %v3871_v8 = vadd.f32 %v3740_v25, %v3533_v27  ;;  %v3536_v29 = vadd.f32 %v5341_v57, %v6948_v18 }
 0x1fb   : > { %v3405_v4 = vpop.f32.mrf.mxu1  ;;  %v3759_v14 = vpop.f32.mrf.mxu0  ;;  %v3916_v22 = vadd.f32 %v7041_v11, %v3873_v9 }
 0x1fc   : > { %4703 = vst [vmem:[%s7055_s12 + $0x8] sm:$0xff] %v4621_v34   ;;  %v4616_v1 = vpack.c.bf16 %v3947_v39, %v3946_v42  ;;  %v3534_v50 = vadd.f32 %v3405_v4, %v6951_v61  ;;  %v3874_v63 = vadd.f32 %v5393_v59, %v3536_v29  ;;  %v3914_v31 = vadd.f32 %v7041_v11, %v3871_v8 }
 0x1fd   : > { %v5344_v45 = vpop.f32.mrf.mxu1  ;;  %v5400_v24 = vpop.f32.mrf.mxu0  ;;  %v3952_v5 = vmax.f32 %v3916_v22, 0.0 }
 0x1fe   : > { %4617 = vst [vmem:[%s7055_s12] sm:$0xff] %v4616_v1   ;;  %v3872_v46 = vadd.f32 %v3743_v13, %v3534_v50  ;;  %v3539_v2 = vadd.f32 %v5344_v45, %v6954_v28  ;;  %v3917_v25 = vadd.f32 %v7041_v11, %v3874_v63  ;;  %v3950_v33 = vmax.f32 %v3914_v31, 0.0 }
 0x1ff   : > { %v3418_v18 = vpop.f32.mrf.mxu1  ;;  %v3772_v37 = vpop.f32.mrf.mxu0 }
 0x200   : > { %v3915_v3 = vadd.f32 %v7041_v11, %v3872_v46  ;;  %v3877_v49 = vadd.f32 %v5396_v44, %v3539_v2  ;;  %v3537_v61 = vadd.f32 %v3418_v18, %v6957_v30  ;;  %v3953_v59 = vmax.f32 %v3917_v25, 0.0 }
 0x201   : > { %v5345_v10 = vpop.f32.mrf.mxu1  ;;  %v5401_v62 = vpop.f32.mrf.mxu0 }
 0x202   : > { %v3951_v41 = vmax.f32 %v3915_v3, 0.0  ;;  %v3540_v13 = vadd.f32 %v5345_v10, %v6960_v54  ;;  %v4631_v28 = vpack.c.bf16 %v3953_v59, %v3952_v5  ;;  %v3875_v27 = vadd.f32 %v3756_v26, %v3537_v61 }
 0x203   : > { %v3421_v9 = vpop.f32.mrf.mxu1  ;;  %v3775_v57 = vpop.f32.mrf.mxu0  ;;  %v3920_v34 = vadd.f32 %v7041_v11, %v3877_v49 }
 0x204   : > { %v4626_v42 = vpack.c.bf16 %v3951_v41, %v3950_v33  ;;  %v3878_v44 = vadd.f32 %v5397_v12, %v3540_v13  ;;  %4705 = vst [vmem:[%s7055_s12 + $0x18] sm:$0xff] %v4631_v28   ;;  %v3538_v30 = vadd.f32 %v3421_v9, %v6963_v40  ;;  %v3918_v54 = vadd.f32 %v7041_v11, %v3875_v27 }
 0x205   : > { %v5348_v39 = vpop.f32.mrf.mxu1  ;;  %v5404_v8 = vpop.f32.mrf.mxu0  ;;  %v3956_v22 = vmax.f32 %v3920_v34, 0.0 }
 0x206   : > { %4704 = vst [vmem:[%s7055_s12 + $0x10] sm:$0xff] %v4626_v42   ;;  %v3921_v29 = vadd.f32 %v7041_v11, %v3878_v44  ;;  %v3543_v4 = vadd.f32 %v5348_v39, %v6966_v0  ;;  %v3876_v1 = vadd.f32 %v3759_v14, %v3538_v30  ;;  %v3954_v0 = vmax.f32 %v3918_v54, 0.0 }
 0x207   : > { %v3434_v26 = vpop.f32.mrf.mxu1  ;;  %v3788_v50 = vpop.f32.mrf.mxu0 }
 0x208   : > { %v3957_v63 = vmax.f32 %v3921_v29, 0.0  ;;  %v3881_v45 = vadd.f32 %v5400_v24, %v3543_v4  ;;  %v3541_v12 = vadd.f32 %v3434_v26, %v6969_v43  ;;  %v3919_v40 = vadd.f32 %v7041_v11, %v3876_v1 }
 0x209   : > { %v5349_v31 = vpop.f32.mrf.mxu1  ;;  %v5405_v46 = vpop.f32.mrf.mxu0 }
 0x20a   : > { %v4641_v2 = vpack.c.bf16 %v3957_v63, %v3956_v22  ;;  %v3879_v25 = vadd.f32 %v3772_v37, %v3541_v12  ;;  %v3544_v18 = vadd.f32 %v5349_v31, %v6972_v6  ;;  %v3955_v3 = vmax.f32 %v3919_v40, 0.0 }
 0x20b   : > { %v3437_v14 = vpop.f32.mrf.mxu1  ;;  %v3791_v49 = vpop.f32.mrf.mxu0  ;;  %v3924_v61 = vadd.f32 %v7041_v11, %v3881_v45 }
 0x20c   : > { %4707 = vst [vmem:[%s7055_s12 + $0x28] sm:$0xff] %v4641_v2   ;;  %v3882_v5 = vadd.f32 %v5401_v62, %v3544_v18  ;;  %v3542_v24 = vadd.f32 %v3437_v14, %v6975_v16  ;;  %v4636_v43 = vpack.c.bf16 %v3955_v3, %v3954_v0  ;;  %v3922_v33 = vadd.f32 %v7041_v11, %v3879_v25 }
 0x20d   : > { %v5352_v59 = vpop.f32.mrf.mxu1  ;;  %v5408_v10 = vpop.f32.mrf.mxu0  ;;  %v3960_v27 = vmax.f32 %v3924_v61, 0.0 }
 0x20e   : > { %v3925_v37 = vadd.f32 %v7041_v11, %v3882_v5  ;;  %v3880_v41 = vadd.f32 %v3775_v57, %v3542_v24  ;;  %v3547_v6 = vadd.f32 %v5352_v59, %v6978_v17  ;;  %4706 = vst [vmem:[%s7055_s12 + $0x20] sm:$0xff] %v4636_v43   ;;  %v3958_v30 = vmax.f32 %v3922_v33, 0.0 }
 0x20f   : > { %v3450_v13 = vpop.f32.mrf.mxu1  ;;  %v3804_v28 = vpop.f32.mrf.mxu0 }
 0x210   : > { %v3961_v9 = vmax.f32 %v3925_v37, 0.0  ;;  %v3923_v62 = vadd.f32 %v7041_v11, %v3880_v41  ;;  %v3545_v16 = vadd.f32 %v3450_v13, %v6981_v38  ;;  %v3885_v42 = vadd.f32 %v5404_v8, %v3547_v6 }
 0x211   : > { %v5353_v34 = vpop.f32.mrf.mxu1  ;;  %v5409_v44 = vpop.f32.mrf.mxu0 }
 0x212   : > { %v4651_v39 = vpack.c.bf16 %v3961_v9, %v3960_v27  ;;  %v3959_v29 = vmax.f32 %v3923_v62, 0.0  ;;  %v3883_v57 = vadd.f32 %v3788_v50, %v3545_v16  ;;  %v3548_v17 = vadd.f32 %v5353_v34, %v6984_v53 }
 0x213   : > { %v3453_v4 = vpop.f32.mrf.mxu1  ;;  %v3807_v54 = vpop.f32.mrf.mxu0  ;;  %v3928_v22 = vadd.f32 %v7041_v11, %v3885_v42 }
 0x214   : > { %4709 = vst [vmem:[%s7055_s12 + $0x38] sm:$0xff] %v4651_v39   ;;  %v4646_v1 = vpack.c.bf16 %v3959_v29, %v3958_v30  ;;  %v3546_v26 = vadd.f32 %v3453_v4, %v6987_v21  ;;  %v3886_v63 = vadd.f32 %v5405_v46, %v3548_v17  ;;  %v3926_v45 = vadd.f32 %v7041_v11, %v3883_v57 }
 0x215   : > { %v5356_v38 = vpop.f32.mrf.mxu1  ;;  %v5412_v8 = vpop.f32.mrf.mxu0  ;;  %v3964_v18 = vmax.f32 %v3928_v22, 0.0 }
 0x216   : > { %4708 = vst [vmem:[%s7055_s12 + $0x30] sm:$0xff] %v4646_v1   ;;  %v3884_v12 = vadd.f32 %v3791_v49, %v3546_v26  ;;  %v3551_v40 = vadd.f32 %v5356_v38, %v6990_v35  ;;  %v3929_v50 = vadd.f32 %v7041_v11, %v3886_v63  ;;  %v3962_v14 = vmax.f32 %v3926_v45, 0.0 }
 0x217   : > { %v3466_v53 = vpop.f32.mrf.mxu1  ;;  %v3820_v31 = vpop.f32.mrf.mxu0 }
 0x218   : > { %v3927_v2 = vadd.f32 %v7041_v11, %v3884_v12  ;;  %v3889_v25 = vadd.f32 %v5408_v10, %v3551_v40  ;;  %v3549_v21 = vadd.f32 %v3466_v53, %v6993_v15  ;;  %v3965_v46 = vmax.f32 %v3929_v50, 0.0 }
 0x219   : > { %v5357_v0 = vpop.f32.mrf.mxu1  ;;  %v5413_v3 = vpop.f32.mrf.mxu0 }
 0x21a   : > { %v3963_v61 = vmax.f32 %v3927_v2, 0.0  ;;  %v3552_v49 = vadd.f32 %v5357_v0, %v6996_v52  ;;  %v4661_v35 = vpack.c.bf16 %v3965_v46, %v3964_v18  ;;  %v3887_v5 = vadd.f32 %v3804_v28, %v3549_v21 }
 0x21b   : > { %v3469_v24 = vpop.f32.mrf.mxu1  ;;  %v3823_v43 = vpop.f32.mrf.mxu0  ;;  %v3932_v33 = vadd.f32 %v7041_v11, %v3889_v25 }
 0x21c   : > { %v4656_v59 = vpack.c.bf16 %v3963_v61, %v3962_v14  ;;  %v3890_v10 = vadd.f32 %v5409_v44, %v3552_v49  ;;  %4711 = vst [vmem:[%s7055_s12 + $0x48] sm:$0xff] %v4661_v35   ;;  %v3550_v15 = vadd.f32 %v3469_v24, %v6999_v60  ;;  %v3930_v52 = vadd.f32 %v7041_v11, %v3887_v5 }
 0x21d   : > { %v5360_v37 = vpop.f32.mrf.mxu1  ;;  %v5416_v41 = vpop.f32.mrf.mxu0  ;;  %v3968_v62 = vmax.f32 %v3932_v33, 0.0 }
 0x21e   : > { %4710 = vst [vmem:[%s7055_s12 + $0x40] sm:$0xff] %v4656_v59   ;;  %v3933_v6 = vadd.f32 %v7041_v11, %v3890_v10  ;;  %v3555_v13 = vadd.f32 %v5360_v37, %v7002_v51  ;;  %v3888_v27 = vadd.f32 %v3807_v54, %v3550_v15  ;;  %v3966_v57 = vmax.f32 %v3930_v52, 0.0 }
 0x21f   : > { %v3482_v28 = vpop.f32.mrf.mxu1  ;;  %v3836_v9 = vpop.f32.mrf.mxu0 }
 0x220   : > { %v3969_v16 = vmax.f32 %v3933_v6, 0.0  ;;  %v3893_v42 = vadd.f32 %v5412_v8, %v3555_v13  ;;  %v3553_v34 = vadd.f32 %v3482_v28, %v7005_v47  ;;  %v3931_v60 = vadd.f32 %v7041_v11, %v3888_v27 }
 0x221   : > { %v5361_v44 = vpop.f32.mrf.mxu1  ;;  %v5417_v51 = vpop.f32.mrf.mxu0 }
 0x222   : > { %v4671_v30 = vpack.c.bf16 %v3969_v16, %v3968_v62  ;;  %v3891_v39 = vadd.f32 %v3820_v31, %v3553_v34  ;;  %v3556_v29 = vadd.f32 %v5361_v44, %v7008_v55  ;;  %v3967_v17 = vmax.f32 %v3931_v60, 0.0 }
 0x223   : > { %v3485_v4 = vpop.f32.mrf.mxu1  ;;  %v3936_v54 = vadd.f32 %v7041_v11, %v3893_v42  ;;  %v3839_v45 = vpop.f32.mrf.mxu0 }
 0x224   : > { %4713 = vst [vmem:[%s7055_s12 + $0x58] sm:$0xff] %v4671_v30   ;;  %v3894_v1 = vadd.f32 %v5413_v3, %v3556_v29  ;;  %v3554_v26 = vadd.f32 %v3485_v4, %v7011_v20  ;;  %v4666_v22 = vpack.c.bf16 %v3967_v17, %v3966_v57  ;;  %v3934_v63 = vadd.f32 %v7041_v11, %v3891_v39 }
 0x225   : > { %v5364_v47 = vpop.f32.mrf.mxu1  ;;  %v3972_v40 = vmax.f32 %v3936_v54, 0.0  ;;  %v5420_v0 = vpop.f32.mrf.mxu0 }
 0x226   : > { %v3937_v38 = vadd.f32 %v7041_v11, %v3894_v1  ;;  %v3892_v8 = vadd.f32 %v3823_v43, %v3554_v26  ;;  %v3559_v55 = vadd.f32 %v5364_v47, %v7014_v7  ;;  %4712 = vst [vmem:[%s7055_s12 + $0x50] sm:$0xff] %v4666_v22   ;;  %v3970_v25 = vmax.f32 %v3934_v63, 0.0 }
 0x227   : > { %v3498_v12 = vpop.f32.mrf.mxu1  ;;  %v3852_v43 = vpop.f32.mrf.mxu0 }
 0x228   : > { %v3973_v50 = vmax.f32 %v3937_v38, 0.0  ;;  %v3935_v53 = vadd.f32 %v7041_v11, %v3892_v8  ;;  %v3557_v31 = vadd.f32 %v3498_v12, %v7017_v23  ;;  %v3897_v20 = vadd.f32 %v5416_v41, %v3559_v55 }
 0x229   : > { %v5365_v2 = vpop.f32.mrf.mxu1  ;;  %v5421_v27 = vpop.f32.mrf.mxu0 }
 0x22a   : > { %v4681_v21 = vpack.c.bf16 %v3973_v50, %v3972_v40  ;;  %v3971_v18 = vmax.f32 %v3935_v53, 0.0  ;;  %v3895_v46 = vadd.f32 %v3836_v9, %v3557_v31  ;;  %v3560_v7 = vadd.f32 %v5365_v2, %v7020_v48 }
 0x22b   : > { %v3501_v3 = vpop.f32.mrf.mxu1  ;;  %v3940_v49 = vadd.f32 %v7041_v11, %v3897_v20  ;;  %v3855_v60 = vpop.f32.mrf.mxu0 }
 0x22c   : > { %4715 = vst [vmem:[%s7055_s12 + $0x68] sm:$0xff] %v4681_v21   ;;  %v4676_v14 = vpack.c.bf16 %v3971_v18, %v3970_v25  ;;  %v3558_v61 = vadd.f32 %v3501_v3, %v7023_v58  ;;  %v3898_v35 = vadd.f32 %v5417_v51, %v3560_v7  ;;  %v3938_v23 = vadd.f32 %v7041_v11, %v3895_v46 }
 0x22d   : > { %v5368_v5 = vpop.f32.mrf.mxu1  ;;  %v3976_v37 = vmax.f32 %v3940_v49, 0.0 }
 0x22e   : > { %4714 = vst [vmem:[%s7055_s12 + $0x60] sm:$0xff] %v4676_v14   ;;  %v3896_v24 = vadd.f32 %v3839_v45, %v3558_v61  ;;  %v3563_v59 = vadd.f32 %v5368_v5, %v7026_v36  ;;  %v3941_v33 = vadd.f32 %v7041_v11, %v3898_v35  ;;  %v3974_v13 = vmax.f32 %v3938_v23, 0.0 }
 0x22f   : > { %v3514_v10 = vpop.f32.mrf.mxu1 }
 0x230   : > { %v3939_v48 = vadd.f32 %v7041_v11, %v3896_v24  ;;  %v3901_v15 = vadd.f32 %v5420_v0, %v3563_v59  ;;  %v3561_v58 = vadd.f32 %v3514_v10, %v7029_v32  ;;  %v3977_v41 = vmax.f32 %v3941_v33, 0.0 }
 0x231   : > { %v5369_v6 = vpop.f32.mrf.mxu1 }
 0x232   : > { %v3975_v52 = vmax.f32 %v3939_v48, 0.0  ;;  %v3564_v28 = vadd.f32 %v5369_v6, %v7032_v56  ;;  %v4691_v9 = vpack.c.bf16 %v3977_v41, %v3976_v37  ;;  %v3899_v36 = vadd.f32 %v3852_v43, %v3561_v58 }
 0x233   : > { %v3517_v62 = vpop.f32.mrf.mxu1  ;;  %v3944_v42 = vadd.f32 %v7041_v11, %v3901_v15 }
 0x234   : > { %v4686_v16 = vpack.c.bf16 %v3975_v52, %v3974_v13  ;;  %v3902_v34 = vadd.f32 %v5421_v27, %v3564_v28  ;;  %4717 = vst [vmem:[%s7055_s12 + $0x78] sm:$0xff] %v4691_v9   ;;  %v3562_v32 = vadd.f32 %v3517_v62, %v7035_v19  ;;  %v3942_v30 = vadd.f32 %v7041_v11, %v3899_v36 }
 0x235   : > { %v3980_v56 = vmax.f32 %v3944_v42, 0.0 }
 0x236   : > { %4716 = vst [vmem:[%s7055_s12 + $0x70] sm:$0xff] %v4686_v16   ;;  %v3945_v44 = vadd.f32 %v7041_v11, %v3902_v34  ;;  %v3900_v39 = vadd.f32 %v3855_v60, %v3562_v32  ;;  %v3978_v17 = vmax.f32 %v3942_v30, 0.0 }
 0x238   : > { %v3981_v29 = vmax.f32 %v3945_v44, 0.0  ;;  %v3943_v51 = vadd.f32 %v7041_v11, %v3900_v39 }
 0x23a   : > { %v4701_v57 = vpack.c.bf16 %v3981_v29, %v3980_v56  ;;  %v3979_v4 = vmax.f32 %v3943_v51, 0.0 }
 0x23c   : > { %4719 = vst [vmem:[%s7055_s12 + $0x88] sm:$0xff] %v4701_v57   ;;  %v4696_v54 = vpack.c.bf16 %v3979_v4, %v3978_v17 }
 0x23e   : > { %4718 = vst [vmem:[%s7055_s12 + $0x80] sm:$0xff] %v4696_v54  }
 0x23f PF: > { %s13_s14 = sadd.s32 1, %s5620_s14   ;;  %s7231_s12 = smov %s5616_s13 }
 0x240   : > { %p10_p5 = scmp.ge.s32.totalorder %s13_s14, 4   ;;  %s7232_s13 = smov %s7234_s15 }
 0x242   :  { %12 = sbr.rel (!%p10_p5) target bundleno = 2 (0x2), region = 76 }

// kernel: dan_resnetv2_forward.19
= control target key start
LH: loop header
LB: loop body
LE: loop exit
PB: predicated region body
PF: predicated region fallthrough
CT: control target
= control target key end

     0   :  { %s735_s12 = smov 0   ;;  %s737_s13 = smov 0   ;;  %s808_s0 = inlined_call_operand.vmem [shape: bf16[2,64,128], index: 0, kind: input, shape index: {}]   ;;  %s809_s1 = inlined_call_operand.vmem [shape: bf16[1,128,128], index: 1, kind: input, shape index: {}]   ;;  %s810_s2 = inlined_call_operand.vmem [shape: f32[1,128], index: 2, kind: input, shape index: {}]   ;;  %s811_s3 = inlined_call_operand.vmem [shape: bf16[2,64,128], index: 3, kind: output, shape index: {}]  }
   0x1   :  { %s739_s14 = smov 0  }
   0x2 LB: > { %s25_s15 = sadd.s32 1, %s709_s13  ;;  %p542_p0 = scmp.ge.s32.totalorder %s713_s14, 1  ;;  %s713_s14 = sphi %s739_s14, %s13_s14   ;;  %s709_s13 = sphi %s737_s13, %s813_s13   ;;  %s705_s12 = sphi %s735_s12, %s812_s12  }
   0x3   : > { %p27_p1 = scmp.ge.s32.totalorder %s25_s15, 2  ;;  %p168_p2 = scmp.lt.s32.totalorder %s713_s14, 3 }
   0x5   : > { %s815_s15 = smov (%p27_p1, %s25_s15), 0  ;;  %p169_p3 = pnand %p542_p0, %p168_p2 }
   0x6   : > { %p202_p4 = scmp.lt.s32.totalorder (!%p169_p3), %s705_s12, 1 }
   0x7   : > { %172 = sbr.rel (%p169_p3) target bundleno = 249 (0xf9), region = 32 }
   0xc   : > { %v679_v0 = vld [vmem:[%s809_s1 + $0x38] sm:$0xff]   ;;  %v680_v1 = vld [vmem:[%s809_s1 + $0x30] sm:$0xff]   ;;  %s817_s12 = smov (!%p202_p4, %s705_s12), 1  ;;  %v681_v2 = vld [vmem:[%s809_s1 + $0x28] sm:$0xff]  }
   0xd   : > { %615 = vmatprep.subr.bf16.mxu0 %v679_v0  ;;  %639 = vmatprep.subr.bf16.mxu1 %v679_v0  ;;  %s570_s22 = sshll.u32 %s817_s12, 5  ;;  %v682_v3 = vld [vmem:[%s809_s1 + $0x20] sm:$0xff]   ;;  %v683_v6 = vld [vmem:[%s809_s1 + $0x18] sm:$0xff]   ;;  %v684_v7 = vld [vmem:[%s809_s1 + $0x10] sm:$0xff]  }
   0xe   : > { %616 = vmatpush3.bf16.msra.mxu0 %v679_v0  ;;  %647 = vmatpush3.bf16.msra.mxu1 %v679_v0  ;;  %s770_s25 = scalar_lea.vmem %s808_s0, %s570_s22  ;;  %v685_v8 = vld [vmem:[%s809_s1 + $0x8] sm:$0xff]   ;;  %v686_v9 = vld [vmem:[%s809_s1] sm:$0xff]   ;;  %s221_s17 = scalar_lea.vmem %s811_s3, %s570_s22 }
   0xf   : > { %617 = vmatprep.subr.bf16.mxu0 %v680_v1  ;;  %640 = vmatprep.subr.bf16.mxu1 %v680_v1  ;;  %v687_v4 = vld [vmem:[%s770_s25] sm:$0xff]   ;;  %v688_v5 = vld [vmem:[%s770_s25 + $0x10] sm:$0xff]   ;;  %v689_v10 = vld [vmem:[%s770_s25 + $0x8] sm:$0xff]  }
  0x10   : > { %631 = vmatprep.mubr.bf16.mxu0 %v687_v4  ;;  %635 = vmatprep.mubr.bf16.mxu1 %v688_v5  ;;  %v690_v11 = vld [vmem:[%s770_s25 + $0x18] sm:$0xff]   ;;  %v547_v14 = vld [vmem:[%s810_s2] ss:$0 sm:$0xff] }
  0x12   : > { %618 = vmatpush3.bf16.msra.mxu0 %v680_v1  ;;  %648 = vmatpush3.bf16.msra.mxu1 %v680_v1 }
  0x13   : > { %619 = vmatprep.subr.bf16.mxu0 %v681_v2  ;;  %641 = vmatprep.subr.bf16.mxu1 %v681_v2 }
  0x16   : > { %620 = vmatpush3.bf16.msra.mxu0 %v681_v2  ;;  %649 = vmatpush3.bf16.msra.mxu1 %v681_v2 }
  0x17   : > { %621 = vmatprep.subr.bf16.mxu0 %v682_v3  ;;  %642 = vmatprep.subr.bf16.mxu1 %v682_v3 }
  0x1a   : > { %622 = vmatpush3.bf16.msra.mxu0 %v682_v3  ;;  %650 = vmatpush3.bf16.msra.mxu1 %v682_v3 }
  0x1b   : > { %623 = vmatprep.subr.bf16.mxu0 %v683_v6  ;;  %643 = vmatprep.subr.bf16.mxu1 %v683_v6 }
  0x1e   : > { %624 = vmatpush3.bf16.msra.mxu0 %v683_v6  ;;  %651 = vmatpush3.bf16.msra.mxu1 %v683_v6 }
  0x1f   : > { %625 = vmatprep.subr.bf16.mxu0 %v684_v7  ;;  %644 = vmatprep.subr.bf16.mxu1 %v684_v7 }
  0x22   : > { %626 = vmatpush3.bf16.msra.mxu0 %v684_v7  ;;  %652 = vmatpush3.bf16.msra.mxu1 %v684_v7 }
  0x23   : > { %627 = vmatprep.subr.bf16.mxu0 %v685_v8  ;;  %645 = vmatprep.subr.bf16.mxu1 %v685_v8 }
  0x26   : > { %628 = vmatpush3.bf16.msra.mxu0 %v685_v8  ;;  %653 = vmatpush3.bf16.msra.mxu1 %v685_v8 }
  0x27   : > { %629 = vmatprep.subr.bf16.mxu0 %v686_v9  ;;  %646 = vmatprep.subr.bf16.mxu1 %v686_v9 }
  0x2a   : > { %630 = vmatpush3.bf16.msra.mxu0 %v686_v9  ;;  %654 = vmatpush3.bf16.msra.mxu1 %v686_v9 }
  0x2d   : > { %632 = vmatmul.mubr.bf16.vlgmr.msra.gmra.mxu0 %v689_v10  ;;  %636 = vmatmul.mubr.bf16.vlgmr.msra.gmra.mxu1 %v690_v11 }
  0xed   : > { %v633_v12 = vpop.f32.mrf.mxu0  ;;  %v637_v13 = vpop.f32.mrf.mxu1 }
  0xee   : > { %v369_v19 = vadd.f32 %v633_v12, %v547_v14  ;;  %v385_v20 = vadd.f32 %v637_v13, %v547_v14 }
  0xef   : > { %v360_v15 = vpop.f32.mrf.mxu0  ;;  %v376_v16 = vpop.f32.mrf.mxu1 }
  0xf0   : > { %v361_v23 = vadd.f32 %v547_v14, %v360_v15  ;;  %v377_v24 = vadd.f32 %v547_v14, %v376_v16 }
  0xf1   : > { %v634_v17 = vpop.f32.mrf.mxu0  ;;  %v638_v18 = vpop.f32.mrf.mxu1 }
  0xf2   : > { %v372_v21 = vadd.f32 %v634_v17, %v547_v14  ;;  %v388_v22 = vadd.f32 %v638_v18, %v547_v14 }
  0xf3   : > { %v363_v25 = vpop.f32.mrf.mxu0  ;;  %v379_v26 = vpop.f32.mrf.mxu1 }
  0xf4   : > { %v588_v27 = vpack.c.bf16 %v372_v21, %v369_v19  ;;  %v598_v28 = vpack.c.bf16 %v388_v22, %v385_v20  ;;  %v364_v29 = vadd.f32 %v547_v14, %v363_v25  ;;  %v380_v30 = vadd.f32 %v547_v14, %v379_v26 }
  0xf6   : > { %600 = vst [vmem:[%s221_s17 + $0x8] sm:$0xff] %v588_v27   ;;  %602 = vst [vmem:[%s221_s17 + $0x18] sm:$0xff] %v598_v28   ;;  %v583_v31 = vpack.c.bf16 %v364_v29, %v361_v23  ;;  %v593_v32 = vpack.c.bf16 %v380_v30, %v377_v24 }
  0xf8   : > { %584 = vst [vmem:[%s221_s17] sm:$0xff] %v583_v31   ;;  %601 = vst [vmem:[%s221_s17 + $0x10] sm:$0xff] %v593_v32  }
  0xf9 PF: > { %s13_s14 = sadd.s32 1, %s713_s14   ;;  %s812_s12 = smov %s709_s13 }
  0xfa   : > { %p10_p5 = scmp.ge.s32.totalorder %s13_s14, 4   ;;  %s813_s13 = smov %s815_s15 }
  0xfc   :  { %12 = sbr.rel (!%p10_p5) target bundleno = 2 (0x2), region = 68 }

// kernel: dan_resnetv2_forward.18
= control target key start
LH: loop header
LB: loop body
LE: loop exit
PB: predicated region body
PF: predicated region fallthrough
CT: control target
= control target key end

     0   :  { %s3116_s12 = smov 0   ;;  %s3118_s13 = smov 0   ;;  %s3690_s0 = inlined_call_operand.vmem [shape: bf16[2,352,128], index: 0, kind: input, shape index: {}]   ;;  %s3691_s1 = inlined_call_operand.vmem [shape: bf16[9,128,128], index: 1, kind: input, shape index: {}]   ;;  %s3692_s2 = inlined_call_operand.vmem [shape: f32[1,128], index: 2, kind: input, shape index: {}]   ;;  %s3693_s3 = inlined_call_operand.vmem [shape: bf16[2,72,128], index: 3, kind: output, shape index: {}]  }
   0x1   :  { %s3120_s14 = smov 0  }
   0x2 LB: > { %s25_s15 = sadd.s32 1, %s3088_s13  ;;  %p2184_p0 = scmp.ge.s32.totalorder %s3092_s14, 1  ;;  %s3092_s14 = sphi %s3120_s14, %s13_s14   ;;  %s3088_s13 = sphi %s3118_s13, %s3695_s13   ;;  %s3084_s12 = sphi %s3116_s12, %s3694_s12  }
   0x3   : > { %p27_p1 = scmp.ge.s32.totalorder %s25_s15, 2  ;;  %p168_p2 = scmp.lt.s32.totalorder %s3092_s14, 3 }
   0x5   : > { %s3697_s15 = smov (%p27_p1, %s25_s15), 0  ;;  %p169_p3 = pnand %p2184_p0, %p168_p2 }
   0x6   : > { %p202_p4 = scmp.lt.s32.totalorder (!%p169_p3), %s3084_s12, 1 }
   0x7   : > { %172 = sbr.rel (%p169_p3) target bundleno = 427 (0x1ab), region = 32 }
   0xc   : > { %v2957_v0 = vld [vmem:[%s3691_s1 + $0x78] sm:$0xff]   ;;  %v3094_v1 = vmov 0.0   ;;  %v2959_v3 = vld [vmem:[%s3691_s1 + $0x70] sm:$0xff]   ;;  %vm3095_vm0 = vmmov 0   ;;  %v2961_v5 = vld [vmem:[%s3691_s1 + $0x68] sm:$0xff]   ;;  %s3699_s12 = smov (!%p202_p4, %s3084_s12), 1 }
   0xd   : > { %2589 = vmatprep.subr.bf16.mxu0 %v3094_v1  ;;  %2625 = vmatprep.subr.bf16.mxu1 %v3094_v1  ;;  %v2958_v2 = vld [vmem:[%s3691_s1 + $0x38] sm:$0xff]   ;;  %v2960_v4 = vld [vmem:[%s3691_s1 + $0x30] sm:$0xff]   ;;  %v2962_v6 = vld [vmem:[%s3691_s1 + $0x28] sm:$0xff]   ;;  %s2929_s5 = smul.u32 176, %s3699_s12  ;;  %vm622_vm1 = vsmask.f32 7424 }
   0xe   : > { %2590 = vmatpush3.bf16.msra.mxu0 %v2957_v0  ;;  %2605 = vmatprep.mubr.msk.bf16.mxu0 %vm3095_vm0, %v3094_v1  ;;  %v2963_v7 = vld [vmem:[%s3691_s1 + $0x60] sm:$0xff]   ;;  %v2965_v9 = vld [vmem:[%s3691_s1 + $0x58] sm:$0xff]   ;;  %v2967_v11 = vld [vmem:[%s3691_s1 + $0x50] sm:$0xff]   ;;  %vm1858_vm2 = vcmask 1046528  }
   0xf   : > { %2626 = vmatpush3.bf16.msra.mxu1 %v2958_v2  ;;  %2591 = vmatprep.subr.bf16.mxu0 %v3094_v1  ;;  %v2964_v8 = vld [vmem:[%s3691_s1 + $0x20] sm:$0xff]   ;;  %v2966_v10 = vld [vmem:[%s3691_s1 + $0x18] sm:$0xff]   ;;  %s3187_s16 = scalar_lea.vmem %s3690_s0, %s2929_s5  ;;  %v2968_v12 = vld [vmem:[%s3691_s1 + $0x10] sm:$0xff]   ;;  %s2930_s5 = smul.u32 36, %s3699_s12 }
  0x10   : > { %2627 = vmatprep.subr.bf16.mxu1 %v3094_v1  ;;  %2641 = vmatprep.mubr.msk.bf16.mxu1 %vm3095_vm0, %v3094_v1  ;;  %v2969_v13 = vld [vmem:[%s3691_s1 + $0x48] sm:$0xff]   ;;  %v2971_v15 = vld [vmem:[%s3691_s1 + $0x40] sm:$0xff]   ;;  %v2975_v19 = vld [vmem:[%s3691_s1 + $0xb8] sm:$0xff]  }
  0x11   : > { %v2970_v14 = vld [vmem:[%s3691_s1 + $0x8] sm:$0xff]   ;;  %v2972_v16 = vld [vmem:[%s3691_s1] sm:$0xff]   ;;  %v2979_v20 = vld [vmem:[%s3691_s1 + $0xf8] sm:$0xff]   ;;  %s3662_s12 = scalar_lea.vmem %s3693_s3, %s2930_s5 }
  0x12   : > { %2592 = vmatpush3.bf16.msra.mxu0 %v2959_v3  ;;  %v2973_v17 = vld [vmem:[%s3187_s16 + $0x2c] sm:$0xff]   ;;  %v2974_v18 = vld [vmem:[%s3187_s16] sm:$0xff]   ;;  %v2977_v22 = vld [vmem:[%s3187_s16 + $0x34] sm:$0xff]  }
  0x13   : > { %2628 = vmatpush3.bf16.msra.mxu1 %v2960_v4  ;;  %2593 = vmatprep.subr.bf16.mxu0 %v3094_v1  ;;  %v2976_v21 = vld [vmem:[%s3691_s1 + $0xb0] sm:$0xff]   ;;  %v2978_v24 = vld [vmem:[%s3187_s16 + $0x8] sm:$0xff]   ;;  %v2984_v27 = vld [vmem:[%s3691_s1 + $0xa0] sm:$0xff]  }
  0x14   : > { %2629 = vmatprep.subr.bf16.mxu1 %v3094_v1  ;;  %v2981_v23 = vld [vmem:[%s3691_s1 + $0xf0] sm:$0xff]   ;;  %v2980_v25 = vld [vmem:[%s3691_s1 + $0xa8] sm:$0xff]   ;;  %v2982_v28 = vld [vmem:[%s3187_s16 + $0x3c] sm:$0xff]  }
  0x15   : > { %v2985_v26 = vld [vmem:[%s3691_s1 + $0xe8] sm:$0xff]   ;;  %v2987_v29 = vld [vmem:[%s3691_s1 + $0xe0] sm:$0xff]   ;;  %v2983_v30 = vld [vmem:[%s3187_s16 + $0x10] sm:$0xff]  }
  0x16   : > { %2594 = vmatpush3.bf16.msra.mxu0 %v2961_v5  ;;  %v2986_v31 = vld [vmem:[%s3691_s1 + $0x98] sm:$0xff]   ;;  %v2991_v33 = vld [vmem:[%s3691_s1 + $0x90] sm:$0xff]   ;;  %v2988_v34 = vld [vmem:[%s3187_s16 + $0x44] sm:$0xff]  }
  0x17   : > { %2630 = vmatpush3.bf16.msra.mxu1 %v2962_v6  ;;  %2595 = vmatprep.subr.bf16.mxu0 %v3094_v1  ;;  %v2990_v32 = vld [vmem:[%s3691_s1 + $0xd8] sm:$0xff]   ;;  %v2992_v35 = vld [vmem:[%s3691_s1 + $0xd0] sm:$0xff]   ;;  %v2999_v37 = vld [vmem:[%s3187_s16] sm:$0xff]  }
  0x18   : > { %2631 = vmatprep.subr.bf16.mxu1 %v3094_v1  ;;  %v2989_v36 = vld [vmem:[%s3187_s16 + $0x18] sm:$0xff]   ;;  %v2993_v38 = vld [vmem:[%s3691_s1 + $0x88] sm:$0xff]   ;;  %v626_v41 = vshll.u32 %v2999_v37, 16  ;;  %v2997_v43 = vld [vmem:[%s3691_s1 + $0x80] sm:$0xff]   ;;  %v624_v46 = vshrl.u32 %v2999_v37, 16 }
  0x19   : > { %v2996_v39 = vld [vmem:[%s3691_s1 + $0xc8] sm:$0xff]   ;;  %v2995_v44 = vld [vmem:[%s3187_s16 + $0x20] ss:$0 sps:$4 sm:$0xff]   ;;  %v3004_v51 = vld [vmem:[%s3187_s16 + $0x10] sm:$0xff]  }
  0x1a   : > { %2596 = vmatpush3.bf16.msra.mxu0 %v2963_v7  ;;  %v3000_v40 = vld [vmem:[%s3187_s16 + $0x8] sm:$0xff]   ;;  %v2998_v45 = vld [vmem:[%s3691_s1 + $0xc0] sm:$0xff]   ;;  %v628_v47 = vrot.slane %v626_v41, 1  ;;  %v3001_v52 = vld [vmem:[%s3187_s16 + $0x58] sm:$0xff]   ;;  %v639_v56 = vshll.u32 %v3004_v51, 16  ;;  %v643_v4 = vshrl.u32 %v3004_v51, 16 }
  0x1b   : > { %2632 = vmatpush3.bf16.msra.mxu1 %v2964_v8  ;;  %2597 = vmatprep.subr.bf16.mxu0 %v3094_v1  ;;  %v2994_v42 = vld [vmem:[%s3187_s16 + $0x4c] ss:$0 sps:$4 sm:$0xff]   ;;  %v631_v48 = vshll.u32 %v3000_v40, 16  ;;  %v3002_v53 = vld [vmem:[%s3691_s1 + $0x138] sm:$0xff]   ;;  %v635_v55 = vshrl.u32 %v3000_v40, 16  ;;  %v3003_v59 = vld [vmem:[%s3691_s1 + $0x130] sm:$0xff]  }
  0x1c   : > { %2633 = vmatprep.subr.bf16.mxu1 %v3094_v1  ;;  %v629_v49 = vor.u32 %v628_v47, %v624_v46  ;;  %v3006_v57 = vld [vmem:[%s3691_s1 + $0x178] sm:$0xff]   ;;  %v641_v61 = vrot.slane %v639_v56, 1  ;;  %v3008_v62 = vld [vmem:[%s3691_s1 + $0x170] sm:$0xff]   ;;  %v3005_v63 = vld [vmem:[%s3187_s16 + $0x60] sm:$0xff]  }
  0x1d   : > { %v633_v50 = vrot.slane %v631_v48, 1  ;;  %v3009_v58 = vld [vmem:[%s3187_s16 + $0x18] sm:$0xff]   ;;  %v3007_v3 = vld [vmem:[%s3691_s1 + $0x128] sm:$0xff]   ;;  %v3011_v7 = vld [vmem:[%s3691_s1 + $0x120] sm:$0xff]  }
  0x1e   : > { %2598 = vmatpush3.bf16.msra.mxu0 %v2965_v9  ;;  %v647_v0 = vshll.u32 %v3009_v58, 16  ;;  %v3012_v5 = vld [vmem:[%s3691_s1 + $0x168] sm:$0xff]   ;;  %v645_v8 = vor.u32 %v643_v4, %v641_v61  ;;  %v3015_v9 = vld [vmem:[%s3187_s16 + $0x20] sm:$0x1f]   ;;  %v3028_v40 = vld [vmem:[%s3691_s1 + $0x1b8] sm:$0xff]  }
  0x1f   : > { %2634 = vmatpush3.bf16.msra.mxu1 %v2966_v10  ;;  %2599 = vmatprep.subr.bf16.mxu0 %v3094_v1  ;;  %v634_v54 = vsel %vm622_vm1, %v629_v49, %v633_v50  ;;  %v637_v60 = vor.u32 %v635_v55, %v633_v50  ;;  %v3014_v10 = vld [vmem:[%s3691_s1 + $0x160] sm:$0xff]   ;;  %v3036_v48 = vld [vmem:[%s3187_s16 + $0x70] sm:$0xff]   ;;  %v3033_v51 = vld [vmem:[%s3691_s1 + $0x1a8] sm:$0xff]  }
  0x20   : > { %2635 = vmatprep.subr.bf16.mxu1 %v3094_v1  ;;  %v649_v6 = vrot.slane %v647_v0, 1  ;;  %v3034_v49 = vld [vmem:[%s3691_s1 + $0x1f0] sm:$0xff]   ;;  %v3038_v55 = vld [vmem:[%s3691_s1 + $0x1e8] sm:$0xff]   ;;  %v3037_v56 = vld [vmem:[%s3691_s1 + $0x1a0] sm:$0xff]   ;;  %v1242_v0 = vshrl.u32 %v3036_v48, 16 }
  0x21   : > { %v642_v2 = vsel %vm622_vm1, %v637_v60, %v641_v61  ;;  %v3030_v50 = vld [vmem:[%s3187_s16 + $0x8c] sm:$0xff]   ;;  %v3040_v60 = vld [vmem:[%s3691_s1 + $0x1e0] sm:$0xff]   ;;  %v3035_v61 = vld [vmem:[%s3187_s16 + $0x94] sm:$0xff]  }
  0x22   : > { %2600 = vmatpush3.bf16.msra.mxu0 %v2967_v11  ;;  %v3010_v11 = vld [vmem:[%s3187_s16 + $0x68] sm:$0xff]   ;;  %v3044_v4 = vld [vmem:[%s3691_s1 + $0x190] sm:$0xff]  }
  0x23   : > { %2636 = vmatpush3.bf16.msra.mxu1 %v2968_v12  ;;  %2601 = vmatprep.subr.bf16.mxu0 %v3094_v1  ;;  %v651_v12 = vshrl.u32 %v3009_v58, 16 }
  0x24   : > { %2637 = vmatprep.subr.bf16.mxu1 %v3094_v1 }
  0x26   : > { %2602 = vmatpush3.bf16.msra.mxu0 %v2969_v13  ;;  %v650_v13 = vsel %vm622_vm1, %v645_v8, %v649_v6  ;;  %v3474_v8 = vld [vmem:[%s3187_s16 + $0x8] sm:$0xf] }
  0x27   : > { %2638 = vmatpush3.bf16.msra.mxu1 %v2970_v14  ;;  %2603 = vmatprep.subr.bf16.mxu0 %v3094_v1  ;;  %v3013_v14 = vld [vmem:[%s3691_s1 + $0x118] sm:$0xff]  }
  0x28   : > { %2639 = vmatprep.subr.bf16.mxu1 %v3094_v1 }
  0x2a   : > { %2604 = vmatpush3.bf16.msra.mxu0 %v2971_v15  ;;  %v655_v15 = vshll.u32 %v3015_v9, 16 }
  0x2b   : > { %2640 = vmatpush3.bf16.msra.mxu1 %v2972_v16  ;;  %2661 = vmatprep.subr.bf16.mxu0 %v3094_v1  ;;  %v3017_v16 = vld [vmem:[%s3691_s1 + $0x158] sm:$0xff]  }
  0x2c   : > { %2697 = vmatprep.subr.bf16.mxu1 %v3094_v1 }
  0x2d   : > { %2606 = vmatmul.mubr.bf16.vlgmr.msra.gmra.mxu0 %v2973_v17  ;;  %v653_v17 = vor.u32 %v651_v12, %v649_v6 }
  0x2e   : > { %2642 = vmatmul.mubr.bf16.vlgmr.msra.gmra.mxu1 %v2974_v18  ;;  %2662 = vmatpush3.bf16.msra.mxu0 %v2975_v19  ;;  %v657_v18 = vrot.slane %v655_v15, 1  ;;  %v3018_v19 = vld [vmem:[%s3691_s1 + $0x110] sm:$0xff]   ;;  %v3048_v15 = vld [vmem:[%s3691_s1 + $0x1c8] sm:$0xff]  }
  0x2f   : > { %2663 = vmatprep.subr.bf16.mxu0 %v3094_v1  ;;  %2609 = vmatprep.mubr.msk.bf16.mxu0 %vm3095_vm0, %v3094_v1 }
  0x30   : > { %2645 = vmatprep.mubr.msk.bf16.mxu1 %vm3095_vm0, %v3094_v1  ;;  %2698 = vmatpush3.bf16.msra.mxu1 %v2979_v20  ;;  %v3019_v20 = vld [vmem:[%s3691_s1 + $0x150] sm:$0xff]  }
  0x31   : > { %2699 = vmatprep.subr.bf16.mxu1 %v3094_v1 }
  0x32   : > { %2664 = vmatpush3.bf16.msra.mxu0 %v2976_v21  ;;  %v3016_v21 = vld [vmem:[%s3187_s16 + $0x70] sm:$0xff]  }
  0x33   : > { %2665 = vmatprep.subr.bf16.mxu0 %v3094_v1 }
  0x34   : > { %2700 = vmatpush3.bf16.msra.mxu1 %v2981_v23  ;;  %v658_v23 = vsel %vm622_vm1, %v653_v17, %v657_v18  ;;  %v3496_v17 = vld [vmem:[%s3187_s16 + $0xc] sm:$0xff]  }
  0x35   : > { %2610 = vmatmul.mubr.bf16.gmra.mxu0 %v2977_v22  ;;  %2701 = vmatprep.subr.bf16.mxu1 %v3094_v1  ;;  %v3020_v22 = vld [vmem:[%s3691_s1 + $0x108] sm:$0xff]  }
  0x36   : > { %2646 = vmatmul.mubr.bf16.gmra.mxu1 %v2978_v24  ;;  %2666 = vmatpush3.bf16.msra.mxu0 %v2980_v25  ;;  %v3026_v24 = vld [vmem:[%s3187_s16 + $0x58] sm:$0xff]   ;;  %v3022_v25 = vld [vmem:[%s3691_s1 + $0x148] sm:$0xff]  }
  0x37   : > { %2613 = vmatprep.mubr.msk.bf16.mxu0 %vm3095_vm0, %v3094_v1  ;;  %2649 = vmatprep.mubr.msk.bf16.mxu1 %vm3095_vm0, %v3094_v1 }
  0x38   : > { %2667 = vmatprep.subr.bf16.mxu0 %v3094_v1  ;;  %2702 = vmatpush3.bf16.msra.mxu1 %v2985_v26  ;;  %v659_v26 = vshrl.u32 %v3015_v9, 16  ;;  %v3045_v9 = vld [vmem:[%s3691_s1 + $0x1d0] sm:$0xff]  }
  0x39   : > { %2703 = vmatprep.subr.bf16.mxu1 %v3094_v1 }
  0x3a   : > { %2668 = vmatpush3.bf16.msra.mxu0 %v2984_v27  ;;  %v3023_v27 = vld [vmem:[%s3691_s1 + $0x100] sm:$0xff]  }
  0x3b   : > { %2669 = vmatprep.subr.bf16.mxu0 %v3094_v1 }
  0x3c   : > { %2704 = vmatpush3.bf16.msra.mxu1 %v2987_v29  ;;  %v1217_v29 = vshll.u32 %v3026_v24, 16 }
  0x3d   : > { %2614 = vmatmul.mubr.bf16.gmra.mxu0 %v2982_v28  ;;  %2705 = vmatprep.subr.bf16.mxu1 %v3094_v1  ;;  %v3027_v28 = vld [vmem:[%s3187_s16 + $0x60] sm:$0xff]  }
  0x3e   : > { %2650 = vmatmul.mubr.bf16.gmra.mxu1 %v2983_v30  ;;  %2670 = vmatpush3.bf16.msra.mxu0 %v2986_v31  ;;  %v3024_v30 = vld [vmem:[%s3691_s1 + $0x140] sm:$0xff]   ;;  %v661_v31 = vor.u32 %v659_v26, %v657_v18 }
  0x3f   : > { %2617 = vmatprep.mubr.msk.bf16.mxu0 %vm3095_vm0, %v3094_v1  ;;  %2653 = vmatprep.mubr.msk.bf16.mxu1 %vm3095_vm0, %v3094_v1 }
  0x40   : > { %2671 = vmatprep.subr.bf16.mxu0 %v3094_v1  ;;  %2706 = vmatpush3.bf16.msra.mxu1 %v2990_v32  ;;  %v3021_v32 = vld [vmem:[%s3187_s16 + $0x78] ss:$0 sps:$4 sm:$0xff]  }
  0x41   : > { %2707 = vmatprep.subr.bf16.mxu1 %v3094_v1 }
  0x42   : > { %2672 = vmatpush3.bf16.msra.mxu0 %v2991_v33  ;;  %v1215_v33 = vshrl.u32 %v3026_v24, 16 }
  0x43   : > { %2673 = vmatprep.subr.bf16.mxu0 %v3094_v1 }
  0x44   : > { %2708 = vmatpush3.bf16.msra.mxu1 %v2992_v35  ;;  %v1222_v35 = vshll.u32 %v3027_v28, 16 }
  0x45   : > { %2618 = vmatmul.mubr.bf16.gmra.mxu0 %v2988_v34  ;;  %2709 = vmatprep.subr.bf16.mxu1 %v3094_v1  ;;  %v1219_v34 = vrot.slane %v1217_v29, 1 }
  0x46   : > { %2654 = vmatmul.mubr.bf16.gmra.mxu1 %v2989_v36  ;;  %2621 = vmatprep.mubr.msk.bf16.mxu0 %vm3095_vm0, %v3094_v1  ;;  %v1224_v37 = vrot.slane %v1222_v35, 1 }
  0x47   : > { %2657 = vmatprep.mubr.msk.bf16.mxu1 %vm3095_vm0, %v3094_v1  ;;  %2674 = vmatpush3.bf16.msra.mxu0 %v2993_v38  ;;  %v1220_v36 = vor.u32 %v1219_v34, %v1215_v33  ;;  %v3031_v38 = vld [vmem:[%s3187_s16 + $0x68] sm:$0xff]   ;;  %v3516_v33 = vld [vmem:[%s3187_s16 + $0x14] sm:$0xff]  }
  0x48   : > { %2710 = vmatpush3.bf16.msra.mxu1 %v2996_v39  ;;  %2675 = vmatprep.subr.bf16.mxu0 %v3094_v1  ;;  %v3025_v39 = vld [vmem:[%s3187_s16 + $0x84] sm:$0xff]  }
  0x49   : > { %2711 = vmatprep.subr.bf16.mxu1 %v3094_v1  ;;  %v1225_v41 = vsel %vm622_vm1, %v1220_v36, %v1224_v37  ;;  %v3058_v36 = vld [vmem:[%s3187_s16 + $0x40] sm:$0xff]  }
  0x4b   : > { %2676 = vmatpush3.bf16.msra.mxu0 %v2997_v43  ;;  %v1230_v43 = vshll.u32 %v3031_v38, 16 }
  0x4c   : > { %2712 = vmatpush3.bf16.msra.mxu1 %v2998_v45  ;;  %2733 = vmatprep.subr.bf16.mxu0 %v3094_v1  ;;  %v3029_v45 = vld [vmem:[%s3691_s1 + $0x1b0] sm:$0xff]  }
  0x4d   : > { %2622 = vmatmul.mubr.bf16.gmra.mxu0 %v2994_v42  ;;  %2769 = vmatprep.subr.bf16.mxu1 %v3094_v1  ;;  %v1226_v42 = vshrl.u32 %v3027_v28, 16  ;;  %v1232_v47 = vrot.slane %v1230_v43, 1  ;;  %v1680_v43 = vshll.u32 %v3058_v36, 16 }
  0x4e   : > { %2658 = vmatmul.mubr.bf16.gmra.mxu1 %v2995_v44  ;;  %2677 = vmatprep.mubr.msk.bf16.mxu0 %vm3095_vm0, %v3094_v1  ;;  %v3032_v44 = vld [vmem:[%s3691_s1 + $0x1f8] sm:$0xff]  }
  0x4f   : > { %2713 = vmatprep.mubr.msk.bf16.mxu1 %vm3095_vm0, %v3094_v1  ;;  %v1228_v46 = vor.u32 %v1226_v42, %v1224_v37 }
  0x55   : > { %2678 = vmatmul.mubr.bf16.vlgmr.msra.gmra.mxu0 %v634_v54  ;;  %v1238_v54 = vshll.u32 %v3036_v48, 16 }
  0x56   : > { %2714 = vmatmul.mubr.bf16.vlgmr.msra.gmra.mxu1 %v3001_v52  ;;  %2734 = vmatpush3.bf16.msra.mxu0 %v3002_v53  ;;  %v1233_v52 = vsel %vm622_vm1, %v1228_v46, %v1232_v47  ;;  %v1234_v53 = vshrl.u32 %v3031_v38, 16  ;;  %v3055_v38 = vld [vmem:[%s3691_s1 + $0x238] sm:$0xff]  }
  0x57   : > { %2735 = vmatprep.subr.bf16.mxu0 %v3094_v1  ;;  %2681 = vmatprep.mubr.msk.bf16.mxu0 %vm3095_vm0, %v3094_v1  ;;  %v1240_v58 = vrot.slane %v1238_v54, 1 }
  0x58   : > { %2717 = vmatprep.mubr.msk.bf16.mxu1 %vm3095_vm0, %v3094_v1  ;;  %2770 = vmatpush3.bf16.msra.mxu1 %v3006_v57  ;;  %v1236_v57 = vor.u32 %v1234_v53, %v1232_v47  ;;  %v3532_v47 = vld [vmem:[%s3187_s16 + $0x1c] sm:$0xff]   ;;  %v1459_v53 = vshrl.u32 %v3516_v33, 16 }
  0x59   : > { %2771 = vmatprep.subr.bf16.mxu1 %v3094_v1  ;;  %v1463_v54 = vshll.u32 %v3532_v47, 16 }
  0x5a   : > { %2736 = vmatpush3.bf16.msra.mxu0 %v3003_v59  ;;  %v3042_v59 = vld [vmem:[%s3187_s16 + $0x78] sm:$0x1f]  }
  0x5b   : > { %2737 = vmatprep.subr.bf16.mxu0 %v3094_v1 }
  0x5c   : > { %2772 = vmatpush3.bf16.msra.mxu1 %v3008_v62  ;;  %v3039_v62 = vld [vmem:[%s3691_s1 + $0x198] sm:$0xff]  }
  0x5d   : > { %2682 = vmatmul.mubr.bf16.gmra.mxu0 %v642_v2  ;;  %2773 = vmatprep.subr.bf16.mxu1 %v3094_v1  ;;  %v1246_v2 = vshll.u32 %v3042_v59, 16 }
  0x5e   : > { %2718 = vmatmul.mubr.bf16.gmra.mxu1 %v3005_v63  ;;  %2738 = vmatpush3.bf16.msra.mxu0 %v3007_v3  ;;  %v1241_v63 = vsel %vm622_vm1, %v1236_v57, %v1240_v58  ;;  %v3043_v3 = vld [vmem:[%s3691_s1 + $0x1d8] sm:$0xff]  }
  0x5f   : > { %2685 = vmatprep.mubr.msk.bf16.mxu0 %vm3095_vm0, %v3094_v1  ;;  %2721 = vmatprep.mubr.msk.bf16.mxu1 %vm3095_vm0, %v3094_v1  ;;  %v1248_v6 = vrot.slane %v1246_v2, 1 }
  0x60   : > { %2739 = vmatprep.subr.bf16.mxu0 %v3094_v1  ;;  %2774 = vmatpush3.bf16.msra.mxu1 %v3012_v5  ;;  %v1244_v5 = vor.u32 %v1242_v0, %v1240_v58  ;;  %v3065_v0 = vld [vmem:[%s3187_s16 + $0x50] sm:$0x1f]  }
  0x61   : > { %2775 = vmatprep.subr.bf16.mxu1 %v3094_v1 }
  0x62   : > { %2740 = vmatpush3.bf16.msra.mxu0 %v3011_v7  ;;  %v1387_v7 = vld [vmem:[%s3187_s16 + $0x4] sm:$0xf]  ;;  %v1249_v12 = vsel %vm622_vm1, %v1244_v5, %v1248_v6 }
  0x63   : > { %2741 = vmatprep.subr.bf16.mxu0 %v3094_v1 }
  0x64   : > { %2776 = vmatpush3.bf16.msra.mxu1 %v3014_v10  ;;  %v3041_v10 = vld [vmem:[%s3187_s16 + $0x9c] sm:$0xff]  }
  0x65   : > { %2686 = vmatmul.mubr.bf16.gmra.mxu0 %v650_v13  ;;  %2777 = vmatprep.subr.bf16.mxu1 %v3094_v1  ;;  %v3046_v13 = vld [vmem:[%s3691_s1 + $0x188] sm:$0xff]  }
  0x66   : > { %2722 = vmatmul.mubr.bf16.gmra.mxu1 %v3010_v11  ;;  %2742 = vmatpush3.bf16.msra.mxu0 %v3013_v14  ;;  %v2361_v11 = vcombine.low %v1387_v7, %v3474_v8  ;;  %v3053_v14 = vld [vmem:[%s3187_s16 + $0x30] sm:$0xff]  }
  0x67   : > { %2689 = vmatprep.mubr.msk.bf16.mxu0 %vm3095_vm0, %v3094_v1  ;;  %2725 = vmatprep.mubr.msk.bf16.mxu1 %vm3095_vm0, %v3094_v1  ;;  %v1665_v28 = vshrl.u32 %v3053_v14, 16 }
  0x68   : > { %2743 = vmatprep.subr.bf16.mxu0 %v3094_v1  ;;  %2778 = vmatpush3.bf16.msra.mxu1 %v3017_v16  ;;  %v1250_v16 = vshrl.u32 %v3042_v59, 16  ;;  %v1442_v18 = vshll.u32 %v2361_v11, 16  ;;  %v1465_v59 = vrot.slane %v1463_v54, 1 }
  0x69   : > { %2779 = vmatprep.subr.bf16.mxu1 %v3094_v1 }
  0x6a   : > { %2744 = vmatpush3.bf16.msra.mxu0 %v3018_v19  ;;  %v3049_v19 = vld [vmem:[%s3691_s1 + $0x180] sm:$0xff]   ;;  %v1252_v24 = vor.u32 %v1250_v16, %v1248_v6  ;;  %v1444_v26 = vrot.slane %v1442_v18, 1  ;;  %v3067_v18 = vld [vmem:[%s3691_s1 + $0x208] sm:$0xff]  }
  0x6b   : > { %2745 = vmatprep.subr.bf16.mxu0 %v3094_v1 }
  0x6c   : > { %2780 = vmatpush3.bf16.msra.mxu1 %v3019_v20  ;;  %v3054_v20 = vld [vmem:[%s3187_s16 + $0x38] sm:$0xff]  }
  0x6d   : > { %2690 = vmatmul.mubr.bf16.gmra.mxu0 %v658_v23  ;;  %2781 = vmatprep.subr.bf16.mxu1 %v3094_v1  ;;  %v3047_v23 = vld [vmem:[%s3187_s16 + $0xa4] ss:$0 sps:$4 sm:$0xff]   ;;  %v1676_v42 = vshrl.u32 %v3054_v20, 16 }
  0x6e   : > { %2726 = vmatmul.mubr.bf16.gmra.mxu1 %v3016_v21  ;;  %2693 = vmatprep.mubr.msk.bf16.mxu0 %vm3095_vm0, %v3094_v1  ;;  %v1667_v21 = vshll.u32 %v3053_v14, 16 }
  0x6f   : > { %2729 = vmatprep.mubr.msk.bf16.mxu1 %vm3095_vm0, %v3094_v1  ;;  %2746 = vmatpush3.bf16.msra.mxu0 %v3020_v22  ;;  %v3050_v22 = vld [vmem:[%s3691_s1 + $0x1c0] sm:$0xff]  }
  0x70   : > { %2782 = vmatpush3.bf16.msra.mxu1 %v3022_v25  ;;  %2747 = vmatprep.subr.bf16.mxu0 %v3094_v1  ;;  %v1440_v25 = vshrl.u32 %v2361_v11, 16  ;;  %v1669_v29 = vrot.slane %v1667_v21, 1  ;;  %v3068_v21 = vld [vmem:[%s3691_s1 + $0x200] sm:$0xff]  }
  0x71   : > { %2783 = vmatprep.subr.bf16.mxu1 %v3094_v1 }
  0x72   : > { %v1670_v34 = vor.u32 %v1669_v29, %v1665_v28  ;;  %v1864_v28 = vrot.slane %v3532_v47, 1 }
  0x73   : > { %2748 = vmatpush3.bf16.msra.mxu0 %v3023_v27  ;;  %v1447_v27 = vshll.u32 %v3496_v17, 16 }
  0x74   : > { %2784 = vmatpush3.bf16.msra.mxu1 %v3024_v30  ;;  %2805 = vmatprep.subr.bf16.mxu0 %v3094_v1  ;;  %v1672_v30 = vshll.u32 %v3054_v20, 16  ;;  %v1700_v20 = vshrl.u32 %v3065_v0, 16 }
  0x75   : > { %2694 = vmatmul.mubr.bf16.gmra.mxu0 %v661_v31  ;;  %2841 = vmatprep.subr.bf16.mxu1 %v3094_v1  ;;  %v1445_v31 = vor.u32 %v1444_v26, %v1440_v25 }
  0x76   : > { %2730 = vmatmul.mubr.bf16.gmra.mxu1 %v3021_v32  ;;  %2749 = vmatprep.mubr.msk.bf16.mxu0 %vm3095_vm0, %v3094_v1  ;;  %v1449_v32 = vrot.slane %v1447_v27, 1  ;;  %v1674_v35 = vrot.slane %v1672_v30, 1  ;;  %v1860_v27 = vrot.slane %v3496_v17, 1 }
  0x77   : > { %2785 = vmatprep.mubr.msk.bf16.mxu1 %vm3095_vm0, %v3094_v1 }
  0x78   : > { %v1450_v37 = vsel %vm622_vm1, %v1445_v31, %v1449_v32  ;;  %v1678_v48 = vor.u32 %v1676_v42, %v1674_v35  ;;  %v1862_v31 = vrot.slane %v3516_v33, 1 }
  0x7d   : > { %2750 = vmatmul.mubr.bf16.vlgmr.msra.gmra.mxu0 %v3025_v39  ;;  %v1451_v39 = vshrl.u32 %v3496_v17, 16  ;;  %v1863_v17 = vsel %vm1858_vm2, %v1860_v27, %v1862_v31 }
  0x7e   : > { %2786 = vmatmul.mubr.bf16.vlgmr.msra.gmra.mxu1 %v1225_v41  ;;  %2806 = vmatpush3.bf16.msra.mxu0 %v3028_v40  ;;  %v1455_v40 = vshll.u32 %v3516_v33, 16  ;;  %v1675_v41 = vsel %vm622_vm1, %v1670_v34, %v1674_v35 }
  0x7f   : > { %2807 = vmatprep.subr.bf16.mxu0 %v3094_v1  ;;  %2753 = vmatprep.mubr.msk.bf16.mxu0 %vm3095_vm0, %v3094_v1 }
  0x80   : > { %2789 = vmatprep.mubr.msk.bf16.mxu1 %vm3095_vm0, %v3094_v1  ;;  %2842 = vmatpush3.bf16.msra.mxu1 %v3032_v44  ;;  %v3056_v44 = vld [vmem:[%s3691_s1 + $0x230] sm:$0xff]   ;;  %v1457_v46 = vrot.slane %v1455_v40, 1 }
  0x81   : > { %2843 = vmatprep.subr.bf16.mxu1 %v3094_v1 }
  0x82   : > { %2808 = vmatpush3.bf16.msra.mxu0 %v3029_v45  ;;  %v1453_v45 = vor.u32 %v1451_v39, %v1449_v32  ;;  %v1461_v58 = vor.u32 %v1459_v53, %v1457_v46  ;;  %v1865_v32 = vsel %vm1858_vm2, %v1862_v31, %v1864_v28 }
  0x83   : > { %2809 = vmatprep.subr.bf16.mxu0 %v3094_v1 }
  0x84   : > { %2844 = vmatpush3.bf16.msra.mxu1 %v3034_v49  ;;  %v1682_v49 = vrot.slane %v1680_v43, 1  ;;  %v1466_v2 = vsel %vm622_vm1, %v1461_v58, %v1465_v59 }
  0x85   : > { %2754 = vmatmul.mubr.bf16.gmra.mxu0 %v3030_v50  ;;  %2845 = vmatprep.subr.bf16.mxu1 %v3094_v1  ;;  %v3061_v50 = vld [vmem:[%s3187_s16 + $0x48] sm:$0xff]  }
  0x86   : > { %2790 = vmatmul.mubr.bf16.gmra.mxu1 %v1233_v52  ;;  %2810 = vmatpush3.bf16.msra.mxu0 %v3033_v51  ;;  %v1458_v51 = vsel %vm622_vm1, %v1453_v45, %v1457_v46  ;;  %v3059_v52 = vld [vmem:[%s3691_s1 + $0x228] sm:$0xff]   ;;  %v1688_v57 = vshll.u32 %v3061_v50, 16  ;;  %v1692_v7 = vshrl.u32 %v3061_v50, 16 }
  0x87   : > { %2757 = vmatprep.mubr.msk.bf16.mxu0 %vm3095_vm0, %v3094_v1  ;;  %2793 = vmatprep.mubr.msk.bf16.mxu1 %vm3095_vm0, %v3094_v1 }
  0x88   : > { %2811 = vmatprep.subr.bf16.mxu0 %v3094_v1  ;;  %2846 = vmatpush3.bf16.msra.mxu1 %v3038_v55  ;;  %v1683_v55 = vsel %vm622_vm1, %v1678_v48, %v1682_v49 }
  0x89   : > { %2847 = vmatprep.subr.bf16.mxu1 %v3094_v1 }
  0x8a   : > { %2812 = vmatpush3.bf16.msra.mxu0 %v3037_v56  ;;  %v1684_v56 = vshrl.u32 %v3058_v36, 16 }
  0x8b   : > { %2813 = vmatprep.subr.bf16.mxu0 %v3094_v1 }
  0x8c   : > { %2848 = vmatpush3.bf16.msra.mxu1 %v3040_v60  ;;  %v3062_v60 = vld [vmem:[%s3691_s1 + $0x220] sm:$0xff]  }
  0x8d   : > { %2758 = vmatmul.mubr.bf16.gmra.mxu0 %v3035_v61  ;;  %2849 = vmatprep.subr.bf16.mxu1 %v3094_v1  ;;  %v3554_v61 = vld [vmem:[%s3187_s16 + $0x24] sm:$0x1f]  }
  0x8e   : > { %2794 = vmatmul.mubr.bf16.gmra.mxu1 %v1241_v63  ;;  %2814 = vmatpush3.bf16.msra.mxu0 %v3039_v62  ;;  %v1686_v62 = vor.u32 %v1684_v56, %v1682_v49  ;;  %v1690_v63 = vrot.slane %v1688_v57, 1  ;;  %v1471_v5 = vshll.u32 %v3554_v61, 16  ;;  %v1866_v29 = vrot.slane %v3554_v61, 1 }
  0x8f   : > { %2761 = vmatprep.mubr.msk.bf16.mxu0 %vm3095_vm0, %v3094_v1  ;;  %2797 = vmatprep.mubr.msk.bf16.mxu1 %vm3095_vm0, %v3094_v1 }
  0x90   : > { %2815 = vmatprep.subr.bf16.mxu0 %v3094_v1  ;;  %2850 = vmatpush3.bf16.msra.mxu1 %v3043_v3  ;;  %v3063_v3 = vld [vmem:[%s3691_s1 + $0x218] sm:$0xff]   ;;  %v1691_v6 = vsel %vm622_vm1, %v1686_v62, %v1690_v63  ;;  %v1473_v11 = vrot.slane %v1471_v5, 1 }
  0x91   : > { %2851 = vmatprep.subr.bf16.mxu1 %v3094_v1 }
  0x92   : > { %2816 = vmatpush3.bf16.msra.mxu0 %v3044_v4  ;;  %v1467_v4 = vshrl.u32 %v3532_v47, 16 }
  0x93   : > { %2817 = vmatprep.subr.bf16.mxu0 %v3094_v1 }
  0x94   : > { %2852 = vmatpush3.bf16.msra.mxu1 %v3045_v9  ;;  %v1696_v9 = vshll.u32 %v3065_v0, 16 }
  0x95   : > { %2762 = vmatmul.mubr.bf16.gmra.mxu0 %v3041_v10  ;;  %2853 = vmatprep.subr.bf16.mxu1 %v3094_v1  ;;  %v1469_v10 = vor.u32 %v1467_v4, %v1465_v59 }
  0x96   : > { %2798 = vmatmul.mubr.bf16.gmra.mxu1 %v1249_v12  ;;  %2765 = vmatprep.mubr.msk.bf16.mxu0 %vm3095_vm0, %v3094_v1  ;;  %v3066_v12 = vld [vmem:[%s3691_s1 + $0x210] sm:$0xff]   ;;  %v1698_v14 = vrot.slane %v1696_v9, 1 }
  0x97   : > { %2801 = vmatprep.mubr.msk.bf16.mxu1 %vm3095_vm0, %v3094_v1  ;;  %2818 = vmatpush3.bf16.msra.mxu0 %v3046_v13  ;;  %v1694_v13 = vor.u32 %v1692_v7, %v1690_v63 }
  0x98   : > { %2854 = vmatpush3.bf16.msra.mxu1 %v3048_v15  ;;  %2819 = vmatprep.subr.bf16.mxu0 %v3094_v1  ;;  %v1474_v15 = vsel %vm622_vm1, %v1469_v10, %v1473_v11 }
  0x99   : > { %2855 = vmatprep.subr.bf16.mxu1 %v3094_v1  ;;  %v1699_v16 = vsel %vm622_vm1, %v1694_v13, %v1698_v14 }
  0x9b   : > { %2820 = vmatpush3.bf16.msra.mxu0 %v3049_v19  ;;  %v1475_v19 = vshrl.u32 %v3554_v61, 16 }
  0x9c   : > { %2856 = vmatpush3.bf16.msra.mxu1 %v3050_v22  ;;  %2877 = vmatprep.subr.bf16.mxu0 %v3094_v1  ;;  %v1837_v22 = vld [vmem:[%s3187_s16 + $0x4] sm:$0xe] }
  0x9d   : > { %2766 = vmatmul.mubr.bf16.gmra.mxu0 %v3047_v23  ;;  %2913 = vmatprep.subr.bf16.mxu1 %v3094_v1  ;;  %v1477_v23 = vor.u32 %v1475_v19, %v1473_v11  ;;  %v2419_v25 = vcombine.low %v1837_v22, %v3474_v8  ;;  %v1867_v8 = vsel %vm1858_vm2, %v1864_v28, %v1866_v29 }
  0x9e   : > { %2802 = vmatmul.mubr.bf16.gmra.mxu1 %v1252_v24  ;;  %2821 = vmatprep.mubr.msk.bf16.mxu0 %vm3095_vm0, %v3094_v1  ;;  %v1702_v24 = vor.u32 %v1700_v20, %v1698_v14 }
  0x9f   : > { %2857 = vmatprep.mubr.msk.bf16.mxu1 %vm3095_vm0, %v3094_v1  ;;  %v1859_v26 = vrot.slane %v2419_v25, 1 }
  0xa1   : > { %v1861_v30 = vsel %vm1858_vm2, %v1859_v26, %v1860_v27 }
  0xa5   : > { %2822 = vmatmul.mubr.bf16.vlgmr.msra.gmra.mxu0 %v1450_v37 }
  0xa6   : > { %2858 = vmatmul.mubr.bf16.vlgmr.msra.gmra.mxu1 %v1675_v41  ;;  %2878 = vmatpush3.bf16.msra.mxu0 %v3055_v38 }
  0xa7   : > { %2879 = vmatprep.subr.bf16.mxu0 %v3094_v1  ;;  %2825 = vmatprep.mubr.msk.bf16.mxu0 %vm3095_vm0, %v3094_v1 }
  0xa8   : > { %2861 = vmatprep.mubr.msk.bf16.mxu1 %vm3095_vm0, %v3094_v1  ;;  %2921 = vmatpush3.bf16.msra.mxu1 %v3055_v38 }
  0xa9   : > { %2914 = vmatprep.subr.bf16.mxu1 %v3094_v1 }
  0xaa   : > { %2880 = vmatpush3.bf16.msra.mxu0 %v3056_v44 }
  0xab   : > { %2881 = vmatprep.subr.bf16.mxu0 %v3094_v1 }
  0xac   : > { %2922 = vmatpush3.bf16.msra.mxu1 %v3056_v44 }
  0xad   : > { %2826 = vmatmul.mubr.bf16.gmra.mxu0 %v1458_v51  ;;  %2915 = vmatprep.subr.bf16.mxu1 %v3094_v1 }
  0xae   : > { %2862 = vmatmul.mubr.bf16.gmra.mxu1 %v1683_v55  ;;  %2882 = vmatpush3.bf16.msra.mxu0 %v3059_v52 }
  0xaf   : > { %2829 = vmatprep.mubr.msk.bf16.mxu0 %vm3095_vm0, %v3094_v1  ;;  %2865 = vmatprep.mubr.msk.bf16.mxu1 %vm3095_vm0, %v3094_v1 }
  0xb0   : > { %2883 = vmatprep.subr.bf16.mxu0 %v3094_v1  ;;  %2923 = vmatpush3.bf16.msra.mxu1 %v3059_v52 }
  0xb1   : > { %2916 = vmatprep.subr.bf16.mxu1 %v3094_v1 }
  0xb2   : > { %2884 = vmatpush3.bf16.msra.mxu0 %v3062_v60 }
  0xb3   : > { %2885 = vmatprep.subr.bf16.mxu0 %v3094_v1 }
  0xb4   : > { %2924 = vmatpush3.bf16.msra.mxu1 %v3062_v60 }
  0xb5   : > { %2830 = vmatmul.mubr.bf16.gmra.mxu0 %v1466_v2  ;;  %2917 = vmatprep.subr.bf16.mxu1 %v3094_v1 }
  0xb6   : > { %2866 = vmatmul.mubr.bf16.gmra.mxu1 %v1691_v6  ;;  %2886 = vmatpush3.bf16.msra.mxu0 %v3063_v3 }
  0xb7   : > { %2833 = vmatprep.mubr.msk.bf16.mxu0 %vm3095_vm0, %v3094_v1  ;;  %2869 = vmatprep.mubr.msk.bf16.mxu1 %vm3095_vm0, %v3094_v1 }
  0xb8   : > { %2925 = vmatpush3.bf16.msra.mxu1 %v3063_v3  ;;  %2887 = vmatprep.subr.bf16.mxu0 %v3094_v1 }
  0xb9   : > { %2918 = vmatprep.subr.bf16.mxu1 %v3094_v1 }
  0xba   : > { %2888 = vmatpush3.bf16.msra.mxu0 %v3066_v12 }
  0xbb   : > { %2889 = vmatprep.subr.bf16.mxu0 %v3094_v1 }
  0xbc   : > { %2926 = vmatpush3.bf16.msra.mxu1 %v3066_v12 }
  0xbd   : > { %2834 = vmatmul.mubr.bf16.gmra.mxu0 %v1474_v15  ;;  %2919 = vmatprep.subr.bf16.mxu1 %v3094_v1 }
  0xbe   : > { %2870 = vmatmul.mubr.bf16.gmra.mxu1 %v1699_v16  ;;  %2837 = vmatprep.mubr.msk.bf16.mxu0 %vm3095_vm0, %v3094_v1 }
  0xbf   : > { %2873 = vmatprep.mubr.msk.bf16.mxu1 %vm3095_vm0, %v3094_v1  ;;  %2890 = vmatpush3.bf16.msra.mxu0 %v3067_v18 }
  0xc0   : > { %2927 = vmatpush3.bf16.msra.mxu1 %v3067_v18  ;;  %2891 = vmatprep.subr.bf16.mxu0 %v3094_v1 }
  0xc1   : > { %2920 = vmatprep.subr.bf16.mxu1 %v3094_v1 }
  0xc3   : > { %2892 = vmatpush3.bf16.msra.mxu0 %v3068_v21 }
  0xc4   : > { %2928 = vmatpush3.bf16.msra.mxu1 %v3068_v21 }
  0xc5   : > { %2838 = vmatmul.mubr.bf16.gmra.mxu0 %v1477_v23 }
  0xc6   : > { %2874 = vmatmul.mubr.bf16.gmra.mxu1 %v1702_v24  ;;  %2893 = vmatprep.mubr.msk.bf16.mxu0 %vm3095_vm0, %v3094_v1 }
  0xc7   : > { %2905 = vmatprep.mubr.msk.bf16.mxu1 %vm3095_vm0, %v3094_v1 }
  0xcd   : > { %2894 = vmatmul.mubr.bf16.vlgmr.msra.gmra.mxu0 %v1861_v30 }
  0xce   : > { %2906 = vmatmul.mubr.bf16.vlgmr.msra.gmra.mxu1 %v1867_v8  ;;  %2897 = vmatprep.mubr.msk.bf16.mxu0 %vm3095_vm0, %v3094_v1 }
  0xcf   : > { %2909 = vmatprep.mubr.msk.bf16.mxu1 %vm3095_vm0, %v3094_v1 }
  0xd5   : > { %2898 = vmatmul.mubr.bf16.gmra.mxu0 %v1863_v17 }
  0xd6   : > { %2910 = vmatmul.mubr.bf16.gmra.mxu1 %v1866_v29  ;;  %2901 = vmatprep.mubr.msk.bf16.mxu0 %vm3095_vm0, %v3094_v1 }
  0xdd   : > { %2902 = vmatmul.mubr.bf16.gmra.mxu0 %v1865_v32 }
  0xed   : > { %v384_v34 = vpop.f32.mrf.mxu0 }
  0xee   : > { %v532_v35 = vpop.f32.mrf.mxu1 }
  0xef   : > { %v533_v36 = vadd.f32 %v532_v35, %v384_v34  ;;  %v2607_v37 = vpop.f32.mrf.mxu0 }
  0xf0   : > { %v2643_v38 = vpop.f32.mrf.mxu1 }
  0xf1   : > { %v387_v39 = vpop.f32.mrf.mxu0 }
  0xf2   : > { %v535_v40 = vpop.f32.mrf.mxu1 }
  0xf3   : > { %v536_v41 = vadd.f32 %v535_v40, %v387_v39  ;;  %v2608_v33 = vpop.f32.mrf.mxu0 }
  0xf4   : > { %v2644_v42 = vpop.f32.mrf.mxu1 }
  0xf5   : > { %v392_v43 = vpop.f32.mrf.mxu0 }
  0xf6   : > { %v540_v44 = vpop.f32.mrf.mxu1 }
  0xf7   : > { %v541_v45 = vadd.f32 %v540_v44, %v392_v43  ;;  %v2611_v46 = vpop.f32.mrf.mxu0 }
  0xf8   : > { %v2647_v47 = vpop.f32.mrf.mxu1 }
  0xf9   : > { %v395_v48 = vpop.f32.mrf.mxu0 }
  0xfa   : > { %v543_v49 = vpop.f32.mrf.mxu1 }
  0xfb   : > { %v544_v1 = vadd.f32 %v543_v49, %v395_v48  ;;  %v2612_v50 = vpop.f32.mrf.mxu0 }
  0xfc   : > { %v2648_v51 = vpop.f32.mrf.mxu1 }
  0xfd   : > { %v400_v52 = vpop.f32.mrf.mxu0 }
  0xfe   : > { %v548_v53 = vpop.f32.mrf.mxu1 }
  0xff   : > { %v549_v54 = vadd.f32 %v548_v53, %v400_v52  ;;  %v2615_v55 = vpop.f32.mrf.mxu0 }
 0x100   : > { %v2651_v56 = vpop.f32.mrf.mxu1 }
 0x101   : > { %v403_v57 = vpop.f32.mrf.mxu0 }
 0x102   : > { %v551_v58 = vpop.f32.mrf.mxu1 }
 0x103   : > { %v552_v59 = vadd.f32 %v551_v58, %v403_v57  ;;  %v2616_v60 = vpop.f32.mrf.mxu0 }
 0x104   : > { %v2652_v61 = vpop.f32.mrf.mxu1 }
 0x105   : > { %v408_v62 = vpop.f32.mrf.mxu0 }
 0x106   : > { %v556_v63 = vpop.f32.mrf.mxu1 }
 0x107   : > { %v557_v0 = vadd.f32 %v556_v63, %v408_v62  ;;  %v2619_v2 = vpop.f32.mrf.mxu0 }
 0x108   : > { %v2655_v3 = vpop.f32.mrf.mxu1 }
 0x109   : > { %v411_v4 = vpop.f32.mrf.mxu0 }
 0x10a   : > { %v559_v5 = vpop.f32.mrf.mxu1 }
 0x10b   : > { %v560_v6 = vadd.f32 %v559_v5, %v411_v4  ;;  %v2620_v7 = vpop.f32.mrf.mxu0 }
 0x10c   : > { %v2656_v9 = vpop.f32.mrf.mxu1 }
 0x10d   : > { %v416_v10 = vpop.f32.mrf.mxu0 }
 0x10e   : > { %v564_v11 = vpop.f32.mrf.mxu1 }
 0x10f   : > { %v565_v12 = vadd.f32 %v564_v11, %v416_v10  ;;  %v2623_v13 = vpop.f32.mrf.mxu0 }
 0x110   : > { %v2659_v14 = vpop.f32.mrf.mxu1 }
 0x111   : > { %v419_v15 = vpop.f32.mrf.mxu0 }
 0x112   : > { %v567_v16 = vpop.f32.mrf.mxu1 }
 0x113   : > { %v2624_v18 = vpop.f32.mrf.mxu0 }
 0x114   : > { %v2660_v19 = vpop.f32.mrf.mxu1 }
 0x115   : > { %v749_v20 = vpop.f32.mrf.mxu0 }
 0x116   : > { %v787_v21 = vadd.f32 %v749_v20, %v533_v36  ;;  %v932_v22 = vpop.f32.mrf.mxu1 }
 0x117   : > { %v2679_v23 = vpop.f32.mrf.mxu0 }
 0x118   : > { %v970_v24 = vadd.f32 %v932_v22, %v787_v21  ;;  %v2715_v25 = vpop.f32.mrf.mxu1 }
 0x119   : > { %v752_v26 = vpop.f32.mrf.mxu0 }
 0x11a   : > { %v788_v27 = vadd.f32 %v752_v26, %v536_v41  ;;  %v935_v28 = vpop.f32.mrf.mxu1 }
 0x11b   : > { %v2680_v29 = vpop.f32.mrf.mxu0 }
 0x11c   : > { %v971_v30 = vadd.f32 %v935_v28, %v788_v27  ;;  %v2716_v8 = vpop.f32.mrf.mxu1 }
 0x11d   : > { %v757_v31 = vpop.f32.mrf.mxu0 }
 0x11e   : > { %v789_v17 = vadd.f32 %v757_v31, %v541_v45  ;;  %v940_v32 = vpop.f32.mrf.mxu1 }
 0x11f   : > { %v2683_v34 = vpop.f32.mrf.mxu0 }
 0x120   : > { %v972_v35 = vadd.f32 %v940_v32, %v789_v17  ;;  %v2719_v37 = vpop.f32.mrf.mxu1 }
 0x121   : > { %v760_v38 = vpop.f32.mrf.mxu0 }
 0x122   : > { %v790_v39 = vadd.f32 %v760_v38, %v544_v1  ;;  %v943_v40 = vpop.f32.mrf.mxu1 }
 0x123   : > { %v2684_v36 = vpop.f32.mrf.mxu0 }
 0x124   : > { %v973_v33 = vadd.f32 %v943_v40, %v790_v39  ;;  %v2720_v42 = vpop.f32.mrf.mxu1 }
 0x125   : > { %v765_v43 = vpop.f32.mrf.mxu0 }
 0x126   : > { %v791_v44 = vadd.f32 %v765_v43, %v549_v54  ;;  %v948_v46 = vpop.f32.mrf.mxu1 }
 0x127   : > { %v2687_v41 = vpop.f32.mrf.mxu0 }
 0x128   : > { %v974_v47 = vadd.f32 %v948_v46, %v791_v44  ;;  %v2723_v48 = vpop.f32.mrf.mxu1 }
 0x129   : > { %v768_v49 = vpop.f32.mrf.mxu0 }
 0x12a   : > { %v792_v50 = vadd.f32 %v768_v49, %v552_v59  ;;  %v951_v51 = vpop.f32.mrf.mxu1 }
 0x12b   : > { %v2688_v45 = vpop.f32.mrf.mxu0 }
 0x12c   : > { %v975_v52 = vadd.f32 %v951_v51, %v792_v50  ;;  %v2724_v53 = vpop.f32.mrf.mxu1 }
 0x12d   : > { %v773_v55 = vpop.f32.mrf.mxu0 }
 0x12e   : > { %v793_v56 = vadd.f32 %v773_v55, %v557_v0  ;;  %v956_v57 = vpop.f32.mrf.mxu1 }
 0x12f   : > { %v2691_v1 = vpop.f32.mrf.mxu0 }
 0x130   : > { %v3614_v58 = vadd.f32 %v956_v57, %v793_v56  ;;  %v2727_v60 = vpop.f32.mrf.mxu1 }
 0x131   : > { %v776_v61 = vpop.f32.mrf.mxu0 }
 0x132   : > { %v794_v62 = vadd.f32 %v776_v61, %v560_v6  ;;  %v959_v54 = vpop.f32.mrf.mxu1 }
 0x133   : > { %v2692_v63 = vpop.f32.mrf.mxu0 }
 0x134   : > { %v3616_v2 = vadd.f32 %v959_v54, %v794_v62  ;;  %v2728_v3 = vpop.f32.mrf.mxu1 }
 0x135   : > { %v781_v4 = vpop.f32.mrf.mxu0 }
 0x136   : > { %v795_v59 = vadd.f32 %v781_v4, %v565_v12  ;;  %v964_v5 = vpop.f32.mrf.mxu1 }
 0x137   : > { %v2695_v7 = vpop.f32.mrf.mxu0 }
 0x138   : > { %v3618_v9 = vadd.f32 %v964_v5, %v795_v59  ;;  %v2731_v10 = vpop.f32.mrf.mxu1 }
 0x139   : > { %v784_v0 = vpop.f32.mrf.mxu0 }
 0x13a   : > { %v967_v11 = vpop.f32.mrf.mxu1 }
 0x13b   : > { %v2696_v13 = vpop.f32.mrf.mxu0 }
 0x13c   : > { %v2732_v14 = vpop.f32.mrf.mxu1 }
 0x13d   : > { %v1115_v15 = vpop.f32.mrf.mxu0 }
 0x13e   : > { %v1153_v16 = vadd.f32 %v1115_v15, %v970_v24  ;;  %v1340_v18 = vpop.f32.mrf.mxu1 }
 0x13f   : > { %v2751_v6 = vpop.f32.mrf.mxu0 }
 0x140   : > { %v3620_v19 = vadd.f32 %v1340_v18, %v1153_v16  ;;  %v2787_v20 = vpop.f32.mrf.mxu1 }
 0x141   : > { %v1118_v21 = vpop.f32.mrf.mxu0 }
 0x142   : > { %v1154_v22 = vadd.f32 %v1118_v21, %v971_v30  ;;  %v1343_v23 = vpop.f32.mrf.mxu1 }
 0x143   : > { %v2752_v12 = vpop.f32.mrf.mxu0 }
 0x144   : > { %v3622_v25 = vadd.f32 %v1343_v23, %v1154_v22  ;;  %v2788_v26 = vpop.f32.mrf.mxu1 }
 0x145   : > { %v1123_v27 = vpop.f32.mrf.mxu0 }
 0x146   : > { %v1155_v28 = vadd.f32 %v1123_v27, %v972_v35  ;;  %v1348_v29 = vpop.f32.mrf.mxu1 }
 0x147   : > { %v2755_v8 = vpop.f32.mrf.mxu0 }
 0x148   : > { %v3624_v31 = vadd.f32 %v1348_v29, %v1155_v28  ;;  %v2791_v17 = vpop.f32.mrf.mxu1 }
 0x149   : > { %v1126_v24 = vpop.f32.mrf.mxu0 }
 0x14a   : > { %v1156_v32 = vadd.f32 %v1126_v24, %v973_v33  ;;  %v1351_v34 = vpop.f32.mrf.mxu1 }
 0x14b   : > { %v2756_v37 = vpop.f32.mrf.mxu0 }
 0x14c   : > { %v3626_v38 = vadd.f32 %v1351_v34, %v1156_v32  ;;  %v2792_v39 = vpop.f32.mrf.mxu1 }
 0x14d   : > { %v1131_v30 = vpop.f32.mrf.mxu0 }
 0x14e   : > { %v1157_v40 = vadd.f32 %v1131_v30, %v974_v47  ;;  %v1356_v36 = vpop.f32.mrf.mxu1 }
 0x14f   : > { %v2759_v42 = vpop.f32.mrf.mxu0 }
 0x150   : > { %v3628_v43 = vadd.f32 %v1356_v36, %v1157_v40  ;;  %v2795_v44 = vpop.f32.mrf.mxu1 }
 0x151   : > { %v1134_v35 = vpop.f32.mrf.mxu0 }
 0x152   : > { %v1158_v46 = vadd.f32 %v1134_v35, %v975_v52  ;;  %v1359_v41 = vpop.f32.mrf.mxu1 }
 0x153   : > { %v2760_v48 = vpop.f32.mrf.mxu0 }
 0x154   : > { %v3630_v49 = vadd.f32 %v1359_v41, %v1158_v46  ;;  %v2796_v50 = vpop.f32.mrf.mxu1 }
 0x155   : > { %v1139_v33 = vpop.f32.mrf.mxu0 }
 0x156   : > { %v1364_v51 = vpop.f32.mrf.mxu1  ;;  %v1159_v40 = vadd.f32 %v1139_v33, %v3614_v58 }
 0x157   : > { %v2763_v45 = vpop.f32.mrf.mxu0 }
 0x158   : > { %v2799_v53 = vpop.f32.mrf.mxu1  ;;  %v1384_v46 = vadd.f32 %v1364_v51, %v1159_v40 }
 0x159   : > { %v1142_v55 = vpop.f32.mrf.mxu0 }
 0x15a   : > { %v1367_v56 = vpop.f32.mrf.mxu1  ;;  %v1160_v41 = vadd.f32 %v1142_v55, %v3616_v2 }
 0x15b   : > { %v2764_v57 = vpop.f32.mrf.mxu0 }
 0x15c   : > { %v2800_v47 = vpop.f32.mrf.mxu1 }
 0x15d   : > { %v1147_v1 = vpop.f32.mrf.mxu0 }
 0x15e   : > { %v1372_v60 = vpop.f32.mrf.mxu1 }
 0x15f   : > { %v2767_v61 = vpop.f32.mrf.mxu0 }
 0x160   : > { %v2803_v62 = vpop.f32.mrf.mxu1  ;;  %v1385_v61 = vadd.f32 %v1367_v56, %v1160_v41 }
 0x161   : > { %v1150_v54 = vpop.f32.mrf.mxu0  ;;  %v1161_v62 = vadd.f32 %v1147_v1, %v3618_v9 }
 0x162   : > { %v1375_v63 = vpop.f32.mrf.mxu1 }
 0x163   : > { %v2768_v52 = vpop.f32.mrf.mxu0  ;;  %v1386_v55 = vadd.f32 %v1372_v60, %v1161_v62 }
 0x164   : > { %v2804_v3 = vpop.f32.mrf.mxu1 }
 0x165   : > { %v1565_v4 = vpop.f32.mrf.mxu0 }
 0x166   : > { %v1790_v59 = vpop.f32.mrf.mxu1  ;;  %v1603_v50 = vadd.f32 %v1565_v4, %v3620_v19  ;;  %v3650_v19 = vld [vmem:[%s3692_s2] ss:$0 sm:$0xff] }
 0x167   : > { %v2823_v5 = vpop.f32.mrf.mxu0 }
 0x168   : > { %v2859_v7 = vpop.f32.mrf.mxu1  ;;  %v1828_v63 = vadd.f32 %v1790_v59, %v1603_v50 }
 0x169   : > { %v1568_v10 = vpop.f32.mrf.mxu0 }
 0x16a   : > { %v1793_v0 = vpop.f32.mrf.mxu1  ;;  %v1604_v58 = vadd.f32 %v1568_v10, %v3622_v25 }
 0x16b   : > { %v2824_v11 = vpop.f32.mrf.mxu0 }
 0x16c   : > { %v2860_v13 = vpop.f32.mrf.mxu1  ;;  %v1829_v9 = vadd.f32 %v1793_v0, %v1604_v58 }
 0x16d   : > { %v1573_v14 = vpop.f32.mrf.mxu0 }
 0x16e   : > { %v1798_v15 = vpop.f32.mrf.mxu1  ;;  %v1605_v1 = vadd.f32 %v1573_v14, %v3624_v31 }
 0x16f   : > { %v2827_v16 = vpop.f32.mrf.mxu0 }
 0x170   : > { %v2863_v18 = vpop.f32.mrf.mxu1 }
 0x171   : > { %v1576_v6 = vpop.f32.mrf.mxu0 }
 0x172   : > { %v3632_v20 = vpop.f32.mrf.mxu1 }
 0x173   : > { %v2828_v21 = vpop.f32.mrf.mxu0 }
 0x174   : > { %v2864_v22 = vpop.f32.mrf.mxu1 }
 0x175   : > { %v3634_v23 = vpop.f32.mrf.mxu0  ;;  %v1830_v22 = vadd.f32 %v1798_v15, %v1605_v1 }
 0x176   : > { %v3636_v12 = vpop.f32.mrf.mxu1 }
 0x177   : > { %v2831_v26 = vpop.f32.mrf.mxu0 }
 0x178   : > { %v2867_v27 = vpop.f32.mrf.mxu1  ;;  %v1606_v26 = vadd.f32 %v1576_v6, %v3626_v38 }
 0x179   : > { %v3638_v28 = vpop.f32.mrf.mxu0 }
 0x17a   : > { %v3640_v29 = vpop.f32.mrf.mxu1 }
 0x17b   : > { %v2832_v8 = vpop.f32.mrf.mxu0 }
 0x17c   : > { %v2868_v17 = vpop.f32.mrf.mxu1 }
 0x17d   : > { %v1589_v24 = vpop.f32.mrf.mxu0 }
 0x17e   : > { %v1814_v32 = vpop.f32.mrf.mxu1  ;;  %v1609_v53 = vadd.f32 %v1589_v24, %v1384_v46 }
 0x17f   : > { %v2835_v34 = vpop.f32.mrf.mxu0 }
 0x180   : > { %v2871_v37 = vpop.f32.mrf.mxu1  ;;  %v1834_v52 = vadd.f32 %v1814_v32, %v1609_v53 }
 0x181   : > { %v1592_v39 = vpop.f32.mrf.mxu0 }
 0x182   : > { %v1817_v30 = vpop.f32.mrf.mxu1  ;;  %v1610_v3 = vadd.f32 %v1592_v39, %v1385_v61  ;;  %v1831_v39 = vadd.f32 %v3632_v20, %v1606_v26 }
 0x183   : > { %v2836_v36 = vpop.f32.mrf.mxu0 }
 0x184   : > { %v2872_v42 = vpop.f32.mrf.mxu1  ;;  %v1835_v25 = vadd.f32 %v1817_v30, %v1610_v3  ;;  %v1607_v30 = vadd.f32 %v3634_v23, %v3628_v43  ;;  %v1608_v43 = vadd.f32 %v3638_v28, %v3630_v49 }
 0x185   : > { %v1597_v44 = vpop.f32.mrf.mxu0 }
 0x186   : > { %v1822_v35 = vpop.f32.mrf.mxu1  ;;  %v1611_v7 = vadd.f32 %v1597_v44, %v1386_v55  ;;  %v1832_v20 = vadd.f32 %v3636_v12, %v1607_v30  ;;  %v1833_v58 = vadd.f32 %v3640_v29, %v1608_v43 }
 0x187   : > { %v2839_v48 = vpop.f32.mrf.mxu0 }
 0x188   : > { %v2875_v45 = vpop.f32.mrf.mxu1  ;;  %v1836_v31 = vadd.f32 %v1822_v35, %v1611_v7 }
 0x189   : > { %v1600_v57 = vpop.f32.mrf.mxu0 }
 0x18a   : > { %v1825_v47 = vpop.f32.mrf.mxu1 }
 0x18b   : > { %v2840_v54 = vpop.f32.mrf.mxu0 }
 0x18c   : > { %v2876_v33 = vpop.f32.mrf.mxu1 }
 0x18d   : > { %v1955_v51 = vpop.f32.mrf.mxu0 }
 0x18e   : > { %v1993_v5 = vadd.f32 %v1955_v51, %v1828_v63  ;;  %v1979_v2 = vpop.f32.mrf.mxu1 }
 0x18f   : > { %v1999_v56 = vadd.f32 %v1979_v2, %v1834_v52  ;;  %v2895_v4 = vpop.f32.mrf.mxu0 }
 0x190   : > { %v2907_v59 = vpop.f32.mrf.mxu1  ;;  %v2009_v11 = vadd.f32 %v3650_v19, %v1993_v5 }
 0x191   : > { %v1958_v10 = vpop.f32.mrf.mxu0  ;;  %v2015_v60 = vadd.f32 %v3650_v19, %v1999_v56 }
 0x192   : > { %v1994_v13 = vadd.f32 %v1958_v10, %v1829_v9  ;;  %v1982_v16 = vpop.f32.mrf.mxu1  ;;  %v2018_v17 = vmax.f32 %v2009_v11, 0.0 }
 0x193   : > { %v2000_v18 = vadd.f32 %v1982_v16, %v1835_v25  ;;  %v2896_v21 = vpop.f32.mrf.mxu0  ;;  %v2024_v37 = vmax.f32 %v2015_v60, 0.0 }
 0x194   : > { %v2010_v0 = vadd.f32 %v3650_v19, %v1994_v13  ;;  %v2908_v27 = vpop.f32.mrf.mxu1 }
 0x195   : > { %v2016_v14 = vadd.f32 %v3650_v19, %v2000_v18  ;;  %v1963_v8 = vpop.f32.mrf.mxu0 }
 0x196   : > { %v2019_v24 = vmax.f32 %v2010_v0, 0.0  ;;  %v1995_v32 = vadd.f32 %v1963_v8, %v1830_v22  ;;  %v1987_v34 = vpop.f32.mrf.mxu1 }
 0x197   : > { %v2025_v38 = vmax.f32 %v2016_v14, 0.0  ;;  %v2001_v15 = vadd.f32 %v1987_v34, %v1836_v31  ;;  %v2899_v6 = vpop.f32.mrf.mxu0 }
 0x198   : > { %v2452_v40 = vpack.c.bf16 %v2019_v24, %v2018_v17  ;;  %v2911_v36 = vpop.f32.mrf.mxu1  ;;  %v2011_v46 = vadd.f32 %v3650_v19, %v1995_v32 }
 0x199   : > { %v2467_v42 = vpack.c.bf16 %v2025_v38, %v2024_v37  ;;  %v2017_v44 = vadd.f32 %v3650_v19, %v2001_v15  ;;  %v1966_v35 = vpop.f32.mrf.mxu0 }
 0x19a   : > { %2453 = vst [vmem:[%s3662_s12] sm:$0xff] %v2452_v40   ;;  %v1996_v41 = vadd.f32 %v1966_v35, %v1831_v39  ;;  %v1990_v48 = vpop.f32.mrf.mxu1  ;;  %v2020_v61 = vmax.f32 %v2011_v46, 0.0 }
 0x19b   : > { %2471 = vst [vmem:[%s3662_s12 + $0x18] sm:$0xff] %v2467_v42   ;;  %v2026_v50 = vmax.f32 %v2017_v44, 0.0  ;;  %v2900_v45 = vpop.f32.mrf.mxu0 }
 0x19c   : > { %v2012_v23 = vadd.f32 %v3650_v19, %v1996_v41  ;;  %v2912_v53 = vpop.f32.mrf.mxu1 }
 0x19d   : > { %v2448_v57 = vpack.c.bf16 %v2026_v50, %v2026_v50  ;;  %v1971_v47 = vpop.f32.mrf.mxu0 }
 0x19e   : > { %v2021_v62 = vmax.f32 %v2012_v23, 0.0  ;;  %v1997_v54 = vadd.f32 %v1971_v47, %v1832_v20 }
 0x19f   : > { %2072 = vst [vmem:[%s3662_s12 + $0x20] sm:$0xf] %v2448_v57  ;;  %v2903_v63 = vpop.f32.mrf.mxu0 }
 0x1a0   : > { %v2457_v33 = vpack.c.bf16 %v2021_v62, %v2020_v61  ;;  %v2013_v12 = vadd.f32 %v3650_v19, %v1997_v54 }
 0x1a1   : > { %v1974_v52 = vpop.f32.mrf.mxu0 }
 0x1a2   : > { %2469 = vst [vmem:[%s3662_s12 + $0x8] sm:$0xff] %v2457_v33   ;;  %v1998_v3 = vadd.f32 %v1974_v52, %v1833_v58  ;;  %v2022_v51 = vmax.f32 %v2013_v12, 0.0 }
 0x1a3   : > { %v2904_v49 = vpop.f32.mrf.mxu0 }
 0x1a4   : > { %v2014_v28 = vadd.f32 %v3650_v19, %v1998_v3 }
 0x1a6   : > { %v2023_v5 = vmax.f32 %v2014_v28, 0.0 }
 0x1a8   : > { %v2462_v2 = vpack.c.bf16 %v2023_v5, %v2022_v51 }
 0x1aa   : > { %2470 = vst [vmem:[%s3662_s12 + $0x10] sm:$0xff] %v2462_v2  }
 0x1ab PF: > { %s13_s14 = sadd.s32 1, %s3092_s14   ;;  %s3694_s12 = smov %s3088_s13 }
 0x1ac   : > { %p10_p5 = scmp.ge.s32.totalorder %s13_s14, 4   ;;  %s3695_s13 = smov %s3697_s15 }
 0x1ae   :  { %12 = sbr.rel (!%p10_p5) target bundleno = 2 (0x2), region = 76 }

// kernel: dan_resnetv2_forward.20
= control target key start
LH: loop header
LB: loop body
LE: loop exit
PB: predicated region body
PF: predicated region fallthrough
CT: control target
= control target key end

     0   :  { %s3155_s15 = smov 0   ;;  %s3157_s16 = smov 0   ;;  %s3843_s0 = inlined_call_operand.vmem [shape: bf16[2,104,128], index: 0, kind: input, shape index: {}]   ;;  %s3844_s1 = inlined_call_operand.vmem [shape: bf16[9,128,128], index: 1, kind: input, shape index: {}]   ;;  %s3845_s2 = inlined_call_operand.vmem [shape: f32[1,128], index: 2, kind: input, shape index: {}]   ;;  %s3846_s3 = inlined_call_operand.vmem [shape: bf16[2,80,128], index: 3, kind: input, shape index: {}]   ;;  %s3847_s4 = inlined_call_operand.vmem [shape: bf16[2,80,128], index: 4, kind: output, shape index: {}]  }
   0x1   :  { %s3159_s17 = smov 0  }
   0x2 LB: > { %s26_s18 = sadd.s32 1, %s3122_s16  ;;  %p2221_p0 = scmp.ge.s32.totalorder %s3126_s17, 1  ;;  %s3126_s17 = sphi %s3159_s17, %s14_s17   ;;  %s3122_s16 = sphi %s3157_s16, %s3849_s16   ;;  %s3118_s15 = sphi %s3155_s15, %s3848_s15  }
   0x3   : > { %p28_p1 = scmp.ge.s32.totalorder %s26_s18, 2  ;;  %p208_p2 = scmp.lt.s32.totalorder %s3126_s17, 3 }
   0x5   : > { %s3851_s18 = smov (%p28_p1, %s26_s18), 0  ;;  %p209_p3 = pnand %p2221_p0, %p208_p2 }
   0x6   : > { %p252_p4 = scmp.lt.s32.totalorder (!%p209_p3), %s3118_s15, 1 }
   0x7   : > { %212 = sbr.rel (%p209_p3) target bundleno = 429 (0x1ad), region = 36 }
   0xc   : > { %v3009_v0 = vld [vmem:[%s3844_s1 + $0x78] sm:$0xff]   ;;  %v3128_v1 = vmov 0.0   ;;  %v3011_v3 = vld [vmem:[%s3844_s1 + $0x70] sm:$0xff]   ;;  %vm3129_vm0 = vmmov 0   ;;  %s3853_s15 = smov (!%p252_p4, %s3118_s15), 1  ;;  %v3013_v5 = vld [vmem:[%s3844_s1 + $0x68] sm:$0xff]  }
   0xd   : > { %2641 = vmatprep.subr.bf16.mxu0 %v3128_v1  ;;  %2677 = vmatprep.subr.bf16.mxu1 %v3128_v1  ;;  %v3010_v2 = vld [vmem:[%s3844_s1 + $0x38] sm:$0xff]   ;;  %v3012_v4 = vld [vmem:[%s3844_s1 + $0x30] sm:$0xff]   ;;  %v3014_v6 = vld [vmem:[%s3844_s1 + $0x28] sm:$0xff]   ;;  %s2981_s5 = smul.u32 52, %s3853_s15  ;;  %vm353_vm1 = vsmask.f32 7424 }
   0xe   : > { %2642 = vmatpush3.bf16.msra.mxu0 %v3009_v0  ;;  %2657 = vmatprep.mubr.msk.bf16.mxu0 %vm3129_vm0, %v3128_v1  ;;  %v3015_v7 = vld [vmem:[%s3844_s1 + $0x60] sm:$0xff]   ;;  %v3017_v9 = vld [vmem:[%s3844_s1 + $0x58] sm:$0xff]   ;;  %v3019_v13 = vld [vmem:[%s3844_s1 + $0x50] sm:$0xff]   ;;  %vm671_vm2 = vcmask 1046528   ;;  %vm1043_vm3 = vsmask.f32 6400 }
   0xf   : > { %2678 = vmatpush3.bf16.msra.mxu1 %v3010_v2  ;;  %2643 = vmatprep.subr.bf16.mxu0 %v3128_v1  ;;  %v3016_v8 = vld [vmem:[%s3844_s1 + $0x20] sm:$0xff]   ;;  %s3215_s12 = scalar_lea.vmem %s3843_s0, %s2981_s5  ;;  %v3018_v10 = vld [vmem:[%s3844_s1 + $0x18] sm:$0xff]   ;;  %v3020_v16 = vld [vmem:[%s3844_s1 + $0x10] sm:$0xff]   ;;  %vm1254_vm4 = vcmask 1045504   ;;  %vm1626_vm5 = vsmask.f32 5376 }
  0x10   : > { %2679 = vmatprep.subr.bf16.mxu1 %v3128_v1  ;;  %2693 = vmatprep.mubr.msk.bf16.mxu1 %vm3129_vm0, %v3128_v1  ;;  %v281_v11 = vld [vmem:[%s3215_s12] sm:$0xf]  ;;  %v3227_v12 = vld [vmem:[%s3215_s12 + $0x4] sm:$0xf]  ;;  %v3234_v15 = vld [vmem:[%s3215_s12 + $0x8] sm:$0xff]   ;;  %vm1837_vm6 = vcmask 1044480  }
  0x11   : > { %v2241_v14 = vcombine.low %v281_v11, %v3227_v12  ;;  %v3021_v18 = vld [vmem:[%s3844_s1 + $0x48] sm:$0xff]   ;;  %v362_v21 = vshll.u32 %v3234_v15, 16  ;;  %v3023_v23 = vld [vmem:[%s3844_s1 + $0x40] sm:$0xff]   ;;  %v3257_v27 = vld [vmem:[%s3215_s12 + $0x10] sm:$0xff]   ;;  %v366_v30 = vshrl.u32 %v3234_v15, 16 }
  0x12   : > { %2644 = vmatpush3.bf16.msra.mxu0 %v3011_v3  ;;  %v3022_v22 = vld [vmem:[%s3844_s1 + $0x8] sm:$0xff]   ;;  %v3024_v24 = vld [vmem:[%s3844_s1] sm:$0xff]   ;;  %v3027_v28 = vld [vmem:[%s3844_s1 + $0xb8] sm:$0xff]   ;;  %v370_v31 = vshll.u32 %v3257_v27, 16  ;;  %v374_v41 = vshrl.u32 %v3257_v27, 16 }
  0x13   : > { %2680 = vmatpush3.bf16.msra.mxu1 %v3012_v4  ;;  %2645 = vmatprep.subr.bf16.mxu0 %v3128_v1  ;;  %v357_v17 = vshll.u32 %v2241_v14, 16  ;;  %v355_v19 = vshrl.u32 %v2241_v14, 16  ;;  %v364_v26 = vrot.slane %v362_v21, 1  ;;  %v3030_v32 = vld [vmem:[%s3844_s1 + $0xf8] sm:$0xff]   ;;  %v3028_v34 = vld [vmem:[%s3844_s1 + $0xb0] sm:$0xff]   ;;  %v3031_v40 = vld [vmem:[%s3844_s1 + $0xa8] sm:$0xff]  }
  0x14   : > { %2681 = vmatprep.subr.bf16.mxu1 %v3128_v1  ;;  %v3273_v33 = vld [vmem:[%s3215_s12 + $0x18] sm:$0xff]   ;;  %v372_v36 = vrot.slane %v370_v31, 1  ;;  %v3032_v37 = vld [vmem:[%s3844_s1 + $0xf0] sm:$0xff]   ;;  %v3035_v42 = vld [vmem:[%s3844_s1 + $0xe8] sm:$0xff]   ;;  %v675_v21 = vrot.slane %v3257_v27, 1 }
  0x15   : > { %v359_v20 = vrot.slane %v357_v17, 1  ;;  %v368_v35 = vor.u32 %v366_v30, %v364_v26  ;;  %v378_v38 = vshll.u32 %v3273_v33, 16  ;;  %v3034_v44 = vld [vmem:[%s3844_s1 + $0xa0] sm:$0xff]   ;;  %v3036_v48 = vld [vmem:[%s3844_s1 + $0x98] sm:$0xff]   ;;  %v382_v50 = vshrl.u32 %v3273_v33, 16  ;;  %v3040_v56 = vld [vmem:[%s3844_s1 + $0x90] sm:$0xff]  }
  0x16   : > { %2646 = vmatpush3.bf16.msra.mxu0 %v3013_v5  ;;  %v3302_v45 = vld [vmem:[%s3215_s12 + $0x20] sm:$0xff]   ;;  %v376_v46 = vor.u32 %v374_v41, %v372_v36  ;;  %v3039_v52 = vld [vmem:[%s3844_s1 + $0xd8] sm:$0xff]   ;;  %v3325_v53 = vld [vmem:[%s3215_s12 + $0x28] ss:$0 sps:$4 sm:$0x11]  }
  0x17   : > { %2682 = vmatpush3.bf16.msra.mxu1 %v3014_v6  ;;  %2647 = vmatprep.subr.bf16.mxu0 %v3128_v1  ;;  %v360_v25 = vor.u32 %v359_v20, %v355_v19  ;;  %v373_v39 = vsel %vm353_vm1, %v368_v35, %v372_v36  ;;  %v380_v43 = vrot.slane %v378_v38, 1  ;;  %v3037_v47 = vld [vmem:[%s3844_s1 + $0xe0] sm:$0xff]   ;;  %v386_v51 = vshll.u32 %v3302_v45, 16  ;;  %v3041_v57 = vld [vmem:[%s3844_s1 + $0xd0] sm:$0xff]   ;;  %v3042_v61 = vld [vmem:[%s3844_s1 + $0x88] sm:$0xff]  }
  0x18   : > { %2683 = vmatprep.subr.bf16.mxu1 %v3128_v1  ;;  %v390_v59 = vshrl.u32 %v3302_v45, 16  ;;  %v394_v60 = vshll.u32 %v3325_v53, 16  ;;  %v3044_v62 = vld [vmem:[%s3844_s1 + $0xc8] sm:$0xff]   ;;  %v3045_v63 = vld [vmem:[%s3844_s1 + $0x80] sm:$0xff]   ;;  %v3050_v17 = vld [vmem:[%s3844_s1 + $0x138] sm:$0xff]   ;;  %v679_v38 = vrot.slane %v3302_v45, 1 }
  0x19   : > { %v365_v29 = vsel %vm353_vm1, %v360_v25, %v364_v26  ;;  %v381_v49 = vsel %vm353_vm1, %v376_v46, %v380_v43  ;;  %v384_v54 = vor.u32 %v382_v50, %v380_v43  ;;  %v388_v55 = vrot.slane %v386_v51, 1  ;;  %v3046_v3 = vld [vmem:[%s3844_s1 + $0xc0] sm:$0xff]   ;;  %v3367_v6 = vld [vmem:[%s3215_s12 + $0x8] sm:$0xf]  ;;  %v3394_v19 = vld [vmem:[%s3215_s12 + $0x14] sm:$0xff]  }
  0x1a   : > { %2648 = vmatpush3.bf16.msra.mxu0 %v3015_v7  ;;  %v396_v2 = vrot.slane %v394_v60, 1  ;;  %v650_v4 = vld [vmem:[%s3215_s12] sm:$0xe]  ;;  %v819_v5 = vld [vmem:[%s3215_s12 + $0x4] sm:$0xe]  ;;  %v3051_v20 = vld [vmem:[%s3844_s1 + $0x130] sm:$0xff]  }
  0x1b   : > { %2684 = vmatpush3.bf16.msra.mxu1 %v3016_v8  ;;  %2649 = vmatprep.subr.bf16.mxu0 %v3128_v1  ;;  %v389_v58 = vsel %vm353_vm1, %v384_v54, %v388_v55  ;;  %v392_v0 = vor.u32 %v390_v59, %v388_v55  ;;  %v2279_v8 = vcombine.low %v650_v4, %v3227_v12  ;;  %v673_v12 = vrot.slane %v3234_v15, 1  ;;  %v3054_v25 = vld [vmem:[%s3844_s1 + $0x128] sm:$0xff]   ;;  %v3057_v30 = vld [vmem:[%s3844_s1 + $0x120] sm:$0xff]   ;;  %v3064_v41 = vld [vmem:[%s3844_s1 + $0x150] sm:$0xff]  }
  0x1c   : > { %2685 = vmatprep.subr.bf16.mxu1 %v3128_v1  ;;  %v3447_v36 = vld [vmem:[%s3215_s12 + $0x24] sm:$0xff]   ;;  %v3066_v43 = vld [vmem:[%s3215_s12 + $0x2c] ss:$0 sps:$4 sm:$0x11]  }
  0x1d   : > { %v397_v7 = vsel %vm353_vm1, %v392_v0, %v396_v2  ;;  %v672_v11 = vrot.slane %v2279_v8, 1  ;;  %v3067_v46 = vld [vmem:[%s3844_s1 + $0x148] sm:$0xff]   ;;  %v3069_v54 = vld [vmem:[%s3844_s1 + $0x140] sm:$0xff]   ;;  %v1062_v2 = vshrl.u32 %v3394_v19, 16 }
  0x1e   : > { %2650 = vmatpush3.bf16.msra.mxu0 %v3017_v9  ;;  %v3373_v9 = vcombine.low %v819_v5, %v3367_v6  ;;  %v1233_v55 = vld [vmem:[%s3215_s12 + $0x4] sm:$0xc] }
  0x1f   : > { %2686 = vmatpush3.bf16.msra.mxu1 %v3018_v10  ;;  %2651 = vmatprep.subr.bf16.mxu0 %v3128_v1  ;;  %v3376_v10 = vld [vmem:[%s3215_s12 + $0xc] sm:$0xff]   ;;  %v1064_v8 = vrot.slane %v1062_v2, 1 }
  0x20   : > { %2687 = vmatprep.subr.bf16.mxu1 %v3128_v1  ;;  %v1053_v50 = vshrl.u32 %v3376_v10, 16  ;;  %v1056_v51 = vshll.u32 %v3376_v10, 16  ;;  %v1256_v5 = vrot.slane %v3376_v10, 2 }
  0x22   : > { %2652 = vmatpush3.bf16.msra.mxu0 %v3019_v13  ;;  %v875_v13 = vrot.slane %v3373_v9, 1  ;;  %v1055_v59 = vrot.slane %v1053_v50, 1  ;;  %v1058_v60 = vrot.slane %v1056_v51, 2  ;;  %v3592_v51 = vld [vmem:[%s3215_s12 + $0x10] sm:$0xff]  }
  0x23   : > { %2688 = vmatpush3.bf16.msra.mxu1 %v3020_v16  ;;  %2653 = vmatprep.subr.bf16.mxu0 %v3128_v1  ;;  %v674_v16 = vsel %vm671_vm2, %v672_v11, %v673_v12 }
  0x24   : > { %2689 = vmatprep.subr.bf16.mxu1 %v3128_v1  ;;  %v1059_v0 = vor.u32 %v1058_v60, %v1055_v59  ;;  %v1639_v59 = vshll.u32 %v3592_v51, 16  ;;  %v3087_v60 = vld [vmem:[%s3844_s1 + $0x1c0] sm:$0xff]  }
  0x26   : > { %2654 = vmatpush3.bf16.msra.mxu0 %v3021_v18 }
  0x27   : > { %2690 = vmatpush3.bf16.msra.mxu1 %v3022_v22  ;;  %2655 = vmatprep.subr.bf16.mxu0 %v3128_v1  ;;  %v878_v22 = vrot.slane %v3394_v19, 1 }
  0x28   : > { %2691 = vmatprep.subr.bf16.mxu1 %v3128_v1 }
  0x2a   : > { %2656 = vmatpush3.bf16.msra.mxu0 %v3023_v23  ;;  %v3055_v23 = vld [vmem:[%s3844_s1 + $0x170] sm:$0xff]  }
  0x2b   : > { %2692 = vmatpush3.bf16.msra.mxu1 %v3024_v24  ;;  %2713 = vmatprep.subr.bf16.mxu0 %v3128_v1  ;;  %v676_v24 = vsel %vm671_vm2, %v673_v12, %v675_v21  ;;  %v3073_v12 = vld [vmem:[%s3844_s1 + $0x1f8] sm:$0xff]  }
  0x2c   : > { %2749 = vmatprep.subr.bf16.mxu1 %v3128_v1 }
  0x2d   : > { %2658 = vmatmul.mubr.bf16.vlgmr.msra.gmra.mxu0 %v365_v29  ;;  %v677_v29 = vrot.slane %v3273_v33, 1 }
  0x2e   : > { %2694 = vmatmul.mubr.bf16.vlgmr.msra.gmra.mxu1 %v2241_v14  ;;  %2714 = vmatpush3.bf16.msra.mxu0 %v3027_v28  ;;  %v876_v14 = vrot.slane %v3376_v10, 1  ;;  %v3058_v28 = vld [vmem:[%s3844_s1 + $0x168] sm:$0xff]   ;;  %v3072_v10 = vld [vmem:[%s3844_s1 + $0x1b0] sm:$0xff]  }
  0x2f   : > { %2715 = vmatprep.subr.bf16.mxu0 %v3128_v1  ;;  %2661 = vmatprep.mubr.msk.bf16.mxu0 %vm3129_vm0, %v3128_v1 }
  0x30   : > { %2697 = vmatprep.mubr.msk.bf16.mxu1 %vm3129_vm0, %v3128_v1  ;;  %2750 = vmatpush3.bf16.msra.mxu1 %v3030_v32  ;;  %v877_v18 = vsel %vm671_vm2, %v875_v13, %v876_v14  ;;  %v879_v26 = vsel %vm671_vm2, %v876_v14, %v878_v22  ;;  %v3060_v32 = vld [vmem:[%s3844_s1 + $0x160] sm:$0xff]  }
  0x31   : > { %2751 = vmatprep.subr.bf16.mxu1 %v3128_v1 }
  0x32   : > { %2716 = vmatpush3.bf16.msra.mxu0 %v3028_v34  ;;  %v3059_v34 = vld [vmem:[%s3844_s1 + $0x118] sm:$0xff]  }
  0x33   : > { %2717 = vmatprep.subr.bf16.mxu0 %v3128_v1 }
  0x34   : > { %2752 = vmatpush3.bf16.msra.mxu1 %v3032_v37  ;;  %v3062_v37 = vld [vmem:[%s3844_s1 + $0x158] sm:$0xff]  }
  0x35   : > { %2662 = vmatmul.mubr.bf16.gmra.mxu0 %v373_v39  ;;  %2753 = vmatprep.subr.bf16.mxu1 %v3128_v1  ;;  %v3063_v39 = vld [vmem:[%s3844_s1 + $0x110] sm:$0xff]  }
  0x36   : > { %2698 = vmatmul.mubr.bf16.gmra.mxu1 %v3234_v15  ;;  %2718 = vmatpush3.bf16.msra.mxu0 %v3031_v40  ;;  %v3053_v15 = vld [vmem:[%s3844_s1 + $0x178] sm:$0xff]   ;;  %v882_v40 = vrot.slane %v3447_v36, 1 }
  0x37   : > { %2665 = vmatprep.mubr.msk.bf16.mxu0 %vm3129_vm0, %v3128_v1  ;;  %2701 = vmatprep.mubr.msk.bf16.mxu1 %vm3129_vm0, %v3128_v1 }
  0x38   : > { %2719 = vmatprep.subr.bf16.mxu0 %v3128_v1  ;;  %2754 = vmatpush3.bf16.msra.mxu1 %v3035_v42  ;;  %v680_v42 = vsel %vm671_vm2, %v677_v29, %v679_v38 }
  0x39   : > { %2755 = vmatprep.subr.bf16.mxu1 %v3128_v1 }
  0x3a   : > { %2720 = vmatpush3.bf16.msra.mxu0 %v3034_v44 }
  0x3b   : > { %2721 = vmatprep.subr.bf16.mxu0 %v3128_v1 }
  0x3c   : > { %2756 = vmatpush3.bf16.msra.mxu1 %v3037_v47  ;;  %v681_v47 = vrot.slane %v3325_v53, 1  ;;  %v3068_v53 = vld [vmem:[%s3844_s1 + $0x100] sm:$0xff]  }
  0x3d   : > { %2666 = vmatmul.mubr.bf16.gmra.mxu0 %v381_v49  ;;  %2757 = vmatprep.subr.bf16.mxu1 %v3128_v1  ;;  %v1048_v49 = vshll.u32 %v3373_v9, 16 }
  0x3e   : > { %2702 = vmatmul.mubr.bf16.gmra.mxu1 %v3257_v27  ;;  %2722 = vmatpush3.bf16.msra.mxu0 %v3036_v48  ;;  %v3420_v27 = vld [vmem:[%s3215_s12 + $0x1c] sm:$0xff]   ;;  %v1045_v48 = vshrl.u32 %v3373_v9, 16 }
  0x3f   : > { %2669 = vmatprep.mubr.msk.bf16.mxu0 %vm3129_vm0, %v3128_v1  ;;  %2705 = vmatprep.mubr.msk.bf16.mxu1 %vm3129_vm0, %v3128_v1  ;;  %v880_v31 = vrot.slane %v3420_v27, 1  ;;  %v1071_v14 = vshrl.u32 %v3420_v27, 16 }
  0x40   : > { %2723 = vmatprep.subr.bf16.mxu0 %v3128_v1  ;;  %2758 = vmatpush3.bf16.msra.mxu1 %v3039_v52  ;;  %v884_v52 = vrot.slane %v3066_v43, 1  ;;  %v3082_v43 = vld [vmem:[%s3844_s1 + $0x1d0] sm:$0xff]  }
  0x41   : > { %2759 = vmatprep.subr.bf16.mxu1 %v3128_v1  ;;  %v881_v35 = vsel %vm671_vm2, %v878_v22, %v880_v31  ;;  %v883_v44 = vsel %vm671_vm2, %v880_v31, %v882_v40 }
  0x42   : > { %2724 = vmatpush3.bf16.msra.mxu0 %v3040_v56  ;;  %v682_v56 = vsel %vm671_vm2, %v679_v38, %v681_v47 }
  0x43   : > { %2725 = vmatprep.subr.bf16.mxu0 %v3128_v1 }
  0x44   : > { %2760 = vmatpush3.bf16.msra.mxu1 %v3041_v57  ;;  %v1047_v57 = vrot.slane %v1045_v48, 1 }
  0x45   : > { %2670 = vmatmul.mubr.bf16.gmra.mxu0 %v389_v58  ;;  %2761 = vmatprep.subr.bf16.mxu1 %v3128_v1  ;;  %v1050_v58 = vrot.slane %v1048_v49, 2 }
  0x46   : > { %2706 = vmatmul.mubr.bf16.gmra.mxu1 %v3273_v33  ;;  %2673 = vmatprep.mubr.msk.bf16.mxu0 %vm3129_vm0, %v3128_v1  ;;  %v678_v33 = vsel %vm671_vm2, %v675_v21, %v677_v29  ;;  %v1073_v21 = vrot.slane %v1071_v14, 1  ;;  %v1260_v29 = vrot.slane %v3420_v27, 2 }
  0x47   : > { %2709 = vmatprep.mubr.msk.bf16.mxu1 %vm3129_vm0, %v3128_v1  ;;  %2726 = vmatpush3.bf16.msra.mxu0 %v3042_v61  ;;  %v885_v61 = vsel %vm671_vm2, %v882_v40, %v884_v52  ;;  %v3085_v52 = vld [vmem:[%s3844_s1 + $0x1c8] sm:$0xff]  }
  0x48   : > { %2762 = vmatpush3.bf16.msra.mxu1 %v3044_v62  ;;  %2727 = vmatprep.subr.bf16.mxu0 %v3128_v1  ;;  %v2359_v62 = vcombine.low %v1233_v55, %v3367_v6  ;;  %v3086_v55 = vld [vmem:[%s3844_s1 + $0x180] sm:$0xff]  }
  0x49   : > { %2763 = vmatprep.subr.bf16.mxu1 %v3128_v1 }
  0x4a   : > { %v1255_v4 = vrot.slane %v2359_v62, 2 }
  0x4b   : > { %2728 = vmatpush3.bf16.msra.mxu0 %v3045_v63  ;;  %v1051_v63 = vor.u32 %v1050_v58, %v1047_v57  ;;  %v1636_v58 = vshrl.u32 %v3592_v51, 16 }
  0x4c   : > { %2764 = vmatpush3.bf16.msra.mxu1 %v3046_v3  ;;  %2785 = vmatprep.subr.bf16.mxu0 %v3128_v1  ;;  %v1065_v3 = vshll.u32 %v3394_v19, 16  ;;  %v1257_v11 = vsel %vm1254_vm4, %v1255_v4, %v1256_v5  ;;  %v3615_v4 = vld [vmem:[%s3215_s12 + $0x18] sm:$0xff]  }
  0x4d   : > { %2674 = vmatmul.mubr.bf16.gmra.mxu0 %v397_v7  ;;  %2821 = vmatprep.subr.bf16.mxu1 %v3128_v1  ;;  %v1060_v6 = vsel %vm1043_vm3, %v1051_v63, %v1059_v0  ;;  %v3071_v7 = vld [vmem:[%s3844_s1 + $0x1b8] sm:$0xff]   ;;  %v1638_v2 = vrot.slane %v1636_v58, 2 }
  0x4e   : > { %2710 = vmatmul.mubr.bf16.gmra.mxu1 %v3302_v45  ;;  %2729 = vmatprep.mubr.msk.bf16.mxu0 %vm3129_vm0, %v3128_v1  ;;  %v3065_v45 = vld [vmem:[%s3844_s1 + $0x108] sm:$0xff]   ;;  %v1067_v9 = vrot.slane %v1065_v3, 2  ;;  %v1641_v3 = vrot.slane %v1639_v59, 3 }
  0x4f   : > { %2765 = vmatprep.mubr.msk.bf16.mxu1 %vm3129_vm0, %v3128_v1 }
  0x50   : > { %v1068_v13 = vor.u32 %v1067_v9, %v1064_v8  ;;  %v1642_v8 = vor.u32 %v1641_v3, %v1638_v2  ;;  %v1645_v9 = vshrl.u32 %v3615_v4, 16 }
  0x52   : > { %v1647_v14 = vrot.slane %v1645_v9, 2 }
  0x55   : > { %2730 = vmatmul.mubr.bf16.vlgmr.msra.gmra.mxu0 %v674_v16  ;;  %v1074_v16 = vshll.u32 %v3420_v27, 16 }
  0x56   : > { %2766 = vmatmul.mubr.bf16.vlgmr.msra.gmra.mxu1 %v877_v18  ;;  %2786 = vmatpush3.bf16.msra.mxu0 %v3050_v17  ;;  %v1258_v17 = vrot.slane %v3394_v19, 2  ;;  %v3075_v18 = vld [vmem:[%s3844_s1 + $0x1f0] sm:$0xff]  }
  0x57   : > { %2787 = vmatprep.subr.bf16.mxu0 %v3128_v1  ;;  %2733 = vmatprep.mubr.msk.bf16.mxu0 %vm3129_vm0, %v3128_v1  ;;  %v1076_v22 = vrot.slane %v1074_v16, 2 }
  0x58   : > { %2769 = vmatprep.mubr.msk.bf16.mxu1 %vm3129_vm0, %v3128_v1  ;;  %2822 = vmatpush3.bf16.msra.mxu1 %v3053_v15  ;;  %v1069_v15 = vsel %vm1043_vm3, %v1059_v0, %v1068_v13  ;;  %v1259_v19 = vsel %vm1254_vm4, %v1256_v5, %v1258_v17  ;;  %v1261_v27 = vsel %vm1254_vm4, %v1258_v17, %v1260_v29  ;;  %v3632_v17 = vld [vmem:[%s3215_s12 + $0x20] sm:$0xff]  }
  0x59   : > { %2823 = vmatprep.subr.bf16.mxu1 %v3128_v1 }
  0x5a   : > { %2788 = vmatpush3.bf16.msra.mxu0 %v3051_v20  ;;  %v3074_v20 = vld [vmem:[%s3844_s1 + $0x1a8] sm:$0xff]  }
  0x5b   : > { %2789 = vmatprep.subr.bf16.mxu0 %v3128_v1 }
  0x5c   : > { %2824 = vmatpush3.bf16.msra.mxu1 %v3055_v23  ;;  %v3077_v23 = vld [vmem:[%s3844_s1 + $0x1e8] sm:$0xff]  }
  0x5d   : > { %2734 = vmatmul.mubr.bf16.gmra.mxu0 %v676_v24  ;;  %2825 = vmatprep.subr.bf16.mxu1 %v3128_v1  ;;  %v1077_v24 = vor.u32 %v1076_v22, %v1073_v21  ;;  %v1654_v21 = vshrl.u32 %v3632_v17, 16  ;;  %v1657_v22 = vshll.u32 %v3632_v17, 16 }
  0x5e   : > { %2770 = vmatmul.mubr.bf16.gmra.mxu1 %v879_v26  ;;  %2790 = vmatpush3.bf16.msra.mxu0 %v3054_v25  ;;  %v3076_v25 = vld [vmem:[%s3844_s1 + $0x1a0] sm:$0xff]   ;;  %v1080_v26 = vshrl.u32 %v3447_v36, 16 }
  0x5f   : > { %2737 = vmatprep.mubr.msk.bf16.mxu0 %vm3129_vm0, %v3128_v1  ;;  %2773 = vmatprep.mubr.msk.bf16.mxu1 %vm3129_vm0, %v3128_v1  ;;  %v1078_v31 = vsel %vm1043_vm3, %v1068_v13, %v1077_v24 }
  0x60   : > { %2791 = vmatprep.subr.bf16.mxu0 %v3128_v1  ;;  %2826 = vmatpush3.bf16.msra.mxu1 %v3058_v28  ;;  %v1083_v28 = vshll.u32 %v3447_v36, 16 }
  0x61   : > { %2827 = vmatprep.subr.bf16.mxu1 %v3128_v1 }
  0x62   : > { %2792 = vmatpush3.bf16.msra.mxu0 %v3057_v30  ;;  %v3079_v30 = vld [vmem:[%s3844_s1 + $0x1e0] sm:$0xff]  }
  0x63   : > { %2793 = vmatprep.subr.bf16.mxu0 %v3128_v1 }
  0x64   : > { %2828 = vmatpush3.bf16.msra.mxu1 %v3060_v32  ;;  %v3078_v32 = vld [vmem:[%s3844_s1 + $0x198] sm:$0xff]  }
  0x65   : > { %2738 = vmatmul.mubr.bf16.gmra.mxu0 %v678_v33  ;;  %2829 = vmatprep.subr.bf16.mxu1 %v3128_v1  ;;  %v1082_v33 = vrot.slane %v1080_v26, 1  ;;  %v1659_v26 = vrot.slane %v1657_v22, 3 }
  0x66   : > { %2774 = vmatmul.mubr.bf16.gmra.mxu1 %v881_v35  ;;  %2794 = vmatpush3.bf16.msra.mxu0 %v3059_v34  ;;  %v1085_v34 = vrot.slane %v1083_v28, 2  ;;  %v3084_v35 = vld [vmem:[%s3215_s12 + $0x2c] ss:$0 sps:$4 sm:$0x33]  }
  0x67   : > { %2741 = vmatprep.mubr.msk.bf16.mxu0 %vm3129_vm0, %v3128_v1  ;;  %2777 = vmatprep.mubr.msk.bf16.mxu1 %vm3129_vm0, %v3128_v1  ;;  %v1089_v40 = vshrl.u32 %v3084_v35, 16  ;;  %v3653_v28 = vld [vmem:[%s3215_s12 + $0x28] sm:$0xff]  }
  0x68   : > { %2795 = vmatprep.subr.bf16.mxu0 %v3128_v1  ;;  %2830 = vmatpush3.bf16.msra.mxu1 %v3062_v37  ;;  %v3080_v37 = vld [vmem:[%s3844_s1 + $0x1d8] sm:$0xff]   ;;  %v1086_v38 = vor.u32 %v1085_v34, %v1082_v33  ;;  %v1666_v33 = vshll.u32 %v3653_v28, 16 }
  0x69   : > { %2831 = vmatprep.subr.bf16.mxu1 %v3128_v1  ;;  %v1091_v47 = vrot.slane %v1089_v40, 1  ;;  %v1465_v40 = vrot.slane %v3653_v28, 2 }
  0x6a   : > { %2796 = vmatpush3.bf16.msra.mxu0 %v3063_v39  ;;  %v3081_v39 = vld [vmem:[%s3844_s1 + $0x190] sm:$0xff]  }
  0x6b   : > { %2797 = vmatprep.subr.bf16.mxu0 %v3128_v1 }
  0x6c   : > { %2832 = vmatpush3.bf16.msra.mxu1 %v3064_v41  ;;  %v1092_v41 = vshll.u32 %v3084_v35, 16 }
  0x6d   : > { %2742 = vmatmul.mubr.bf16.gmra.mxu0 %v680_v42  ;;  %2833 = vmatprep.subr.bf16.mxu1 %v3128_v1  ;;  %v1262_v42 = vrot.slane %v3447_v36, 2  ;;  %v3083_v36 = vld [vmem:[%s3844_s1 + $0x188] sm:$0xff]  }
  0x6e   : > { %2778 = vmatmul.mubr.bf16.gmra.mxu1 %v883_v44  ;;  %2745 = vmatprep.mubr.msk.bf16.mxu0 %vm3129_vm0, %v3128_v1  ;;  %v1402_v44 = vld [vmem:[%s3215_s12 + $0x8] sm:$0xc]  ;;  %v1094_v48 = vrot.slane %v1092_v41, 2  ;;  %v3098_v41 = vld [vmem:[%s3844_s1 + $0x210] sm:$0xff]  }
  0x6f   : > { %2781 = vmatprep.mubr.msk.bf16.mxu1 %vm3129_vm0, %v3128_v1  ;;  %2798 = vmatpush3.bf16.msra.mxu0 %v3065_v45  ;;  %v3581_v45 = vld [vmem:[%s3215_s12 + $0xc] sm:$0xf]  ;;  %v1263_v49 = vsel %vm1254_vm4, %v1260_v29, %v1262_v42  ;;  %v1463_v29 = vrot.slane %v3632_v17, 2 }
  0x70   : > { %2834 = vmatpush3.bf16.msra.mxu1 %v3067_v46  ;;  %2799 = vmatprep.subr.bf16.mxu0 %v3128_v1  ;;  %v1087_v46 = vsel %vm1043_vm3, %v1077_v24, %v1086_v38  ;;  %v2384_v50 = vcombine.low %v1402_v44, %v3581_v45 }
  0x71   : > { %2835 = vmatprep.subr.bf16.mxu1 %v3128_v1 }
  0x72   : > { %v1631_v57 = vshll.u32 %v2384_v50, 16  ;;  %v1458_v5 = vrot.slane %v2384_v50, 2 }
  0x73   : > { %2800 = vmatpush3.bf16.msra.mxu0 %v3068_v53  ;;  %v1095_v53 = vor.u32 %v1094_v48, %v1091_v47  ;;  %v3100_v47 = vld [vmem:[%s3215_s12 + $0x30] ss:$0 sps:$4 sm:$0x33]  }
  0x74   : > { %2836 = vmatpush3.bf16.msra.mxu1 %v3069_v54  ;;  %2857 = vmatprep.subr.bf16.mxu0 %v3128_v1  ;;  %v1264_v54 = vrot.slane %v3084_v35, 2  ;;  %v1633_v0 = vrot.slane %v1631_v57, 3  ;;  %v3096_v35 = vld [vmem:[%s3844_s1 + $0x218] sm:$0xff]  }
  0x75   : > { %2746 = vmatmul.mubr.bf16.gmra.mxu0 %v682_v56  ;;  %2893 = vmatprep.subr.bf16.mxu1 %v3128_v1  ;;  %v1628_v56 = vshrl.u32 %v2384_v50, 16 }
  0x76   : > { %2782 = vmatmul.mubr.bf16.gmra.mxu1 %v885_v61  ;;  %2801 = vmatprep.mubr.msk.bf16.mxu0 %vm3129_vm0, %v3128_v1  ;;  %v1096_v61 = vsel %vm1043_vm3, %v1086_v38, %v1095_v53  ;;  %v1265_v62 = vsel %vm1254_vm4, %v1262_v42, %v1264_v54  ;;  %v1668_v38 = vrot.slane %v1666_v33, 3  ;;  %v3102_v54 = vld [vmem:[%s3844_s1 + $0x200] sm:$0xff]  }
  0x77   : > { %2837 = vmatprep.mubr.msk.bf16.mxu1 %vm3129_vm0, %v3128_v1  ;;  %v1630_v63 = vrot.slane %v1628_v56, 2 }
  0x7d   : > { %2802 = vmatmul.mubr.bf16.vlgmr.msra.gmra.mxu0 %v1060_v6  ;;  %v1459_v6 = vrot.slane %v3592_v51, 2 }
  0x7e   : > { %2838 = vmatmul.mubr.bf16.vlgmr.msra.gmra.mxu1 %v1257_v11  ;;  %2858 = vmatpush3.bf16.msra.mxu0 %v3071_v7  ;;  %v1634_v7 = vor.u32 %v1633_v0, %v1630_v63  ;;  %v1648_v11 = vshll.u32 %v3615_v4, 16  ;;  %v1841_v0 = vrot.slane %v3615_v4, 3 }
  0x7f   : > { %2859 = vmatprep.subr.bf16.mxu0 %v3128_v1  ;;  %2805 = vmatprep.mubr.msk.bf16.mxu0 %vm3129_vm0, %v3128_v1 }
  0x80   : > { %2841 = vmatprep.mubr.msk.bf16.mxu1 %vm3129_vm0, %v3128_v1  ;;  %2894 = vmatpush3.bf16.msra.mxu1 %v3073_v12  ;;  %v1460_v12 = vsel %vm1254_vm4, %v1458_v5, %v1459_v6  ;;  %v1643_v13 = vsel %vm1626_vm5, %v1634_v7, %v1642_v8  ;;  %v1650_v16 = vrot.slane %v1648_v11, 3 }
  0x81   : > { %2895 = vmatprep.subr.bf16.mxu1 %v3128_v1 }
  0x82   : > { %2860 = vmatpush3.bf16.msra.mxu0 %v3072_v10  ;;  %v3090_v10 = vld [vmem:[%s3844_s1 + $0x238] sm:$0xff]  }
  0x83   : > { %2861 = vmatprep.subr.bf16.mxu0 %v3128_v1 }
  0x84   : > { %2896 = vmatpush3.bf16.msra.mxu1 %v3075_v18  ;;  %v3091_v18 = vld [vmem:[%s3844_s1 + $0x230] sm:$0xff]  }
  0x85   : > { %2806 = vmatmul.mubr.bf16.gmra.mxu0 %v1069_v15  ;;  %2897 = vmatprep.subr.bf16.mxu1 %v3128_v1  ;;  %v1461_v15 = vrot.slane %v3615_v4, 2 }
  0x86   : > { %2842 = vmatmul.mubr.bf16.gmra.mxu1 %v1259_v19  ;;  %2862 = vmatpush3.bf16.msra.mxu0 %v3074_v20  ;;  %v1651_v20 = vor.u32 %v1650_v16, %v1647_v14 }
  0x87   : > { %2809 = vmatprep.mubr.msk.bf16.mxu0 %vm3129_vm0, %v3128_v1  ;;  %2845 = vmatprep.mubr.msk.bf16.mxu1 %vm3129_vm0, %v3128_v1  ;;  %v1462_v19 = vsel %vm1254_vm4, %v1459_v6, %v1461_v15  ;;  %v1464_v34 = vsel %vm1254_vm4, %v1461_v15, %v1463_v29 }
  0x88   : > { %2863 = vmatprep.subr.bf16.mxu0 %v3128_v1  ;;  %2898 = vmatpush3.bf16.msra.mxu1 %v3077_v23  ;;  %v3093_v23 = vld [vmem:[%s3844_s1 + $0x228] sm:$0xff]   ;;  %v1652_v24 = vsel %vm1626_vm5, %v1642_v8, %v1651_v20 }
  0x89   : > { %2899 = vmatprep.subr.bf16.mxu1 %v3128_v1 }
  0x8a   : > { %2864 = vmatpush3.bf16.msra.mxu0 %v3076_v25  ;;  %v1656_v25 = vrot.slane %v1654_v21, 2 }
  0x8b   : > { %2865 = vmatprep.subr.bf16.mxu0 %v3128_v1 }
  0x8c   : > { %2900 = vmatpush3.bf16.msra.mxu1 %v3079_v30  ;;  %v3095_v30 = vld [vmem:[%s3844_s1 + $0x220] sm:$0xff]  }
  0x8d   : > { %2810 = vmatmul.mubr.bf16.gmra.mxu0 %v1078_v31  ;;  %2901 = vmatprep.subr.bf16.mxu1 %v3128_v1  ;;  %v1660_v31 = vor.u32 %v1659_v26, %v1656_v25 }
  0x8e   : > { %2846 = vmatmul.mubr.bf16.gmra.mxu1 %v1261_v27  ;;  %2866 = vmatpush3.bf16.msra.mxu0 %v3078_v32  ;;  %v1663_v32 = vshrl.u32 %v3653_v28, 16 }
  0x8f   : > { %2813 = vmatprep.mubr.msk.bf16.mxu0 %vm3129_vm0, %v3128_v1  ;;  %2849 = vmatprep.mubr.msk.bf16.mxu1 %vm3129_vm0, %v3128_v1  ;;  %v1661_v27 = vsel %vm1626_vm5, %v1651_v20, %v1660_v31 }
  0x90   : > { %2867 = vmatprep.subr.bf16.mxu0 %v3128_v1  ;;  %2902 = vmatpush3.bf16.msra.mxu1 %v3080_v37  ;;  %v1665_v37 = vrot.slane %v1663_v32, 2 }
  0x91   : > { %2903 = vmatprep.subr.bf16.mxu1 %v3128_v1 }
  0x92   : > { %2868 = vmatpush3.bf16.msra.mxu0 %v3081_v39  ;;  %v3675_v39 = vld [vmem:[%s3215_s12 + $0x30] ss:$0 sps:$4 sm:$0x77]   ;;  %v1669_v42 = vor.u32 %v1668_v38, %v1665_v37 }
  0x93   : > { %2869 = vmatprep.subr.bf16.mxu0 %v3128_v1  ;;  %v1675_v44 = vshll.u32 %v3675_v39, 16 }
  0x94   : > { %2904 = vmatpush3.bf16.msra.mxu1 %v3082_v43  ;;  %v1672_v43 = vshrl.u32 %v3675_v39, 16  ;;  %v1670_v48 = vsel %vm1626_vm5, %v1660_v31, %v1669_v42 }
  0x95   : > { %2814 = vmatmul.mubr.bf16.gmra.mxu0 %v1087_v46  ;;  %2905 = vmatprep.subr.bf16.mxu1 %v3128_v1  ;;  %v1466_v46 = vsel %vm1254_vm4, %v1463_v29, %v1465_v40  ;;  %v1677_v50 = vrot.slane %v1675_v44, 3 }
  0x96   : > { %2850 = vmatmul.mubr.bf16.gmra.mxu1 %v1263_v49  ;;  %2817 = vmatprep.mubr.msk.bf16.mxu0 %vm3129_vm0, %v3128_v1  ;;  %v3099_v49 = vld [vmem:[%s3844_s1 + $0x208] sm:$0xff]  }
  0x97   : > { %2853 = vmatprep.mubr.msk.bf16.mxu1 %vm3129_vm0, %v3128_v1  ;;  %2870 = vmatpush3.bf16.msra.mxu0 %v3083_v36  ;;  %v1674_v36 = vrot.slane %v1672_v43, 2 }
  0x98   : > { %2906 = vmatpush3.bf16.msra.mxu1 %v3085_v52  ;;  %2871 = vmatprep.subr.bf16.mxu0 %v3128_v1  ;;  %v1467_v52 = vrot.slane %v3100_v47, 2 }
  0x99   : > { %2907 = vmatprep.subr.bf16.mxu1 %v3128_v1  ;;  %v1678_v53 = vor.u32 %v1677_v50, %v1674_v36 }
  0x9a   : > { %v1468_v56 = vsel %vm1254_vm4, %v1465_v40, %v1467_v52 }
  0x9b   : > { %2872 = vmatpush3.bf16.msra.mxu0 %v3086_v55  ;;  %v1816_v55 = vld [vmem:[%s3215_s12 + $0x8] sm:$0x8]  ;;  %v1679_v58 = vsel %vm1626_vm5, %v1669_v42, %v1678_v53  ;;  %s2982_s12 = smul.u32 40, %s3853_s15 }
  0x9c   : > { %2908 = vmatpush3.bf16.msra.mxu1 %v3087_v60  ;;  %2929 = vmatprep.subr.bf16.mxu0 %v3128_v1  ;;  %v2439_v57 = vcombine.low %v1816_v55, %v3581_v45  ;;  %v1839_v60 = vrot.slane %v3592_v51, 3  ;;  %v1845_v45 = vrot.slane %v3653_v28, 3  ;;  %v1847_v51 = vrot.slane %v3675_v39, 3 }
  0x9d   : > { %2818 = vmatmul.mubr.bf16.gmra.mxu0 %v1096_v61  ;;  %2965 = vmatprep.subr.bf16.mxu1 %v3128_v1  ;;  %v1843_v61 = vrot.slane %v3632_v17, 3  ;;  %s3782_s21 = scalar_lea.vmem %s3846_s3, %s2982_s12  ;;  %s3817_s26 = scalar_lea.vmem %s3847_s4, %s2982_s12 }
  0x9e   : > { %2854 = vmatmul.mubr.bf16.gmra.mxu1 %v1265_v62  ;;  %2873 = vmatprep.mubr.msk.bf16.mxu0 %vm3129_vm0, %v3128_v1  ;;  %v1838_v59 = vrot.slane %v2439_v57, 3  ;;  %v1842_v2 = vsel %vm1837_vm6, %v1839_v60, %v1841_v0  ;;  %v1848_v3 = vsel %vm1837_vm6, %v1845_v45, %v1847_v51 }
  0x9f   : > { %2909 = vmatprep.mubr.msk.bf16.mxu1 %vm3129_vm0, %v3128_v1  ;;  %v1846_v63 = vsel %vm1837_vm6, %v1843_v61, %v1845_v45  ;;  %v1844_v5 = vsel %vm1837_vm6, %v1841_v0, %v1843_v61 }
  0xa0   : > { %v1840_v62 = vsel %vm1837_vm6, %v1838_v59, %v1839_v60 }
  0xa5   : > { %2874 = vmatmul.mubr.bf16.vlgmr.msra.gmra.mxu0 %v1460_v12 }
  0xa6   : > { %2910 = vmatmul.mubr.bf16.vlgmr.msra.gmra.mxu1 %v1643_v13  ;;  %2930 = vmatpush3.bf16.msra.mxu0 %v3090_v10 }
  0xa7   : > { %2931 = vmatprep.subr.bf16.mxu0 %v3128_v1  ;;  %2877 = vmatprep.mubr.msk.bf16.mxu0 %vm3129_vm0, %v3128_v1 }
  0xa8   : > { %2913 = vmatprep.mubr.msk.bf16.mxu1 %vm3129_vm0, %v3128_v1  ;;  %2973 = vmatpush3.bf16.msra.mxu1 %v3090_v10 }
  0xa9   : > { %2966 = vmatprep.subr.bf16.mxu1 %v3128_v1 }
  0xaa   : > { %2932 = vmatpush3.bf16.msra.mxu0 %v3091_v18 }
  0xab   : > { %2933 = vmatprep.subr.bf16.mxu0 %v3128_v1 }
  0xac   : > { %2974 = vmatpush3.bf16.msra.mxu1 %v3091_v18 }
  0xad   : > { %2878 = vmatmul.mubr.bf16.gmra.mxu0 %v1462_v19  ;;  %2967 = vmatprep.subr.bf16.mxu1 %v3128_v1 }
  0xae   : > { %2914 = vmatmul.mubr.bf16.gmra.mxu1 %v1652_v24  ;;  %2934 = vmatpush3.bf16.msra.mxu0 %v3093_v23 }
  0xaf   : > { %2881 = vmatprep.mubr.msk.bf16.mxu0 %vm3129_vm0, %v3128_v1  ;;  %2917 = vmatprep.mubr.msk.bf16.mxu1 %vm3129_vm0, %v3128_v1 }
  0xb0   : > { %2935 = vmatprep.subr.bf16.mxu0 %v3128_v1  ;;  %2975 = vmatpush3.bf16.msra.mxu1 %v3093_v23 }
  0xb1   : > { %2968 = vmatprep.subr.bf16.mxu1 %v3128_v1 }
  0xb2   : > { %2936 = vmatpush3.bf16.msra.mxu0 %v3095_v30 }
  0xb3   : > { %2937 = vmatprep.subr.bf16.mxu0 %v3128_v1 }
  0xb4   : > { %2976 = vmatpush3.bf16.msra.mxu1 %v3095_v30 }
  0xb5   : > { %2882 = vmatmul.mubr.bf16.gmra.mxu0 %v1464_v34  ;;  %2969 = vmatprep.subr.bf16.mxu1 %v3128_v1 }
  0xb6   : > { %2918 = vmatmul.mubr.bf16.gmra.mxu1 %v1661_v27  ;;  %2938 = vmatpush3.bf16.msra.mxu0 %v3096_v35 }
  0xb7   : > { %2885 = vmatprep.mubr.msk.bf16.mxu0 %vm3129_vm0, %v3128_v1  ;;  %2921 = vmatprep.mubr.msk.bf16.mxu1 %vm3129_vm0, %v3128_v1 }
  0xb8   : > { %2977 = vmatpush3.bf16.msra.mxu1 %v3096_v35  ;;  %2939 = vmatprep.subr.bf16.mxu0 %v3128_v1 }
  0xb9   : > { %2970 = vmatprep.subr.bf16.mxu1 %v3128_v1 }
  0xba   : > { %2940 = vmatpush3.bf16.msra.mxu0 %v3098_v41 }
  0xbb   : > { %2941 = vmatprep.subr.bf16.mxu0 %v3128_v1 }
  0xbc   : > { %2978 = vmatpush3.bf16.msra.mxu1 %v3098_v41 }
  0xbd   : > { %2886 = vmatmul.mubr.bf16.gmra.mxu0 %v1466_v46  ;;  %2971 = vmatprep.subr.bf16.mxu1 %v3128_v1 }
  0xbe   : > { %2922 = vmatmul.mubr.bf16.gmra.mxu1 %v1670_v48  ;;  %2889 = vmatprep.mubr.msk.bf16.mxu0 %vm3129_vm0, %v3128_v1 }
  0xbf   : > { %2925 = vmatprep.mubr.msk.bf16.mxu1 %vm3129_vm0, %v3128_v1  ;;  %2942 = vmatpush3.bf16.msra.mxu0 %v3099_v49 }
  0xc0   : > { %2979 = vmatpush3.bf16.msra.mxu1 %v3099_v49  ;;  %2943 = vmatprep.subr.bf16.mxu0 %v3128_v1 }
  0xc1   : > { %2972 = vmatprep.subr.bf16.mxu1 %v3128_v1 }
  0xc3   : > { %2944 = vmatpush3.bf16.msra.mxu0 %v3102_v54 }
  0xc4   : > { %2980 = vmatpush3.bf16.msra.mxu1 %v3102_v54 }
  0xc5   : > { %2890 = vmatmul.mubr.bf16.gmra.mxu0 %v1468_v56 }
  0xc6   : > { %2926 = vmatmul.mubr.bf16.gmra.mxu1 %v1679_v58  ;;  %2945 = vmatprep.mubr.msk.bf16.mxu0 %vm3129_vm0, %v3128_v1 }
  0xc7   : > { %2957 = vmatprep.mubr.msk.bf16.mxu1 %vm3129_vm0, %v3128_v1 }
  0xcd   : > { %2946 = vmatmul.mubr.bf16.vlgmr.msra.gmra.mxu0 %v1840_v62 }
  0xce   : > { %2958 = vmatmul.mubr.bf16.vlgmr.msra.gmra.mxu1 %v1846_v63  ;;  %2949 = vmatprep.mubr.msk.bf16.mxu0 %vm3129_vm0, %v3128_v1 }
  0xcf   : > { %2961 = vmatprep.mubr.msk.bf16.mxu1 %vm3129_vm0, %v3128_v1 }
  0xd5   : > { %2950 = vmatmul.mubr.bf16.gmra.mxu0 %v1842_v2 }
  0xd6   : > { %2962 = vmatmul.mubr.bf16.gmra.mxu1 %v1848_v3  ;;  %2953 = vmatprep.mubr.msk.bf16.mxu0 %vm3129_vm0, %v3128_v1 }
  0xdd   : > { %2954 = vmatmul.mubr.bf16.gmra.mxu0 %v1844_v5 }
  0xed   : > { %v485_v6 = vpop.f32.mrf.mxu0 }
  0xee   : > { %v611_v7 = vpop.f32.mrf.mxu1 }
  0xef   : > { %v612_v4 = vadd.f32 %v611_v7, %v485_v6  ;;  %v2659_v8 = vpop.f32.mrf.mxu0 }
  0xf0   : > { %v2695_v9 = vpop.f32.mrf.mxu1 }
  0xf1   : > { %v488_v11 = vpop.f32.mrf.mxu0 }
  0xf2   : > { %v614_v12 = vpop.f32.mrf.mxu1 }
  0xf3   : > { %v615_v10 = vadd.f32 %v614_v12, %v488_v11  ;;  %v2660_v13 = vpop.f32.mrf.mxu0 }
  0xf4   : > { %v2696_v14 = vpop.f32.mrf.mxu1 }
  0xf5   : > { %v493_v16 = vpop.f32.mrf.mxu0 }
  0xf6   : > { %v619_v17 = vpop.f32.mrf.mxu1 }
  0xf7   : > { %v620_v18 = vadd.f32 %v619_v17, %v493_v16  ;;  %v2663_v15 = vpop.f32.mrf.mxu0 }
  0xf8   : > { %v2699_v20 = vpop.f32.mrf.mxu1 }
  0xf9   : > { %v496_v21 = vpop.f32.mrf.mxu0 }
  0xfa   : > { %v622_v1 = vpop.f32.mrf.mxu1 }
  0xfb   : > { %v623_v22 = vadd.f32 %v622_v1, %v496_v21  ;;  %v2664_v19 = vpop.f32.mrf.mxu0 }
  0xfc   : > { %v2700_v23 = vpop.f32.mrf.mxu1 }
  0xfd   : > { %v501_v24 = vpop.f32.mrf.mxu0 }
  0xfe   : > { %v627_v25 = vpop.f32.mrf.mxu1 }
  0xff   : > { %v628_v26 = vadd.f32 %v627_v25, %v501_v24  ;;  %v2667_v28 = vpop.f32.mrf.mxu0 }
 0x100   : > { %v2703_v29 = vpop.f32.mrf.mxu1 }
 0x101   : > { %v504_v30 = vpop.f32.mrf.mxu0 }
 0x102   : > { %v630_v31 = vpop.f32.mrf.mxu1 }
 0x103   : > { %v631_v32 = vadd.f32 %v630_v31, %v504_v30  ;;  %v2668_v33 = vpop.f32.mrf.mxu0 }
 0x104   : > { %v2704_v34 = vpop.f32.mrf.mxu1 }
 0x105   : > { %v509_v35 = vpop.f32.mrf.mxu0 }
 0x106   : > { %v635_v27 = vpop.f32.mrf.mxu1 }
 0x107   : > { %v636_v37 = vadd.f32 %v635_v27, %v509_v35  ;;  %v2671_v38 = vpop.f32.mrf.mxu0 }
 0x108   : > { %v2707_v39 = vpop.f32.mrf.mxu1 }
 0x109   : > { %v512_v40 = vpop.f32.mrf.mxu0 }
 0x10a   : > { %v638_v41 = vpop.f32.mrf.mxu1 }
 0x10b   : > { %v639_v42 = vadd.f32 %v638_v41, %v512_v40  ;;  %v2672_v43 = vpop.f32.mrf.mxu0 }
 0x10c   : > { %v2708_v44 = vpop.f32.mrf.mxu1 }
 0x10d   : > { %v517_v46 = vpop.f32.mrf.mxu0 }
 0x10e   : > { %v643_v47 = vpop.f32.mrf.mxu1 }
 0x10f   : > { %v644_v48 = vadd.f32 %v643_v47, %v517_v46  ;;  %v2675_v49 = vpop.f32.mrf.mxu0 }
 0x110   : > { %v2711_v36 = vpop.f32.mrf.mxu1 }
 0x111   : > { %v520_v50 = vpop.f32.mrf.mxu0 }
 0x112   : > { %v646_v52 = vpop.f32.mrf.mxu1 }
 0x113   : > { %v647_v53 = vadd.f32 %v646_v52, %v520_v50  ;;  %v2676_v54 = vpop.f32.mrf.mxu0 }
 0x114   : > { %v2712_v55 = vpop.f32.mrf.mxu1 }
 0x115   : > { %v770_v56 = vpop.f32.mrf.mxu0 }
 0x116   : > { %v809_v57 = vadd.f32 %v770_v56, %v612_v4  ;;  %v973_v58 = vpop.f32.mrf.mxu1 }
 0x117   : > { %v2731_v59 = vpop.f32.mrf.mxu0 }
 0x118   : > { %v1012_v60 = vadd.f32 %v973_v58, %v809_v57  ;;  %v2767_v61 = vpop.f32.mrf.mxu1 }
 0x119   : > { %v773_v45 = vpop.f32.mrf.mxu0 }
 0x11a   : > { %v810_v62 = vadd.f32 %v773_v45, %v615_v10  ;;  %v976_v63 = vpop.f32.mrf.mxu1 }
 0x11b   : > { %v2732_v0 = vpop.f32.mrf.mxu0 }
 0x11c   : > { %v1013_v51 = vadd.f32 %v976_v63, %v810_v62  ;;  %v2768_v2 = vpop.f32.mrf.mxu1 }
 0x11d   : > { %v778_v3 = vpop.f32.mrf.mxu0 }
 0x11e   : > { %v811_v5 = vadd.f32 %v778_v3, %v620_v18  ;;  %v981_v6 = vpop.f32.mrf.mxu1 }
 0x11f   : > { %v2735_v7 = vpop.f32.mrf.mxu0 }
 0x120   : > { %v1014_v8 = vadd.f32 %v981_v6, %v811_v5  ;;  %v2771_v9 = vpop.f32.mrf.mxu1 }
 0x121   : > { %v781_v11 = vpop.f32.mrf.mxu0 }
 0x122   : > { %v812_v12 = vadd.f32 %v781_v11, %v623_v22  ;;  %v984_v13 = vpop.f32.mrf.mxu1 }
 0x123   : > { %v2736_v4 = vpop.f32.mrf.mxu0 }
 0x124   : > { %v1015_v14 = vadd.f32 %v984_v13, %v812_v12  ;;  %v2772_v16 = vpop.f32.mrf.mxu1 }
 0x125   : > { %v786_v17 = vpop.f32.mrf.mxu0 }
 0x126   : > { %v813_v15 = vadd.f32 %v786_v17, %v628_v26  ;;  %v989_v20 = vpop.f32.mrf.mxu1 }
 0x127   : > { %v2739_v10 = vpop.f32.mrf.mxu0 }
 0x128   : > { %v1016_v21 = vadd.f32 %v989_v20, %v813_v15  ;;  %v2775_v1 = vpop.f32.mrf.mxu1 }
 0x129   : > { %v789_v19 = vpop.f32.mrf.mxu0 }
 0x12a   : > { %v814_v23 = vadd.f32 %v789_v19, %v631_v32  ;;  %v992_v24 = vpop.f32.mrf.mxu1 }
 0x12b   : > { %v2740_v18 = vpop.f32.mrf.mxu0 }
 0x12c   : > { %v1017_v25 = vadd.f32 %v992_v24, %v814_v23  ;;  %v2776_v28 = vpop.f32.mrf.mxu1 }
 0x12d   : > { %v794_v29 = vpop.f32.mrf.mxu0 }
 0x12e   : > { %v815_v30 = vadd.f32 %v794_v29, %v636_v37  ;;  %v997_v31 = vpop.f32.mrf.mxu1 }
 0x12f   : > { %v2743_v22 = vpop.f32.mrf.mxu0 }
 0x130   : > { %v3731_v33 = vadd.f32 %v997_v31, %v815_v30  ;;  %v2779_v34 = vpop.f32.mrf.mxu1 }
 0x131   : > { %v797_v35 = vpop.f32.mrf.mxu0 }
 0x132   : > { %v816_v27 = vadd.f32 %v797_v35, %v639_v42  ;;  %v1000_v26 = vpop.f32.mrf.mxu1 }
 0x133   : > { %v2744_v38 = vpop.f32.mrf.mxu0 }
 0x134   : > { %v3733_v39 = vadd.f32 %v1000_v26, %v816_v27  ;;  %v2780_v40 = vpop.f32.mrf.mxu1 }
 0x135   : > { %v802_v41 = vpop.f32.mrf.mxu0 }
 0x136   : > { %v817_v32 = vadd.f32 %v802_v41, %v644_v48  ;;  %v1005_v43 = vpop.f32.mrf.mxu1 }
 0x137   : > { %v2747_v44 = vpop.f32.mrf.mxu0 }
 0x138   : > { %v3735_v46 = vadd.f32 %v1005_v43, %v817_v32  ;;  %v2783_v47 = vpop.f32.mrf.mxu1 }
 0x139   : > { %v805_v37 = vpop.f32.mrf.mxu0 }
 0x13a   : > { %v818_v49 = vadd.f32 %v805_v37, %v647_v53  ;;  %v1008_v36 = vpop.f32.mrf.mxu1 }
 0x13b   : > { %v2748_v50 = vpop.f32.mrf.mxu0 }
 0x13c   : > { %v3737_v52 = vadd.f32 %v1008_v36, %v818_v49  ;;  %v2784_v54 = vpop.f32.mrf.mxu1 }
 0x13d   : > { %v1184_v42 = vpop.f32.mrf.mxu0 }
 0x13e   : > { %v1223_v55 = vadd.f32 %v1184_v42, %v1012_v60  ;;  %v1353_v56 = vpop.f32.mrf.mxu1 }
 0x13f   : > { %v2803_v57 = vpop.f32.mrf.mxu0 }
 0x140   : > { %v3739_v58 = vadd.f32 %v1353_v56, %v1223_v55  ;;  %v2839_v59 = vpop.f32.mrf.mxu1 }
 0x141   : > { %v1187_v48 = vpop.f32.mrf.mxu0 }
 0x142   : > { %v1224_v61 = vadd.f32 %v1187_v48, %v1013_v51  ;;  %v1356_v45 = vpop.f32.mrf.mxu1 }
 0x143   : > { %v2804_v62 = vpop.f32.mrf.mxu0 }
 0x144   : > { %v3741_v63 = vadd.f32 %v1356_v45, %v1224_v61  ;;  %v2840_v0 = vpop.f32.mrf.mxu1 }
 0x145   : > { %v1192_v53 = vpop.f32.mrf.mxu0 }
 0x146   : > { %v1225_v2 = vadd.f32 %v1192_v53, %v1014_v8  ;;  %v1361_v3 = vpop.f32.mrf.mxu1 }
 0x147   : > { %v2807_v5 = vpop.f32.mrf.mxu0 }
 0x148   : > { %v3743_v6 = vadd.f32 %v1361_v3, %v1225_v2  ;;  %v2843_v7 = vpop.f32.mrf.mxu1 }
 0x149   : > { %v1195_v60 = vpop.f32.mrf.mxu0 }
 0x14a   : > { %v1226_v9 = vadd.f32 %v1195_v60, %v1015_v14  ;;  %v1364_v11 = vpop.f32.mrf.mxu1 }
 0x14b   : > { %v2808_v12 = vpop.f32.mrf.mxu0 }
 0x14c   : > { %v3745_v13 = vadd.f32 %v1364_v11, %v1226_v9  ;;  %v2844_v4 = vpop.f32.mrf.mxu1 }
 0x14d   : > { %v1200_v51 = vpop.f32.mrf.mxu0 }
 0x14e   : > { %v1227_v16 = vadd.f32 %v1200_v51, %v1016_v21  ;;  %v1369_v17 = vpop.f32.mrf.mxu1 }
 0x14f   : > { %v2811_v15 = vpop.f32.mrf.mxu0 }
 0x150   : > { %v3747_v20 = vadd.f32 %v1369_v17, %v1227_v16  ;;  %v2847_v10 = vpop.f32.mrf.mxu1 }
 0x151   : > { %v1203_v8 = vpop.f32.mrf.mxu0 }
 0x152   : > { %v1228_v1 = vadd.f32 %v1203_v8, %v1017_v25  ;;  %v1372_v19 = vpop.f32.mrf.mxu1 }
 0x153   : > { %v2812_v23 = vpop.f32.mrf.mxu0 }
 0x154   : > { %v3749_v24 = vadd.f32 %v1372_v19, %v1228_v1  ;;  %v2848_v18 = vpop.f32.mrf.mxu1 }
 0x155   : > { %v1208_v14 = vpop.f32.mrf.mxu0 }
 0x156   : > { %v1377_v28 = vpop.f32.mrf.mxu1  ;;  %v1229_v17 = vadd.f32 %v1208_v14, %v3731_v33 }
 0x157   : > { %v2815_v29 = vpop.f32.mrf.mxu0 }
 0x158   : > { %v2851_v30 = vpop.f32.mrf.mxu1  ;;  %v1398_v19 = vadd.f32 %v1377_v28, %v1229_v17 }
 0x159   : > { %v1211_v31 = vpop.f32.mrf.mxu0 }
 0x15a   : > { %v1380_v22 = vpop.f32.mrf.mxu1  ;;  %v1230_v23 = vadd.f32 %v1211_v31, %v3733_v39 }
 0x15b   : > { %v2816_v34 = vpop.f32.mrf.mxu0 }
 0x15c   : > { %v2852_v21 = vpop.f32.mrf.mxu1  ;;  %v1399_v33 = vadd.f32 %v1380_v22, %v1230_v23 }
 0x15d   : > { %v1216_v35 = vpop.f32.mrf.mxu0 }
 0x15e   : > { %v3751_v27 = vpop.f32.mrf.mxu1  ;;  %v1231_v14 = vadd.f32 %v1216_v35, %v3735_v46 }
 0x15f   : > { %v2819_v26 = vpop.f32.mrf.mxu0 }
 0x160   : > { %v2855_v38 = vpop.f32.mrf.mxu1  ;;  %v1400_v22 = vadd.f32 %v3751_v27, %v1231_v14 }
 0x161   : > { %v3753_v40 = vpop.f32.mrf.mxu0 }
 0x162   : > { %v3755_v25 = vpop.f32.mrf.mxu1  ;;  %v1232_v46 = vadd.f32 %v3753_v40, %v3737_v52 }
 0x163   : > { %v2820_v41 = vpop.f32.mrf.mxu0 }
 0x164   : > { %v2856_v32 = vpop.f32.mrf.mxu1  ;;  %v1401_v40 = vadd.f32 %v3755_v25, %v1232_v46 }
 0x165   : > { %v1556_v43 = vpop.f32.mrf.mxu0 }
 0x166   : > { %v1767_v44 = vpop.f32.mrf.mxu1  ;;  %v1595_v29 = vadd.f32 %v1556_v43, %v3739_v58  ;;  %v3789_v43 = vld [vmem:[%s3845_s2] ss:$0 sm:$0xff] }
 0x167   : > { %v2875_v47 = vpop.f32.mrf.mxu0 }
 0x168   : > { %v2911_v37 = vpop.f32.mrf.mxu1  ;;  %v1806_v28 = vadd.f32 %v1767_v44, %v1595_v29  ;;  %v2472_v47 = vld [vmem:[%s3782_s21] sm:$0xff]  }
 0x169   : > { %v1559_v49 = vpop.f32.mrf.mxu0 }
 0x16a   : > { %v1770_v36 = vpop.f32.mrf.mxu1  ;;  %v1596_v58 = vadd.f32 %v1559_v49, %v3741_v63 }
 0x16b   : > { %v2876_v50 = vpop.f32.mrf.mxu0 }
 0x16c   : > { %v2912_v54 = vpop.f32.mrf.mxu1  ;;  %v1807_v44 = vadd.f32 %v1770_v36, %v1596_v58 }
 0x16d   : > { %v1564_v42 = vpop.f32.mrf.mxu0  ;;  %v2518_v54 = vld [vmem:[%s3782_s21 + $0x18] sm:$0xff]  }
 0x16e   : > { %v3757_v55 = vpop.f32.mrf.mxu1  ;;  %v1597_v49 = vadd.f32 %v1564_v42, %v3743_v6  ;;  %v2486_v42 = vunpack.c.h.bf16 %v2518_v54 }
 0x16f   : > { %v2879_v56 = vpop.f32.mrf.mxu0 }
 0x170   : > { %v2915_v57 = vpop.f32.mrf.mxu1 }
 0x171   : > { %v3759_v59 = vpop.f32.mrf.mxu0  ;;  %v2473_v57 = vunpack.c.l.bf16 %v2472_v47 }
 0x172   : > { %v3761_v48 = vpop.f32.mrf.mxu1  ;;  %v1598_v6 = vadd.f32 %v3759_v59, %v3745_v13 }
 0x173   : > { %v2880_v61 = vpop.f32.mrf.mxu0 }
 0x174   : > { %v2916_v45 = vpop.f32.mrf.mxu1 }
 0x175   : > { %v3763_v62 = vpop.f32.mrf.mxu0 }
 0x176   : > { %v3765_v0 = vpop.f32.mrf.mxu1 }
 0x177   : > { %v2883_v53 = vpop.f32.mrf.mxu0 }
 0x178   : > { %v2919_v2 = vpop.f32.mrf.mxu1 }
 0x179   : > { %v3767_v3 = vpop.f32.mrf.mxu0 }
 0x17a   : > { %v3769_v5 = vpop.f32.mrf.mxu1 }
 0x17b   : > { %v2884_v7 = vpop.f32.mrf.mxu0 }
 0x17c   : > { %v2920_v60 = vpop.f32.mrf.mxu1  ;;  %v2485_v7 = vunpack.c.l.bf16 %v2518_v54 }
 0x17d   : > { %v1580_v9 = vpop.f32.mrf.mxu0 }
 0x17e   : > { %v1791_v11 = vpop.f32.mrf.mxu1  ;;  %v1601_v34 = vadd.f32 %v1580_v9, %v1398_v19  ;;  %v2474_v9 = vunpack.c.h.bf16 %v2472_v47 }
 0x17f   : > { %v2887_v12 = vpop.f32.mrf.mxu0 }
 0x180   : > { %v2923_v4 = vpop.f32.mrf.mxu1  ;;  %v1812_v38 = vadd.f32 %v1791_v11, %v1601_v34  ;;  %v2516_v12 = vld [vmem:[%s3782_s21 + $0x8] sm:$0xff]  }
 0x181   : > { %v1583_v51 = vpop.f32.mrf.mxu0  ;;  %v1808_v4 = vadd.f32 %v3757_v55, %v1597_v49  ;;  %v2477_v59 = vunpack.c.l.bf16 %v2516_v12  ;;  %v2478_v47 = vunpack.c.h.bf16 %v2516_v12  ;;  %v2517_v49 = vld [vmem:[%s3782_s21 + $0x10] sm:$0xff]  }
 0x182   : > { %v1794_v16 = vpop.f32.mrf.mxu1  ;;  %v1602_v41 = vadd.f32 %v1583_v51, %v1399_v33 }
 0x183   : > { %v2888_v15 = vpop.f32.mrf.mxu0 }
 0x184   : > { %v2924_v10 = vpop.f32.mrf.mxu1  ;;  %v1813_v45 = vadd.f32 %v1794_v16, %v1602_v41  ;;  %v2519_v15 = vld [vmem:[%s3782_s21 + $0x20] sm:$0xff]  }
 0x185   : > { %v1588_v8 = vpop.f32.mrf.mxu0  ;;  %v2489_v33 = vunpack.c.l.bf16 %v2519_v15  ;;  %v2490_v54 = vunpack.c.h.bf16 %v2519_v15 }
 0x186   : > { %v1799_v1 = vpop.f32.mrf.mxu1  ;;  %v1603_v53 = vadd.f32 %v1588_v8, %v1400_v22 }
 0x187   : > { %v2891_v18 = vpop.f32.mrf.mxu0 }
 0x188   : > { %v2927_v30 = vpop.f32.mrf.mxu1  ;;  %v1814_v10 = vadd.f32 %v1799_v1, %v1603_v53 }
 0x189   : > { %v1591_v21 = vpop.f32.mrf.mxu0  ;;  %v1809_v30 = vadd.f32 %v3761_v48, %v1598_v6 }
 0x18a   : > { %v3775_v26 = vpop.f32.mrf.mxu1  ;;  %v1604_v8 = vadd.f32 %v1591_v21, %v1401_v40 }
 0x18b   : > { %v2892_v39 = vpop.f32.mrf.mxu0 }
 0x18c   : > { %v2928_v31 = vpop.f32.mrf.mxu1  ;;  %v1599_v39 = vadd.f32 %v3763_v62, %v3747_v20 }
 0x18d   : > { %v1936_v32 = vpop.f32.mrf.mxu0  ;;  %v1815_v31 = vadd.f32 %v3775_v26, %v1604_v8 }
 0x18e   : > { %v1975_v37 = vadd.f32 %v1936_v32, %v1806_v28  ;;  %v1960_v50 = vpop.f32.mrf.mxu1  ;;  %v1810_v46 = vadd.f32 %v3765_v0, %v1599_v39 }
 0x18f   : > { %v1981_v35 = vadd.f32 %v1960_v50, %v1812_v38  ;;  %v2947_v63 = vpop.f32.mrf.mxu0 }
 0x190   : > { %v1992_v56 = vadd.f32 %v3789_v43, %v1975_v37  ;;  %v2959_v61 = vpop.f32.mrf.mxu1 }
 0x191   : > { %v1998_v2 = vadd.f32 %v3789_v43, %v1981_v35  ;;  %v1939_v27 = vpop.f32.mrf.mxu0  ;;  %v1600_v35 = vadd.f32 %v3767_v3, %v3749_v24 }
 0x192   : > { %v1976_v60 = vadd.f32 %v1939_v27, %v1807_v44  ;;  %v1963_v52 = vpop.f32.mrf.mxu1  ;;  %v2022_v51 = vadd.f32 %v2473_v57, %v1992_v56  ;;  %v2481_v27 = vunpack.c.l.bf16 %v2517_v49 }
 0x193   : > { %v1982_v36 = vadd.f32 %v1963_v52, %v1813_v45  ;;  %v2948_v11 = vpop.f32.mrf.mxu0  ;;  %v2028_v19 = vadd.f32 %v2485_v7, %v1998_v2  ;;  %v1811_v24 = vadd.f32 %v3769_v5, %v1600_v35 }
 0x194   : > { %v1993_v16 = vadd.f32 %v3789_v43, %v1976_v60  ;;  %v2960_v17 = vpop.f32.mrf.mxu1  ;;  %v2032_v1 = vmax.f32 %v2022_v51, 0.0  ;;  %v2482_v11 = vunpack.c.h.bf16 %v2517_v49 }
 0x195   : > { %v1999_v23 = vadd.f32 %v3789_v43, %v1982_v36  ;;  %v1944_v25 = vpop.f32.mrf.mxu0  ;;  %v2038_v38 = vmax.f32 %v2028_v19, 0.0 }
 0x196   : > { %v2023_v18 = vadd.f32 %v2474_v9, %v1993_v16  ;;  %v1977_v13 = vadd.f32 %v1944_v25, %v1808_v4  ;;  %v1968_v29 = vpop.f32.mrf.mxu1 }
 0x197   : > { %v2029_v34 = vadd.f32 %v2486_v42, %v1999_v23  ;;  %v1983_v55 = vadd.f32 %v1968_v29, %v1814_v10  ;;  %v2951_v14 = vpop.f32.mrf.mxu0 }
 0x198   : > { %v2033_v21 = vmax.f32 %v2023_v18, 0.0  ;;  %v1994_v28 = vadd.f32 %v3789_v43, %v1977_v13  ;;  %v2963_v58 = vpop.f32.mrf.mxu1 }
 0x199   : > { %v2039_v48 = vmax.f32 %v2029_v34, 0.0  ;;  %v2000_v41 = vadd.f32 %v3789_v43, %v1983_v55  ;;  %v1947_v20 = vpop.f32.mrf.mxu0 }
 0x19a   : > { %v2494_v62 = vpack.c.bf16 %v2033_v21, %v2032_v1  ;;  %v1978_v32 = vadd.f32 %v1947_v20, %v1809_v30  ;;  %v1971_v37 = vpop.f32.mrf.mxu1  ;;  %v2024_v63 = vadd.f32 %v2477_v59, %v1994_v28 }
 0x19b   : > { %v2509_v50 = vpack.c.bf16 %v2039_v48, %v2038_v38  ;;  %v1984_v26 = vadd.f32 %v1971_v37, %v1815_v31  ;;  %v2952_v22 = vpop.f32.mrf.mxu0  ;;  %v2030_v57 = vadd.f32 %v2489_v33, %v2000_v41 }
 0x19c   : > { %2495 = vst [vmem:[%s3817_s26] sm:$0xff] %v2494_v62   ;;  %v1995_v44 = vadd.f32 %v3789_v43, %v1978_v32  ;;  %v2964_v56 = vpop.f32.mrf.mxu1  ;;  %v2034_v3 = vmax.f32 %v2024_v63, 0.0 }
 0x19d   : > { %2522 = vst [vmem:[%s3817_s26 + $0x18] sm:$0xff] %v2509_v50   ;;  %v2001_v61 = vadd.f32 %v3789_v43, %v1984_v26  ;;  %v1952_v45 = vpop.f32.mrf.mxu0  ;;  %v2040_v52 = vmax.f32 %v2030_v57, 0.0 }
 0x19e   : > { %v2025_v53 = vadd.f32 %v2478_v47, %v1995_v44  ;;  %v1979_v2 = vadd.f32 %v1952_v45, %v1810_v46 }
 0x19f   : > { %v2031_v7 = vadd.f32 %v2490_v54, %v2001_v61  ;;  %v2955_v0 = vpop.f32.mrf.mxu0 }
 0x1a0   : > { %v2035_v60 = vmax.f32 %v2025_v53, 0.0  ;;  %v1996_v9 = vadd.f32 %v3789_v43, %v1979_v2 }
 0x1a1   : > { %v2041_v40 = vmax.f32 %v2031_v7, 0.0  ;;  %v1955_v6 = vpop.f32.mrf.mxu0 }
 0x1a2   : > { %v2499_v36 = vpack.c.bf16 %v2035_v60, %v2034_v3  ;;  %v1980_v42 = vadd.f32 %v1955_v6, %v1811_v24  ;;  %v2026_v51 = vadd.f32 %v2481_v27, %v1996_v9 }
 0x1a3   : > { %v2514_v12 = vpack.c.bf16 %v2041_v40, %v2040_v52  ;;  %v2956_v4 = vpop.f32.mrf.mxu0 }
 0x1a4   : > { %2520 = vst [vmem:[%s3817_s26 + $0x8] sm:$0xff] %v2499_v36   ;;  %v1997_v16 = vadd.f32 %v3789_v43, %v1980_v42  ;;  %v2036_v5 = vmax.f32 %v2026_v51, 0.0 }
 0x1a5   : > { %2523 = vst [vmem:[%s3817_s26 + $0x20] sm:$0xff] %v2514_v12  }
 0x1a6   : > { %v2027_v17 = vadd.f32 %v2482_v11, %v1997_v16 }
 0x1a8   : > { %v2037_v15 = vmax.f32 %v2027_v17, 0.0 }
 0x1aa   : > { %v2504_v10 = vpack.c.bf16 %v2037_v15, %v2036_v5 }
 0x1ac   : > { %2521 = vst [vmem:[%s3817_s26 + $0x10] sm:$0xff] %v2504_v10  }
 0x1ad PF: > { %s14_s17 = sadd.s32 1, %s3126_s17   ;;  %s3848_s15 = smov %s3122_s16 }
 0x1ae   : > { %p11_p5 = scmp.ge.s32.totalorder %s14_s17, 4   ;;  %s3849_s16 = smov %s3851_s18 }
 0x1b0   :  { %13 = sbr.rel (!%p11_p5) target bundleno = 2 (0x2), region = 83 }

// kernel: dan_resnetv2_forward.21
= control target key start
LH: loop header
LB: loop body
LE: loop exit
PB: predicated region body
PF: predicated region fallthrough
CT: control target
= control target key end

     0   :  { %s3039_s12 = smov 0   ;;  %s3041_s13 = smov 0   ;;  %s3694_s0 = inlined_call_operand.vmem [shape: bf16[2,104,128], index: 0, kind: input, shape index: {}]   ;;  %s3695_s1 = inlined_call_operand.vmem [shape: bf16[9,128,128], index: 1, kind: input, shape index: {}]   ;;  %s3696_s2 = inlined_call_operand.vmem [shape: f32[1,128], index: 2, kind: input, shape index: {}]   ;;  %s3697_s3 = inlined_call_operand.vmem [shape: bf16[2,80,128], index: 3, kind: output, shape index: {}]  }
   0x1   :  { %s3043_s14 = smov 0  }
   0x2 LB: > { %s25_s15 = sadd.s32 1, %s3011_s13  ;;  %p2115_p0 = scmp.ge.s32.totalorder %s3015_s14, 1  ;;  %s3015_s14 = sphi %s3043_s14, %s13_s14   ;;  %s3011_s13 = sphi %s3041_s13, %s3699_s13   ;;  %s3007_s12 = sphi %s3039_s12, %s3698_s12  }
   0x3   : > { %p27_p1 = scmp.ge.s32.totalorder %s25_s15, 2  ;;  %p168_p2 = scmp.lt.s32.totalorder %s3015_s14, 3 }
   0x5   : > { %s3701_s15 = smov (%p27_p1, %s25_s15), 0  ;;  %p169_p3 = pnand %p2115_p0, %p168_p2 }
   0x6   : > { %p202_p4 = scmp.lt.s32.totalorder (!%p169_p3), %s3007_s12, 1 }
   0x7   : > { %172 = sbr.rel (%p169_p3) target bundleno = 439 (0x1b7), region = 32 }
   0xc   : > { %v2878_v0 = vld [vmem:[%s3695_s1 + $0x78] sm:$0xff]   ;;  %v3017_v1 = vmov 0.0   ;;  %v2880_v3 = vld [vmem:[%s3695_s1 + $0x70] sm:$0xff]   ;;  %vm3018_vm0 = vmmov 0   ;;  %s3703_s12 = smov (!%p202_p4, %s3007_s12), 1  ;;  %v2882_v5 = vld [vmem:[%s3695_s1 + $0x68] sm:$0xff]  }
   0xd   : > { %2510 = vmatprep.subr.bf16.mxu0 %v3017_v1  ;;  %2546 = vmatprep.subr.bf16.mxu1 %v3017_v1  ;;  %v2879_v2 = vld [vmem:[%s3695_s1 + $0x38] sm:$0xff]   ;;  %v2881_v4 = vld [vmem:[%s3695_s1 + $0x30] sm:$0xff]   ;;  %v2883_v6 = vld [vmem:[%s3695_s1 + $0x28] sm:$0xff]   ;;  %s2850_s28 = smul.u32 52, %s3703_s12  ;;  %vm295_vm1 = vsmask.f32 7424 }
   0xe   : > { %2511 = vmatpush3.bf16.msra.mxu0 %v2878_v0  ;;  %2526 = vmatprep.mubr.msk.bf16.mxu0 %vm3018_vm0, %v3017_v1  ;;  %v2884_v7 = vld [vmem:[%s3695_s1 + $0x60] sm:$0xff]   ;;  %v2886_v9 = vld [vmem:[%s3695_s1 + $0x58] sm:$0xff]   ;;  %v2888_v13 = vld [vmem:[%s3695_s1 + $0x50] sm:$0xff]   ;;  %vm613_vm2 = vcmask 1046528   ;;  %vm985_vm3 = vsmask.f32 6400 }
   0xf   : > { %2547 = vmatpush3.bf16.msra.mxu1 %v2879_v2  ;;  %2512 = vmatprep.subr.bf16.mxu0 %v3017_v1  ;;  %v2885_v8 = vld [vmem:[%s3695_s1 + $0x20] sm:$0xff]   ;;  %s3099_s8 = scalar_lea.vmem %s3694_s0, %s2850_s28  ;;  %v2887_v10 = vld [vmem:[%s3695_s1 + $0x18] sm:$0xff]   ;;  %v2889_v16 = vld [vmem:[%s3695_s1 + $0x10] sm:$0xff]   ;;  %vm1196_vm4 = vcmask 1045504   ;;  %vm1568_vm5 = vsmask.f32 5376 }
  0x10   : > { %2548 = vmatprep.subr.bf16.mxu1 %v3017_v1  ;;  %2562 = vmatprep.mubr.msk.bf16.mxu1 %vm3018_vm0, %v3017_v1  ;;  %v223_v11 = vld [vmem:[%s3099_s8] sm:$0xf]  ;;  %v3111_v12 = vld [vmem:[%s3099_s8 + $0x4] sm:$0xf]  ;;  %v3118_v15 = vld [vmem:[%s3099_s8 + $0x8] sm:$0xff]   ;;  %vm1779_vm6 = vcmask 1044480  }
  0x11   : > { %v2134_v14 = vcombine.low %v223_v11, %v3111_v12  ;;  %v2890_v18 = vld [vmem:[%s3695_s1 + $0x48] sm:$0xff]   ;;  %v304_v21 = vshll.u32 %v3118_v15, 16  ;;  %v2892_v23 = vld [vmem:[%s3695_s1 + $0x40] sm:$0xff]   ;;  %v3141_v27 = vld [vmem:[%s3099_s8 + $0x10] sm:$0xff]   ;;  %v308_v30 = vshrl.u32 %v3118_v15, 16  ;;  %s2851_s5 = smul.u32 40, %s3703_s12 }
  0x12   : > { %2513 = vmatpush3.bf16.msra.mxu0 %v2880_v3  ;;  %v2891_v22 = vld [vmem:[%s3695_s1 + $0x8] sm:$0xff]   ;;  %v2893_v24 = vld [vmem:[%s3695_s1] sm:$0xff]   ;;  %v2896_v28 = vld [vmem:[%s3695_s1 + $0xb8] sm:$0xff]   ;;  %v312_v31 = vshll.u32 %v3141_v27, 16  ;;  %v316_v41 = vshrl.u32 %v3141_v27, 16 }
  0x13   : > { %2549 = vmatpush3.bf16.msra.mxu1 %v2881_v4  ;;  %2514 = vmatprep.subr.bf16.mxu0 %v3017_v1  ;;  %v299_v17 = vshll.u32 %v2134_v14, 16  ;;  %v297_v19 = vshrl.u32 %v2134_v14, 16  ;;  %v306_v26 = vrot.slane %v304_v21, 1  ;;  %v2899_v32 = vld [vmem:[%s3695_s1 + $0xf8] sm:$0xff]   ;;  %v2897_v34 = vld [vmem:[%s3695_s1 + $0xb0] sm:$0xff]   ;;  %v2900_v40 = vld [vmem:[%s3695_s1 + $0xa8] sm:$0xff]   ;;  %s221_s9 = scalar_lea.vmem %s3697_s3, %s2851_s5 }
  0x14   : > { %2550 = vmatprep.subr.bf16.mxu1 %v3017_v1  ;;  %v3157_v33 = vld [vmem:[%s3099_s8 + $0x18] sm:$0xff]   ;;  %v314_v36 = vrot.slane %v312_v31, 1  ;;  %v2901_v37 = vld [vmem:[%s3695_s1 + $0xf0] sm:$0xff]   ;;  %v2904_v42 = vld [vmem:[%s3695_s1 + $0xe8] sm:$0xff]   ;;  %v617_v21 = vrot.slane %v3141_v27, 1 }
  0x15   : > { %v301_v20 = vrot.slane %v299_v17, 1  ;;  %v310_v35 = vor.u32 %v308_v30, %v306_v26  ;;  %v320_v38 = vshll.u32 %v3157_v33, 16  ;;  %v2903_v44 = vld [vmem:[%s3695_s1 + $0xa0] sm:$0xff]   ;;  %v2905_v48 = vld [vmem:[%s3695_s1 + $0x98] sm:$0xff]   ;;  %v324_v50 = vshrl.u32 %v3157_v33, 16  ;;  %v2909_v56 = vld [vmem:[%s3695_s1 + $0x90] sm:$0xff]  }
  0x16   : > { %2515 = vmatpush3.bf16.msra.mxu0 %v2882_v5  ;;  %v3186_v45 = vld [vmem:[%s3099_s8 + $0x20] sm:$0xff]   ;;  %v318_v46 = vor.u32 %v316_v41, %v314_v36  ;;  %v2908_v52 = vld [vmem:[%s3695_s1 + $0xd8] sm:$0xff]   ;;  %v3209_v53 = vld [vmem:[%s3099_s8 + $0x28] ss:$0 sps:$4 sm:$0x11]  }
  0x17   : > { %2551 = vmatpush3.bf16.msra.mxu1 %v2883_v6  ;;  %2516 = vmatprep.subr.bf16.mxu0 %v3017_v1  ;;  %v302_v25 = vor.u32 %v301_v20, %v297_v19  ;;  %v315_v39 = vsel %vm295_vm1, %v310_v35, %v314_v36  ;;  %v322_v43 = vrot.slane %v320_v38, 1  ;;  %v2906_v47 = vld [vmem:[%s3695_s1 + $0xe0] sm:$0xff]   ;;  %v328_v51 = vshll.u32 %v3186_v45, 16  ;;  %v2910_v57 = vld [vmem:[%s3695_s1 + $0xd0] sm:$0xff]   ;;  %v2911_v61 = vld [vmem:[%s3695_s1 + $0x88] sm:$0xff]  }
  0x18   : > { %2552 = vmatprep.subr.bf16.mxu1 %v3017_v1  ;;  %v332_v59 = vshrl.u32 %v3186_v45, 16  ;;  %v336_v60 = vshll.u32 %v3209_v53, 16  ;;  %v2913_v62 = vld [vmem:[%s3695_s1 + $0xc8] sm:$0xff]   ;;  %v2914_v63 = vld [vmem:[%s3695_s1 + $0x80] sm:$0xff]   ;;  %v2919_v17 = vld [vmem:[%s3695_s1 + $0x138] sm:$0xff]   ;;  %v621_v38 = vrot.slane %v3186_v45, 1 }
  0x19   : > { %v307_v29 = vsel %vm295_vm1, %v302_v25, %v306_v26  ;;  %v323_v49 = vsel %vm295_vm1, %v318_v46, %v322_v43  ;;  %v326_v54 = vor.u32 %v324_v50, %v322_v43  ;;  %v330_v55 = vrot.slane %v328_v51, 1  ;;  %v2915_v3 = vld [vmem:[%s3695_s1 + $0xc0] sm:$0xff]   ;;  %v3251_v6 = vld [vmem:[%s3099_s8 + $0x8] sm:$0xf]  ;;  %v3278_v19 = vld [vmem:[%s3099_s8 + $0x14] sm:$0xff]  }
  0x1a   : > { %2517 = vmatpush3.bf16.msra.mxu0 %v2884_v7  ;;  %v338_v2 = vrot.slane %v336_v60, 1  ;;  %v592_v4 = vld [vmem:[%s3099_s8] sm:$0xe]  ;;  %v761_v5 = vld [vmem:[%s3099_s8 + $0x4] sm:$0xe]  ;;  %v2920_v20 = vld [vmem:[%s3695_s1 + $0x130] sm:$0xff]  }
  0x1b   : > { %2553 = vmatpush3.bf16.msra.mxu1 %v2885_v8  ;;  %2518 = vmatprep.subr.bf16.mxu0 %v3017_v1  ;;  %v331_v58 = vsel %vm295_vm1, %v326_v54, %v330_v55  ;;  %v334_v0 = vor.u32 %v332_v59, %v330_v55  ;;  %v2172_v8 = vcombine.low %v592_v4, %v3111_v12  ;;  %v615_v12 = vrot.slane %v3118_v15, 1  ;;  %v2923_v25 = vld [vmem:[%s3695_s1 + $0x128] sm:$0xff]   ;;  %v2926_v30 = vld [vmem:[%s3695_s1 + $0x120] sm:$0xff]   ;;  %v2933_v41 = vld [vmem:[%s3695_s1 + $0x150] sm:$0xff]  }
  0x1c   : > { %2554 = vmatprep.subr.bf16.mxu1 %v3017_v1  ;;  %v3331_v36 = vld [vmem:[%s3099_s8 + $0x24] sm:$0xff]   ;;  %v2935_v43 = vld [vmem:[%s3099_s8 + $0x2c] ss:$0 sps:$4 sm:$0x11]  }
  0x1d   : > { %v339_v7 = vsel %vm295_vm1, %v334_v0, %v338_v2  ;;  %v614_v11 = vrot.slane %v2172_v8, 1  ;;  %v2936_v46 = vld [vmem:[%s3695_s1 + $0x148] sm:$0xff]   ;;  %v2938_v54 = vld [vmem:[%s3695_s1 + $0x140] sm:$0xff]   ;;  %v1004_v2 = vshrl.u32 %v3278_v19, 16 }
  0x1e   : > { %2519 = vmatpush3.bf16.msra.mxu0 %v2886_v9  ;;  %v3257_v9 = vcombine.low %v761_v5, %v3251_v6  ;;  %v1175_v55 = vld [vmem:[%s3099_s8 + $0x4] sm:$0xc] }
  0x1f   : > { %2555 = vmatpush3.bf16.msra.mxu1 %v2887_v10  ;;  %2520 = vmatprep.subr.bf16.mxu0 %v3017_v1  ;;  %v3260_v10 = vld [vmem:[%s3099_s8 + $0xc] sm:$0xff]   ;;  %v1006_v8 = vrot.slane %v1004_v2, 1 }
  0x20   : > { %2556 = vmatprep.subr.bf16.mxu1 %v3017_v1  ;;  %v995_v50 = vshrl.u32 %v3260_v10, 16  ;;  %v998_v51 = vshll.u32 %v3260_v10, 16  ;;  %v1198_v5 = vrot.slane %v3260_v10, 2 }
  0x22   : > { %2521 = vmatpush3.bf16.msra.mxu0 %v2888_v13  ;;  %v817_v13 = vrot.slane %v3257_v9, 1  ;;  %v997_v59 = vrot.slane %v995_v50, 1  ;;  %v1000_v60 = vrot.slane %v998_v51, 2  ;;  %v3476_v51 = vld [vmem:[%s3099_s8 + $0x10] sm:$0xff]  }
  0x23   : > { %2557 = vmatpush3.bf16.msra.mxu1 %v2889_v16  ;;  %2522 = vmatprep.subr.bf16.mxu0 %v3017_v1  ;;  %v616_v16 = vsel %vm613_vm2, %v614_v11, %v615_v12 }
  0x24   : > { %2558 = vmatprep.subr.bf16.mxu1 %v3017_v1  ;;  %v1001_v0 = vor.u32 %v1000_v60, %v997_v59  ;;  %v1581_v59 = vshll.u32 %v3476_v51, 16  ;;  %v2956_v60 = vld [vmem:[%s3695_s1 + $0x1c0] sm:$0xff]  }
  0x26   : > { %2523 = vmatpush3.bf16.msra.mxu0 %v2890_v18 }
  0x27   : > { %2559 = vmatpush3.bf16.msra.mxu1 %v2891_v22  ;;  %2524 = vmatprep.subr.bf16.mxu0 %v3017_v1  ;;  %v820_v22 = vrot.slane %v3278_v19, 1 }
  0x28   : > { %2560 = vmatprep.subr.bf16.mxu1 %v3017_v1 }
  0x2a   : > { %2525 = vmatpush3.bf16.msra.mxu0 %v2892_v23  ;;  %v2924_v23 = vld [vmem:[%s3695_s1 + $0x170] sm:$0xff]  }
  0x2b   : > { %2561 = vmatpush3.bf16.msra.mxu1 %v2893_v24  ;;  %2582 = vmatprep.subr.bf16.mxu0 %v3017_v1  ;;  %v618_v24 = vsel %vm613_vm2, %v615_v12, %v617_v21  ;;  %v2942_v12 = vld [vmem:[%s3695_s1 + $0x1f8] sm:$0xff]  }
  0x2c   : > { %2618 = vmatprep.subr.bf16.mxu1 %v3017_v1 }
  0x2d   : > { %2527 = vmatmul.mubr.bf16.vlgmr.msra.gmra.mxu0 %v307_v29  ;;  %v619_v29 = vrot.slane %v3157_v33, 1 }
  0x2e   : > { %2563 = vmatmul.mubr.bf16.vlgmr.msra.gmra.mxu1 %v2134_v14  ;;  %2583 = vmatpush3.bf16.msra.mxu0 %v2896_v28  ;;  %v818_v14 = vrot.slane %v3260_v10, 1  ;;  %v2927_v28 = vld [vmem:[%s3695_s1 + $0x168] sm:$0xff]   ;;  %v2941_v10 = vld [vmem:[%s3695_s1 + $0x1b0] sm:$0xff]  }
  0x2f   : > { %2584 = vmatprep.subr.bf16.mxu0 %v3017_v1  ;;  %2530 = vmatprep.mubr.msk.bf16.mxu0 %vm3018_vm0, %v3017_v1 }
  0x30   : > { %2566 = vmatprep.mubr.msk.bf16.mxu1 %vm3018_vm0, %v3017_v1  ;;  %2619 = vmatpush3.bf16.msra.mxu1 %v2899_v32  ;;  %v819_v18 = vsel %vm613_vm2, %v817_v13, %v818_v14  ;;  %v821_v26 = vsel %vm613_vm2, %v818_v14, %v820_v22  ;;  %v2929_v32 = vld [vmem:[%s3695_s1 + $0x160] sm:$0xff]  }
  0x31   : > { %2620 = vmatprep.subr.bf16.mxu1 %v3017_v1 }
  0x32   : > { %2585 = vmatpush3.bf16.msra.mxu0 %v2897_v34  ;;  %v2928_v34 = vld [vmem:[%s3695_s1 + $0x118] sm:$0xff]  }
  0x33   : > { %2586 = vmatprep.subr.bf16.mxu0 %v3017_v1 }
  0x34   : > { %2621 = vmatpush3.bf16.msra.mxu1 %v2901_v37  ;;  %v2931_v37 = vld [vmem:[%s3695_s1 + $0x158] sm:$0xff]  }
  0x35   : > { %2531 = vmatmul.mubr.bf16.gmra.mxu0 %v315_v39  ;;  %2622 = vmatprep.subr.bf16.mxu1 %v3017_v1  ;;  %v2932_v39 = vld [vmem:[%s3695_s1 + $0x110] sm:$0xff]  }
  0x36   : > { %2567 = vmatmul.mubr.bf16.gmra.mxu1 %v3118_v15  ;;  %2587 = vmatpush3.bf16.msra.mxu0 %v2900_v40  ;;  %v2922_v15 = vld [vmem:[%s3695_s1 + $0x178] sm:$0xff]   ;;  %v824_v40 = vrot.slane %v3331_v36, 1 }
  0x37   : > { %2534 = vmatprep.mubr.msk.bf16.mxu0 %vm3018_vm0, %v3017_v1  ;;  %2570 = vmatprep.mubr.msk.bf16.mxu1 %vm3018_vm0, %v3017_v1 }
  0x38   : > { %2588 = vmatprep.subr.bf16.mxu0 %v3017_v1  ;;  %2623 = vmatpush3.bf16.msra.mxu1 %v2904_v42  ;;  %v622_v42 = vsel %vm613_vm2, %v619_v29, %v621_v38 }
  0x39   : > { %2624 = vmatprep.subr.bf16.mxu1 %v3017_v1 }
  0x3a   : > { %2589 = vmatpush3.bf16.msra.mxu0 %v2903_v44 }
  0x3b   : > { %2590 = vmatprep.subr.bf16.mxu0 %v3017_v1 }
  0x3c   : > { %2625 = vmatpush3.bf16.msra.mxu1 %v2906_v47  ;;  %v623_v47 = vrot.slane %v3209_v53, 1  ;;  %v2937_v53 = vld [vmem:[%s3695_s1 + $0x100] sm:$0xff]  }
  0x3d   : > { %2535 = vmatmul.mubr.bf16.gmra.mxu0 %v323_v49  ;;  %2626 = vmatprep.subr.bf16.mxu1 %v3017_v1  ;;  %v990_v49 = vshll.u32 %v3257_v9, 16 }
  0x3e   : > { %2571 = vmatmul.mubr.bf16.gmra.mxu1 %v3141_v27  ;;  %2591 = vmatpush3.bf16.msra.mxu0 %v2905_v48  ;;  %v3304_v27 = vld [vmem:[%s3099_s8 + $0x1c] sm:$0xff]   ;;  %v987_v48 = vshrl.u32 %v3257_v9, 16 }
  0x3f   : > { %2538 = vmatprep.mubr.msk.bf16.mxu0 %vm3018_vm0, %v3017_v1  ;;  %2574 = vmatprep.mubr.msk.bf16.mxu1 %vm3018_vm0, %v3017_v1  ;;  %v822_v31 = vrot.slane %v3304_v27, 1  ;;  %v1013_v14 = vshrl.u32 %v3304_v27, 16 }
  0x40   : > { %2592 = vmatprep.subr.bf16.mxu0 %v3017_v1  ;;  %2627 = vmatpush3.bf16.msra.mxu1 %v2908_v52  ;;  %v826_v52 = vrot.slane %v2935_v43, 1  ;;  %v2951_v43 = vld [vmem:[%s3695_s1 + $0x1d0] sm:$0xff]  }
  0x41   : > { %2628 = vmatprep.subr.bf16.mxu1 %v3017_v1  ;;  %v823_v35 = vsel %vm613_vm2, %v820_v22, %v822_v31  ;;  %v825_v44 = vsel %vm613_vm2, %v822_v31, %v824_v40 }
  0x42   : > { %2593 = vmatpush3.bf16.msra.mxu0 %v2909_v56  ;;  %v624_v56 = vsel %vm613_vm2, %v621_v38, %v623_v47 }
  0x43   : > { %2594 = vmatprep.subr.bf16.mxu0 %v3017_v1 }
  0x44   : > { %2629 = vmatpush3.bf16.msra.mxu1 %v2910_v57  ;;  %v989_v57 = vrot.slane %v987_v48, 1 }
  0x45   : > { %2539 = vmatmul.mubr.bf16.gmra.mxu0 %v331_v58  ;;  %2630 = vmatprep.subr.bf16.mxu1 %v3017_v1  ;;  %v992_v58 = vrot.slane %v990_v49, 2 }
  0x46   : > { %2575 = vmatmul.mubr.bf16.gmra.mxu1 %v3157_v33  ;;  %2542 = vmatprep.mubr.msk.bf16.mxu0 %vm3018_vm0, %v3017_v1  ;;  %v620_v33 = vsel %vm613_vm2, %v617_v21, %v619_v29  ;;  %v1015_v21 = vrot.slane %v1013_v14, 1  ;;  %v1202_v29 = vrot.slane %v3304_v27, 2 }
  0x47   : > { %2578 = vmatprep.mubr.msk.bf16.mxu1 %vm3018_vm0, %v3017_v1  ;;  %2595 = vmatpush3.bf16.msra.mxu0 %v2911_v61  ;;  %v827_v61 = vsel %vm613_vm2, %v824_v40, %v826_v52  ;;  %v2954_v52 = vld [vmem:[%s3695_s1 + $0x1c8] sm:$0xff]  }
  0x48   : > { %2631 = vmatpush3.bf16.msra.mxu1 %v2913_v62  ;;  %2596 = vmatprep.subr.bf16.mxu0 %v3017_v1  ;;  %v2252_v62 = vcombine.low %v1175_v55, %v3251_v6  ;;  %v2955_v55 = vld [vmem:[%s3695_s1 + $0x180] sm:$0xff]  }
  0x49   : > { %2632 = vmatprep.subr.bf16.mxu1 %v3017_v1 }
  0x4a   : > { %v1197_v4 = vrot.slane %v2252_v62, 2 }
  0x4b   : > { %2597 = vmatpush3.bf16.msra.mxu0 %v2914_v63  ;;  %v993_v63 = vor.u32 %v992_v58, %v989_v57  ;;  %v1578_v58 = vshrl.u32 %v3476_v51, 16 }
  0x4c   : > { %2633 = vmatpush3.bf16.msra.mxu1 %v2915_v3  ;;  %2654 = vmatprep.subr.bf16.mxu0 %v3017_v1  ;;  %v1007_v3 = vshll.u32 %v3278_v19, 16  ;;  %v1199_v11 = vsel %vm1196_vm4, %v1197_v4, %v1198_v5  ;;  %v3499_v4 = vld [vmem:[%s3099_s8 + $0x18] sm:$0xff]  }
  0x4d   : > { %2543 = vmatmul.mubr.bf16.gmra.mxu0 %v339_v7  ;;  %2690 = vmatprep.subr.bf16.mxu1 %v3017_v1  ;;  %v1002_v6 = vsel %vm985_vm3, %v993_v63, %v1001_v0  ;;  %v2940_v7 = vld [vmem:[%s3695_s1 + $0x1b8] sm:$0xff]   ;;  %v1580_v2 = vrot.slane %v1578_v58, 2 }
  0x4e   : > { %2579 = vmatmul.mubr.bf16.gmra.mxu1 %v3186_v45  ;;  %2598 = vmatprep.mubr.msk.bf16.mxu0 %vm3018_vm0, %v3017_v1  ;;  %v2934_v45 = vld [vmem:[%s3695_s1 + $0x108] sm:$0xff]   ;;  %v1009_v9 = vrot.slane %v1007_v3, 2  ;;  %v1583_v3 = vrot.slane %v1581_v59, 3 }
  0x4f   : > { %2634 = vmatprep.mubr.msk.bf16.mxu1 %vm3018_vm0, %v3017_v1 }
  0x50   : > { %v1010_v13 = vor.u32 %v1009_v9, %v1006_v8  ;;  %v1584_v8 = vor.u32 %v1583_v3, %v1580_v2  ;;  %v1587_v9 = vshrl.u32 %v3499_v4, 16 }
  0x52   : > { %v1589_v14 = vrot.slane %v1587_v9, 2 }
  0x55   : > { %2599 = vmatmul.mubr.bf16.vlgmr.msra.gmra.mxu0 %v616_v16  ;;  %v1016_v16 = vshll.u32 %v3304_v27, 16 }
  0x56   : > { %2635 = vmatmul.mubr.bf16.vlgmr.msra.gmra.mxu1 %v819_v18  ;;  %2655 = vmatpush3.bf16.msra.mxu0 %v2919_v17  ;;  %v1200_v17 = vrot.slane %v3278_v19, 2  ;;  %v2944_v18 = vld [vmem:[%s3695_s1 + $0x1f0] sm:$0xff]  }
  0x57   : > { %2656 = vmatprep.subr.bf16.mxu0 %v3017_v1  ;;  %2602 = vmatprep.mubr.msk.bf16.mxu0 %vm3018_vm0, %v3017_v1  ;;  %v1018_v22 = vrot.slane %v1016_v16, 2 }
  0x58   : > { %2638 = vmatprep.mubr.msk.bf16.mxu1 %vm3018_vm0, %v3017_v1  ;;  %2691 = vmatpush3.bf16.msra.mxu1 %v2922_v15  ;;  %v1011_v15 = vsel %vm985_vm3, %v1001_v0, %v1010_v13  ;;  %v1201_v19 = vsel %vm1196_vm4, %v1198_v5, %v1200_v17  ;;  %v1203_v27 = vsel %vm1196_vm4, %v1200_v17, %v1202_v29  ;;  %v3516_v17 = vld [vmem:[%s3099_s8 + $0x20] sm:$0xff]  }
  0x59   : > { %2692 = vmatprep.subr.bf16.mxu1 %v3017_v1 }
  0x5a   : > { %2657 = vmatpush3.bf16.msra.mxu0 %v2920_v20  ;;  %v2943_v20 = vld [vmem:[%s3695_s1 + $0x1a8] sm:$0xff]  }
  0x5b   : > { %2658 = vmatprep.subr.bf16.mxu0 %v3017_v1 }
  0x5c   : > { %2693 = vmatpush3.bf16.msra.mxu1 %v2924_v23  ;;  %v2946_v23 = vld [vmem:[%s3695_s1 + $0x1e8] sm:$0xff]  }
  0x5d   : > { %2603 = vmatmul.mubr.bf16.gmra.mxu0 %v618_v24  ;;  %2694 = vmatprep.subr.bf16.mxu1 %v3017_v1  ;;  %v1019_v24 = vor.u32 %v1018_v22, %v1015_v21  ;;  %v1596_v21 = vshrl.u32 %v3516_v17, 16  ;;  %v1599_v22 = vshll.u32 %v3516_v17, 16 }
  0x5e   : > { %2639 = vmatmul.mubr.bf16.gmra.mxu1 %v821_v26  ;;  %2659 = vmatpush3.bf16.msra.mxu0 %v2923_v25  ;;  %v2945_v25 = vld [vmem:[%s3695_s1 + $0x1a0] sm:$0xff]   ;;  %v1022_v26 = vshrl.u32 %v3331_v36, 16 }
  0x5f   : > { %2606 = vmatprep.mubr.msk.bf16.mxu0 %vm3018_vm0, %v3017_v1  ;;  %2642 = vmatprep.mubr.msk.bf16.mxu1 %vm3018_vm0, %v3017_v1  ;;  %v1020_v31 = vsel %vm985_vm3, %v1010_v13, %v1019_v24 }
  0x60   : > { %2660 = vmatprep.subr.bf16.mxu0 %v3017_v1  ;;  %2695 = vmatpush3.bf16.msra.mxu1 %v2927_v28  ;;  %v1025_v28 = vshll.u32 %v3331_v36, 16 }
  0x61   : > { %2696 = vmatprep.subr.bf16.mxu1 %v3017_v1 }
  0x62   : > { %2661 = vmatpush3.bf16.msra.mxu0 %v2926_v30  ;;  %v2948_v30 = vld [vmem:[%s3695_s1 + $0x1e0] sm:$0xff]  }
  0x63   : > { %2662 = vmatprep.subr.bf16.mxu0 %v3017_v1 }
  0x64   : > { %2697 = vmatpush3.bf16.msra.mxu1 %v2929_v32  ;;  %v2947_v32 = vld [vmem:[%s3695_s1 + $0x198] sm:$0xff]  }
  0x65   : > { %2607 = vmatmul.mubr.bf16.gmra.mxu0 %v620_v33  ;;  %2698 = vmatprep.subr.bf16.mxu1 %v3017_v1  ;;  %v1024_v33 = vrot.slane %v1022_v26, 1  ;;  %v1601_v26 = vrot.slane %v1599_v22, 3 }
  0x66   : > { %2643 = vmatmul.mubr.bf16.gmra.mxu1 %v823_v35  ;;  %2663 = vmatpush3.bf16.msra.mxu0 %v2928_v34  ;;  %v1027_v34 = vrot.slane %v1025_v28, 2  ;;  %v2953_v35 = vld [vmem:[%s3099_s8 + $0x2c] ss:$0 sps:$4 sm:$0x33]  }
  0x67   : > { %2610 = vmatprep.mubr.msk.bf16.mxu0 %vm3018_vm0, %v3017_v1  ;;  %2646 = vmatprep.mubr.msk.bf16.mxu1 %vm3018_vm0, %v3017_v1  ;;  %v1031_v40 = vshrl.u32 %v2953_v35, 16  ;;  %v3537_v28 = vld [vmem:[%s3099_s8 + $0x28] sm:$0xff]  }
  0x68   : > { %2664 = vmatprep.subr.bf16.mxu0 %v3017_v1  ;;  %2699 = vmatpush3.bf16.msra.mxu1 %v2931_v37  ;;  %v2949_v37 = vld [vmem:[%s3695_s1 + $0x1d8] sm:$0xff]   ;;  %v1028_v38 = vor.u32 %v1027_v34, %v1024_v33  ;;  %v1608_v33 = vshll.u32 %v3537_v28, 16 }
  0x69   : > { %2700 = vmatprep.subr.bf16.mxu1 %v3017_v1  ;;  %v1033_v47 = vrot.slane %v1031_v40, 1  ;;  %v1407_v40 = vrot.slane %v3537_v28, 2 }
  0x6a   : > { %2665 = vmatpush3.bf16.msra.mxu0 %v2932_v39  ;;  %v2950_v39 = vld [vmem:[%s3695_s1 + $0x190] sm:$0xff]  }
  0x6b   : > { %2666 = vmatprep.subr.bf16.mxu0 %v3017_v1 }
  0x6c   : > { %2701 = vmatpush3.bf16.msra.mxu1 %v2933_v41  ;;  %v1034_v41 = vshll.u32 %v2953_v35, 16 }
  0x6d   : > { %2611 = vmatmul.mubr.bf16.gmra.mxu0 %v622_v42  ;;  %2702 = vmatprep.subr.bf16.mxu1 %v3017_v1  ;;  %v1204_v42 = vrot.slane %v3331_v36, 2  ;;  %v2952_v36 = vld [vmem:[%s3695_s1 + $0x188] sm:$0xff]  }
  0x6e   : > { %2647 = vmatmul.mubr.bf16.gmra.mxu1 %v825_v44  ;;  %2614 = vmatprep.mubr.msk.bf16.mxu0 %vm3018_vm0, %v3017_v1  ;;  %v1344_v44 = vld [vmem:[%s3099_s8 + $0x8] sm:$0xc]  ;;  %v1036_v48 = vrot.slane %v1034_v41, 2  ;;  %v2967_v41 = vld [vmem:[%s3695_s1 + $0x210] sm:$0xff]  }
  0x6f   : > { %2650 = vmatprep.mubr.msk.bf16.mxu1 %vm3018_vm0, %v3017_v1  ;;  %2667 = vmatpush3.bf16.msra.mxu0 %v2934_v45  ;;  %v3465_v45 = vld [vmem:[%s3099_s8 + $0xc] sm:$0xf]  ;;  %v1205_v49 = vsel %vm1196_vm4, %v1202_v29, %v1204_v42  ;;  %v1405_v29 = vrot.slane %v3516_v17, 2 }
  0x70   : > { %2703 = vmatpush3.bf16.msra.mxu1 %v2936_v46  ;;  %2668 = vmatprep.subr.bf16.mxu0 %v3017_v1  ;;  %v1029_v46 = vsel %vm985_vm3, %v1019_v24, %v1028_v38  ;;  %v2277_v50 = vcombine.low %v1344_v44, %v3465_v45 }
  0x71   : > { %2704 = vmatprep.subr.bf16.mxu1 %v3017_v1 }
  0x72   : > { %v1573_v57 = vshll.u32 %v2277_v50, 16  ;;  %v1400_v5 = vrot.slane %v2277_v50, 2 }
  0x73   : > { %2669 = vmatpush3.bf16.msra.mxu0 %v2937_v53  ;;  %v1037_v53 = vor.u32 %v1036_v48, %v1033_v47  ;;  %v2969_v47 = vld [vmem:[%s3099_s8 + $0x30] ss:$0 sps:$4 sm:$0x33]  }
  0x74   : > { %2705 = vmatpush3.bf16.msra.mxu1 %v2938_v54  ;;  %2726 = vmatprep.subr.bf16.mxu0 %v3017_v1  ;;  %v1206_v54 = vrot.slane %v2953_v35, 2  ;;  %v1575_v0 = vrot.slane %v1573_v57, 3  ;;  %v2965_v35 = vld [vmem:[%s3695_s1 + $0x218] sm:$0xff]  }
  0x75   : > { %2615 = vmatmul.mubr.bf16.gmra.mxu0 %v624_v56  ;;  %2762 = vmatprep.subr.bf16.mxu1 %v3017_v1  ;;  %v1570_v56 = vshrl.u32 %v2277_v50, 16 }
  0x76   : > { %2651 = vmatmul.mubr.bf16.gmra.mxu1 %v827_v61  ;;  %2670 = vmatprep.mubr.msk.bf16.mxu0 %vm3018_vm0, %v3017_v1  ;;  %v1038_v61 = vsel %vm985_vm3, %v1028_v38, %v1037_v53  ;;  %v1207_v62 = vsel %vm1196_vm4, %v1204_v42, %v1206_v54  ;;  %v1610_v38 = vrot.slane %v1608_v33, 3  ;;  %v2971_v54 = vld [vmem:[%s3695_s1 + $0x200] sm:$0xff]  }
  0x77   : > { %2706 = vmatprep.mubr.msk.bf16.mxu1 %vm3018_vm0, %v3017_v1  ;;  %v1572_v63 = vrot.slane %v1570_v56, 2 }
  0x7d   : > { %2671 = vmatmul.mubr.bf16.vlgmr.msra.gmra.mxu0 %v1002_v6  ;;  %v1401_v6 = vrot.slane %v3476_v51, 2 }
  0x7e   : > { %2707 = vmatmul.mubr.bf16.vlgmr.msra.gmra.mxu1 %v1199_v11  ;;  %2727 = vmatpush3.bf16.msra.mxu0 %v2940_v7  ;;  %v1576_v7 = vor.u32 %v1575_v0, %v1572_v63  ;;  %v1590_v11 = vshll.u32 %v3499_v4, 16  ;;  %v1783_v0 = vrot.slane %v3499_v4, 3 }
  0x7f   : > { %2728 = vmatprep.subr.bf16.mxu0 %v3017_v1  ;;  %2674 = vmatprep.mubr.msk.bf16.mxu0 %vm3018_vm0, %v3017_v1 }
  0x80   : > { %2710 = vmatprep.mubr.msk.bf16.mxu1 %vm3018_vm0, %v3017_v1  ;;  %2763 = vmatpush3.bf16.msra.mxu1 %v2942_v12  ;;  %v1402_v12 = vsel %vm1196_vm4, %v1400_v5, %v1401_v6  ;;  %v1585_v13 = vsel %vm1568_vm5, %v1576_v7, %v1584_v8  ;;  %v1592_v16 = vrot.slane %v1590_v11, 3 }
  0x81   : > { %2764 = vmatprep.subr.bf16.mxu1 %v3017_v1 }
  0x82   : > { %2729 = vmatpush3.bf16.msra.mxu0 %v2941_v10  ;;  %v2959_v10 = vld [vmem:[%s3695_s1 + $0x238] sm:$0xff]  }
  0x83   : > { %2730 = vmatprep.subr.bf16.mxu0 %v3017_v1 }
  0x84   : > { %2765 = vmatpush3.bf16.msra.mxu1 %v2944_v18  ;;  %v2960_v18 = vld [vmem:[%s3695_s1 + $0x230] sm:$0xff]  }
  0x85   : > { %2675 = vmatmul.mubr.bf16.gmra.mxu0 %v1011_v15  ;;  %2766 = vmatprep.subr.bf16.mxu1 %v3017_v1  ;;  %v1403_v15 = vrot.slane %v3499_v4, 2 }
  0x86   : > { %2711 = vmatmul.mubr.bf16.gmra.mxu1 %v1201_v19  ;;  %2731 = vmatpush3.bf16.msra.mxu0 %v2943_v20  ;;  %v1593_v20 = vor.u32 %v1592_v16, %v1589_v14 }
  0x87   : > { %2678 = vmatprep.mubr.msk.bf16.mxu0 %vm3018_vm0, %v3017_v1  ;;  %2714 = vmatprep.mubr.msk.bf16.mxu1 %vm3018_vm0, %v3017_v1  ;;  %v1404_v19 = vsel %vm1196_vm4, %v1401_v6, %v1403_v15  ;;  %v1406_v34 = vsel %vm1196_vm4, %v1403_v15, %v1405_v29 }
  0x88   : > { %2732 = vmatprep.subr.bf16.mxu0 %v3017_v1  ;;  %2767 = vmatpush3.bf16.msra.mxu1 %v2946_v23  ;;  %v2962_v23 = vld [vmem:[%s3695_s1 + $0x228] sm:$0xff]   ;;  %v1594_v24 = vsel %vm1568_vm5, %v1584_v8, %v1593_v20 }
  0x89   : > { %2768 = vmatprep.subr.bf16.mxu1 %v3017_v1 }
  0x8a   : > { %2733 = vmatpush3.bf16.msra.mxu0 %v2945_v25  ;;  %v1598_v25 = vrot.slane %v1596_v21, 2 }
  0x8b   : > { %2734 = vmatprep.subr.bf16.mxu0 %v3017_v1 }
  0x8c   : > { %2769 = vmatpush3.bf16.msra.mxu1 %v2948_v30  ;;  %v2964_v30 = vld [vmem:[%s3695_s1 + $0x220] sm:$0xff]  }
  0x8d   : > { %2679 = vmatmul.mubr.bf16.gmra.mxu0 %v1020_v31  ;;  %2770 = vmatprep.subr.bf16.mxu1 %v3017_v1  ;;  %v1602_v31 = vor.u32 %v1601_v26, %v1598_v25 }
  0x8e   : > { %2715 = vmatmul.mubr.bf16.gmra.mxu1 %v1203_v27  ;;  %2735 = vmatpush3.bf16.msra.mxu0 %v2947_v32  ;;  %v1605_v32 = vshrl.u32 %v3537_v28, 16 }
  0x8f   : > { %2682 = vmatprep.mubr.msk.bf16.mxu0 %vm3018_vm0, %v3017_v1  ;;  %2718 = vmatprep.mubr.msk.bf16.mxu1 %vm3018_vm0, %v3017_v1  ;;  %v1603_v27 = vsel %vm1568_vm5, %v1593_v20, %v1602_v31 }
  0x90   : > { %2736 = vmatprep.subr.bf16.mxu0 %v3017_v1  ;;  %2771 = vmatpush3.bf16.msra.mxu1 %v2949_v37  ;;  %v1607_v37 = vrot.slane %v1605_v32, 2 }
  0x91   : > { %2772 = vmatprep.subr.bf16.mxu1 %v3017_v1 }
  0x92   : > { %2737 = vmatpush3.bf16.msra.mxu0 %v2950_v39  ;;  %v3559_v39 = vld [vmem:[%s3099_s8 + $0x30] ss:$0 sps:$4 sm:$0x77]   ;;  %v1611_v42 = vor.u32 %v1610_v38, %v1607_v37 }
  0x93   : > { %2738 = vmatprep.subr.bf16.mxu0 %v3017_v1  ;;  %v1617_v44 = vshll.u32 %v3559_v39, 16 }
  0x94   : > { %2773 = vmatpush3.bf16.msra.mxu1 %v2951_v43  ;;  %v1614_v43 = vshrl.u32 %v3559_v39, 16  ;;  %v1612_v48 = vsel %vm1568_vm5, %v1602_v31, %v1611_v42 }
  0x95   : > { %2683 = vmatmul.mubr.bf16.gmra.mxu0 %v1029_v46  ;;  %2774 = vmatprep.subr.bf16.mxu1 %v3017_v1  ;;  %v1408_v46 = vsel %vm1196_vm4, %v1405_v29, %v1407_v40  ;;  %v1619_v50 = vrot.slane %v1617_v44, 3 }
  0x96   : > { %2719 = vmatmul.mubr.bf16.gmra.mxu1 %v1205_v49  ;;  %2686 = vmatprep.mubr.msk.bf16.mxu0 %vm3018_vm0, %v3017_v1  ;;  %v2968_v49 = vld [vmem:[%s3695_s1 + $0x208] sm:$0xff]  }
  0x97   : > { %2722 = vmatprep.mubr.msk.bf16.mxu1 %vm3018_vm0, %v3017_v1  ;;  %2739 = vmatpush3.bf16.msra.mxu0 %v2952_v36  ;;  %v1616_v36 = vrot.slane %v1614_v43, 2 }
  0x98   : > { %2775 = vmatpush3.bf16.msra.mxu1 %v2954_v52  ;;  %2740 = vmatprep.subr.bf16.mxu0 %v3017_v1  ;;  %v1409_v52 = vrot.slane %v2969_v47, 2 }
  0x99   : > { %2776 = vmatprep.subr.bf16.mxu1 %v3017_v1  ;;  %v1620_v53 = vor.u32 %v1619_v50, %v1616_v36 }
  0x9a   : > { %v1410_v56 = vsel %vm1196_vm4, %v1407_v40, %v1409_v52 }
  0x9b   : > { %2741 = vmatpush3.bf16.msra.mxu0 %v2955_v55  ;;  %v1758_v55 = vld [vmem:[%s3099_s8 + $0x8] sm:$0x8]  ;;  %v1621_v58 = vsel %vm1568_vm5, %v1611_v42, %v1620_v53 }
  0x9c   : > { %2777 = vmatpush3.bf16.msra.mxu1 %v2956_v60  ;;  %2798 = vmatprep.subr.bf16.mxu0 %v3017_v1  ;;  %v2332_v57 = vcombine.low %v1758_v55, %v3465_v45  ;;  %v1781_v60 = vrot.slane %v3476_v51, 3  ;;  %v1787_v45 = vrot.slane %v3537_v28, 3  ;;  %v1789_v51 = vrot.slane %v3559_v39, 3 }
  0x9d   : > { %2687 = vmatmul.mubr.bf16.gmra.mxu0 %v1038_v61  ;;  %2834 = vmatprep.subr.bf16.mxu1 %v3017_v1  ;;  %v1785_v61 = vrot.slane %v3516_v17, 3 }
  0x9e   : > { %2723 = vmatmul.mubr.bf16.gmra.mxu1 %v1207_v62  ;;  %2742 = vmatprep.mubr.msk.bf16.mxu0 %vm3018_vm0, %v3017_v1  ;;  %v1780_v59 = vrot.slane %v2332_v57, 3  ;;  %v1784_v2 = vsel %vm1779_vm6, %v1781_v60, %v1783_v0  ;;  %v1790_v3 = vsel %vm1779_vm6, %v1787_v45, %v1789_v51 }
  0x9f   : > { %2778 = vmatprep.mubr.msk.bf16.mxu1 %vm3018_vm0, %v3017_v1  ;;  %v1788_v63 = vsel %vm1779_vm6, %v1785_v61, %v1787_v45  ;;  %v1786_v5 = vsel %vm1779_vm6, %v1783_v0, %v1785_v61 }
  0xa0   : > { %v1782_v62 = vsel %vm1779_vm6, %v1780_v59, %v1781_v60 }
  0xa5   : > { %2743 = vmatmul.mubr.bf16.vlgmr.msra.gmra.mxu0 %v1402_v12 }
  0xa6   : > { %2779 = vmatmul.mubr.bf16.vlgmr.msra.gmra.mxu1 %v1585_v13  ;;  %2799 = vmatpush3.bf16.msra.mxu0 %v2959_v10 }
  0xa7   : > { %2800 = vmatprep.subr.bf16.mxu0 %v3017_v1  ;;  %2746 = vmatprep.mubr.msk.bf16.mxu0 %vm3018_vm0, %v3017_v1 }
  0xa8   : > { %2782 = vmatprep.mubr.msk.bf16.mxu1 %vm3018_vm0, %v3017_v1  ;;  %2842 = vmatpush3.bf16.msra.mxu1 %v2959_v10 }
  0xa9   : > { %2835 = vmatprep.subr.bf16.mxu1 %v3017_v1 }
  0xaa   : > { %2801 = vmatpush3.bf16.msra.mxu0 %v2960_v18 }
  0xab   : > { %2802 = vmatprep.subr.bf16.mxu0 %v3017_v1 }
  0xac   : > { %2843 = vmatpush3.bf16.msra.mxu1 %v2960_v18 }
  0xad   : > { %2747 = vmatmul.mubr.bf16.gmra.mxu0 %v1404_v19  ;;  %2836 = vmatprep.subr.bf16.mxu1 %v3017_v1 }
  0xae   : > { %2783 = vmatmul.mubr.bf16.gmra.mxu1 %v1594_v24  ;;  %2803 = vmatpush3.bf16.msra.mxu0 %v2962_v23 }
  0xaf   : > { %2750 = vmatprep.mubr.msk.bf16.mxu0 %vm3018_vm0, %v3017_v1  ;;  %2786 = vmatprep.mubr.msk.bf16.mxu1 %vm3018_vm0, %v3017_v1 }
  0xb0   : > { %2804 = vmatprep.subr.bf16.mxu0 %v3017_v1  ;;  %2844 = vmatpush3.bf16.msra.mxu1 %v2962_v23 }
  0xb1   : > { %2837 = vmatprep.subr.bf16.mxu1 %v3017_v1 }
  0xb2   : > { %2805 = vmatpush3.bf16.msra.mxu0 %v2964_v30 }
  0xb3   : > { %2806 = vmatprep.subr.bf16.mxu0 %v3017_v1 }
  0xb4   : > { %2845 = vmatpush3.bf16.msra.mxu1 %v2964_v30 }
  0xb5   : > { %2751 = vmatmul.mubr.bf16.gmra.mxu0 %v1406_v34  ;;  %2838 = vmatprep.subr.bf16.mxu1 %v3017_v1 }
  0xb6   : > { %2787 = vmatmul.mubr.bf16.gmra.mxu1 %v1603_v27  ;;  %2807 = vmatpush3.bf16.msra.mxu0 %v2965_v35 }
  0xb7   : > { %2754 = vmatprep.mubr.msk.bf16.mxu0 %vm3018_vm0, %v3017_v1  ;;  %2790 = vmatprep.mubr.msk.bf16.mxu1 %vm3018_vm0, %v3017_v1 }
  0xb8   : > { %2846 = vmatpush3.bf16.msra.mxu1 %v2965_v35  ;;  %2808 = vmatprep.subr.bf16.mxu0 %v3017_v1 }
  0xb9   : > { %2839 = vmatprep.subr.bf16.mxu1 %v3017_v1 }
  0xba   : > { %2809 = vmatpush3.bf16.msra.mxu0 %v2967_v41 }
  0xbb   : > { %2810 = vmatprep.subr.bf16.mxu0 %v3017_v1 }
  0xbc   : > { %2847 = vmatpush3.bf16.msra.mxu1 %v2967_v41 }
  0xbd   : > { %2755 = vmatmul.mubr.bf16.gmra.mxu0 %v1408_v46  ;;  %2840 = vmatprep.subr.bf16.mxu1 %v3017_v1 }
  0xbe   : > { %2791 = vmatmul.mubr.bf16.gmra.mxu1 %v1612_v48  ;;  %2758 = vmatprep.mubr.msk.bf16.mxu0 %vm3018_vm0, %v3017_v1 }
  0xbf   : > { %2794 = vmatprep.mubr.msk.bf16.mxu1 %vm3018_vm0, %v3017_v1  ;;  %2811 = vmatpush3.bf16.msra.mxu0 %v2968_v49 }
  0xc0   : > { %2848 = vmatpush3.bf16.msra.mxu1 %v2968_v49  ;;  %2812 = vmatprep.subr.bf16.mxu0 %v3017_v1 }
  0xc1   : > { %2841 = vmatprep.subr.bf16.mxu1 %v3017_v1 }
  0xc3   : > { %2813 = vmatpush3.bf16.msra.mxu0 %v2971_v54 }
  0xc4   : > { %2849 = vmatpush3.bf16.msra.mxu1 %v2971_v54 }
  0xc5   : > { %2759 = vmatmul.mubr.bf16.gmra.mxu0 %v1410_v56 }
  0xc6   : > { %2795 = vmatmul.mubr.bf16.gmra.mxu1 %v1621_v58  ;;  %2814 = vmatprep.mubr.msk.bf16.mxu0 %vm3018_vm0, %v3017_v1 }
  0xc7   : > { %2826 = vmatprep.mubr.msk.bf16.mxu1 %vm3018_vm0, %v3017_v1 }
  0xcd   : > { %2815 = vmatmul.mubr.bf16.vlgmr.msra.gmra.mxu0 %v1782_v62 }
  0xce   : > { %2827 = vmatmul.mubr.bf16.vlgmr.msra.gmra.mxu1 %v1788_v63  ;;  %2818 = vmatprep.mubr.msk.bf16.mxu0 %vm3018_vm0, %v3017_v1 }
  0xcf   : > { %2830 = vmatprep.mubr.msk.bf16.mxu1 %vm3018_vm0, %v3017_v1 }
  0xd5   : > { %2819 = vmatmul.mubr.bf16.gmra.mxu0 %v1784_v2 }
  0xd6   : > { %2831 = vmatmul.mubr.bf16.gmra.mxu1 %v1790_v3  ;;  %2822 = vmatprep.mubr.msk.bf16.mxu0 %vm3018_vm0, %v3017_v1 }
  0xdd   : > { %2823 = vmatmul.mubr.bf16.gmra.mxu0 %v1786_v5 }
  0xed   : > { %v427_v6 = vpop.f32.mrf.mxu0 }
  0xee   : > { %v553_v7 = vpop.f32.mrf.mxu1 }
  0xef   : > { %v554_v4 = vadd.f32 %v553_v7, %v427_v6  ;;  %v2528_v8 = vpop.f32.mrf.mxu0 }
  0xf0   : > { %v2564_v9 = vpop.f32.mrf.mxu1 }
  0xf1   : > { %v430_v11 = vpop.f32.mrf.mxu0 }
  0xf2   : > { %v556_v12 = vpop.f32.mrf.mxu1 }
  0xf3   : > { %v557_v10 = vadd.f32 %v556_v12, %v430_v11  ;;  %v2529_v13 = vpop.f32.mrf.mxu0 }
  0xf4   : > { %v2565_v14 = vpop.f32.mrf.mxu1 }
  0xf5   : > { %v435_v16 = vpop.f32.mrf.mxu0 }
  0xf6   : > { %v561_v17 = vpop.f32.mrf.mxu1 }
  0xf7   : > { %v562_v18 = vadd.f32 %v561_v17, %v435_v16  ;;  %v2532_v15 = vpop.f32.mrf.mxu0 }
  0xf8   : > { %v2568_v20 = vpop.f32.mrf.mxu1 }
  0xf9   : > { %v438_v21 = vpop.f32.mrf.mxu0 }
  0xfa   : > { %v564_v1 = vpop.f32.mrf.mxu1 }
  0xfb   : > { %v565_v22 = vadd.f32 %v564_v1, %v438_v21  ;;  %v2533_v19 = vpop.f32.mrf.mxu0 }
  0xfc   : > { %v2569_v23 = vpop.f32.mrf.mxu1 }
  0xfd   : > { %v443_v24 = vpop.f32.mrf.mxu0 }
  0xfe   : > { %v569_v25 = vpop.f32.mrf.mxu1 }
  0xff   : > { %v570_v26 = vadd.f32 %v569_v25, %v443_v24  ;;  %v2536_v28 = vpop.f32.mrf.mxu0 }
 0x100   : > { %v2572_v29 = vpop.f32.mrf.mxu1 }
 0x101   : > { %v446_v30 = vpop.f32.mrf.mxu0 }
 0x102   : > { %v572_v31 = vpop.f32.mrf.mxu1 }
 0x103   : > { %v573_v32 = vadd.f32 %v572_v31, %v446_v30  ;;  %v2537_v33 = vpop.f32.mrf.mxu0 }
 0x104   : > { %v2573_v34 = vpop.f32.mrf.mxu1 }
 0x105   : > { %v451_v35 = vpop.f32.mrf.mxu0 }
 0x106   : > { %v577_v27 = vpop.f32.mrf.mxu1 }
 0x107   : > { %v578_v37 = vadd.f32 %v577_v27, %v451_v35  ;;  %v2540_v38 = vpop.f32.mrf.mxu0 }
 0x108   : > { %v2576_v39 = vpop.f32.mrf.mxu1 }
 0x109   : > { %v454_v40 = vpop.f32.mrf.mxu0 }
 0x10a   : > { %v580_v41 = vpop.f32.mrf.mxu1 }
 0x10b   : > { %v581_v42 = vadd.f32 %v580_v41, %v454_v40  ;;  %v2541_v43 = vpop.f32.mrf.mxu0 }
 0x10c   : > { %v2577_v44 = vpop.f32.mrf.mxu1 }
 0x10d   : > { %v459_v46 = vpop.f32.mrf.mxu0 }
 0x10e   : > { %v585_v47 = vpop.f32.mrf.mxu1 }
 0x10f   : > { %v586_v48 = vadd.f32 %v585_v47, %v459_v46  ;;  %v2544_v49 = vpop.f32.mrf.mxu0 }
 0x110   : > { %v2580_v36 = vpop.f32.mrf.mxu1 }
 0x111   : > { %v462_v50 = vpop.f32.mrf.mxu0 }
 0x112   : > { %v588_v52 = vpop.f32.mrf.mxu1 }
 0x113   : > { %v589_v53 = vadd.f32 %v588_v52, %v462_v50  ;;  %v2545_v54 = vpop.f32.mrf.mxu0 }
 0x114   : > { %v2581_v55 = vpop.f32.mrf.mxu1 }
 0x115   : > { %v712_v56 = vpop.f32.mrf.mxu0 }
 0x116   : > { %v751_v57 = vadd.f32 %v712_v56, %v554_v4  ;;  %v915_v58 = vpop.f32.mrf.mxu1 }
 0x117   : > { %v2600_v59 = vpop.f32.mrf.mxu0 }
 0x118   : > { %v954_v60 = vadd.f32 %v915_v58, %v751_v57  ;;  %v2636_v61 = vpop.f32.mrf.mxu1 }
 0x119   : > { %v715_v45 = vpop.f32.mrf.mxu0 }
 0x11a   : > { %v752_v62 = vadd.f32 %v715_v45, %v557_v10  ;;  %v918_v63 = vpop.f32.mrf.mxu1 }
 0x11b   : > { %v2601_v0 = vpop.f32.mrf.mxu0 }
 0x11c   : > { %v955_v51 = vadd.f32 %v918_v63, %v752_v62  ;;  %v2637_v2 = vpop.f32.mrf.mxu1 }
 0x11d   : > { %v720_v3 = vpop.f32.mrf.mxu0 }
 0x11e   : > { %v753_v5 = vadd.f32 %v720_v3, %v562_v18  ;;  %v923_v6 = vpop.f32.mrf.mxu1 }
 0x11f   : > { %v2604_v7 = vpop.f32.mrf.mxu0 }
 0x120   : > { %v956_v8 = vadd.f32 %v923_v6, %v753_v5  ;;  %v2640_v9 = vpop.f32.mrf.mxu1 }
 0x121   : > { %v723_v11 = vpop.f32.mrf.mxu0 }
 0x122   : > { %v754_v12 = vadd.f32 %v723_v11, %v565_v22  ;;  %v926_v13 = vpop.f32.mrf.mxu1 }
 0x123   : > { %v2605_v4 = vpop.f32.mrf.mxu0 }
 0x124   : > { %v957_v14 = vadd.f32 %v926_v13, %v754_v12  ;;  %v2641_v16 = vpop.f32.mrf.mxu1 }
 0x125   : > { %v728_v17 = vpop.f32.mrf.mxu0 }
 0x126   : > { %v755_v15 = vadd.f32 %v728_v17, %v570_v26  ;;  %v931_v20 = vpop.f32.mrf.mxu1 }
 0x127   : > { %v2608_v10 = vpop.f32.mrf.mxu0 }
 0x128   : > { %v958_v21 = vadd.f32 %v931_v20, %v755_v15  ;;  %v2644_v1 = vpop.f32.mrf.mxu1 }
 0x129   : > { %v731_v19 = vpop.f32.mrf.mxu0 }
 0x12a   : > { %v756_v23 = vadd.f32 %v731_v19, %v573_v32  ;;  %v934_v24 = vpop.f32.mrf.mxu1 }
 0x12b   : > { %v2609_v18 = vpop.f32.mrf.mxu0 }
 0x12c   : > { %v959_v25 = vadd.f32 %v934_v24, %v756_v23  ;;  %v2645_v28 = vpop.f32.mrf.mxu1 }
 0x12d   : > { %v736_v29 = vpop.f32.mrf.mxu0 }
 0x12e   : > { %v757_v30 = vadd.f32 %v736_v29, %v578_v37  ;;  %v939_v31 = vpop.f32.mrf.mxu1 }
 0x12f   : > { %v2612_v22 = vpop.f32.mrf.mxu0 }
 0x130   : > { %v3615_v33 = vadd.f32 %v939_v31, %v757_v30  ;;  %v2648_v34 = vpop.f32.mrf.mxu1 }
 0x131   : > { %v739_v35 = vpop.f32.mrf.mxu0 }
 0x132   : > { %v758_v27 = vadd.f32 %v739_v35, %v581_v42  ;;  %v942_v26 = vpop.f32.mrf.mxu1 }
 0x133   : > { %v2613_v38 = vpop.f32.mrf.mxu0 }
 0x134   : > { %v3617_v39 = vadd.f32 %v942_v26, %v758_v27  ;;  %v2649_v40 = vpop.f32.mrf.mxu1 }
 0x135   : > { %v744_v41 = vpop.f32.mrf.mxu0 }
 0x136   : > { %v759_v32 = vadd.f32 %v744_v41, %v586_v48  ;;  %v947_v43 = vpop.f32.mrf.mxu1 }
 0x137   : > { %v2616_v44 = vpop.f32.mrf.mxu0 }
 0x138   : > { %v3619_v46 = vadd.f32 %v947_v43, %v759_v32  ;;  %v2652_v47 = vpop.f32.mrf.mxu1 }
 0x139   : > { %v747_v37 = vpop.f32.mrf.mxu0 }
 0x13a   : > { %v760_v49 = vadd.f32 %v747_v37, %v589_v53  ;;  %v950_v36 = vpop.f32.mrf.mxu1 }
 0x13b   : > { %v2617_v50 = vpop.f32.mrf.mxu0 }
 0x13c   : > { %v3621_v52 = vadd.f32 %v950_v36, %v760_v49  ;;  %v2653_v54 = vpop.f32.mrf.mxu1 }
 0x13d   : > { %v1126_v42 = vpop.f32.mrf.mxu0 }
 0x13e   : > { %v1165_v55 = vadd.f32 %v1126_v42, %v954_v60  ;;  %v1295_v56 = vpop.f32.mrf.mxu1 }
 0x13f   : > { %v2672_v57 = vpop.f32.mrf.mxu0 }
 0x140   : > { %v3623_v58 = vadd.f32 %v1295_v56, %v1165_v55  ;;  %v2708_v59 = vpop.f32.mrf.mxu1 }
 0x141   : > { %v1129_v48 = vpop.f32.mrf.mxu0 }
 0x142   : > { %v1166_v61 = vadd.f32 %v1129_v48, %v955_v51  ;;  %v1298_v45 = vpop.f32.mrf.mxu1 }
 0x143   : > { %v2673_v62 = vpop.f32.mrf.mxu0 }
 0x144   : > { %v3625_v63 = vadd.f32 %v1298_v45, %v1166_v61  ;;  %v2709_v0 = vpop.f32.mrf.mxu1 }
 0x145   : > { %v1134_v53 = vpop.f32.mrf.mxu0 }
 0x146   : > { %v1167_v2 = vadd.f32 %v1134_v53, %v956_v8  ;;  %v1303_v3 = vpop.f32.mrf.mxu1 }
 0x147   : > { %v2676_v5 = vpop.f32.mrf.mxu0 }
 0x148   : > { %v3627_v6 = vadd.f32 %v1303_v3, %v1167_v2  ;;  %v2712_v7 = vpop.f32.mrf.mxu1 }
 0x149   : > { %v1137_v60 = vpop.f32.mrf.mxu0 }
 0x14a   : > { %v1168_v9 = vadd.f32 %v1137_v60, %v957_v14  ;;  %v1306_v11 = vpop.f32.mrf.mxu1 }
 0x14b   : > { %v2677_v12 = vpop.f32.mrf.mxu0 }
 0x14c   : > { %v3629_v13 = vadd.f32 %v1306_v11, %v1168_v9  ;;  %v2713_v4 = vpop.f32.mrf.mxu1 }
 0x14d   : > { %v1142_v51 = vpop.f32.mrf.mxu0 }
 0x14e   : > { %v1169_v16 = vadd.f32 %v1142_v51, %v958_v21  ;;  %v1311_v17 = vpop.f32.mrf.mxu1 }
 0x14f   : > { %v2680_v15 = vpop.f32.mrf.mxu0 }
 0x150   : > { %v3631_v20 = vadd.f32 %v1311_v17, %v1169_v16  ;;  %v2716_v10 = vpop.f32.mrf.mxu1 }
 0x151   : > { %v1145_v8 = vpop.f32.mrf.mxu0 }
 0x152   : > { %v1170_v1 = vadd.f32 %v1145_v8, %v959_v25  ;;  %v1314_v19 = vpop.f32.mrf.mxu1 }
 0x153   : > { %v2681_v23 = vpop.f32.mrf.mxu0 }
 0x154   : > { %v3633_v24 = vadd.f32 %v1314_v19, %v1170_v1  ;;  %v2717_v18 = vpop.f32.mrf.mxu1 }
 0x155   : > { %v1150_v14 = vpop.f32.mrf.mxu0 }
 0x156   : > { %v1319_v28 = vpop.f32.mrf.mxu1  ;;  %v1171_v17 = vadd.f32 %v1150_v14, %v3615_v33 }
 0x157   : > { %v2684_v29 = vpop.f32.mrf.mxu0 }
 0x158   : > { %v2720_v30 = vpop.f32.mrf.mxu1  ;;  %v1340_v19 = vadd.f32 %v1319_v28, %v1171_v17 }
 0x159   : > { %v1153_v31 = vpop.f32.mrf.mxu0 }
 0x15a   : > { %v1322_v22 = vpop.f32.mrf.mxu1  ;;  %v1172_v23 = vadd.f32 %v1153_v31, %v3617_v39  ;;  %v3657_v39 = vld [vmem:[%s3696_s2] ss:$0 sm:$0xff] }
 0x15b   : > { %v2685_v34 = vpop.f32.mrf.mxu0 }
 0x15c   : > { %v2721_v21 = vpop.f32.mrf.mxu1 }
 0x15d   : > { %v1158_v35 = vpop.f32.mrf.mxu0 }
 0x15e   : > { %v1327_v27 = vpop.f32.mrf.mxu1 }
 0x15f   : > { %v2688_v26 = vpop.f32.mrf.mxu0 }
 0x160   : > { %v2724_v38 = vpop.f32.mrf.mxu1 }
 0x161   : > { %v1161_v40 = vpop.f32.mrf.mxu0  ;;  %v1341_v38 = vadd.f32 %v1322_v22, %v1172_v23 }
 0x162   : > { %v3635_v41 = vpop.f32.mrf.mxu1  ;;  %v1174_v22 = vadd.f32 %v1161_v40, %v3621_v52 }
 0x163   : > { %v2689_v25 = vpop.f32.mrf.mxu0 }
 0x164   : > { %v2725_v32 = vpop.f32.mrf.mxu1  ;;  %v1173_v25 = vadd.f32 %v1158_v35, %v3619_v46 }
 0x165   : > { %v1498_v43 = vpop.f32.mrf.mxu0 }
 0x166   : > { %v1709_v44 = vpop.f32.mrf.mxu1  ;;  %v1537_v29 = vadd.f32 %v1498_v43, %v3623_v58  ;;  %v1342_v43 = vadd.f32 %v1327_v27, %v1173_v25 }
 0x167   : > { %v2744_v47 = vpop.f32.mrf.mxu0 }
 0x168   : > { %v2780_v37 = vpop.f32.mrf.mxu1  ;;  %v1748_v47 = vadd.f32 %v1709_v44, %v1537_v29 }
 0x169   : > { %v1501_v49 = vpop.f32.mrf.mxu0 }
 0x16a   : > { %v1712_v36 = vpop.f32.mrf.mxu1  ;;  %v1538_v33 = vadd.f32 %v1501_v49, %v3625_v63 }
 0x16b   : > { %v2745_v50 = vpop.f32.mrf.mxu0 }
 0x16c   : > { %v2781_v54 = vpop.f32.mrf.mxu1  ;;  %v1749_v35 = vadd.f32 %v1712_v36, %v1538_v33 }
 0x16d   : > { %v1506_v42 = vpop.f32.mrf.mxu0 }
 0x16e   : > { %v3637_v55 = vpop.f32.mrf.mxu1  ;;  %v1539_v44 = vadd.f32 %v1506_v42, %v3627_v6 }
 0x16f   : > { %v2748_v56 = vpop.f32.mrf.mxu0 }
 0x170   : > { %v2784_v57 = vpop.f32.mrf.mxu1  ;;  %v1750_v52 = vadd.f32 %v3637_v55, %v1539_v44 }
 0x171   : > { %v1509_v59 = vpop.f32.mrf.mxu0 }
 0x172   : > { %v3639_v48 = vpop.f32.mrf.mxu1  ;;  %v1540_v40 = vadd.f32 %v1509_v59, %v3629_v13 }
 0x173   : > { %v2749_v61 = vpop.f32.mrf.mxu0 }
 0x174   : > { %v2785_v45 = vpop.f32.mrf.mxu1  ;;  %v1751_v55 = vadd.f32 %v3639_v48, %v1540_v40 }
 0x175   : > { %v3641_v62 = vpop.f32.mrf.mxu0 }
 0x176   : > { %v3643_v0 = vpop.f32.mrf.mxu1  ;;  %v1541_v13 = vadd.f32 %v3641_v62, %v3631_v20 }
 0x177   : > { %v2752_v53 = vpop.f32.mrf.mxu0 }
 0x178   : > { %v2788_v2 = vpop.f32.mrf.mxu1  ;;  %v1752_v29 = vadd.f32 %v3643_v0, %v1541_v13 }
 0x179   : > { %v3645_v3 = vpop.f32.mrf.mxu0 }
 0x17a   : > { %v3647_v5 = vpop.f32.mrf.mxu1  ;;  %v1542_v48 = vadd.f32 %v3645_v3, %v3633_v24 }
 0x17b   : > { %v2753_v7 = vpop.f32.mrf.mxu0 }
 0x17c   : > { %v2789_v60 = vpop.f32.mrf.mxu1  ;;  %v1343_v7 = vadd.f32 %v3635_v41, %v1174_v22 }
 0x17d   : > { %v1522_v9 = vpop.f32.mrf.mxu0 }
 0x17e   : > { %v1733_v11 = vpop.f32.mrf.mxu1  ;;  %v1543_v34 = vadd.f32 %v1522_v9, %v1340_v19 }
 0x17f   : > { %v2756_v12 = vpop.f32.mrf.mxu0 }
 0x180   : > { %v2792_v4 = vpop.f32.mrf.mxu1  ;;  %v1754_v37 = vadd.f32 %v1733_v11, %v1543_v34 }
 0x181   : > { %v1525_v51 = vpop.f32.mrf.mxu0 }
 0x182   : > { %v1736_v16 = vpop.f32.mrf.mxu1  ;;  %v1544_v50 = vadd.f32 %v1525_v51, %v1341_v38  ;;  %v1753_v38 = vadd.f32 %v3647_v5, %v1542_v48 }
 0x183   : > { %v2757_v15 = vpop.f32.mrf.mxu0 }
 0x184   : > { %v2793_v10 = vpop.f32.mrf.mxu1  ;;  %v1755_v56 = vadd.f32 %v1736_v16, %v1544_v50 }
 0x185   : > { %v1530_v8 = vpop.f32.mrf.mxu0 }
 0x186   : > { %v1741_v1 = vpop.f32.mrf.mxu1  ;;  %v1545_v57 = vadd.f32 %v1530_v8, %v1342_v43 }
 0x187   : > { %v2760_v18 = vpop.f32.mrf.mxu0 }
 0x188   : > { %v2796_v30 = vpop.f32.mrf.mxu1  ;;  %v1756_v42 = vadd.f32 %v1741_v1, %v1545_v57 }
 0x189   : > { %v1533_v21 = vpop.f32.mrf.mxu0 }
 0x18a   : > { %v1744_v26 = vpop.f32.mrf.mxu1  ;;  %v1546_v9 = vadd.f32 %v1533_v21, %v1343_v7 }
 0x18b   : > { %v2761_v32 = vpop.f32.mrf.mxu0 }
 0x18c   : > { %v2797_v14 = vpop.f32.mrf.mxu1  ;;  %v1757_v15 = vadd.f32 %v1744_v26, %v1546_v9 }
 0x18d   : > { %v1878_v28 = vpop.f32.mrf.mxu0 }
 0x18e   : > { %v1917_v58 = vadd.f32 %v1878_v28, %v1748_v47  ;;  %v1902_v31 = vpop.f32.mrf.mxu1 }
 0x18f   : > { %v1923_v54 = vadd.f32 %v1902_v31, %v1754_v37  ;;  %v2816_v46 = vpop.f32.mrf.mxu0 }
 0x190   : > { %v1934_v63 = vadd.f32 %v3657_v39, %v1917_v58  ;;  %v2828_v49 = vpop.f32.mrf.mxu1 }
 0x191   : > { %v1940_v61 = vadd.f32 %v3657_v39, %v1923_v54  ;;  %v1881_v45 = vpop.f32.mrf.mxu0 }
 0x192   : > { %v1918_v53 = vadd.f32 %v1881_v45, %v1749_v35  ;;  %v1905_v2 = vpop.f32.mrf.mxu1  ;;  %2973 = vtanh.f32 %v1934_v63 }
 0x193   : > { %v1924_v27 = vadd.f32 %v1905_v2, %v1755_v56  ;;  %v2817_v60 = vpop.f32.mrf.mxu0  ;;  %2975 = vtanh.f32 %v1940_v61 }
 0x194   : > { %v1935_v6 = vadd.f32 %v3657_v39, %v1918_v53  ;;  %v2829_v36 = vpop.f32.mrf.mxu1 }
 0x195   : > { %v1941_v11 = vadd.f32 %v3657_v39, %v1924_v27  ;;  %v1886_v12 = vpop.f32.mrf.mxu0 }
 0x196   : > { %2977 = vtanh.f32 %v1935_v6  ;;  %v1919_v4 = vadd.f32 %v1886_v12, %v1750_v52  ;;  %v1910_v51 = vpop.f32.mrf.mxu1 }
 0x197   : > { %2979 = vtanh.f32 %v1941_v11  ;;  %v1925_v41 = vadd.f32 %v1910_v51, %v1756_v42  ;;  %v2820_v16 = vpop.f32.mrf.mxu0 }
 0x198   : > { %v1936_v59 = vadd.f32 %v3657_v39, %v1919_v4  ;;  %v2832_v17 = vpop.f32.mrf.mxu1 }
 0x199   : > { %v1942_v10 = vadd.f32 %v3657_v39, %v1925_v41  ;;  %v1889_v8 = vpop.f32.mrf.mxu0 }
 0x19a   : > { %v1920_v1 = vadd.f32 %v1889_v8, %v1751_v55  ;;  %v1913_v19 = vpop.f32.mrf.mxu1  ;;  %2981 = vtanh.f32 %v1936_v59 }
 0x19b   : > { %v1926_v23 = vadd.f32 %v1913_v19, %v1757_v15  ;;  %v2821_v18 = vpop.f32.mrf.mxu0  ;;  %2983 = vtanh.f32 %v1942_v10 }
 0x19c   : > { %v1937_v20 = vadd.f32 %v3657_v39, %v1920_v1  ;;  %v2833_v62 = vpop.f32.mrf.mxu1 }
 0x19d   : > { %v1943_v30 = vadd.f32 %v3657_v39, %v1926_v23  ;;  %v1894_v34 = vpop.f32.mrf.mxu0 }
 0x19e   : > { %2985 = vtanh.f32 %v1937_v20  ;;  %v1921_v21 = vadd.f32 %v1894_v34, %v1752_v29 }
 0x19f   : > { %2987 = vtanh.f32 %v1943_v30  ;;  %v2824_v26 = vpop.f32.mrf.mxu0  ;;  %v2974_v25 = vpop.eup %2973 }
 0x1a0   : > { %v1938_v0 = vadd.f32 %v3657_v39, %v1921_v21  ;;  %v2976_v24 = vpop.eup %2975 }
 0x1a1   : > { %v1897_v32 = vpop.f32.mrf.mxu0 }
 0x1a2   : > { %v1922_v3 = vadd.f32 %v1897_v32, %v1753_v38  ;;  %2989 = vtanh.f32 %v1938_v0 }
 0x1a3   : > { %v2978_v47 = vpop.eup %2977  ;;  %v2825_v33 = vpop.f32.mrf.mxu0 }
 0x1a4   : > { %v2980_v14 = vpop.eup %2979  ;;  %v2367_v37 = vpack.c.bf16 %v2978_v47, %v2974_v25  ;;  %v1939_v50 = vadd.f32 %v3657_v39, %v1922_v3 }
 0x1a5   : > { %v2382_v28 = vpack.c.bf16 %v2980_v14, %v2976_v24 }
 0x1a6   : > { %2368 = vst [vmem:[%s221_s9] sm:$0xff] %v2367_v37   ;;  %2991 = vtanh.f32 %v1939_v50 }
 0x1a7   : > { %2391 = vst [vmem:[%s221_s9 + $0x18] sm:$0xff] %v2382_v28   ;;  %v2982_v5 = vpop.eup %2981 }
 0x1a8   : > { %v2984_v58 = vpop.eup %2983 }
 0x1ab   : > { %v2986_v31 = vpop.eup %2985 }
 0x1ac   : > { %v2988_v43 = vpop.eup %2987  ;;  %v2372_v22 = vpack.c.bf16 %v2986_v31, %v2982_v5 }
 0x1ad   : > { %v2387_v54 = vpack.c.bf16 %v2988_v43, %v2984_v58 }
 0x1ae   : > { %2389 = vst [vmem:[%s221_s9 + $0x8] sm:$0xff] %v2372_v22  }
 0x1af   : > { %2392 = vst [vmem:[%s221_s9 + $0x20] sm:$0xff] %v2387_v54   ;;  %v2990_v46 = vpop.eup %2989 }
 0x1b3   : > { %v2992_v35 = vpop.eup %2991 }
 0x1b4   : > { %v2377_v44 = vpack.c.bf16 %v2992_v35, %v2990_v46 }
 0x1b6   : > { %2390 = vst [vmem:[%s221_s9 + $0x10] sm:$0xff] %v2377_v44  }
 0x1b7 PF: > { %s13_s14 = sadd.s32 1, %s3015_s14   ;;  %s3698_s12 = smov %s3011_s13 }
 0x1b8   : > { %p10_p5 = scmp.ge.s32.totalorder %s13_s14, 4   ;;  %s3699_s13 = smov %s3701_s15 }
 0x1ba   :  { %12 = sbr.rel (!%p10_p5) target bundleno = 2 (0x2), region = 76 }

// kernel: dan_resnetv2_forward.22
= control target key start
LH: loop header
LB: loop body
LE: loop exit
PB: predicated region body
PF: predicated region fallthrough
CT: control target
= control target key end

     0   :  { %s2250_s12 = smov 0   ;;  %s2252_s13 = smov 0   ;;  %s2559_s0 = inlined_call_operand.vmem [shape: bf16[2,128,128], index: 0, kind: input, shape index: {}]   ;;  %s2560_s1 = inlined_call_operand.vmem [shape: bf16[9,128,128], index: 1, kind: input, shape index: {}]   ;;  %s2561_s2 = inlined_call_operand.vmem [shape: f32[1,128], index: 2, kind: input, shape index: {}]   ;;  %s2562_s3 = inlined_call_operand.vmem [shape: bf16[2,24,128], index: 3, kind: output, shape index: {}]  }
   0x1   :  { %s2254_s14 = smov 0  }
   0x2 LB: > { %s25_s15 = sadd.s32 1, %s2224_s13  ;;  %p1586_p0 = scmp.ge.s32.totalorder %s2228_s14, 1  ;;  %s2228_s14 = sphi %s2254_s14, %s13_s14   ;;  %s2224_s13 = sphi %s2252_s13, %s2564_s13   ;;  %s2220_s12 = sphi %s2250_s12, %s2563_s12  }
   0x3   : > { %p27_p1 = scmp.ge.s32.totalorder %s25_s15, 2  ;;  %p168_p2 = scmp.lt.s32.totalorder %s2228_s14, 3 }
   0x5   : > { %s2566_s15 = smov (%p27_p1, %s25_s15), 0  ;;  %p169_p3 = pnand %p1586_p0, %p168_p2 }
   0x6   : > { %p202_p4 = scmp.lt.s32.totalorder (!%p169_p3), %s2220_s12, 1 }
   0x7   : > { %172 = sbr.rel (%p169_p3) target bundleno = 381 (0x17d), region = 32 }
   0xc   : > { %v2117_v0 = vld [vmem:[%s2560_s1 + $0x78] sm:$0xff]   ;;  %v2119_v2 = vld [vmem:[%s2560_s1 + $0x70] sm:$0xff]   ;;  %v2121_v4 = vld [vmem:[%s2560_s1 + $0x68] sm:$0xff]   ;;  %s2568_s12 = smov (!%p202_p4, %s2220_s12), 1  ;;  %vm505_vm0 = vsmask.f32 7424 }
   0xd   : > { %v2118_v1 = vld [vmem:[%s2560_s1 + $0x38] sm:$0xff]   ;;  %1912 = vmatprep.subr.bf16.mxu0 %v2117_v0  ;;  %v2120_v3 = vld [vmem:[%s2560_s1 + $0x30] sm:$0xff]   ;;  %v2122_v5 = vld [vmem:[%s2560_s1 + $0x28] sm:$0xff]   ;;  %s1813_s5 = sshll.u32 %s2568_s12, 6  ;;  %vm1052_vm1 = vsmask.f32 5376 }
   0xe   : > { %1932 = vmatprep.subr.bf16.mxu1 %v2118_v1  ;;  %1913 = vmatpush3.bf16.msra.mxu0 %v2117_v0  ;;  %v2123_v6 = vld [vmem:[%s2560_s1 + $0x60] sm:$0xff]   ;;  %v2125_v8 = vld [vmem:[%s2560_s1 + $0x58] sm:$0xff]   ;;  %s2304_s16 = scalar_lea.vmem %s2559_s0, %s1813_s5  ;;  %v2127_v10 = vld [vmem:[%s2560_s1 + $0x50] sm:$0xff]   ;;  %vm1341_vm2 = vcmask 1044480   ;;  %s2092_s5 = smul.u32 12, %s2568_s12 }
   0xf   : > { %1933 = vmatpush3.bf16.msra.mxu1 %v2118_v1  ;;  %1914 = vmatprep.subr.bf16.mxu0 %v2119_v2  ;;  %v2124_v7 = vld [vmem:[%s2560_s1 + $0x20] sm:$0xff]   ;;  %v2126_v9 = vld [vmem:[%s2560_s1 + $0x18] sm:$0xff]   ;;  %v2128_v11 = vld [vmem:[%s2560_s1 + $0x10] sm:$0xff]  }
  0x10   : > { %1934 = vmatprep.subr.bf16.mxu1 %v2120_v3  ;;  %v2133_v12 = vld [vmem:[%s2304_s16 + $0x10] sm:$0xff]   ;;  %v2134_v13 = vld [vmem:[%s2304_s16] sm:$0xff]   ;;  %v2129_v14 = vld [vmem:[%s2560_s1 + $0x48] sm:$0xff]   ;;  %s221_s8 = scalar_lea.vmem %s2562_s3, %s2092_s5 }
  0x11   : > { %1928 = vmatprep.mubr.bf16.mxu0 %v2133_v12  ;;  %1948 = vmatprep.mubr.bf16.mxu1 %v2134_v13  ;;  %v2130_v15 = vld [vmem:[%s2560_s1 + $0x8] sm:$0xff]   ;;  %v2131_v16 = vld [vmem:[%s2560_s1 + $0x40] sm:$0xff]   ;;  %v2137_v18 = vld [vmem:[%s2560_s1 + $0xb8] sm:$0xff]  }
  0x12   : > { %1915 = vmatpush3.bf16.msra.mxu0 %v2119_v2  ;;  %v2132_v17 = vld [vmem:[%s2560_s1] sm:$0xff]   ;;  %v2138_v19 = vld [vmem:[%s2560_s1 + $0xf8] sm:$0xff]   ;;  %v2136_v21 = vld [vmem:[%s2304_s16 + $0x8] ss:$0 sps:$4 sm:$0xff]  }
  0x13   : > { %1935 = vmatpush3.bf16.msra.mxu1 %v2120_v3  ;;  %1916 = vmatprep.subr.bf16.mxu0 %v2121_v4  ;;  %v2135_v20 = vld [vmem:[%s2304_s16 + $0x18] ss:$0 sps:$4 sm:$0xff]   ;;  %v2139_v22 = vld [vmem:[%s2560_s1 + $0xb0] sm:$0xff]   ;;  %v474_v24 = vld [vmem:[%s2304_s16] sm:$0xf] }
  0x14   : > { %1936 = vmatprep.subr.bf16.mxu1 %v2122_v5  ;;  %v2140_v23 = vld [vmem:[%s2560_s1 + $0xf0] sm:$0xff]   ;;  %v2342_v25 = vld [vmem:[%s2304_s16 + $0x4] sm:$0xf]  ;;  %v2141_v26 = vld [vmem:[%s2560_s1 + $0xa8] sm:$0xff]  }
  0x15   : > { %v2348_v27 = vld [vmem:[%s2304_s16 + $0x8] sm:$0xf]  ;;  %v477_v28 = vld [vmem:[%s2304_s16 + $0xc] sm:$0x1]  ;;  %v1642_v29 = vcombine.low %v474_v24, %v2342_v25  ;;  %v2157_v34 = vld [vmem:[%s2304_s16 + $0x20] sm:$0xff]  }
  0x16   : > { %1917 = vmatpush3.bf16.msra.mxu0 %v2121_v4  ;;  %v2142_v30 = vld [vmem:[%s2560_s1 + $0xe8] sm:$0xff]   ;;  %v1643_v31 = vcombine.low %v2348_v27, %v477_v28  ;;  %v2143_v36 = vld [vmem:[%s2560_s1 + $0xa0] sm:$0xff]   ;;  %v2145_v41 = vld [vmem:[%s2560_s1 + $0x98] sm:$0xff]  }
  0x17   : > { %1937 = vmatpush3.bf16.msra.mxu1 %v2122_v5  ;;  %1918 = vmatprep.subr.bf16.mxu0 %v2123_v6  ;;  %v507_v32 = vshrl.u32 %v1642_v29, 16  ;;  %v509_v33 = vshll.u32 %v1642_v29, 16  ;;  %v2144_v38 = vld [vmem:[%s2560_s1 + $0xe0] sm:$0xff]   ;;  %v2146_v43 = vld [vmem:[%s2560_s1 + $0xd8] sm:$0xff]   ;;  %v2147_v44 = vld [vmem:[%s2560_s1 + $0x90] sm:$0xff]  }
  0x18   : > { %1938 = vmatprep.subr.bf16.mxu1 %v2124_v7  ;;  %v514_v35 = vshll.u32 %v1643_v31, 16  ;;  %v2148_v45 = vld [vmem:[%s2560_s1 + $0xd0] sm:$0xff]   ;;  %v2149_v46 = vld [vmem:[%s2560_s1 + $0x88] sm:$0xff]   ;;  %v2151_v48 = vld [vmem:[%s2560_s1 + $0x80] sm:$0xff]   ;;  %v518_v50 = vshrl.u32 %v1643_v31, 16 }
  0x19   : > { %v511_v37 = vrot.slane %v509_v33, 1  ;;  %v2150_v47 = vld [vmem:[%s2560_s1 + $0xc8] sm:$0xff]   ;;  %v2152_v49 = vld [vmem:[%s2560_s1 + $0xc0] sm:$0xff]   ;;  %v2156_v53 = vld [vmem:[%s2560_s1 + $0x138] sm:$0xff]  }
  0x1a   : > { %1919 = vmatpush3.bf16.msra.mxu0 %v2123_v6  ;;  %v516_v39 = vrot.slane %v514_v35, 1  ;;  %v2177_v51 = vld [vmem:[%s2304_s16 + $0x20] sm:$0xff]   ;;  %v2390_v52 = vld [vmem:[%s2304_s16 + $0x28] sm:$0x1f]   ;;  %v2159_v54 = vld [vmem:[%s2560_s1 + $0x178] sm:$0xff]  }
  0x1b   : > { %1939 = vmatpush3.bf16.msra.mxu1 %v2124_v7  ;;  %1920 = vmatprep.subr.bf16.mxu0 %v2125_v8  ;;  %v512_v40 = vor.u32 %v511_v37, %v507_v32  ;;  %v912_v55 = vshrl.u32 %v2177_v51, 16  ;;  %v914_v56 = vshll.u32 %v2177_v51, 16  ;;  %v919_v57 = vshll.u32 %v2390_v52, 16  ;;  %v2158_v59 = vld [vmem:[%s2304_s16 + $0x28] ss:$0 sps:$4 sm:$0xff]   ;;  %v2160_v60 = vld [vmem:[%s2560_s1 + $0x130] sm:$0xff]  }
  0x1c   : > { %1940 = vmatprep.subr.bf16.mxu1 %v2126_v9  ;;  %v520_v58 = vor.u32 %v518_v50, %v516_v39  ;;  %v2161_v61 = vld [vmem:[%s2560_s1 + $0x170] sm:$0xff]   ;;  %v2162_v3 = vld [vmem:[%s2560_s1 + $0x128] sm:$0xff]   ;;  %v2164_v5 = vld [vmem:[%s2560_s1 + $0x120] sm:$0xff]   ;;  %v923_v31 = vshrl.u32 %v2390_v52, 16 }
  0x1d   : > { %v517_v42 = vsel %vm505_vm0, %v512_v40, %v516_v39  ;;  %v916_v62 = vrot.slane %v914_v56, 1  ;;  %v2406_v63 = vrot.slane %v919_v57, 1  ;;  %v2174_v0 = vld [vmem:[%s2304_s16 + $0x30] sm:$0xff]   ;;  %v2163_v4 = vld [vmem:[%s2560_s1 + $0x168] sm:$0xff]   ;;  %v2165_v6 = vld [vmem:[%s2560_s1 + $0x160] sm:$0xff]  }
  0x1e   : > { %1921 = vmatpush3.bf16.msra.mxu0 %v2125_v8  ;;  %v1028_v7 = vld [vmem:[%s2304_s16 + $0xc] sm:$0x7]  ;;  %v2166_v8 = vld [vmem:[%s2560_s1 + $0x118] sm:$0xff]   ;;  %v2168_v12 = vld [vmem:[%s2560_s1 + $0x110] sm:$0xff]  }
  0x1f   : > { %1941 = vmatpush3.bf16.msra.mxu1 %v2126_v9  ;;  %1922 = vmatprep.subr.bf16.mxu0 %v2127_v10  ;;  %v917_v1 = vor.u32 %v916_v62, %v912_v55  ;;  %v2167_v9 = vld [vmem:[%s2560_s1 + $0x158] sm:$0xff]   ;;  %v2169_v13 = vld [vmem:[%s2560_s1 + $0x150] sm:$0xff]   ;;  %v2172_v28 = vld [vmem:[%s2560_s1 + $0x100] sm:$0xff]  }
  0x20   : > { %1942 = vmatprep.subr.bf16.mxu1 %v2128_v11  ;;  %v2173_v29 = vld [vmem:[%s2560_s1 + $0x140] sm:$0xff]   ;;  %v2176_v39 = vld [vmem:[%s2560_s1 + $0x1b8] sm:$0xff]   ;;  %v2182_v51 = vld [vmem:[%s2560_s1 + $0x1a8] sm:$0xff]  }
  0x21   : > { %v922_v2 = vsel %vm505_vm0, %v917_v1, %v2406_v63  ;;  %v2179_v40 = vld [vmem:[%s2560_s1 + $0x1f8] sm:$0xff]   ;;  %v2183_v52 = vld [vmem:[%s2560_s1 + $0x1e8] sm:$0xff]   ;;  %v2188_v57 = vld [vmem:[%s2560_s1 + $0x190] sm:$0xff]  }
  0x22   : > { %1923 = vmatpush3.bf16.msra.mxu0 %v2127_v10  ;;  %v2431_v10 = vcombine.low %v2348_v27, %v1028_v7  ;;  %v2186_v55 = vld [vmem:[%s2560_s1 + $0x198] sm:$0xff]   ;;  %v2192_v62 = vld [vmem:[%s2560_s1 + $0x180] sm:$0xff]  }
  0x23   : > { %1943 = vmatpush3.bf16.msra.mxu1 %v2128_v11  ;;  %1924 = vmatprep.subr.bf16.mxu0 %v2129_v14  ;;  %v1027_v11 = vld [vmem:[%s2304_s16] sm:$0xc]  ;;  %v2187_v56 = vld [vmem:[%s2560_s1 + $0x1d8] sm:$0xff]  }
  0x24   : > { %1944 = vmatprep.subr.bf16.mxu1 %v2130_v15  ;;  %v2195_v1 = vld [vmem:[%s2560_s1 + $0x238] sm:$0xff]  }
  0x25   : > { %v2201_v7 = vld [vmem:[%s2560_s1 + $0x218] sm:$0xff]  }
  0x26   : > { %1925 = vmatpush3.bf16.msra.mxu0 %v2129_v14  ;;  %v1746_v14 = vcombine.low %v1027_v11, %v2342_v25 }
  0x27   : > { %1945 = vmatpush3.bf16.msra.mxu1 %v2130_v15  ;;  %1926 = vmatprep.subr.bf16.mxu0 %v2131_v16  ;;  %v2170_v15 = vld [vmem:[%s2560_s1 + $0x108] sm:$0xff]  }
  0x28   : > { %1946 = vmatprep.subr.bf16.mxu1 %v2132_v17 }
  0x2a   : > { %1927 = vmatpush3.bf16.msra.mxu0 %v2131_v16  ;;  %v1062_v16 = vshrl.u32 %v2431_v10, 16 }
  0x2b   : > { %1947 = vmatpush3.bf16.msra.mxu1 %v2132_v17  ;;  %1952 = vmatprep.subr.bf16.mxu0 %v2137_v18  ;;  %v2196_v17 = vld [vmem:[%s2304_s16 + $0x10] sm:$0xfc]  }
  0x2c   : > { %1972 = vmatprep.subr.bf16.mxu1 %v2138_v19  ;;  %v1206_v24 = vshll.u32 %v2196_v17, 16 }
  0x2d   : > { %1929 = vmatmul.mubr.bf16.vlgmr.msra.gmra.mxu0 %v2135_v20  ;;  %v1065_v20 = vshll.u32 %v2431_v10, 16 }
  0x2e   : > { %1949 = vmatmul.mubr.bf16.vlgmr.msra.gmra.mxu1 %v2136_v21  ;;  %1953 = vmatpush3.bf16.msra.mxu0 %v2137_v18  ;;  %v2197_v18 = vld [vmem:[%s2304_s16 + $0x18] sm:$0x7f]   ;;  %v1054_v21 = vshrl.u32 %v1746_v14, 16 }
  0x2f   : > { %1973 = vmatpush3.bf16.msra.mxu1 %v2138_v19  ;;  %1954 = vmatprep.subr.bf16.mxu0 %v2139_v22  ;;  %v2171_v19 = vld [vmem:[%s2560_s1 + $0x148] sm:$0xff]   ;;  %v1214_v27 = vshll.u32 %v2197_v18, 16 }
  0x30   : > { %1974 = vmatprep.subr.bf16.mxu1 %v2140_v23  ;;  %1988 = vmatprep.mubr.bf16.mxu1 %v2157_v34  ;;  %v1056_v32 = vrot.slane %v1054_v21, 2  ;;  %v1067_v34 = vrot.slane %v1065_v20, 3 }
  0x31   : > { %1968 = vmatprep.mubr.bf16.mxu0 %v517_v42 }
  0x32   : > { %1955 = vmatpush3.bf16.msra.mxu0 %v2139_v22  ;;  %v1057_v22 = vshll.u32 %v1746_v14, 16 }
  0x33   : > { %1975 = vmatpush3.bf16.msra.mxu1 %v2140_v23  ;;  %1956 = vmatprep.subr.bf16.mxu0 %v2141_v26  ;;  %v1203_v23 = vshrl.u32 %v2196_v17, 16 }
  0x34   : > { %1976 = vmatprep.subr.bf16.mxu1 %v2142_v30  ;;  %v1059_v33 = vrot.slane %v1057_v22, 3 }
  0x35   : > { %v1205_v35 = vrot.slane %v1203_v23, 2 }
  0x36   : > { %1957 = vmatpush3.bf16.msra.mxu0 %v2141_v26  ;;  %v1211_v26 = vshrl.u32 %v2197_v18, 16  ;;  %v1060_v42 = vor.u32 %v1059_v33, %v1056_v32 }
  0x37   : > { %1977 = vmatpush3.bf16.msra.mxu1 %v2142_v30  ;;  %1958 = vmatprep.subr.bf16.mxu0 %v2143_v36  ;;  %v1064_v30 = vrot.slane %v1062_v16, 2 }
  0x38   : > { %1978 = vmatprep.subr.bf16.mxu1 %v2144_v38  ;;  %v1213_v37 = vrot.slane %v1211_v26, 2 }
  0x3a   : > { %1959 = vmatpush3.bf16.msra.mxu0 %v2143_v36  ;;  %v1208_v36 = vrot.slane %v1206_v24, 3 }
  0x3b   : > { %1979 = vmatpush3.bf16.msra.mxu1 %v2144_v38  ;;  %1960 = vmatprep.subr.bf16.mxu0 %v2145_v41  ;;  %v1216_v38 = vrot.slane %v1214_v27, 3 }
  0x3c   : > { %1980 = vmatprep.subr.bf16.mxu1 %v2146_v43 }
  0x3e   : > { %1961 = vmatpush3.bf16.msra.mxu0 %v2145_v41  ;;  %v2175_v41 = vld [vmem:[%s2304_s16 + $0x38] ss:$0 sps:$4 sm:$0xff]  }
  0x3f   : > { %1981 = vmatpush3.bf16.msra.mxu1 %v2146_v43  ;;  %1962 = vmatprep.subr.bf16.mxu0 %v2147_v44  ;;  %v2465_v43 = vor.u32 %v1067_v34, %v1064_v30 }
  0x40   : > { %1982 = vmatprep.subr.bf16.mxu1 %v2148_v45 }
  0x42   : > { %1963 = vmatpush3.bf16.msra.mxu0 %v2147_v44  ;;  %v925_v44 = vor.u32 %v923_v31, %v2406_v63  ;;  %v2193_v63 = vld [vmem:[%s2560_s1 + $0x1c0] sm:$0xff]  }
  0x43   : > { %1983 = vmatpush3.bf16.msra.mxu1 %v2148_v45  ;;  %1964 = vmatprep.subr.bf16.mxu0 %v2149_v46  ;;  %v1209_v45 = vor.u32 %v1208_v36, %v1205_v35 }
  0x44   : > { %1984 = vmatprep.subr.bf16.mxu1 %v2150_v47 }
  0x46   : > { %1965 = vmatpush3.bf16.msra.mxu0 %v2149_v46  ;;  %v2468_v46 = vor.u32 %v1216_v38, %v1213_v37 }
  0x47   : > { %1985 = vmatpush3.bf16.msra.mxu1 %v2150_v47  ;;  %1966 = vmatprep.subr.bf16.mxu0 %v2151_v48  ;;  %v2180_v47 = vld [vmem:[%s2560_s1 + $0x1b0] sm:$0xff]  }
  0x48   : > { %1986 = vmatprep.subr.bf16.mxu1 %v2152_v49  ;;  %v1218_v50 = vsel %vm1052_vm1, %v1209_v45, %v2468_v46 }
  0x4a   : > { %1967 = vmatpush3.bf16.msra.mxu0 %v2151_v48  ;;  %v2181_v48 = vld [vmem:[%s2560_s1 + $0x1f0] sm:$0xff]  }
  0x4b   : > { %1987 = vmatpush3.bf16.msra.mxu1 %v2152_v49  ;;  %1992 = vmatprep.subr.bf16.mxu0 %v2156_v53  ;;  %v1069_v49 = vsel %vm1052_vm1, %v1060_v42, %v2465_v43 }
  0x4c   : > { %2012 = vmatprep.subr.bf16.mxu1 %v2159_v54 }
  0x4d   : > { %1969 = vmatmul.mubr.bf16.vlgmr.msra.gmra.mxu0 %v520_v58  ;;  %v2189_v58 = vld [vmem:[%s2560_s1 + $0x1d0] sm:$0xff]  }
  0x4e   : > { %1993 = vmatpush3.bf16.msra.mxu0 %v2156_v53  ;;  %1989 = vmatmul.mubr.bf16.vlgmr.msra.gmra.mxu1 %v2158_v59  ;;  %v2184_v53 = vld [vmem:[%s2560_s1 + $0x1a0] sm:$0xff]   ;;  %v2190_v59 = vld [vmem:[%s2560_s1 + $0x188] sm:$0xff]  }
  0x4f   : > { %2013 = vmatpush3.bf16.msra.mxu1 %v2159_v54  ;;  %1994 = vmatprep.subr.bf16.mxu0 %v2160_v60  ;;  %v2185_v54 = vld [vmem:[%s2560_s1 + $0x1e0] sm:$0xff]  }
  0x50   : > { %2014 = vmatprep.subr.bf16.mxu1 %v2161_v61  ;;  %2008 = vmatprep.mubr.bf16.mxu0 %v2174_v0 }
  0x51   : > { %2028 = vmatprep.mubr.bf16.mxu1 %v922_v2 }
  0x52   : > { %1995 = vmatpush3.bf16.msra.mxu0 %v2160_v60  ;;  %v2191_v60 = vld [vmem:[%s2560_s1 + $0x1c8] sm:$0xff]  }
  0x53   : > { %2015 = vmatpush3.bf16.msra.mxu1 %v2161_v61  ;;  %1996 = vmatprep.subr.bf16.mxu0 %v2162_v3  ;;  %v1320_v61 = vld [vmem:[%s2304_s16] sm:$0x8] }
  0x54   : > { %2016 = vmatprep.subr.bf16.mxu1 %v2163_v4  ;;  %v1798_v0 = vcombine.low %v1320_v61, %v2342_v25 }
  0x56   : > { %1997 = vmatpush3.bf16.msra.mxu0 %v2162_v3  ;;  %v1342_v2 = vrot.slane %v1798_v0, 3  ;;  %v1343_v3 = vrot.slane %v2431_v10, 3  ;;  %v2204_v10 = vld [vmem:[%s2560_s1 + $0x200] sm:$0xff]  }
  0x57   : > { %2017 = vmatpush3.bf16.msra.mxu1 %v2163_v4  ;;  %1998 = vmatprep.subr.bf16.mxu0 %v2164_v5  ;;  %v2198_v4 = vld [vmem:[%s2560_s1 + $0x230] sm:$0xff]  }
  0x58   : > { %2018 = vmatprep.subr.bf16.mxu1 %v2165_v6  ;;  %v1344_v25 = vsel %vm1341_vm2, %v1342_v2, %v1343_v3 }
  0x5a   : > { %1999 = vmatpush3.bf16.msra.mxu0 %v2164_v5  ;;  %v2199_v5 = vld [vmem:[%s2560_s1 + $0x228] sm:$0xff]  }
  0x5b   : > { %2019 = vmatpush3.bf16.msra.mxu1 %v2165_v6  ;;  %2000 = vmatprep.subr.bf16.mxu0 %v2166_v8  ;;  %v2200_v6 = vld [vmem:[%s2560_s1 + $0x220] sm:$0xff]  }
  0x5c   : > { %2020 = vmatprep.subr.bf16.mxu1 %v2167_v9 }
  0x5e   : > { %2001 = vmatpush3.bf16.msra.mxu0 %v2166_v8  ;;  %v2202_v8 = vld [vmem:[%s2560_s1 + $0x210] sm:$0xff]  }
  0x5f   : > { %2021 = vmatpush3.bf16.msra.mxu1 %v2167_v9  ;;  %2002 = vmatprep.subr.bf16.mxu0 %v2168_v12  ;;  %v2203_v9 = vld [vmem:[%s2560_s1 + $0x208] sm:$0xff]  }
  0x60   : > { %2022 = vmatprep.subr.bf16.mxu1 %v2169_v13 }
  0x62   : > { %2003 = vmatpush3.bf16.msra.mxu0 %v2168_v12 }
  0x63   : > { %2023 = vmatpush3.bf16.msra.mxu1 %v2169_v13  ;;  %2004 = vmatprep.subr.bf16.mxu0 %v2170_v15 }
  0x64   : > { %2024 = vmatprep.subr.bf16.mxu1 %v2171_v19 }
  0x66   : > { %2005 = vmatpush3.bf16.msra.mxu0 %v2170_v15 }
  0x67   : > { %2025 = vmatpush3.bf16.msra.mxu1 %v2171_v19  ;;  %2006 = vmatprep.subr.bf16.mxu0 %v2172_v28 }
  0x68   : > { %2026 = vmatprep.subr.bf16.mxu1 %v2173_v29 }
  0x6a   : > { %2007 = vmatpush3.bf16.msra.mxu0 %v2172_v28 }
  0x6b   : > { %2027 = vmatpush3.bf16.msra.mxu1 %v2173_v29  ;;  %2032 = vmatprep.subr.bf16.mxu0 %v2176_v39 }
  0x6c   : > { %2052 = vmatprep.subr.bf16.mxu1 %v2179_v40 }
  0x6d   : > { %2009 = vmatmul.mubr.bf16.vlgmr.msra.gmra.mxu0 %v2175_v41 }
  0x6e   : > { %2033 = vmatpush3.bf16.msra.mxu0 %v2176_v39  ;;  %2029 = vmatmul.mubr.bf16.vlgmr.msra.gmra.mxu1 %v925_v44 }
  0x6f   : > { %2053 = vmatpush3.bf16.msra.mxu1 %v2179_v40  ;;  %2034 = vmatprep.subr.bf16.mxu0 %v2180_v47 }
  0x70   : > { %2054 = vmatprep.subr.bf16.mxu1 %v2181_v48  ;;  %2048 = vmatprep.mubr.bf16.mxu0 %v1069_v49 }
  0x71   : > { %2068 = vmatprep.mubr.bf16.mxu1 %v1218_v50 }
  0x72   : > { %2035 = vmatpush3.bf16.msra.mxu0 %v2180_v47 }
  0x73   : > { %2055 = vmatpush3.bf16.msra.mxu1 %v2181_v48  ;;  %2036 = vmatprep.subr.bf16.mxu0 %v2182_v51 }
  0x74   : > { %2056 = vmatprep.subr.bf16.mxu1 %v2183_v52 }
  0x76   : > { %2037 = vmatpush3.bf16.msra.mxu0 %v2182_v51 }
  0x77   : > { %2057 = vmatpush3.bf16.msra.mxu1 %v2183_v52  ;;  %2038 = vmatprep.subr.bf16.mxu0 %v2184_v53 }
  0x78   : > { %2058 = vmatprep.subr.bf16.mxu1 %v2185_v54 }
  0x7a   : > { %2039 = vmatpush3.bf16.msra.mxu0 %v2184_v53 }
  0x7b   : > { %2059 = vmatpush3.bf16.msra.mxu1 %v2185_v54  ;;  %2040 = vmatprep.subr.bf16.mxu0 %v2186_v55 }
  0x7c   : > { %2060 = vmatprep.subr.bf16.mxu1 %v2187_v56 }
  0x7e   : > { %2041 = vmatpush3.bf16.msra.mxu0 %v2186_v55 }
  0x7f   : > { %2061 = vmatpush3.bf16.msra.mxu1 %v2187_v56  ;;  %2042 = vmatprep.subr.bf16.mxu0 %v2188_v57 }
  0x80   : > { %2062 = vmatprep.subr.bf16.mxu1 %v2189_v58 }
  0x82   : > { %2043 = vmatpush3.bf16.msra.mxu0 %v2188_v57 }
  0x83   : > { %2063 = vmatpush3.bf16.msra.mxu1 %v2189_v58  ;;  %2044 = vmatprep.subr.bf16.mxu0 %v2190_v59 }
  0x84   : > { %2064 = vmatprep.subr.bf16.mxu1 %v2191_v60 }
  0x86   : > { %2045 = vmatpush3.bf16.msra.mxu0 %v2190_v59 }
  0x87   : > { %2065 = vmatpush3.bf16.msra.mxu1 %v2191_v60  ;;  %2046 = vmatprep.subr.bf16.mxu0 %v2192_v62 }
  0x88   : > { %2066 = vmatprep.subr.bf16.mxu1 %v2193_v63 }
  0x8a   : > { %2047 = vmatpush3.bf16.msra.mxu0 %v2192_v62  ;;  %v1807_v62 = vld [vmem:[%s2561_s2] ss:$0 sm:$0xff] }
  0x8b   : > { %2067 = vmatpush3.bf16.msra.mxu1 %v2193_v63  ;;  %2072 = vmatprep.subr.bf16.mxu0 %v2195_v1 }
  0x8d   : > { %2049 = vmatmul.mubr.bf16.vlgmr.msra.gmra.mxu0 %v2465_v43 }
  0x8e   : > { %2073 = vmatpush3.bf16.msra.mxu0 %v2195_v1  ;;  %2069 = vmatmul.mubr.bf16.vlgmr.msra.gmra.mxu1 %v2468_v46 }
  0x8f   : > { %2074 = vmatprep.subr.bf16.mxu0 %v2198_v4  ;;  %2088 = vmatprep.mubr.bf16.mxu0 %v1344_v25 }
  0x92   : > { %2075 = vmatpush3.bf16.msra.mxu0 %v2198_v4 }
  0x93   : > { %2076 = vmatprep.subr.bf16.mxu0 %v2199_v5 }
  0x96   : > { %2077 = vmatpush3.bf16.msra.mxu0 %v2199_v5 }
  0x97   : > { %2078 = vmatprep.subr.bf16.mxu0 %v2200_v6 }
  0x9a   : > { %2079 = vmatpush3.bf16.msra.mxu0 %v2200_v6 }
  0x9b   : > { %2080 = vmatprep.subr.bf16.mxu0 %v2201_v7 }
  0x9e   : > { %2081 = vmatpush3.bf16.msra.mxu0 %v2201_v7 }
  0x9f   : > { %2082 = vmatprep.subr.bf16.mxu0 %v2202_v8 }
  0xa2   : > { %2083 = vmatpush3.bf16.msra.mxu0 %v2202_v8 }
  0xa3   : > { %2084 = vmatprep.subr.bf16.mxu0 %v2203_v9 }
  0xa6   : > { %2085 = vmatpush3.bf16.msra.mxu0 %v2203_v9 }
  0xa7   : > { %2086 = vmatprep.subr.bf16.mxu0 %v2204_v10 }
  0xaa   : > { %2087 = vmatpush3.bf16.msra.mxu0 %v2204_v10 }
  0xad   : > { %2089 = vmatmul.mubr.bf16.vlgmr.msra.gmra.mxu0 %v1343_v3 }
  0xed   : > { %v1930_v11 = vpop.f32.mrf.mxu0 }
  0xee   : > { %v1950_v12 = vpop.f32.mrf.mxu1 }
  0xef   : > { %v469_v13 = vadd.f32 %v1950_v12, %v1930_v11  ;;  %v354_v14 = vpop.f32.mrf.mxu0 }
  0xf0   : > { %v460_v15 = vpop.f32.mrf.mxu1 }
  0xf1   : > { %v461_v16 = vadd.f32 %v460_v15, %v354_v14  ;;  %v1931_v17 = vpop.f32.mrf.mxu0 }
  0xf2   : > { %v1951_v18 = vpop.f32.mrf.mxu1 }
  0xf3   : > { %v357_v19 = vpop.f32.mrf.mxu0 }
  0xf4   : > { %v463_v20 = vpop.f32.mrf.mxu1 }
  0xf5   : > { %v464_v21 = vadd.f32 %v463_v20, %v357_v19 }
 0x10d   : > { %v1970_v22 = vpop.f32.mrf.mxu0 }
 0x10e   : > { %v621_v23 = vadd.f32 %v1970_v22, %v469_v13  ;;  %v1990_v24 = vpop.f32.mrf.mxu1 }
 0x10f   : > { %v605_v26 = vpop.f32.mrf.mxu0 }
 0x110   : > { %v619_v27 = vadd.f32 %v605_v26, %v461_v16  ;;  %v750_v28 = vadd.f32 %v1990_v24, %v621_v23  ;;  %v734_v29 = vpop.f32.mrf.mxu1 }
 0x111   : > { %v1971_v30 = vpop.f32.mrf.mxu0 }
 0x112   : > { %v748_v31 = vadd.f32 %v734_v29, %v619_v27  ;;  %v1991_v32 = vpop.f32.mrf.mxu1 }
 0x113   : > { %v608_v33 = vpop.f32.mrf.mxu0 }
 0x114   : > { %v737_v34 = vpop.f32.mrf.mxu1  ;;  %v620_v49 = vadd.f32 %v608_v33, %v464_v21 }
 0x116   : > { %v749_v52 = vadd.f32 %v737_v34, %v620_v49 }
 0x12d   : > { %v2010_v35 = vpop.f32.mrf.mxu0 }
 0x12e   : > { %v2030_v36 = vpop.f32.mrf.mxu1  ;;  %v879_v50 = vadd.f32 %v2010_v35, %v750_v28 }
 0x12f   : > { %v863_v37 = vpop.f32.mrf.mxu0 }
 0x130   : > { %v1010_v38 = vpop.f32.mrf.mxu1  ;;  %v877_v51 = vadd.f32 %v863_v37, %v748_v31  ;;  %v1026_v53 = vadd.f32 %v2030_v36, %v879_v50 }
 0x131   : > { %v2011_v39 = vpop.f32.mrf.mxu0 }
 0x132   : > { %v2031_v40 = vpop.f32.mrf.mxu1  ;;  %v1024_v54 = vadd.f32 %v1010_v38, %v877_v51 }
 0x133   : > { %v866_v41 = vpop.f32.mrf.mxu0 }
 0x134   : > { %v1013_v42 = vpop.f32.mrf.mxu1  ;;  %v878_v55 = vadd.f32 %v866_v41, %v749_v52 }
 0x136   : > { %v1025_v59 = vadd.f32 %v1013_v42, %v878_v55 }
 0x14d   : > { %v2050_v43 = vpop.f32.mrf.mxu0 }
 0x14e   : > { %v2070_v44 = vpop.f32.mrf.mxu1  ;;  %v1170_v56 = vadd.f32 %v2050_v43, %v1026_v53 }
 0x14f   : > { %v1154_v45 = vpop.f32.mrf.mxu0 }
 0x150   : > { %v1303_v46 = vpop.f32.mrf.mxu1  ;;  %v1168_v57 = vadd.f32 %v1154_v45, %v1024_v54  ;;  %v1319_v60 = vadd.f32 %v2070_v44, %v1170_v56 }
 0x151   : > { %v2051_v47 = vpop.f32.mrf.mxu0 }
 0x152   : > { %v2071_v48 = vpop.f32.mrf.mxu1  ;;  %v1317_v63 = vadd.f32 %v1303_v46, %v1168_v57 }
 0x153   : > { %v1157_v58 = vpop.f32.mrf.mxu0 }
 0x154   : > { %v1169_v0 = vadd.f32 %v1157_v58, %v1025_v59  ;;  %v1306_v2 = vpop.f32.mrf.mxu1 }
 0x156   : > { %v1318_v6 = vadd.f32 %v1306_v2, %v1169_v0 }
 0x16d   : > { %v2090_v61 = vpop.f32.mrf.mxu0 }
 0x16e   : > { %v1445_v1 = vadd.f32 %v2090_v61, %v1319_v60 }
 0x16f   : > { %v1429_v3 = vpop.f32.mrf.mxu0 }
 0x170   : > { %v1455_v4 = vadd.f32 %v1807_v62, %v1445_v1  ;;  %v1443_v25 = vadd.f32 %v1429_v3, %v1317_v63 }
 0x171   : > { %v2091_v5 = vpop.f32.mrf.mxu0 }
 0x172   : > { %v1458_v7 = vmax.f32 %v1455_v4, 0.0  ;;  %v1453_v10 = vadd.f32 %v1807_v62, %v1443_v25 }
 0x173   : > { %v1432_v8 = vpop.f32.mrf.mxu0 }
 0x174   : > { %v1816_v9 = vpack.c.bf16 %v1458_v7, %v1458_v7  ;;  %v1444_v11 = vadd.f32 %v1432_v8, %v1318_v6  ;;  %v1456_v13 = vmax.f32 %v1453_v10, 0.0 }
 0x176   : > { %1474 = vst [vmem:[%s221_s8 + $0x8] sm:$0xf] %v1816_v9  ;;  %v1454_v12 = vadd.f32 %v1807_v62, %v1444_v11 }
 0x178   : > { %v1457_v14 = vmax.f32 %v1454_v12, 0.0 }
 0x17a   : > { %v1820_v15 = vpack.c.bf16 %v1457_v14, %v1456_v13 }
 0x17c   : > { %1821 = vst [vmem:[%s221_s8] sm:$0xff] %v1820_v15  }
 0x17d PF: > { %s13_s14 = sadd.s32 1, %s2228_s14   ;;  %s2563_s12 = smov %s2224_s13 }
 0x17e   : > { %p10_p5 = scmp.ge.s32.totalorder %s13_s14, 4   ;;  %s2564_s13 = smov %s2566_s15 }
 0x180   :  { %12 = sbr.rel (!%p10_p5) target bundleno = 2 (0x2), region = 76 }

// kernel: dan_resnetv2_forward.23
= control target key start
LH: loop header
LB: loop body
LE: loop exit
PB: predicated region body
PF: predicated region fallthrough
CT: control target
= control target key end

     0   :  { %s602_s12 = smov 0   ;;  %s604_s13 = smov 0   ;;  %s665_s0 = inlined_call_operand.vmem [shape: bf16[2,16,128], index: 0, kind: input, shape index: {}]   ;;  %s666_s1 = inlined_call_operand.vmem [shape: bf16[1,128,128], index: 1, kind: input, shape index: {}]   ;;  %s667_s2 = inlined_call_operand.vmem [shape: f32[1,128], index: 2, kind: input, shape index: {}]   ;;  %s668_s3 = inlined_call_operand.vmem [shape: bf16[2,16,128], index: 3, kind: output, shape index: {}]  }
   0x1   :  { %s606_s14 = smov 0  }
   0x2 LB: > { %s25_s15 = sadd.s32 1, %s574_s13  ;;  %p464_p0 = scmp.ge.s32.totalorder %s578_s14, 1  ;;  %s578_s14 = sphi %s606_s14, %s13_s14   ;;  %s574_s13 = sphi %s604_s13, %s670_s13   ;;  %s570_s12 = sphi %s602_s12, %s669_s12  }
   0x3   : > { %p27_p1 = scmp.ge.s32.totalorder %s25_s15, 2  ;;  %p168_p2 = scmp.lt.s32.totalorder %s578_s14, 3 }
   0x5   : > { %s672_s15 = smov (%p27_p1, %s25_s15), 0  ;;  %p169_p3 = pnand %p464_p0, %p168_p2 }
   0x6   : > { %p202_p4 = scmp.lt.s32.totalorder (!%p169_p3), %s570_s12, 1 }
   0x7   : > { %172 = sbr.rel (%p169_p3) target bundleno = 247 (0xf7), region = 32 }
   0xc   : > { %v547_v0 = vld [vmem:[%s666_s1 + $0x38] sm:$0xff]   ;;  %v580_v1 = vmov 0.0   ;;  %v548_v2 = vld [vmem:[%s666_s1 + $0x30] sm:$0xff]   ;;  %vm581_vm0 = vmmov 0   ;;  %s674_s12 = smov (!%p202_p4, %s570_s12), 1  ;;  %v549_v3 = vld [vmem:[%s666_s1 + $0x28] sm:$0xff]  }
   0xd   : > { %501 = vmatprep.subr.bf16.mxu0 %v580_v1  ;;  %517 = vmatprep.mubr.msk.bf16.mxu0 %vm581_vm0, %v580_v1  ;;  %s483_s22 = sshll.u32 %s674_s12, 3  ;;  %v550_v4 = vld [vmem:[%s666_s1 + $0x20] sm:$0xff]   ;;  %v551_v5 = vld [vmem:[%s666_s1 + $0x18] sm:$0xff]   ;;  %v552_v6 = vld [vmem:[%s666_s1 + $0x10] sm:$0xff]  }
   0xe   : > { %502 = vmatpush3.bf16.msra.mxu0 %v547_v0  ;;  %s206_s25 = scalar_lea.vmem %s665_s0, %s483_s22  ;;  %v553_v7 = vld [vmem:[%s666_s1 + $0x8] sm:$0xff]   ;;  %v554_v8 = vld [vmem:[%s666_s1] sm:$0xff]   ;;  %s221_s16 = scalar_lea.vmem %s668_s3, %s483_s22 }
   0xf   : > { %503 = vmatprep.subr.bf16.mxu0 %v580_v1  ;;  %v555_v9 = vld [vmem:[%s206_s25] sm:$0xff]  }
  0x10   : > { %v469_v11 = vld [vmem:[%s667_s2] ss:$0 sm:$0xff] }
  0x12   : > { %504 = vmatpush3.bf16.msra.mxu0 %v548_v2 }
  0x13   : > { %505 = vmatprep.subr.bf16.mxu0 %v580_v1 }
  0x16   : > { %506 = vmatpush3.bf16.msra.mxu0 %v549_v3 }
  0x17   : > { %507 = vmatprep.subr.bf16.mxu0 %v580_v1 }
  0x1a   : > { %508 = vmatpush3.bf16.msra.mxu0 %v550_v4 }
  0x1b   : > { %509 = vmatprep.subr.bf16.mxu0 %v580_v1 }
  0x1e   : > { %510 = vmatpush3.bf16.msra.mxu0 %v551_v5 }
  0x1f   : > { %511 = vmatprep.subr.bf16.mxu0 %v580_v1 }
  0x22   : > { %512 = vmatpush3.bf16.msra.mxu0 %v552_v6 }
  0x23   : > { %513 = vmatprep.subr.bf16.mxu0 %v580_v1 }
  0x26   : > { %514 = vmatpush3.bf16.msra.mxu0 %v553_v7 }
  0x27   : > { %515 = vmatprep.subr.bf16.mxu0 %v580_v1 }
  0x2a   : > { %516 = vmatpush3.bf16.msra.mxu0 %v554_v8 }
  0x2d   : > { %518 = vmatmul.mubr.bf16.vlgmr.msra.gmra.mxu0 %v555_v9 }
  0xed   : > { %v336_v10 = vpop.f32.mrf.mxu0 }
  0xee   : > { %v337_v14 = vadd.f32 %v469_v11, %v336_v10 }
  0xef   : > { %v519_v12 = vpop.f32.mrf.mxu0 }
  0xf1   : > { %v339_v13 = vpop.f32.mrf.mxu0 }
  0xf2   : > { %v340_v15 = vadd.f32 %v469_v11, %v339_v13 }
  0xf3   : > { %v520_v16 = vpop.f32.mrf.mxu0 }
  0xf4   : > { %v490_v17 = vpack.c.bf16 %v340_v15, %v337_v14 }
  0xf6   : > { %491 = vst [vmem:[%s221_s16] sm:$0xff] %v490_v17  }
  0xf7 PF: > { %s13_s14 = sadd.s32 1, %s578_s14   ;;  %s669_s12 = smov %s574_s13 }
  0xf8   : > { %p10_p5 = scmp.ge.s32.totalorder %s13_s14, 4   ;;  %s670_s13 = smov %s672_s15 }
  0xfa   :  { %12 = sbr.rel (!%p10_p5) target bundleno = 2 (0x2), region = 68 }

// kernel: dan_resnetv2_forward.24
= control target key start
LH: loop header
LB: loop body
LE: loop exit
PB: predicated region body
PF: predicated region fallthrough
CT: control target
= control target key end

     0   :  { %s2290_s15 = smov 0   ;;  %s2292_s16 = smov 0   ;;  %s2621_s0 = inlined_call_operand.vmem [shape: bf16[2,40,128], index: 0, kind: input, shape index: {}]   ;;  %s2622_s1 = inlined_call_operand.vmem [shape: bf16[9,128,128], index: 1, kind: input, shape index: {}]   ;;  %s2623_s2 = inlined_call_operand.vmem [shape: f32[1,128], index: 2, kind: input, shape index: {}]   ;;  %s2624_s3 = inlined_call_operand.vmem [shape: bf16[2,24,128], index: 3, kind: input, shape index: {}]   ;;  %s2625_s4 = inlined_call_operand.vmem [shape: bf16[2,24,128], index: 4, kind: output, shape index: {}]  }
   0x1   :  { %s2294_s17 = smov 0  }
   0x2 LB: > { %s26_s18 = sadd.s32 1, %s2259_s16  ;;  %p1625_p0 = scmp.ge.s32.totalorder %s2263_s17, 1  ;;  %s2263_s17 = sphi %s2294_s17, %s14_s17   ;;  %s2259_s16 = sphi %s2292_s16, %s2627_s16   ;;  %s2255_s15 = sphi %s2290_s15, %s2626_s15  }
   0x3   : > { %p28_p1 = scmp.ge.s32.totalorder %s26_s18, 2  ;;  %p208_p2 = scmp.lt.s32.totalorder %s2263_s17, 3 }
   0x5   : > { %s2629_s18 = smov (%p28_p1, %s26_s18), 0  ;;  %p209_p3 = pnand %p1625_p0, %p208_p2 }
   0x6   : > { %p252_p4 = scmp.lt.s32.totalorder (!%p209_p3), %s2255_s15, 1 }
   0x7   : > { %212 = sbr.rel (%p209_p3) target bundleno = 383 (0x17f), region = 36 }
   0xc   : > { %v2156_v0 = vld [vmem:[%s2622_s1 + $0x78] sm:$0xff]   ;;  %v2158_v2 = vld [vmem:[%s2622_s1 + $0x70] sm:$0xff]   ;;  %v2160_v4 = vld [vmem:[%s2622_s1 + $0x68] sm:$0xff]   ;;  %s2631_s15 = smov (!%p252_p4, %s2255_s15), 1  ;;  %vm328_vm0 = vsmask.f32 7424 }
   0xd   : > { %v2157_v1 = vld [vmem:[%s2622_s1 + $0x38] sm:$0xff]   ;;  %1950 = vmatprep.subr.bf16.mxu0 %v2156_v0  ;;  %v2159_v3 = vld [vmem:[%s2622_s1 + $0x30] sm:$0xff]   ;;  %v2161_v5 = vld [vmem:[%s2622_s1 + $0x28] sm:$0xff]   ;;  %s2130_s9 = smul.u32 20, %s2631_s15  ;;  %vm562_vm1 = vcmask 1046528   ;;  %vm692_vm2 = vcmask 1044480  }
   0xe   : > { %1970 = vmatprep.subr.bf16.mxu1 %v2157_v1  ;;  %1951 = vmatpush3.bf16.msra.mxu0 %v2156_v0  ;;  %v2162_v6 = vld [vmem:[%s2622_s1 + $0x60] sm:$0xff]   ;;  %v2164_v8 = vld [vmem:[%s2622_s1 + $0x58] sm:$0xff]   ;;  %v2166_v10 = vld [vmem:[%s2622_s1 + $0x50] sm:$0xff]   ;;  %vm818_vm3 = vsmask.f32 4352  ;;  %vm1088_vm4 = vcmask 1045504  }
   0xf   : > { %1971 = vmatpush3.bf16.msra.mxu1 %v2157_v1  ;;  %1952 = vmatprep.subr.bf16.mxu0 %v2158_v2  ;;  %v2163_v7 = vld [vmem:[%s2622_s1 + $0x20] sm:$0xff]   ;;  %v2165_v9 = vld [vmem:[%s2622_s1 + $0x18] sm:$0xff]   ;;  %s2344_s20 = scalar_lea.vmem %s2621_s0, %s2130_s9  ;;  %v2167_v14 = vld [vmem:[%s2622_s1 + $0x10] sm:$0xff]   ;;  %vm1214_vm5 = vsmask.f32 5376  ;;  %s2131_s11 = smul.u32 12, %s2631_s15 }
  0x10   : > { %1972 = vmatprep.subr.bf16.mxu1 %v2159_v3  ;;  %v281_v11 = vld [vmem:[%s2344_s20] sm:$0xf]  ;;  %v2351_v12 = vld [vmem:[%s2344_s20 + $0x4] sm:$0xf]  ;;  %v2354_v13 = vld [vmem:[%s2344_s20 + $0x8] sm:$0xf] }
  0x11   : > { %v300_v15 = vld [vmem:[%s2344_s20 + $0xc] sm:$0x1]  ;;  %v1645_v16 = vcombine.low %v281_v11, %v2351_v12  ;;  %v2170_v26 = vld [vmem:[%s2622_s1 + $0x40] sm:$0xff]   ;;  %v2175_v30 = vld [vmem:[%s2622_s1 + $0xb8] sm:$0xff]   ;;  %v1655_v33 = vcombine.low %v2354_v13, %v2354_v13  ;;  %s271_s14 = scalar_lea.vmem %s2624_s3, %s2131_s11  ;;  %s279_s24 = scalar_lea.vmem %s2625_s4, %s2131_s11 }
  0x12   : > { %1953 = vmatpush3.bf16.msra.mxu0 %v2158_v2  ;;  %v2362_v17 = vcombine.low %v2354_v13, %v300_v15  ;;  %v2168_v20 = vld [vmem:[%s2622_s1 + $0x48] sm:$0xff]   ;;  %v2171_v27 = vld [vmem:[%s2622_s1] sm:$0xff]   ;;  %v2176_v31 = vld [vmem:[%s2622_s1 + $0xf8] sm:$0xff]   ;;  %v1756_v15 = vcombine.low %v2351_v12, %v2354_v13 }
  0x13   : > { %1973 = vmatpush3.bf16.msra.mxu1 %v2159_v3  ;;  %1954 = vmatprep.subr.bf16.mxu0 %v2160_v4  ;;  %v330_v18 = vshrl.u32 %v1645_v16, 16  ;;  %v332_v19 = vshll.u32 %v1645_v16, 16  ;;  %v2169_v22 = vld [vmem:[%s2622_s1 + $0x8] sm:$0xff]   ;;  %v2177_v34 = vld [vmem:[%s2622_s1 + $0xb0] sm:$0xff]   ;;  %v541_v36 = vld [vmem:[%s2344_s20] sm:$0xe] }
  0x14   : > { %1974 = vmatprep.subr.bf16.mxu1 %v2161_v5  ;;  %1986 = vmatprep.mubr.bf16.mxu1 %v1645_v16  ;;  %v337_v21 = vshll.u32 %v2362_v17, 16  ;;  %v341_v29 = vshrl.u32 %v2362_v17, 16  ;;  %v2178_v35 = vld [vmem:[%s2622_s1 + $0xf0] sm:$0xff]   ;;  %v1680_v37 = vcombine.low %v541_v36, %v2351_v12  ;;  %v564_v38 = vrot.slane %v2362_v17, 1  ;;  %v667_v39 = vld [vmem:[%s2344_s20] sm:$0x8] }
  0x15   : > { %v334_v23 = vrot.slane %v332_v19, 1  ;;  %v668_v40 = vld [vmem:[%s2344_s20 + $0xc] sm:$0x7]  ;;  %v1705_v42 = vcombine.low %v667_v39, %v2351_v12  ;;  %v2181_v49 = vld [vmem:[%s2622_s1 + $0xa0] sm:$0xff]   ;;  %v2183_v52 = vld [vmem:[%s2622_s1 + $0x98] sm:$0xff]  }
  0x16   : > { %1955 = vmatpush3.bf16.msra.mxu0 %v2160_v4  ;;  %v339_v24 = vrot.slane %v337_v21, 1  ;;  %v2179_v41 = vld [vmem:[%s2622_s1 + $0xa8] sm:$0xff]   ;;  %v1706_v43 = vcombine.low %v2354_v13, %v668_v40  ;;  %v563_v45 = vrot.slane %v1680_v37, 1  ;;  %v2182_v51 = vld [vmem:[%s2622_s1 + $0xe0] sm:$0xff]   ;;  %v2184_v53 = vld [vmem:[%s2622_s1 + $0xd8] sm:$0xff]  }
  0x17   : > { %1975 = vmatpush3.bf16.msra.mxu1 %v2161_v5  ;;  %1956 = vmatprep.subr.bf16.mxu0 %v2162_v6  ;;  %v335_v25 = vor.u32 %v334_v23, %v330_v18  ;;  %v2180_v44 = vld [vmem:[%s2622_s1 + $0xe8] sm:$0xff]   ;;  %v693_v46 = vrot.slane %v1705_v42, 3  ;;  %v2185_v54 = vld [vmem:[%s2622_s1 + $0x90] sm:$0xff]   ;;  %v820_v58 = vshrl.u32 %v1705_v42, 16  ;;  %v823_v59 = vshll.u32 %v1705_v42, 16  ;;  %v2189_v0 = vld [vmem:[%s2622_s1 + $0x80] sm:$0xff]  }
  0x18   : > { %1976 = vmatprep.subr.bf16.mxu1 %v2163_v7  ;;  %v343_v32 = vor.u32 %v341_v29, %v339_v24  ;;  %v2406_v47 = vrot.slane %v1706_v43, 3  ;;  %v565_v48 = vsel %vm562_vm1, %v563_v45, %v564_v38  ;;  %v2186_v55 = vld [vmem:[%s2622_s1 + $0xd0] sm:$0xff]   ;;  %v2187_v56 = vld [vmem:[%s2622_s1 + $0x88] sm:$0xff]   ;;  %v2190_v1 = vld [vmem:[%s2622_s1 + $0xc0] sm:$0xff]  }
  0x19   : > { %v340_v28 = vsel %vm328_vm0, %v335_v25, %v339_v24  ;;  %v2435_v57 = vld [vmem:[%s2344_s20 + $0xc] sm:$0xf]  ;;  %v822_v2 = vrot.slane %v820_v58, 3  ;;  %v825_v3 = vrot.slane %v823_v59, 4  ;;  %v2197_v11 = vld [vmem:[%s2622_s1 + $0x170] sm:$0xff]   ;;  %v2200_v12 = vld [vmem:[%s2622_s1 + $0x120] sm:$0xff]  }
  0x1a   : > { %1957 = vmatpush3.bf16.msra.mxu0 %v2162_v6  ;;  %1966 = vmatprep.mubr.bf16.mxu0 %v340_v28  ;;  %v695_v50 = vsel %vm692_vm2, %v693_v46, %v2406_v47  ;;  %v1731_v60 = vcombine.low %v2354_v13, %v2435_v57  ;;  %v2188_v61 = vld [vmem:[%s2622_s1 + $0xc8] sm:$0xff]   ;;  %v2192_v6 = vld [vmem:[%s2622_s1 + $0x138] sm:$0xff]   ;;  %v2201_v13 = vld [vmem:[%s2622_s1 + $0x160] sm:$0xff]  }
  0x1b   : > { %1977 = vmatpush3.bf16.msra.mxu1 %v2163_v7  ;;  %1958 = vmatprep.subr.bf16.mxu0 %v2164_v8  ;;  %v2195_v7 = vld [vmem:[%s2622_s1 + $0x178] sm:$0xff]   ;;  %v2198_v16 = vld [vmem:[%s2622_s1 + $0x128] sm:$0xff]   ;;  %v1193_v19 = vld [vmem:[%s2344_s20 + $0x10] sm:$0x7] }
  0x1c   : > { %1978 = vmatprep.subr.bf16.mxu1 %v2165_v9  ;;  %v828_v62 = vshrl.u32 %v1731_v60, 16  ;;  %v831_v63 = vshll.u32 %v1731_v60, 16  ;;  %v2199_v17 = vld [vmem:[%s2622_s1 + $0x168] sm:$0xff]   ;;  %v2203_v21 = vld [vmem:[%s2622_s1 + $0x158] sm:$0xff]   ;;  %v1333_v24 = vld [vmem:[%s2344_s20 + $0x4] sm:$0x8] }
  0x1d   : > { %v1059_v18 = vld [vmem:[%s2344_s20 + $0xc] sm:$0xf]  ;;  %v1058_v23 = vld [vmem:[%s2344_s20 + $0x8] sm:$0xf]  ;;  %v1057_v28 = vld [vmem:[%s2344_s20 + $0x4] sm:$0xc] }
  0x1e   : > { %1959 = vmatpush3.bf16.msra.mxu0 %v2164_v8  ;;  %v830_v4 = vrot.slane %v828_v62, 3  ;;  %v833_v5 = vrot.slane %v831_v63, 4  ;;  %v826_v8 = vor.u32 %v825_v3, %v822_v2  ;;  %v1833_v25 = vcombine.low %v1333_v24, %v1058_v23  ;;  %v2205_v29 = vld [vmem:[%s2622_s1 + $0x150] sm:$0xff]   ;;  %v2208_v40 = vld [vmem:[%s2622_s1 + $0x100] sm:$0xff]   ;;  %v2217_v58 = vld [vmem:[%s2622_s1 + $0x1a8] sm:$0xff]  }
  0x1f   : > { %1979 = vmatpush3.bf16.msra.mxu1 %v2165_v9  ;;  %1960 = vmatprep.subr.bf16.mxu0 %v2166_v10  ;;  %v2218_v59 = vld [vmem:[%s2622_s1 + $0x1e8] sm:$0xff]   ;;  %v2219_v60 = vld [vmem:[%s2622_s1 + $0x1a0] sm:$0xff]   ;;  %v2221_v62 = vld [vmem:[%s2622_s1 + $0x198] sm:$0xff]  }
  0x20   : > { %1980 = vmatprep.subr.bf16.mxu1 %v2167_v14  ;;  %v2454_v9 = vor.u32 %v833_v5, %v830_v4  ;;  %v2222_v63 = vld [vmem:[%s2622_s1 + $0x1d8] sm:$0xff]   ;;  %v2225_v2 = vld [vmem:[%s2622_s1 + $0x188] sm:$0xff]   ;;  %v2227_v4 = vld [vmem:[%s2622_s1 + $0x180] sm:$0xff]  }
  0x21   : > { %v2226_v3 = vld [vmem:[%s2622_s1 + $0x1c8] sm:$0xff]   ;;  %v2228_v5 = vld [vmem:[%s2622_s1 + $0x1c0] sm:$0xff]  }
  0x22   : > { %1961 = vmatpush3.bf16.msra.mxu0 %v2166_v10  ;;  %v2196_v10 = vld [vmem:[%s2622_s1 + $0x130] sm:$0xff]  }
  0x23   : > { %1981 = vmatpush3.bf16.msra.mxu1 %v2167_v14  ;;  %1962 = vmatprep.subr.bf16.mxu0 %v2168_v20  ;;  %v835_v14 = vsel %vm818_vm3, %v826_v8, %v2454_v9  ;;  %v2234_v8 = vld [vmem:[%s2622_s1 + $0x228] sm:$0xff]  }
  0x24   : > { %1982 = vmatprep.subr.bf16.mxu1 %v2169_v22 }
  0x26   : > { %1963 = vmatpush3.bf16.msra.mxu0 %v2168_v20  ;;  %v2202_v20 = vld [vmem:[%s2622_s1 + $0x118] sm:$0xff]  }
  0x27   : > { %1983 = vmatpush3.bf16.msra.mxu1 %v2169_v22  ;;  %1964 = vmatprep.subr.bf16.mxu0 %v2170_v26  ;;  %v2488_v22 = vcombine.low %v1059_v18, %v1193_v19 }
  0x28   : > { %1984 = vmatprep.subr.bf16.mxu1 %v2171_v27 }
  0x29   : > { %v1227_v39 = vshll.u32 %v2488_v22, 16 }
  0x2a   : > { %1965 = vmatpush3.bf16.msra.mxu0 %v2170_v26  ;;  %v1355_v26 = vrot.slane %v2488_v22, 3 }
  0x2b   : > { %1985 = vmatpush3.bf16.msra.mxu1 %v2171_v27  ;;  %1990 = vmatprep.subr.bf16.mxu0 %v2175_v30  ;;  %v2204_v27 = vld [vmem:[%s2622_s1 + $0x110] sm:$0xff]   ;;  %v1229_v46 = vrot.slane %v1227_v39, 3 }
  0x2c   : > { %2010 = vmatprep.subr.bf16.mxu1 %v2176_v31 }
  0x2d   : > { %1967 = vmatmul.mubr.bf16.vlgmr.msra.gmra.mxu0 %v343_v32 }
  0x2e   : > { %1987 = vmatmul.mubr.bf16.vlgmr.msra.gmra.mxu1 %v1655_v33  ;;  %1991 = vmatpush3.bf16.msra.mxu0 %v2175_v30  ;;  %v1354_v30 = vrot.slane %v1833_v25, 3  ;;  %v2206_v33 = vld [vmem:[%s2622_s1 + $0x108] sm:$0xff]  }
  0x2f   : > { %2011 = vmatpush3.bf16.msra.mxu1 %v2176_v31  ;;  %1992 = vmatprep.subr.bf16.mxu0 %v2177_v34  ;;  %v1782_v31 = vcombine.low %v1057_v28, %v1058_v23 }
  0x30   : > { %2012 = vmatprep.subr.bf16.mxu1 %v2178_v35  ;;  %2006 = vmatprep.mubr.bf16.mxu0 %v565_v48  ;;  %v2503_v32 = vsel %vm692_vm2, %v1354_v30, %v1355_v26  ;;  %v2214_v48 = vld [vmem:[%s2622_s1 + $0x1f8] sm:$0xff]  }
  0x31   : > { %2026 = vmatprep.mubr.bf16.mxu1 %v695_v50  ;;  %v1216_v36 = vshrl.u32 %v1782_v31, 16  ;;  %v1219_v37 = vshll.u32 %v1782_v31, 16 }
  0x32   : > { %1993 = vmatpush3.bf16.msra.mxu0 %v2177_v34  ;;  %v2207_v34 = vld [vmem:[%s2622_s1 + $0x148] sm:$0xff]  }
  0x33   : > { %2013 = vmatpush3.bf16.msra.mxu1 %v2178_v35  ;;  %1994 = vmatprep.subr.bf16.mxu0 %v2179_v41  ;;  %v1060_v35 = vld [vmem:[%s2344_s20 + $0x10] sm:$0x3]  ;;  %v1218_v43 = vrot.slane %v1216_v36, 2 }
  0x34   : > { %2014 = vmatprep.subr.bf16.mxu1 %v2180_v44  ;;  %v1783_v42 = vcombine.low %v1059_v18, %v1060_v35 }
  0x36   : > { %1995 = vmatpush3.bf16.msra.mxu0 %v2179_v41  ;;  %v2209_v41 = vld [vmem:[%s2622_s1 + $0x140] sm:$0xff]   ;;  %v1090_v50 = vrot.slane %v1783_v42, 2 }
  0x37   : > { %2015 = vmatpush3.bf16.msra.mxu1 %v2180_v44  ;;  %1996 = vmatprep.subr.bf16.mxu0 %v2181_v49  ;;  %v1221_v44 = vrot.slane %v1219_v37, 3 }
  0x38   : > { %2016 = vmatprep.subr.bf16.mxu1 %v2182_v51 }
  0x3a   : > { %1997 = vmatpush3.bf16.msra.mxu0 %v2181_v49  ;;  %v1089_v49 = vrot.slane %v1782_v31, 2 }
  0x3b   : > { %2017 = vmatpush3.bf16.msra.mxu1 %v2182_v51  ;;  %1998 = vmatprep.subr.bf16.mxu0 %v2183_v52  ;;  %v1757_v51 = vcombine.low %v2435_v57, %v2435_v57 }
  0x3c   : > { %2018 = vmatprep.subr.bf16.mxu1 %v2184_v53 }
  0x3e   : > { %1999 = vmatpush3.bf16.msra.mxu0 %v2183_v52  ;;  %v1222_v52 = vor.u32 %v1221_v44, %v1218_v43 }
  0x3f   : > { %2019 = vmatpush3.bf16.msra.mxu1 %v2184_v53  ;;  %2000 = vmatprep.subr.bf16.mxu0 %v2185_v54 }
  0x40   : > { %2020 = vmatprep.subr.bf16.mxu1 %v2186_v55 }
  0x42   : > { %2001 = vmatpush3.bf16.msra.mxu0 %v2185_v54  ;;  %v2215_v54 = vld [vmem:[%s2622_s1 + $0x1b0] sm:$0xff]  }
  0x43   : > { %2021 = vmatpush3.bf16.msra.mxu1 %v2186_v55  ;;  %2002 = vmatprep.subr.bf16.mxu0 %v2187_v56  ;;  %v2216_v55 = vld [vmem:[%s2622_s1 + $0x1f0] sm:$0xff]  }
  0x44   : > { %2022 = vmatprep.subr.bf16.mxu1 %v2188_v61 }
  0x46   : > { %2003 = vmatpush3.bf16.msra.mxu0 %v2187_v56  ;;  %v1091_v56 = vsel %vm1088_vm4, %v1089_v49, %v1090_v50 }
  0x47   : > { %2023 = vmatpush3.bf16.msra.mxu1 %v2188_v61  ;;  %2004 = vmatprep.subr.bf16.mxu0 %v2189_v0  ;;  %v2220_v61 = vld [vmem:[%s2622_s1 + $0x1e0] sm:$0xff]  }
  0x48   : > { %2024 = vmatprep.subr.bf16.mxu1 %v2190_v1 }
  0x4a   : > { %2005 = vmatpush3.bf16.msra.mxu0 %v2189_v0  ;;  %v2223_v0 = vld [vmem:[%s2622_s1 + $0x190] sm:$0xff]  }
  0x4b   : > { %2025 = vmatpush3.bf16.msra.mxu1 %v2190_v1  ;;  %2030 = vmatprep.subr.bf16.mxu0 %v2192_v6  ;;  %v2224_v1 = vld [vmem:[%s2622_s1 + $0x1d0] sm:$0xff]  }
  0x4c   : > { %2050 = vmatprep.subr.bf16.mxu1 %v2195_v7 }
  0x4d   : > { %2007 = vmatmul.mubr.bf16.vlgmr.msra.gmra.mxu0 %v564_v38  ;;  %v1224_v38 = vshrl.u32 %v2488_v22, 16 }
  0x4e   : > { %2031 = vmatpush3.bf16.msra.mxu0 %v2192_v6  ;;  %2027 = vmatmul.mubr.bf16.vlgmr.msra.gmra.mxu1 %v2406_v47  ;;  %v2211_v47 = vld [vmem:[%s2622_s1 + $0x1b8] sm:$0xff]  }
  0x4f   : > { %2051 = vmatpush3.bf16.msra.mxu1 %v2195_v7  ;;  %2032 = vmatprep.subr.bf16.mxu0 %v2196_v10  ;;  %v1226_v45 = vrot.slane %v1224_v38, 2  ;;  %v2232_v6 = vld [vmem:[%s2622_s1 + $0x238] sm:$0xff]   ;;  %v2233_v7 = vld [vmem:[%s2622_s1 + $0x230] sm:$0xff]  }
  0x50   : > { %2052 = vmatprep.subr.bf16.mxu1 %v2197_v11  ;;  %2046 = vmatprep.mubr.bf16.mxu0 %v835_v14  ;;  %v2238_v14 = vld [vmem:[%s2622_s1 + $0x208] sm:$0xff]  }
  0x51   : > { %2066 = vmatprep.mubr.bf16.mxu1 %v1756_v15  ;;  %v1230_v53 = vor.u32 %v1229_v46, %v1226_v45  ;;  %v2239_v15 = vld [vmem:[%s2622_s1 + $0x200] sm:$0xff]  }
  0x52   : > { %2033 = vmatpush3.bf16.msra.mxu0 %v2196_v10  ;;  %v2236_v10 = vld [vmem:[%s2622_s1 + $0x218] sm:$0xff]  }
  0x53   : > { %2053 = vmatpush3.bf16.msra.mxu1 %v2197_v11  ;;  %2034 = vmatprep.subr.bf16.mxu0 %v2198_v16  ;;  %v1231_v57 = vsel %vm1214_vm5, %v1222_v52, %v1230_v53  ;;  %v2237_v11 = vld [vmem:[%s2622_s1 + $0x210] sm:$0xff]  }
  0x54   : > { %2054 = vmatprep.subr.bf16.mxu1 %v2199_v17 }
  0x56   : > { %2035 = vmatpush3.bf16.msra.mxu0 %v2198_v16 }
  0x57   : > { %2055 = vmatpush3.bf16.msra.mxu1 %v2199_v17  ;;  %2036 = vmatprep.subr.bf16.mxu0 %v2200_v12 }
  0x58   : > { %2056 = vmatprep.subr.bf16.mxu1 %v2201_v13 }
  0x5a   : > { %2037 = vmatpush3.bf16.msra.mxu0 %v2200_v12 }
  0x5b   : > { %2057 = vmatpush3.bf16.msra.mxu1 %v2201_v13  ;;  %2038 = vmatprep.subr.bf16.mxu0 %v2202_v20 }
  0x5c   : > { %2058 = vmatprep.subr.bf16.mxu1 %v2203_v21 }
  0x5e   : > { %2039 = vmatpush3.bf16.msra.mxu0 %v2202_v20 }
  0x5f   : > { %2059 = vmatpush3.bf16.msra.mxu1 %v2203_v21  ;;  %2040 = vmatprep.subr.bf16.mxu0 %v2204_v27 }
  0x60   : > { %2060 = vmatprep.subr.bf16.mxu1 %v2205_v29 }
  0x62   : > { %2041 = vmatpush3.bf16.msra.mxu0 %v2204_v27 }
  0x63   : > { %2061 = vmatpush3.bf16.msra.mxu1 %v2205_v29  ;;  %2042 = vmatprep.subr.bf16.mxu0 %v2206_v33 }
  0x64   : > { %2062 = vmatprep.subr.bf16.mxu1 %v2207_v34 }
  0x66   : > { %2043 = vmatpush3.bf16.msra.mxu0 %v2206_v33 }
  0x67   : > { %2063 = vmatpush3.bf16.msra.mxu1 %v2207_v34  ;;  %2044 = vmatprep.subr.bf16.mxu0 %v2208_v40 }
  0x68   : > { %2064 = vmatprep.subr.bf16.mxu1 %v2209_v41 }
  0x6a   : > { %2045 = vmatpush3.bf16.msra.mxu0 %v2208_v40 }
  0x6b   : > { %2065 = vmatpush3.bf16.msra.mxu1 %v2209_v41  ;;  %2070 = vmatprep.subr.bf16.mxu0 %v2211_v47 }
  0x6c   : > { %2090 = vmatprep.subr.bf16.mxu1 %v2214_v48 }
  0x6d   : > { %2047 = vmatmul.mubr.bf16.vlgmr.msra.gmra.mxu0 %v2454_v9  ;;  %v2235_v9 = vld [vmem:[%s2622_s1 + $0x220] sm:$0xff]  }
  0x6e   : > { %2071 = vmatpush3.bf16.msra.mxu0 %v2211_v47  ;;  %2067 = vmatmul.mubr.bf16.vlgmr.msra.gmra.mxu1 %v1757_v51 }
  0x6f   : > { %2091 = vmatpush3.bf16.msra.mxu1 %v2214_v48  ;;  %2072 = vmatprep.subr.bf16.mxu0 %v2215_v54 }
  0x70   : > { %2092 = vmatprep.subr.bf16.mxu1 %v2216_v55  ;;  %2086 = vmatprep.mubr.bf16.mxu0 %v1091_v56 }
  0x71   : > { %2106 = vmatprep.mubr.bf16.mxu1 %v1231_v57 }
  0x72   : > { %2073 = vmatpush3.bf16.msra.mxu0 %v2215_v54 }
  0x73   : > { %2093 = vmatpush3.bf16.msra.mxu1 %v2216_v55  ;;  %2074 = vmatprep.subr.bf16.mxu0 %v2217_v58 }
  0x74   : > { %2094 = vmatprep.subr.bf16.mxu1 %v2218_v59 }
  0x76   : > { %2075 = vmatpush3.bf16.msra.mxu0 %v2217_v58 }
  0x77   : > { %2095 = vmatpush3.bf16.msra.mxu1 %v2218_v59  ;;  %2076 = vmatprep.subr.bf16.mxu0 %v2219_v60 }
  0x78   : > { %2096 = vmatprep.subr.bf16.mxu1 %v2220_v61 }
  0x7a   : > { %2077 = vmatpush3.bf16.msra.mxu0 %v2219_v60 }
  0x7b   : > { %2097 = vmatpush3.bf16.msra.mxu1 %v2220_v61  ;;  %2078 = vmatprep.subr.bf16.mxu0 %v2221_v62  ;;  %v1470_v61 = vld [vmem:[%s271_s14 + $0x8] sm:$0xf] }
  0x7c   : > { %2098 = vmatprep.subr.bf16.mxu1 %v2222_v63 }
  0x7e   : > { %2079 = vmatpush3.bf16.msra.mxu0 %v2221_v62 }
  0x7f   : > { %2099 = vmatpush3.bf16.msra.mxu1 %v2222_v63  ;;  %2080 = vmatprep.subr.bf16.mxu0 %v2223_v0 }
  0x80   : > { %2100 = vmatprep.subr.bf16.mxu1 %v2224_v1 }
  0x82   : > { %2081 = vmatpush3.bf16.msra.mxu0 %v2223_v0 }
  0x83   : > { %2101 = vmatpush3.bf16.msra.mxu1 %v2224_v1  ;;  %2082 = vmatprep.subr.bf16.mxu0 %v2225_v2  ;;  %v1842_v1 = vld [vmem:[%s2623_s2] ss:$0 sm:$0xff] }
  0x84   : > { %2102 = vmatprep.subr.bf16.mxu1 %v2226_v3 }
  0x86   : > { %2083 = vmatpush3.bf16.msra.mxu0 %v2225_v2 }
  0x87   : > { %2103 = vmatpush3.bf16.msra.mxu1 %v2226_v3  ;;  %2084 = vmatprep.subr.bf16.mxu0 %v2227_v4 }
  0x88   : > { %2104 = vmatprep.subr.bf16.mxu1 %v2228_v5 }
  0x8a   : > { %2085 = vmatpush3.bf16.msra.mxu0 %v2227_v4 }
  0x8b   : > { %2105 = vmatpush3.bf16.msra.mxu1 %v2228_v5  ;;  %2110 = vmatprep.subr.bf16.mxu0 %v2232_v6  ;;  %v1473_v5 = vunpack.c.l.bf16 %v1470_v61 }
  0x8d   : > { %2087 = vmatmul.mubr.bf16.vlgmr.msra.gmra.mxu0 %v1090_v50 }
  0x8e   : > { %2111 = vmatpush3.bf16.msra.mxu0 %v2232_v6  ;;  %2107 = vmatmul.mubr.bf16.vlgmr.msra.gmra.mxu1 %v1230_v53 }
  0x8f   : > { %2112 = vmatprep.subr.bf16.mxu0 %v2233_v7  ;;  %2126 = vmatprep.mubr.bf16.mxu0 %v2503_v32 }
  0x92   : > { %2113 = vmatpush3.bf16.msra.mxu0 %v2233_v7 }
  0x93   : > { %2114 = vmatprep.subr.bf16.mxu0 %v2234_v8 }
  0x96   : > { %2115 = vmatpush3.bf16.msra.mxu0 %v2234_v8  ;;  %v1852_v8 = vld [vmem:[%s271_s14] sm:$0xff]  }
  0x97   : > { %2116 = vmatprep.subr.bf16.mxu0 %v2235_v9 }
  0x9a   : > { %2117 = vmatpush3.bf16.msra.mxu0 %v2235_v9 }
  0x9b   : > { %2118 = vmatprep.subr.bf16.mxu0 %v2236_v10 }
  0x9e   : > { %2119 = vmatpush3.bf16.msra.mxu0 %v2236_v10 }
  0x9f   : > { %2120 = vmatprep.subr.bf16.mxu0 %v2237_v11 }
  0xa2   : > { %2121 = vmatpush3.bf16.msra.mxu0 %v2237_v11 }
  0xa3   : > { %2122 = vmatprep.subr.bf16.mxu0 %v2238_v14 }
  0xa6   : > { %2123 = vmatpush3.bf16.msra.mxu0 %v2238_v14 }
  0xa7   : > { %2124 = vmatprep.subr.bf16.mxu0 %v2239_v15 }
  0xaa   : > { %2125 = vmatpush3.bf16.msra.mxu0 %v2239_v15 }
  0xad   : > { %2127 = vmatmul.mubr.bf16.vlgmr.msra.gmra.mxu0 %v1355_v26 }
  0xed   : > { %v1968_v16 = vpop.f32.mrf.mxu0 }
  0xee   : > { %v1988_v17 = vpop.f32.mrf.mxu1 }
  0xef   : > { %v536_v12 = vadd.f32 %v1988_v17, %v1968_v16  ;;  %v428_v13 = vpop.f32.mrf.mxu0  ;;  %v1853_v17 = vunpack.c.l.bf16 %v1852_v8 }
  0xf0   : > { %v527_v18 = vpop.f32.mrf.mxu1 }
  0xf1   : > { %v528_v19 = vadd.f32 %v527_v18, %v428_v13  ;;  %v1969_v20 = vpop.f32.mrf.mxu0 }
  0xf2   : > { %v1989_v21 = vpop.f32.mrf.mxu1 }
  0xf3   : > { %v431_v23 = vpop.f32.mrf.mxu0 }
  0xf4   : > { %v530_v24 = vpop.f32.mrf.mxu1 }
  0xf5   : > { %v531_v25 = vadd.f32 %v530_v24, %v431_v23 }
 0x10d   : > { %v2008_v27 = vpop.f32.mrf.mxu0 }
 0x10e   : > { %v666_v28 = vadd.f32 %v2008_v27, %v536_v12  ;;  %v2028_v29 = vpop.f32.mrf.mxu1 }
 0x10f   : > { %v650_v30 = vpop.f32.mrf.mxu0 }
 0x110   : > { %v664_v31 = vadd.f32 %v650_v30, %v528_v19  ;;  %v796_v32 = vadd.f32 %v2028_v29, %v666_v28  ;;  %v780_v33 = vpop.f32.mrf.mxu1  ;;  %v1854_v19 = vunpack.c.h.bf16 %v1852_v8 }
 0x111   : > { %v2009_v22 = vpop.f32.mrf.mxu0 }
 0x112   : > { %v794_v26 = vadd.f32 %v780_v33, %v664_v31  ;;  %v2029_v34 = vpop.f32.mrf.mxu1 }
 0x113   : > { %v653_v35 = vpop.f32.mrf.mxu0 }
 0x114   : > { %v783_v36 = vpop.f32.mrf.mxu1  ;;  %v665_v51 = vadd.f32 %v653_v35, %v531_v25 }
 0x116   : > { %v795_v54 = vadd.f32 %v783_v36, %v665_v51 }
 0x12d   : > { %v2048_v37 = vpop.f32.mrf.mxu0 }
 0x12e   : > { %v2068_v38 = vpop.f32.mrf.mxu1  ;;  %v936_v52 = vadd.f32 %v2048_v37, %v796_v32 }
 0x12f   : > { %v920_v39 = vpop.f32.mrf.mxu0 }
 0x130   : > { %v1040_v40 = vpop.f32.mrf.mxu1  ;;  %v934_v53 = vadd.f32 %v920_v39, %v794_v26  ;;  %v1056_v55 = vadd.f32 %v2068_v38, %v936_v52 }
 0x131   : > { %v2049_v41 = vpop.f32.mrf.mxu0 }
 0x132   : > { %v2069_v42 = vpop.f32.mrf.mxu1  ;;  %v1054_v56 = vadd.f32 %v1040_v40, %v934_v53 }
 0x133   : > { %v923_v43 = vpop.f32.mrf.mxu0 }
 0x134   : > { %v1043_v44 = vpop.f32.mrf.mxu1  ;;  %v935_v57 = vadd.f32 %v923_v43, %v795_v54 }
 0x136   : > { %v1055_v62 = vadd.f32 %v1043_v44, %v935_v57 }
 0x14d   : > { %v2088_v45 = vpop.f32.mrf.mxu0 }
 0x14e   : > { %v2108_v46 = vpop.f32.mrf.mxu1  ;;  %v1192_v58 = vadd.f32 %v2088_v45, %v1056_v55 }
 0x14f   : > { %v1176_v47 = vpop.f32.mrf.mxu0 }
 0x150   : > { %v1316_v48 = vpop.f32.mrf.mxu1  ;;  %v1190_v59 = vadd.f32 %v1176_v47, %v1054_v56  ;;  %v1332_v63 = vadd.f32 %v2108_v46, %v1192_v58 }
 0x151   : > { %v2089_v49 = vpop.f32.mrf.mxu0 }
 0x152   : > { %v2109_v50 = vpop.f32.mrf.mxu1  ;;  %v1330_v2 = vadd.f32 %v1316_v48, %v1190_v59 }
 0x153   : > { %v1179_v60 = vpop.f32.mrf.mxu0 }
 0x154   : > { %v1191_v3 = vadd.f32 %v1179_v60, %v1055_v62  ;;  %v1319_v6 = vpop.f32.mrf.mxu1 }
 0x156   : > { %v1331_v14 = vadd.f32 %v1319_v6, %v1191_v3 }
 0x16d   : > { %v2128_v0 = vpop.f32.mrf.mxu0 }
 0x16e   : > { %v1457_v4 = vadd.f32 %v2128_v0, %v1332_v63 }
 0x16f   : > { %v1441_v7 = vpop.f32.mrf.mxu0 }
 0x170   : > { %v1467_v9 = vadd.f32 %v1842_v1, %v1457_v4  ;;  %v1455_v10 = vadd.f32 %v1441_v7, %v1330_v2 }
 0x171   : > { %v2129_v11 = vpop.f32.mrf.mxu0 }
 0x172   : > { %v1476_v15 = vadd.f32 %v1473_v5, %v1467_v9  ;;  %v1465_v16 = vadd.f32 %v1842_v1, %v1455_v10 }
 0x173   : > { %v1444_v12 = vpop.f32.mrf.mxu0 }
 0x174   : > { %v1479_v13 = vmax.f32 %v1476_v15, 0.0  ;;  %v1456_v18 = vadd.f32 %v1444_v12, %v1331_v14  ;;  %v1474_v21 = vadd.f32 %v1853_v17, %v1465_v16 }
 0x176   : > { %v1850_v20 = vpack.c.bf16 %v1479_v13, %v1479_v13  ;;  %v1466_v23 = vadd.f32 %v1842_v1, %v1456_v18  ;;  %v1477_v25 = vmax.f32 %v1474_v21, 0.0 }
 0x178   : > { %1495 = vst [vmem:[%s279_s24 + $0x8] sm:$0xf] %v1850_v20  ;;  %v1475_v24 = vadd.f32 %v1854_v19, %v1466_v23 }
 0x17a   : > { %v1478_v27 = vmax.f32 %v1475_v24, 0.0 }
 0x17c   : > { %v1858_v28 = vpack.c.bf16 %v1478_v27, %v1477_v25 }
 0x17e   : > { %1859 = vst [vmem:[%s279_s24] sm:$0xff] %v1858_v28  }
 0x17f PF: > { %s14_s17 = sadd.s32 1, %s2263_s17   ;;  %s2626_s15 = smov %s2259_s16 }
 0x180   : > { %p11_p5 = scmp.ge.s32.totalorder %s14_s17, 4   ;;  %s2627_s16 = smov %s2629_s18 }
 0x182   :  { %13 = sbr.rel (!%p11_p5) target bundleno = 2 (0x2), region = 83 }

// kernel: dan_resnetv2_forward.25
= control target key start
LH: loop header
LB: loop body
LE: loop exit
PB: predicated region body
PF: predicated region fallthrough
CT: control target
= control target key end

     0   :  { %s2195_s12 = smov 0   ;;  %s2197_s13 = smov 0   ;;  %s2519_s0 = inlined_call_operand.vmem [shape: bf16[2,40,128], index: 0, kind: input, shape index: {}]   ;;  %s2520_s1 = inlined_call_operand.vmem [shape: bf16[9,128,128], index: 1, kind: input, shape index: {}]   ;;  %s2521_s2 = inlined_call_operand.vmem [shape: f32[1,128], index: 2, kind: input, shape index: {}]   ;;  %s2522_s3 = inlined_call_operand.vmem [shape: bf16[2,24,128], index: 3, kind: output, shape index: {}]  }
   0x1   :  { %s2199_s14 = smov 0  }
   0x2 LB: > { %s25_s15 = sadd.s32 1, %s2169_s13  ;;  %p1540_p0 = scmp.ge.s32.totalorder %s2173_s14, 1  ;;  %s2173_s14 = sphi %s2199_s14, %s13_s14   ;;  %s2169_s13 = sphi %s2197_s13, %s2524_s13   ;;  %s2165_s12 = sphi %s2195_s12, %s2523_s12  }
   0x3   : > { %p27_p1 = scmp.ge.s32.totalorder %s25_s15, 2  ;;  %p168_p2 = scmp.lt.s32.totalorder %s2173_s14, 3 }
   0x5   : > { %s2526_s15 = smov (%p27_p1, %s25_s15), 0  ;;  %p169_p3 = pnand %p1540_p0, %p168_p2 }
   0x6   : > { %p202_p4 = scmp.lt.s32.totalorder (!%p169_p3), %s2165_s12, 1 }
   0x7   : > { %172 = sbr.rel (%p169_p3) target bundleno = 381 (0x17d), region = 32 }
   0xc   : > { %v2066_v0 = vld [vmem:[%s2520_s1 + $0x78] sm:$0xff]   ;;  %v2068_v2 = vld [vmem:[%s2520_s1 + $0x70] sm:$0xff]   ;;  %v2070_v4 = vld [vmem:[%s2520_s1 + $0x68] sm:$0xff]   ;;  %s2528_s12 = smov (!%p202_p4, %s2165_s12), 1  ;;  %vm270_vm0 = vsmask.f32 7424 }
   0xd   : > { %v2067_v1 = vld [vmem:[%s2520_s1 + $0x38] sm:$0xff]   ;;  %1860 = vmatprep.subr.bf16.mxu0 %v2066_v0  ;;  %v2069_v3 = vld [vmem:[%s2520_s1 + $0x30] sm:$0xff]   ;;  %v2071_v5 = vld [vmem:[%s2520_s1 + $0x28] sm:$0xff]   ;;  %s2040_s5 = smul.u32 20, %s2528_s12  ;;  %vm504_vm1 = vcmask 1046528   ;;  %vm634_vm2 = vcmask 1044480  }
   0xe   : > { %1880 = vmatprep.subr.bf16.mxu1 %v2067_v1  ;;  %1861 = vmatpush3.bf16.msra.mxu0 %v2066_v0  ;;  %v2072_v6 = vld [vmem:[%s2520_s1 + $0x60] sm:$0xff]   ;;  %v2074_v8 = vld [vmem:[%s2520_s1 + $0x58] sm:$0xff]   ;;  %v2076_v10 = vld [vmem:[%s2520_s1 + $0x50] sm:$0xff]   ;;  %vm760_vm3 = vsmask.f32 4352  ;;  %vm1030_vm4 = vcmask 1045504  }
   0xf   : > { %1881 = vmatpush3.bf16.msra.mxu1 %v2067_v1  ;;  %1862 = vmatprep.subr.bf16.mxu0 %v2068_v2  ;;  %v2073_v7 = vld [vmem:[%s2520_s1 + $0x20] sm:$0xff]   ;;  %v2075_v9 = vld [vmem:[%s2520_s1 + $0x18] sm:$0xff]   ;;  %s2249_s16 = scalar_lea.vmem %s2519_s0, %s2040_s5  ;;  %v2077_v14 = vld [vmem:[%s2520_s1 + $0x10] sm:$0xff]   ;;  %vm1156_vm5 = vsmask.f32 5376  ;;  %s2041_s30 = smul.u32 12, %s2528_s12 }
  0x10   : > { %1882 = vmatprep.subr.bf16.mxu1 %v2069_v3  ;;  %v223_v11 = vld [vmem:[%s2249_s16] sm:$0xf]  ;;  %v2256_v12 = vld [vmem:[%s2249_s16 + $0x4] sm:$0xf]  ;;  %v2259_v13 = vld [vmem:[%s2249_s16 + $0x8] sm:$0xf] }
  0x11   : > { %v242_v15 = vld [vmem:[%s2249_s16 + $0xc] sm:$0x1]  ;;  %v1559_v16 = vcombine.low %v223_v11, %v2256_v12  ;;  %v2080_v26 = vld [vmem:[%s2520_s1 + $0x40] sm:$0xff]   ;;  %v2085_v30 = vld [vmem:[%s2520_s1 + $0xb8] sm:$0xff]   ;;  %v1569_v33 = vcombine.low %v2259_v13, %v2259_v13  ;;  %s221_s6 = scalar_lea.vmem %s2522_s3, %s2041_s30 }
  0x12   : > { %1863 = vmatpush3.bf16.msra.mxu0 %v2068_v2  ;;  %v2267_v17 = vcombine.low %v2259_v13, %v242_v15  ;;  %v2078_v20 = vld [vmem:[%s2520_s1 + $0x48] sm:$0xff]   ;;  %v2081_v27 = vld [vmem:[%s2520_s1] sm:$0xff]   ;;  %v2086_v31 = vld [vmem:[%s2520_s1 + $0xf8] sm:$0xff]   ;;  %v1670_v15 = vcombine.low %v2256_v12, %v2259_v13 }
  0x13   : > { %1883 = vmatpush3.bf16.msra.mxu1 %v2069_v3  ;;  %1864 = vmatprep.subr.bf16.mxu0 %v2070_v4  ;;  %v272_v18 = vshrl.u32 %v1559_v16, 16  ;;  %v274_v19 = vshll.u32 %v1559_v16, 16  ;;  %v2079_v22 = vld [vmem:[%s2520_s1 + $0x8] sm:$0xff]   ;;  %v2087_v34 = vld [vmem:[%s2520_s1 + $0xb0] sm:$0xff]   ;;  %v483_v36 = vld [vmem:[%s2249_s16] sm:$0xe] }
  0x14   : > { %1884 = vmatprep.subr.bf16.mxu1 %v2071_v5  ;;  %1896 = vmatprep.mubr.bf16.mxu1 %v1559_v16  ;;  %v279_v21 = vshll.u32 %v2267_v17, 16  ;;  %v283_v29 = vshrl.u32 %v2267_v17, 16  ;;  %v2088_v35 = vld [vmem:[%s2520_s1 + $0xf0] sm:$0xff]   ;;  %v1594_v37 = vcombine.low %v483_v36, %v2256_v12  ;;  %v506_v38 = vrot.slane %v2267_v17, 1  ;;  %v609_v39 = vld [vmem:[%s2249_s16] sm:$0x8] }
  0x15   : > { %v276_v23 = vrot.slane %v274_v19, 1  ;;  %v610_v40 = vld [vmem:[%s2249_s16 + $0xc] sm:$0x7]  ;;  %v1619_v42 = vcombine.low %v609_v39, %v2256_v12  ;;  %v2091_v49 = vld [vmem:[%s2520_s1 + $0xa0] sm:$0xff]   ;;  %v2093_v52 = vld [vmem:[%s2520_s1 + $0x98] sm:$0xff]  }
  0x16   : > { %1865 = vmatpush3.bf16.msra.mxu0 %v2070_v4  ;;  %v281_v24 = vrot.slane %v279_v21, 1  ;;  %v2089_v41 = vld [vmem:[%s2520_s1 + $0xa8] sm:$0xff]   ;;  %v1620_v43 = vcombine.low %v2259_v13, %v610_v40  ;;  %v505_v45 = vrot.slane %v1594_v37, 1  ;;  %v2092_v51 = vld [vmem:[%s2520_s1 + $0xe0] sm:$0xff]   ;;  %v2094_v53 = vld [vmem:[%s2520_s1 + $0xd8] sm:$0xff]  }
  0x17   : > { %1885 = vmatpush3.bf16.msra.mxu1 %v2071_v5  ;;  %1866 = vmatprep.subr.bf16.mxu0 %v2072_v6  ;;  %v277_v25 = vor.u32 %v276_v23, %v272_v18  ;;  %v2090_v44 = vld [vmem:[%s2520_s1 + $0xe8] sm:$0xff]   ;;  %v635_v46 = vrot.slane %v1619_v42, 3  ;;  %v2095_v54 = vld [vmem:[%s2520_s1 + $0x90] sm:$0xff]   ;;  %v762_v58 = vshrl.u32 %v1619_v42, 16  ;;  %v765_v59 = vshll.u32 %v1619_v42, 16  ;;  %v2099_v0 = vld [vmem:[%s2520_s1 + $0x80] sm:$0xff]  }
  0x18   : > { %1886 = vmatprep.subr.bf16.mxu1 %v2073_v7  ;;  %v285_v32 = vor.u32 %v283_v29, %v281_v24  ;;  %v2311_v47 = vrot.slane %v1620_v43, 3  ;;  %v507_v48 = vsel %vm504_vm1, %v505_v45, %v506_v38  ;;  %v2096_v55 = vld [vmem:[%s2520_s1 + $0xd0] sm:$0xff]   ;;  %v2097_v56 = vld [vmem:[%s2520_s1 + $0x88] sm:$0xff]   ;;  %v2100_v1 = vld [vmem:[%s2520_s1 + $0xc0] sm:$0xff]  }
  0x19   : > { %v282_v28 = vsel %vm270_vm0, %v277_v25, %v281_v24  ;;  %v2340_v57 = vld [vmem:[%s2249_s16 + $0xc] sm:$0xf]  ;;  %v764_v2 = vrot.slane %v762_v58, 3  ;;  %v767_v3 = vrot.slane %v765_v59, 4  ;;  %v2107_v11 = vld [vmem:[%s2520_s1 + $0x170] sm:$0xff]   ;;  %v2110_v12 = vld [vmem:[%s2520_s1 + $0x120] sm:$0xff]  }
  0x1a   : > { %1867 = vmatpush3.bf16.msra.mxu0 %v2072_v6  ;;  %1876 = vmatprep.mubr.bf16.mxu0 %v282_v28  ;;  %v637_v50 = vsel %vm634_vm2, %v635_v46, %v2311_v47  ;;  %v1645_v60 = vcombine.low %v2259_v13, %v2340_v57  ;;  %v2098_v61 = vld [vmem:[%s2520_s1 + $0xc8] sm:$0xff]   ;;  %v2102_v6 = vld [vmem:[%s2520_s1 + $0x138] sm:$0xff]   ;;  %v2111_v13 = vld [vmem:[%s2520_s1 + $0x160] sm:$0xff]  }
  0x1b   : > { %1887 = vmatpush3.bf16.msra.mxu1 %v2073_v7  ;;  %1868 = vmatprep.subr.bf16.mxu0 %v2074_v8  ;;  %v2105_v7 = vld [vmem:[%s2520_s1 + $0x178] sm:$0xff]   ;;  %v2108_v16 = vld [vmem:[%s2520_s1 + $0x128] sm:$0xff]   ;;  %v1135_v19 = vld [vmem:[%s2249_s16 + $0x10] sm:$0x7] }
  0x1c   : > { %1888 = vmatprep.subr.bf16.mxu1 %v2075_v9  ;;  %v770_v62 = vshrl.u32 %v1645_v60, 16  ;;  %v773_v63 = vshll.u32 %v1645_v60, 16  ;;  %v2109_v17 = vld [vmem:[%s2520_s1 + $0x168] sm:$0xff]   ;;  %v2113_v21 = vld [vmem:[%s2520_s1 + $0x158] sm:$0xff]   ;;  %v1275_v24 = vld [vmem:[%s2249_s16 + $0x4] sm:$0x8] }
  0x1d   : > { %v1001_v18 = vld [vmem:[%s2249_s16 + $0xc] sm:$0xf]  ;;  %v1000_v23 = vld [vmem:[%s2249_s16 + $0x8] sm:$0xf]  ;;  %v999_v28 = vld [vmem:[%s2249_s16 + $0x4] sm:$0xc] }
  0x1e   : > { %1869 = vmatpush3.bf16.msra.mxu0 %v2074_v8  ;;  %v772_v4 = vrot.slane %v770_v62, 3  ;;  %v775_v5 = vrot.slane %v773_v63, 4  ;;  %v768_v8 = vor.u32 %v767_v3, %v764_v2  ;;  %v1747_v25 = vcombine.low %v1275_v24, %v1000_v23  ;;  %v2115_v29 = vld [vmem:[%s2520_s1 + $0x150] sm:$0xff]   ;;  %v2118_v40 = vld [vmem:[%s2520_s1 + $0x100] sm:$0xff]   ;;  %v2127_v58 = vld [vmem:[%s2520_s1 + $0x1a8] sm:$0xff]  }
  0x1f   : > { %1889 = vmatpush3.bf16.msra.mxu1 %v2075_v9  ;;  %1870 = vmatprep.subr.bf16.mxu0 %v2076_v10  ;;  %v2128_v59 = vld [vmem:[%s2520_s1 + $0x1e8] sm:$0xff]   ;;  %v2129_v60 = vld [vmem:[%s2520_s1 + $0x1a0] sm:$0xff]   ;;  %v2131_v62 = vld [vmem:[%s2520_s1 + $0x198] sm:$0xff]  }
  0x20   : > { %1890 = vmatprep.subr.bf16.mxu1 %v2077_v14  ;;  %v2359_v9 = vor.u32 %v775_v5, %v772_v4  ;;  %v2132_v63 = vld [vmem:[%s2520_s1 + $0x1d8] sm:$0xff]   ;;  %v2135_v2 = vld [vmem:[%s2520_s1 + $0x188] sm:$0xff]   ;;  %v2137_v4 = vld [vmem:[%s2520_s1 + $0x180] sm:$0xff]  }
  0x21   : > { %v2136_v3 = vld [vmem:[%s2520_s1 + $0x1c8] sm:$0xff]   ;;  %v2138_v5 = vld [vmem:[%s2520_s1 + $0x1c0] sm:$0xff]  }
  0x22   : > { %1871 = vmatpush3.bf16.msra.mxu0 %v2076_v10  ;;  %v2106_v10 = vld [vmem:[%s2520_s1 + $0x130] sm:$0xff]  }
  0x23   : > { %1891 = vmatpush3.bf16.msra.mxu1 %v2077_v14  ;;  %1872 = vmatprep.subr.bf16.mxu0 %v2078_v20  ;;  %v777_v14 = vsel %vm760_vm3, %v768_v8, %v2359_v9  ;;  %v2144_v8 = vld [vmem:[%s2520_s1 + $0x228] sm:$0xff]  }
  0x24   : > { %1892 = vmatprep.subr.bf16.mxu1 %v2079_v22 }
  0x26   : > { %1873 = vmatpush3.bf16.msra.mxu0 %v2078_v20  ;;  %v2112_v20 = vld [vmem:[%s2520_s1 + $0x118] sm:$0xff]  }
  0x27   : > { %1893 = vmatpush3.bf16.msra.mxu1 %v2079_v22  ;;  %1874 = vmatprep.subr.bf16.mxu0 %v2080_v26  ;;  %v2393_v22 = vcombine.low %v1001_v18, %v1135_v19 }
  0x28   : > { %1894 = vmatprep.subr.bf16.mxu1 %v2081_v27 }
  0x29   : > { %v1169_v39 = vshll.u32 %v2393_v22, 16 }
  0x2a   : > { %1875 = vmatpush3.bf16.msra.mxu0 %v2080_v26  ;;  %v1297_v26 = vrot.slane %v2393_v22, 3 }
  0x2b   : > { %1895 = vmatpush3.bf16.msra.mxu1 %v2081_v27  ;;  %1900 = vmatprep.subr.bf16.mxu0 %v2085_v30  ;;  %v2114_v27 = vld [vmem:[%s2520_s1 + $0x110] sm:$0xff]   ;;  %v1171_v46 = vrot.slane %v1169_v39, 3 }
  0x2c   : > { %1920 = vmatprep.subr.bf16.mxu1 %v2086_v31 }
  0x2d   : > { %1877 = vmatmul.mubr.bf16.vlgmr.msra.gmra.mxu0 %v285_v32 }
  0x2e   : > { %1897 = vmatmul.mubr.bf16.vlgmr.msra.gmra.mxu1 %v1569_v33  ;;  %1901 = vmatpush3.bf16.msra.mxu0 %v2085_v30  ;;  %v1296_v30 = vrot.slane %v1747_v25, 3  ;;  %v2116_v33 = vld [vmem:[%s2520_s1 + $0x108] sm:$0xff]  }
  0x2f   : > { %1921 = vmatpush3.bf16.msra.mxu1 %v2086_v31  ;;  %1902 = vmatprep.subr.bf16.mxu0 %v2087_v34  ;;  %v1696_v31 = vcombine.low %v999_v28, %v1000_v23 }
  0x30   : > { %1922 = vmatprep.subr.bf16.mxu1 %v2088_v35  ;;  %1916 = vmatprep.mubr.bf16.mxu0 %v507_v48  ;;  %v2408_v32 = vsel %vm634_vm2, %v1296_v30, %v1297_v26  ;;  %v2124_v48 = vld [vmem:[%s2520_s1 + $0x1f8] sm:$0xff]  }
  0x31   : > { %1936 = vmatprep.mubr.bf16.mxu1 %v637_v50  ;;  %v1158_v36 = vshrl.u32 %v1696_v31, 16  ;;  %v1161_v37 = vshll.u32 %v1696_v31, 16 }
  0x32   : > { %1903 = vmatpush3.bf16.msra.mxu0 %v2087_v34  ;;  %v2117_v34 = vld [vmem:[%s2520_s1 + $0x148] sm:$0xff]  }
  0x33   : > { %1923 = vmatpush3.bf16.msra.mxu1 %v2088_v35  ;;  %1904 = vmatprep.subr.bf16.mxu0 %v2089_v41  ;;  %v1002_v35 = vld [vmem:[%s2249_s16 + $0x10] sm:$0x3]  ;;  %v1160_v43 = vrot.slane %v1158_v36, 2 }
  0x34   : > { %1924 = vmatprep.subr.bf16.mxu1 %v2090_v44  ;;  %v1697_v42 = vcombine.low %v1001_v18, %v1002_v35 }
  0x36   : > { %1905 = vmatpush3.bf16.msra.mxu0 %v2089_v41  ;;  %v2119_v41 = vld [vmem:[%s2520_s1 + $0x140] sm:$0xff]   ;;  %v1032_v50 = vrot.slane %v1697_v42, 2 }
  0x37   : > { %1925 = vmatpush3.bf16.msra.mxu1 %v2090_v44  ;;  %1906 = vmatprep.subr.bf16.mxu0 %v2091_v49  ;;  %v1163_v44 = vrot.slane %v1161_v37, 3 }
  0x38   : > { %1926 = vmatprep.subr.bf16.mxu1 %v2092_v51 }
  0x3a   : > { %1907 = vmatpush3.bf16.msra.mxu0 %v2091_v49  ;;  %v1031_v49 = vrot.slane %v1696_v31, 2 }
  0x3b   : > { %1927 = vmatpush3.bf16.msra.mxu1 %v2092_v51  ;;  %1908 = vmatprep.subr.bf16.mxu0 %v2093_v52  ;;  %v1671_v51 = vcombine.low %v2340_v57, %v2340_v57 }
  0x3c   : > { %1928 = vmatprep.subr.bf16.mxu1 %v2094_v53 }
  0x3e   : > { %1909 = vmatpush3.bf16.msra.mxu0 %v2093_v52  ;;  %v1164_v52 = vor.u32 %v1163_v44, %v1160_v43 }
  0x3f   : > { %1929 = vmatpush3.bf16.msra.mxu1 %v2094_v53  ;;  %1910 = vmatprep.subr.bf16.mxu0 %v2095_v54 }
  0x40   : > { %1930 = vmatprep.subr.bf16.mxu1 %v2096_v55 }
  0x42   : > { %1911 = vmatpush3.bf16.msra.mxu0 %v2095_v54  ;;  %v2125_v54 = vld [vmem:[%s2520_s1 + $0x1b0] sm:$0xff]  }
  0x43   : > { %1931 = vmatpush3.bf16.msra.mxu1 %v2096_v55  ;;  %1912 = vmatprep.subr.bf16.mxu0 %v2097_v56  ;;  %v2126_v55 = vld [vmem:[%s2520_s1 + $0x1f0] sm:$0xff]  }
  0x44   : > { %1932 = vmatprep.subr.bf16.mxu1 %v2098_v61 }
  0x46   : > { %1913 = vmatpush3.bf16.msra.mxu0 %v2097_v56  ;;  %v1033_v56 = vsel %vm1030_vm4, %v1031_v49, %v1032_v50 }
  0x47   : > { %1933 = vmatpush3.bf16.msra.mxu1 %v2098_v61  ;;  %1914 = vmatprep.subr.bf16.mxu0 %v2099_v0  ;;  %v2130_v61 = vld [vmem:[%s2520_s1 + $0x1e0] sm:$0xff]  }
  0x48   : > { %1934 = vmatprep.subr.bf16.mxu1 %v2100_v1 }
  0x4a   : > { %1915 = vmatpush3.bf16.msra.mxu0 %v2099_v0  ;;  %v2133_v0 = vld [vmem:[%s2520_s1 + $0x190] sm:$0xff]  }
  0x4b   : > { %1935 = vmatpush3.bf16.msra.mxu1 %v2100_v1  ;;  %1940 = vmatprep.subr.bf16.mxu0 %v2102_v6  ;;  %v2134_v1 = vld [vmem:[%s2520_s1 + $0x1d0] sm:$0xff]  }
  0x4c   : > { %1960 = vmatprep.subr.bf16.mxu1 %v2105_v7 }
  0x4d   : > { %1917 = vmatmul.mubr.bf16.vlgmr.msra.gmra.mxu0 %v506_v38  ;;  %v1166_v38 = vshrl.u32 %v2393_v22, 16 }
  0x4e   : > { %1941 = vmatpush3.bf16.msra.mxu0 %v2102_v6  ;;  %1937 = vmatmul.mubr.bf16.vlgmr.msra.gmra.mxu1 %v2311_v47  ;;  %v2121_v47 = vld [vmem:[%s2520_s1 + $0x1b8] sm:$0xff]  }
  0x4f   : > { %1961 = vmatpush3.bf16.msra.mxu1 %v2105_v7  ;;  %1942 = vmatprep.subr.bf16.mxu0 %v2106_v10  ;;  %v1168_v45 = vrot.slane %v1166_v38, 2  ;;  %v2142_v6 = vld [vmem:[%s2520_s1 + $0x238] sm:$0xff]   ;;  %v2143_v7 = vld [vmem:[%s2520_s1 + $0x230] sm:$0xff]  }
  0x50   : > { %1962 = vmatprep.subr.bf16.mxu1 %v2107_v11  ;;  %1956 = vmatprep.mubr.bf16.mxu0 %v777_v14  ;;  %v2148_v14 = vld [vmem:[%s2520_s1 + $0x208] sm:$0xff]  }
  0x51   : > { %1976 = vmatprep.mubr.bf16.mxu1 %v1670_v15  ;;  %v1172_v53 = vor.u32 %v1171_v46, %v1168_v45  ;;  %v2149_v15 = vld [vmem:[%s2520_s1 + $0x200] sm:$0xff]  }
  0x52   : > { %1943 = vmatpush3.bf16.msra.mxu0 %v2106_v10  ;;  %v2146_v10 = vld [vmem:[%s2520_s1 + $0x218] sm:$0xff]  }
  0x53   : > { %1963 = vmatpush3.bf16.msra.mxu1 %v2107_v11  ;;  %1944 = vmatprep.subr.bf16.mxu0 %v2108_v16  ;;  %v1173_v57 = vsel %vm1156_vm5, %v1164_v52, %v1172_v53  ;;  %v2147_v11 = vld [vmem:[%s2520_s1 + $0x210] sm:$0xff]  }
  0x54   : > { %1964 = vmatprep.subr.bf16.mxu1 %v2109_v17 }
  0x56   : > { %1945 = vmatpush3.bf16.msra.mxu0 %v2108_v16 }
  0x57   : > { %1965 = vmatpush3.bf16.msra.mxu1 %v2109_v17  ;;  %1946 = vmatprep.subr.bf16.mxu0 %v2110_v12 }
  0x58   : > { %1966 = vmatprep.subr.bf16.mxu1 %v2111_v13 }
  0x5a   : > { %1947 = vmatpush3.bf16.msra.mxu0 %v2110_v12 }
  0x5b   : > { %1967 = vmatpush3.bf16.msra.mxu1 %v2111_v13  ;;  %1948 = vmatprep.subr.bf16.mxu0 %v2112_v20 }
  0x5c   : > { %1968 = vmatprep.subr.bf16.mxu1 %v2113_v21 }
  0x5e   : > { %1949 = vmatpush3.bf16.msra.mxu0 %v2112_v20 }
  0x5f   : > { %1969 = vmatpush3.bf16.msra.mxu1 %v2113_v21  ;;  %1950 = vmatprep.subr.bf16.mxu0 %v2114_v27 }
  0x60   : > { %1970 = vmatprep.subr.bf16.mxu1 %v2115_v29 }
  0x62   : > { %1951 = vmatpush3.bf16.msra.mxu0 %v2114_v27 }
  0x63   : > { %1971 = vmatpush3.bf16.msra.mxu1 %v2115_v29  ;;  %1952 = vmatprep.subr.bf16.mxu0 %v2116_v33 }
  0x64   : > { %1972 = vmatprep.subr.bf16.mxu1 %v2117_v34 }
  0x66   : > { %1953 = vmatpush3.bf16.msra.mxu0 %v2116_v33 }
  0x67   : > { %1973 = vmatpush3.bf16.msra.mxu1 %v2117_v34  ;;  %1954 = vmatprep.subr.bf16.mxu0 %v2118_v40 }
  0x68   : > { %1974 = vmatprep.subr.bf16.mxu1 %v2119_v41 }
  0x6a   : > { %1955 = vmatpush3.bf16.msra.mxu0 %v2118_v40 }
  0x6b   : > { %1975 = vmatpush3.bf16.msra.mxu1 %v2119_v41  ;;  %1980 = vmatprep.subr.bf16.mxu0 %v2121_v47 }
  0x6c   : > { %2000 = vmatprep.subr.bf16.mxu1 %v2124_v48 }
  0x6d   : > { %1957 = vmatmul.mubr.bf16.vlgmr.msra.gmra.mxu0 %v2359_v9  ;;  %v2145_v9 = vld [vmem:[%s2520_s1 + $0x220] sm:$0xff]  }
  0x6e   : > { %1981 = vmatpush3.bf16.msra.mxu0 %v2121_v47  ;;  %1977 = vmatmul.mubr.bf16.vlgmr.msra.gmra.mxu1 %v1671_v51 }
  0x6f   : > { %2001 = vmatpush3.bf16.msra.mxu1 %v2124_v48  ;;  %1982 = vmatprep.subr.bf16.mxu0 %v2125_v54 }
  0x70   : > { %2002 = vmatprep.subr.bf16.mxu1 %v2126_v55  ;;  %1996 = vmatprep.mubr.bf16.mxu0 %v1033_v56 }
  0x71   : > { %2016 = vmatprep.mubr.bf16.mxu1 %v1173_v57 }
  0x72   : > { %1983 = vmatpush3.bf16.msra.mxu0 %v2125_v54 }
  0x73   : > { %2003 = vmatpush3.bf16.msra.mxu1 %v2126_v55  ;;  %1984 = vmatprep.subr.bf16.mxu0 %v2127_v58 }
  0x74   : > { %2004 = vmatprep.subr.bf16.mxu1 %v2128_v59 }
  0x76   : > { %1985 = vmatpush3.bf16.msra.mxu0 %v2127_v58 }
  0x77   : > { %2005 = vmatpush3.bf16.msra.mxu1 %v2128_v59  ;;  %1986 = vmatprep.subr.bf16.mxu0 %v2129_v60 }
  0x78   : > { %2006 = vmatprep.subr.bf16.mxu1 %v2130_v61 }
  0x7a   : > { %1987 = vmatpush3.bf16.msra.mxu0 %v2129_v60 }
  0x7b   : > { %2007 = vmatpush3.bf16.msra.mxu1 %v2130_v61  ;;  %1988 = vmatprep.subr.bf16.mxu0 %v2131_v62 }
  0x7c   : > { %2008 = vmatprep.subr.bf16.mxu1 %v2132_v63 }
  0x7e   : > { %1989 = vmatpush3.bf16.msra.mxu0 %v2131_v62 }
  0x7f   : > { %2009 = vmatpush3.bf16.msra.mxu1 %v2132_v63  ;;  %1990 = vmatprep.subr.bf16.mxu0 %v2133_v0 }
  0x80   : > { %2010 = vmatprep.subr.bf16.mxu1 %v2134_v1 }
  0x82   : > { %1991 = vmatpush3.bf16.msra.mxu0 %v2133_v0  ;;  %v1756_v0 = vld [vmem:[%s2521_s2] ss:$0 sm:$0xff] }
  0x83   : > { %2011 = vmatpush3.bf16.msra.mxu1 %v2134_v1  ;;  %1992 = vmatprep.subr.bf16.mxu0 %v2135_v2 }
  0x84   : > { %2012 = vmatprep.subr.bf16.mxu1 %v2136_v3 }
  0x86   : > { %1993 = vmatpush3.bf16.msra.mxu0 %v2135_v2 }
  0x87   : > { %2013 = vmatpush3.bf16.msra.mxu1 %v2136_v3  ;;  %1994 = vmatprep.subr.bf16.mxu0 %v2137_v4 }
  0x88   : > { %2014 = vmatprep.subr.bf16.mxu1 %v2138_v5 }
  0x8a   : > { %1995 = vmatpush3.bf16.msra.mxu0 %v2137_v4 }
  0x8b   : > { %2015 = vmatpush3.bf16.msra.mxu1 %v2138_v5  ;;  %2020 = vmatprep.subr.bf16.mxu0 %v2142_v6 }
  0x8d   : > { %1997 = vmatmul.mubr.bf16.vlgmr.msra.gmra.mxu0 %v1032_v50 }
  0x8e   : > { %2021 = vmatpush3.bf16.msra.mxu0 %v2142_v6  ;;  %2017 = vmatmul.mubr.bf16.vlgmr.msra.gmra.mxu1 %v1172_v53 }
  0x8f   : > { %2022 = vmatprep.subr.bf16.mxu0 %v2143_v7  ;;  %2036 = vmatprep.mubr.bf16.mxu0 %v2408_v32 }
  0x92   : > { %2023 = vmatpush3.bf16.msra.mxu0 %v2143_v7 }
  0x93   : > { %2024 = vmatprep.subr.bf16.mxu0 %v2144_v8 }
  0x96   : > { %2025 = vmatpush3.bf16.msra.mxu0 %v2144_v8 }
  0x97   : > { %2026 = vmatprep.subr.bf16.mxu0 %v2145_v9 }
  0x9a   : > { %2027 = vmatpush3.bf16.msra.mxu0 %v2145_v9 }
  0x9b   : > { %2028 = vmatprep.subr.bf16.mxu0 %v2146_v10 }
  0x9e   : > { %2029 = vmatpush3.bf16.msra.mxu0 %v2146_v10 }
  0x9f   : > { %2030 = vmatprep.subr.bf16.mxu0 %v2147_v11 }
  0xa2   : > { %2031 = vmatpush3.bf16.msra.mxu0 %v2147_v11 }
  0xa3   : > { %2032 = vmatprep.subr.bf16.mxu0 %v2148_v14 }
  0xa6   : > { %2033 = vmatpush3.bf16.msra.mxu0 %v2148_v14 }
  0xa7   : > { %2034 = vmatprep.subr.bf16.mxu0 %v2149_v15 }
  0xaa   : > { %2035 = vmatpush3.bf16.msra.mxu0 %v2149_v15 }
  0xad   : > { %2037 = vmatmul.mubr.bf16.vlgmr.msra.gmra.mxu0 %v1297_v26 }
  0xed   : > { %v1878_v16 = vpop.f32.mrf.mxu0 }
  0xee   : > { %v1898_v17 = vpop.f32.mrf.mxu1 }
  0xef   : > { %v478_v12 = vadd.f32 %v1898_v17, %v1878_v16  ;;  %v370_v13 = vpop.f32.mrf.mxu0 }
  0xf0   : > { %v469_v18 = vpop.f32.mrf.mxu1 }
  0xf1   : > { %v470_v19 = vadd.f32 %v469_v18, %v370_v13  ;;  %v1879_v20 = vpop.f32.mrf.mxu0 }
  0xf2   : > { %v1899_v21 = vpop.f32.mrf.mxu1 }
  0xf3   : > { %v373_v23 = vpop.f32.mrf.mxu0 }
  0xf4   : > { %v472_v24 = vpop.f32.mrf.mxu1 }
  0xf5   : > { %v473_v25 = vadd.f32 %v472_v24, %v373_v23 }
 0x10d   : > { %v1918_v27 = vpop.f32.mrf.mxu0 }
 0x10e   : > { %v608_v28 = vadd.f32 %v1918_v27, %v478_v12  ;;  %v1938_v29 = vpop.f32.mrf.mxu1 }
 0x10f   : > { %v592_v30 = vpop.f32.mrf.mxu0 }
 0x110   : > { %v606_v31 = vadd.f32 %v592_v30, %v470_v19  ;;  %v738_v32 = vadd.f32 %v1938_v29, %v608_v28  ;;  %v722_v33 = vpop.f32.mrf.mxu1 }
 0x111   : > { %v1919_v22 = vpop.f32.mrf.mxu0 }
 0x112   : > { %v736_v26 = vadd.f32 %v722_v33, %v606_v31  ;;  %v1939_v34 = vpop.f32.mrf.mxu1 }
 0x113   : > { %v595_v35 = vpop.f32.mrf.mxu0 }
 0x114   : > { %v725_v36 = vpop.f32.mrf.mxu1  ;;  %v607_v51 = vadd.f32 %v595_v35, %v473_v25 }
 0x116   : > { %v737_v54 = vadd.f32 %v725_v36, %v607_v51 }
 0x12d   : > { %v1958_v37 = vpop.f32.mrf.mxu0 }
 0x12e   : > { %v1978_v38 = vpop.f32.mrf.mxu1  ;;  %v878_v52 = vadd.f32 %v1958_v37, %v738_v32 }
 0x12f   : > { %v862_v39 = vpop.f32.mrf.mxu0 }
 0x130   : > { %v982_v40 = vpop.f32.mrf.mxu1  ;;  %v876_v53 = vadd.f32 %v862_v39, %v736_v26  ;;  %v998_v55 = vadd.f32 %v1978_v38, %v878_v52 }
 0x131   : > { %v1959_v41 = vpop.f32.mrf.mxu0 }
 0x132   : > { %v1979_v42 = vpop.f32.mrf.mxu1  ;;  %v996_v56 = vadd.f32 %v982_v40, %v876_v53 }
 0x133   : > { %v865_v43 = vpop.f32.mrf.mxu0 }
 0x134   : > { %v985_v44 = vpop.f32.mrf.mxu1  ;;  %v877_v57 = vadd.f32 %v865_v43, %v737_v54 }
 0x136   : > { %v997_v61 = vadd.f32 %v985_v44, %v877_v57 }
 0x14d   : > { %v1998_v45 = vpop.f32.mrf.mxu0 }
 0x14e   : > { %v2018_v46 = vpop.f32.mrf.mxu1  ;;  %v1134_v58 = vadd.f32 %v1998_v45, %v998_v55 }
 0x14f   : > { %v1118_v47 = vpop.f32.mrf.mxu0 }
 0x150   : > { %v1258_v48 = vpop.f32.mrf.mxu1  ;;  %v1132_v59 = vadd.f32 %v1118_v47, %v996_v56  ;;  %v1274_v62 = vadd.f32 %v2018_v46, %v1134_v58 }
 0x151   : > { %v1999_v49 = vpop.f32.mrf.mxu0 }
 0x152   : > { %v2019_v50 = vpop.f32.mrf.mxu1  ;;  %v1272_v1 = vadd.f32 %v1258_v48, %v1132_v59 }
 0x153   : > { %v1121_v60 = vpop.f32.mrf.mxu0 }
 0x154   : > { %v1133_v2 = vadd.f32 %v1121_v60, %v997_v61  ;;  %v1261_v4 = vpop.f32.mrf.mxu1 }
 0x156   : > { %v1273_v9 = vadd.f32 %v1261_v4, %v1133_v2 }
 0x16d   : > { %v2038_v63 = vpop.f32.mrf.mxu0 }
 0x16e   : > { %v1399_v3 = vadd.f32 %v2038_v63, %v1274_v62 }
 0x16f   : > { %v1383_v5 = vpop.f32.mrf.mxu0 }
 0x170   : > { %v1409_v6 = vadd.f32 %v1756_v0, %v1399_v3  ;;  %v1397_v7 = vadd.f32 %v1383_v5, %v1272_v1 }
 0x171   : > { %v2039_v8 = vpop.f32.mrf.mxu0 }
 0x172   : > { %v1412_v10 = vmax.f32 %v1409_v6, 0.0  ;;  %v1407_v15 = vadd.f32 %v1756_v0, %v1397_v7 }
 0x173   : > { %v1386_v11 = vpop.f32.mrf.mxu0 }
 0x174   : > { %v1764_v14 = vpack.c.bf16 %v1412_v10, %v1412_v10  ;;  %v1398_v16 = vadd.f32 %v1386_v11, %v1273_v9  ;;  %v1410_v12 = vmax.f32 %v1407_v15, 0.0 }
 0x176   : > { %1428 = vst [vmem:[%s221_s6 + $0x8] sm:$0xf] %v1764_v14  ;;  %v1408_v17 = vadd.f32 %v1756_v0, %v1398_v16 }
 0x178   : > { %v1411_v13 = vmax.f32 %v1408_v17, 0.0 }
 0x17a   : > { %v1768_v18 = vpack.c.bf16 %v1411_v13, %v1410_v12 }
 0x17c   : > { %1769 = vst [vmem:[%s221_s6] sm:$0xff] %v1768_v18  }
 0x17d PF: > { %s13_s14 = sadd.s32 1, %s2173_s14   ;;  %s2523_s12 = smov %s2169_s13 }
 0x17e   : > { %p10_p5 = scmp.ge.s32.totalorder %s13_s14, 4   ;;  %s2524_s13 = smov %s2526_s15 }
 0x180   :  { %12 = sbr.rel (!%p10_p5) target bundleno = 2 (0x2), region = 76 }

// kernel: dan_resnetv2_forward.33
= control target key start
LH: loop header
LB: loop body
LE: loop exit
PB: predicated region body
PF: predicated region fallthrough
CT: control target
= control target key end

     0   :  { %s912_s12 = smov 0   ;;  %s914_s13 = smov 0   ;;  %s1063_s0 = inlined_call_operand.vmem [shape: bf16[2,16,128], index: 0, kind: input, shape index: {}]   ;;  %s1064_s1 = inlined_call_operand.vmem [shape: bf16[3,128,128], index: 1, kind: input, shape index: {}]   ;;  %s1065_s2 = inlined_call_operand.vmem [shape: f32[1,128], index: 2, kind: input, shape index: {}]   ;;  %s1066_s3 = inlined_call_operand.vmem [shape: bf16[2,8,128], index: 3, kind: output, shape index: {}]  }
   0x1   :  { %s916_s14 = smov 0  }
   0x2 LB: > { %s25_s15 = sadd.s32 1, %s884_s13  ;;  %p663_p0 = scmp.ge.s32.totalorder %s888_s14, 1  ;;  %s888_s14 = sphi %s916_s14, %s13_s14   ;;  %s884_s13 = sphi %s914_s13, %s1068_s13   ;;  %s880_s12 = sphi %s912_s12, %s1067_s12  }
   0x3   : > { %p27_p1 = scmp.ge.s32.totalorder %s25_s15, 2  ;;  %p168_p2 = scmp.lt.s32.totalorder %s888_s14, 3 }
   0x5   : > { %s1070_s15 = smov (%p27_p1, %s25_s15), 0  ;;  %p169_p3 = pnand %p663_p0, %p168_p2 }
   0x6   : > { %p201_p4 = scmp.lt.s32.totalorder (!%p169_p3), %s880_s12, 1 }
   0x7   : > { %172 = sbr.rel (%p169_p3) target bundleno = 279 (0x117), region = 32 }
   0xc   : > { %v841_v0 = vld [vmem:[%s1064_s1 + $0x78] sm:$0xff]   ;;  %v890_v1 = vmov 0.0   ;;  %v843_v3 = vld [vmem:[%s1064_s1 + $0x70] sm:$0xff]   ;;  %vm891_vm0 = vmmov 0   ;;  %v845_v5 = vld [vmem:[%s1064_s1 + $0x68] sm:$0xff]   ;;  %s1072_s12 = smov (!%p201_p4, %s880_s12), 1 }
   0xd   : > { %755 = vmatprep.subr.bf16.mxu0 %v890_v1  ;;  %775 = vmatprep.subr.bf16.mxu1 %v890_v1  ;;  %v842_v2 = vld [vmem:[%s1064_s1 + $0x38] sm:$0xff]   ;;  %v844_v4 = vld [vmem:[%s1064_s1 + $0x30] sm:$0xff]   ;;  %v846_v6 = vld [vmem:[%s1064_s1 + $0x28] sm:$0xff]   ;;  %s727_s5 = sshll.u32 %s1072_s12, 3  ;;  %s666_s25 = sshll.u32 %s1072_s12, 2 }
   0xe   : > { %756 = vmatpush3.bf16.msra.mxu0 %v841_v0  ;;  %771 = vmatprep.mubr.msk.bf16.mxu0 %vm891_vm0, %v890_v1  ;;  %v847_v7 = vld [vmem:[%s1064_s1 + $0x60] sm:$0xff]   ;;  %v849_v9 = vld [vmem:[%s1064_s1 + $0x58] sm:$0xff]   ;;  %s983_s16 = scalar_lea.vmem %s1063_s0, %s727_s5  ;;  %v851_v11 = vld [vmem:[%s1064_s1 + $0x50] sm:$0xff]   ;;  %s219_s27 = scalar_lea.vmem %s1066_s3, %s666_s25 }
   0xf   : > { %776 = vmatpush3.bf16.msra.mxu1 %v842_v2  ;;  %757 = vmatprep.subr.bf16.mxu0 %v890_v1  ;;  %v848_v8 = vld [vmem:[%s1064_s1 + $0x20] sm:$0xff]   ;;  %v850_v10 = vld [vmem:[%s1064_s1 + $0x18] sm:$0xff]   ;;  %v852_v12 = vld [vmem:[%s1064_s1 + $0x10] sm:$0xff]  }
  0x10   : > { %777 = vmatprep.subr.bf16.mxu1 %v890_v1  ;;  %791 = vmatprep.mubr.msk.bf16.mxu1 %vm891_vm0, %v890_v1  ;;  %v853_v13 = vld [vmem:[%s1064_s1 + $0x48] sm:$0xff]   ;;  %v857_v15 = vld [vmem:[%s983_s16] sm:$0x3c]   ;;  %v858_v19 = vld [vmem:[%s1064_s1 + $0xb8] sm:$0xff]  }
  0x11   : > { %v854_v14 = vld [vmem:[%s1064_s1 + $0x8] sm:$0xff]   ;;  %v855_v16 = vld [vmem:[%s1064_s1 + $0x40] sm:$0xff]   ;;  %v262_v18 = vrot.slane %v857_v15, 2  ;;  %v859_v21 = vld [vmem:[%s1064_s1 + $0xb0] sm:$0xff]  }
  0x12   : > { %758 = vmatpush3.bf16.msra.mxu0 %v843_v3  ;;  %v856_v17 = vld [vmem:[%s1064_s1] sm:$0xff]   ;;  %v860_v22 = vld [vmem:[%s1064_s1 + $0xa8] sm:$0xff]   ;;  %v862_v24 = vld [vmem:[%s1064_s1 + $0x98] sm:$0xff]  }
  0x13   : > { %778 = vmatpush3.bf16.msra.mxu1 %v844_v4  ;;  %759 = vmatprep.subr.bf16.mxu0 %v890_v1  ;;  %v221_v20 = vld [vmem:[%s983_s16] sm:$0xf]  ;;  %v863_v25 = vld [vmem:[%s1064_s1 + $0x90] sm:$0xff]   ;;  %v864_v26 = vld [vmem:[%s1064_s1 + $0x88] sm:$0xff]  }
  0x14   : > { %779 = vmatprep.subr.bf16.mxu1 %v890_v1  ;;  %v861_v23 = vld [vmem:[%s1064_s1 + $0xa0] sm:$0xff]  }
  0x15   : > { %v865_v27 = vld [vmem:[%s1064_s1 + $0x80] sm:$0xff]  }
  0x16   : > { %760 = vmatpush3.bf16.msra.mxu0 %v845_v5  ;;  %v440_v28 = vld [vmem:[%s983_s16 + $0x4] sm:$0xf]  ;;  %v724_v39 = vld [vmem:[%s1065_s2] ss:$0 sm:$0xff] }
  0x17   : > { %780 = vmatpush3.bf16.msra.mxu1 %v846_v6  ;;  %761 = vmatprep.subr.bf16.mxu0 %v890_v1 }
  0x18   : > { %781 = vmatprep.subr.bf16.mxu1 %v890_v1 }
  0x1a   : > { %762 = vmatpush3.bf16.msra.mxu0 %v847_v7 }
  0x1b   : > { %782 = vmatpush3.bf16.msra.mxu1 %v848_v8  ;;  %763 = vmatprep.subr.bf16.mxu0 %v890_v1 }
  0x1c   : > { %783 = vmatprep.subr.bf16.mxu1 %v890_v1 }
  0x1e   : > { %764 = vmatpush3.bf16.msra.mxu0 %v849_v9 }
  0x1f   : > { %784 = vmatpush3.bf16.msra.mxu1 %v850_v10  ;;  %765 = vmatprep.subr.bf16.mxu0 %v890_v1 }
  0x20   : > { %785 = vmatprep.subr.bf16.mxu1 %v890_v1 }
  0x22   : > { %766 = vmatpush3.bf16.msra.mxu0 %v851_v11 }
  0x23   : > { %786 = vmatpush3.bf16.msra.mxu1 %v852_v12  ;;  %767 = vmatprep.subr.bf16.mxu0 %v890_v1 }
  0x24   : > { %787 = vmatprep.subr.bf16.mxu1 %v890_v1 }
  0x26   : > { %768 = vmatpush3.bf16.msra.mxu0 %v853_v13 }
  0x27   : > { %788 = vmatpush3.bf16.msra.mxu1 %v854_v14  ;;  %769 = vmatprep.subr.bf16.mxu0 %v890_v1 }
  0x28   : > { %789 = vmatprep.subr.bf16.mxu1 %v890_v1 }
  0x2a   : > { %770 = vmatpush3.bf16.msra.mxu0 %v855_v16 }
  0x2b   : > { %790 = vmatpush3.bf16.msra.mxu1 %v856_v17  ;;  %795 = vmatprep.subr.bf16.mxu0 %v890_v1 }
  0x2d   : > { %772 = vmatmul.mubr.bf16.vlgmr.msra.gmra.mxu0 %v262_v18 }
  0x2e   : > { %792 = vmatmul.mubr.bf16.vlgmr.msra.gmra.mxu1 %v221_v20  ;;  %796 = vmatpush3.bf16.msra.mxu0 %v858_v19 }
  0x2f   : > { %797 = vmatprep.subr.bf16.mxu0 %v890_v1  ;;  %811 = vmatprep.mubr.msk.bf16.mxu0 %vm891_vm0, %v890_v1 }
  0x32   : > { %798 = vmatpush3.bf16.msra.mxu0 %v859_v21 }
  0x33   : > { %799 = vmatprep.subr.bf16.mxu0 %v890_v1 }
  0x36   : > { %800 = vmatpush3.bf16.msra.mxu0 %v860_v22 }
  0x37   : > { %801 = vmatprep.subr.bf16.mxu0 %v890_v1 }
  0x3a   : > { %802 = vmatpush3.bf16.msra.mxu0 %v861_v23 }
  0x3b   : > { %803 = vmatprep.subr.bf16.mxu0 %v890_v1 }
  0x3e   : > { %804 = vmatpush3.bf16.msra.mxu0 %v862_v24 }
  0x3f   : > { %805 = vmatprep.subr.bf16.mxu0 %v890_v1 }
  0x42   : > { %806 = vmatpush3.bf16.msra.mxu0 %v863_v25 }
  0x43   : > { %807 = vmatprep.subr.bf16.mxu0 %v890_v1 }
  0x46   : > { %808 = vmatpush3.bf16.msra.mxu0 %v864_v26 }
  0x47   : > { %809 = vmatprep.subr.bf16.mxu0 %v890_v1 }
  0x4a   : > { %810 = vmatpush3.bf16.msra.mxu0 %v865_v27 }
  0x4d   : > { %812 = vmatmul.mubr.bf16.vlgmr.msra.gmra.mxu0 %v440_v28 }
  0xed   : > { %v346_v29 = vpop.f32.mrf.mxu0 }
  0xee   : > { %v434_v30 = vpop.f32.mrf.mxu1 }
  0xef   : > { %v773_v31 = vpop.f32.mrf.mxu0  ;;  %v435_v37 = vadd.f32 %v434_v30, %v346_v29 }
  0xf0   : > { %v793_v32 = vpop.f32.mrf.mxu1 }
  0xf1   : > { %v349_v33 = vpop.f32.mrf.mxu0 }
  0xf2   : > { %v437_v34 = vpop.f32.mrf.mxu1 }
  0xf3   : > { %v774_v35 = vpop.f32.mrf.mxu0 }
  0xf4   : > { %v794_v36 = vpop.f32.mrf.mxu1 }
 0x10d   : > { %v540_v38 = vpop.f32.mrf.mxu0 }
 0x10e   : > { %v546_v40 = vadd.f32 %v540_v38, %v435_v37 }
 0x10f   : > { %v813_v41 = vpop.f32.mrf.mxu0 }
 0x110   : > { %v554_v42 = vadd.f32 %v724_v39, %v546_v40 }
 0x111   : > { %v543_v43 = vpop.f32.mrf.mxu0 }
 0x112   : > { %v555_v44 = vmax.f32 %v554_v42, 0.0 }
 0x113   : > { %v814_v45 = vpop.f32.mrf.mxu0 }
 0x114   : > { %v556_v46 = vpack.c.bf16 %v555_v44, %v555_v44 }
 0x116   : > { %557 = vst [vmem:[%s219_s27] sm:$0xf] %v556_v46 }
 0x117 PF: > { %s13_s14 = sadd.s32 1, %s888_s14   ;;  %s1067_s12 = smov %s884_s13 }
 0x118   : > { %p10_p5 = scmp.ge.s32.totalorder %s13_s14, 4   ;;  %s1068_s13 = smov %s1070_s15 }
 0x11a   :  { %12 = sbr.rel (!%p10_p5) target bundleno = 2 (0x2), region = 70 }

</bundles_post_ra>
